<compile_context>
chip_gen: v7x
topology: tpu7x:2x2x1
jax: 0.10.0
libtpu: 0.0.40
codegen_flags: <defaults>
</compile_context>

<pallas_src>
import jax
import jax.numpy as jnp
from jax import lax
from jax.experimental import pallas as pl
from jax.experimental.pallas import tpu as pltpu

NUM_GROUPS = 16     # GroupNorm(16, in_channels), as in the PyTorch module
GN_EPS = 1e-5       # torch.nn.GroupNorm default eps
NUM_REG = 4         # bbox regression channels
HEAD_C = 8          # fused head channels: 4 reg + 1 centerness + 3 zero pad
PAD_L = 8           # left halo width in the scratch (sublane-aligned interior)


# ----------------------------------------------------------------------------
# Fused tower kernel: [conv3x3 + GN + ReLU] * L  ->  fused heads, one image/step.
# ----------------------------------------------------------------------------
def _make_tower_kernel(H, W, C, L):
    HW = H * W
    cpg = C // NUM_GROUPS
    inv_count = 1.0 / float(HW * cpg)
    hw_f = float(HW)

    def conv3x3(pad_ref, w_ref, base, cout):
        # 3x3 "same" conv on the zero-haloed scratch: 9 shifted (HW,C)x(C,cout)
        # bf16 MXU matmuls accumulated in f32.
        acc = jnp.zeros((HW, cout), jnp.float32)
        for dy in range(3):
            for dx in range(3):
                patch = pad_ref[dy:dy + H, PAD_L - 1 + dx:PAD_L - 1 + dx + W, :]
                patch = patch.reshape(HW, C).astype(jnp.bfloat16)
                acc = acc + jnp.dot(patch, w_ref[base + dy * 3 + dx],
                                    preferred_element_type=jnp.float32)
        return acc

    def kernel(x_ref, convw_ref, convb_ref, gamma_ref, beta_ref,
               headw_ref, headb_ref, m_ref, mt_ref, out_ref, pad_ref):
        # Re-zero the scratch every grid step (cheap: ~a dozen vreg stores) so
        # the halo is zero regardless of how grid steps map onto cores; the
        # interior is overwritten with the input right below.
        pad_ref[...] = jnp.zeros_like(pad_ref)
        pad_ref[1:H + 1, PAD_L:PAD_L + W, :] = x_ref[0]

        m = m_ref[...]      # (C, G) one-hot channel -> group membership
        mt = mt_ref[...]    # (G, C)

        for l in range(L):
            z = conv3x3(pad_ref, convw_ref, l * 9, C)           # conv, no bias
            b = convb_ref[l]                                    # (1, C)
            # ---- GroupNorm(16, C), biased variance (matches torch) ----
            # Per-channel sums of z; fold the conv bias into the (1, C) stats
            # rather than touching the (HW, C) activation.
            s = jnp.sum(z, axis=0, keepdims=True)               # (1, C)
            ss = jnp.sum(z * z, axis=0, keepdims=True)          # (1, C)
            sy = s + hw_f * b                                   # sums of z + b
            ssy = ss + 2.0 * b * s + hw_f * (b * b)             # sums of (z+b)^2
            g_mean = jnp.dot(sy, m, preferred_element_type=jnp.float32) * inv_count
            g_msq = jnp.dot(ssy, m, preferred_element_type=jnp.float32) * inv_count
            g_var = g_msq - g_mean * g_mean
            mean_c = jnp.dot(g_mean, mt, preferred_element_type=jnp.float32)
            rstd_c = lax.rsqrt(
                jnp.dot(g_var, mt, preferred_element_type=jnp.float32) + GN_EPS)
            # Fold bias + GN + affine into one per-channel scale/shift.
            scale = rstd_c * gamma_ref[l]                       # (1, C)
            shift = (b - mean_c) * scale + beta_ref[l]          # (1, C)
            acc = jnp.maximum(z * scale + shift, 0.0)           # GN + ReLU
            # Write back into the zero-haloed scratch (aligned: column offset 8).
            pad_ref[1:H + 1, PAD_L:PAD_L + W, :] = acc.reshape(H, W, C)

        # Fused heads: channels 0..3 = bbox_reg (+ReLU via lower bound 0),
        # channel 4 = centerness (lower bound -inf, i.e. raw logit).
        acc = conv3x3(pad_ref, headw_ref, 0, HEAD_C) + headb_ref[0:1, :]
        acc = jnp.maximum(acc, headb_ref[1:2, :])
        out_ref[0] = acc.astype(out_ref.dtype)

    return kernel


def fcos_tower_level(packed, x_nhwc):
    """Run the full regression-head tower for one pyramid level.

    x_nhwc: (N, H, W, C) f32.  Returns (N, H*W, HEAD_C) f32 where [..., :4]
    is the bbox regression output and [..., 4] is the centerness logit.
    """
    N, H, W, C = x_nhwc.shape
    HW = H * W
    L = packed["conv_b"].shape[0]
    assert C % NUM_GROUPS == 0
    assert W % 8 == 0, "W must be a multiple of 8 (f32 sublane tile)"

    kernel = _make_tower_kernel(H, W, C, L)
    # TODO(synk): for realistic FPN levels (C=256, large H*W) tile the H axis
    # with a (num_convs + 1)-row halo so blocks fit v7x's 64 MiB VMEM and the
    # grid pipelines; whole-image blocks are fine for the small shapes here.
    return pl.pallas_call(
        kernel,
        out_shape=jax.ShapeDtypeStruct((N, HW, HEAD_C), jnp.float32),
        grid=(N,),
        in_specs=[
            pl.BlockSpec((1, H, W, C), lambda n: (n, 0, 0, 0)),     # x
            pl.BlockSpec((L * 9, C, C), lambda n: (0, 0, 0)),       # conv w (bf16)
            pl.BlockSpec((L, 1, C), lambda n: (0, 0, 0)),           # conv bias
            pl.BlockSpec((L, 1, C), lambda n: (0, 0, 0)),           # GN gamma
            pl.BlockSpec((L, 1, C), lambda n: (0, 0, 0)),           # GN beta
            pl.BlockSpec((9, C, HEAD_C), lambda n: (0, 0, 0)),      # head w (bf16)
            pl.BlockSpec((2, HEAD_C), lambda n: (0, 0)),            # head bias + lb
            pl.BlockSpec((C, NUM_GROUPS), lambda n: (0, 0)),        # membership
            pl.BlockSpec((NUM_GROUPS, C), lambda n: (0, 0)),        # membership^T
        ],
        out_specs=pl.BlockSpec((1, HW, HEAD_C), lambda n: (n, 0, 0)),
        scratch_shapes=[pltpu.VMEM((H + 2, PAD_L + W + 1, C), jnp.float32)],
        compiler_params=pltpu.CompilerParams(
            dimension_semantics=("parallel",),
            vmem_limit_bytes=32 * 1024 * 1024),
    )(x_nhwc, packed["conv_w"], packed["conv_b"], packed["conv_gamma"],
      packed["conv_beta"], packed["head_w"], packed["head_b"],
      packed["mem"], packed["mem_t"])


# ----------------------------------------------------------------------------
# Parameter init (mirrors FCOSRegressionHead.__init__ / init_weights) + packing
# ----------------------------------------------------------------------------
def init_params(key, in_channels, num_convs=3):
    keys = jax.random.split(key, num_convs + 2)
    params = {"conv": []}
    for i in range(num_convs):
        w = 0.01 * jax.random.normal(
            keys[i], (3, 3, in_channels, in_channels), jnp.float32)
        b = jnp.zeros((in_channels,), jnp.float32)
        gamma = jnp.ones((in_channels,), jnp.float32)   # GroupNorm default affine
        beta = jnp.zeros((in_channels,), jnp.float32)
        params["conv"].append((w, b, gamma, beta))
    params["bbox_reg"] = (
        0.01 * jax.random.normal(keys[num_convs], (3, 3, in_channels, 4), jnp.float32),
        jnp.zeros((4,), jnp.float32))
    params["ctr"] = (
        0.01 * jax.random.normal(keys[num_convs + 1], (3, 3, in_channels, 1), jnp.float32),
        jnp.zeros((1,), jnp.float32))
    return params


def pack_params(params):
    """Stack / reshape / cast parameters into the layout the fused kernel consumes."""
    C = params["conv"][0][0].shape[2]
    conv_w = jnp.concatenate(
        [w.reshape(9, C, C) for (w, _, _, _) in params["conv"]],
        axis=0).astype(jnp.bfloat16)                                   # (L*9, C, C)
    conv_b = jnp.stack([b for (_, b, _, _) in params["conv"]])[:, None, :]
    conv_gamma = jnp.stack([g for (_, _, g, _) in params["conv"]])[:, None, :]
    conv_beta = jnp.stack([bt for (_, _, _, bt) in params["conv"]])[:, None, :]

    w_reg, b_reg = params["bbox_reg"]
    w_ctr, b_ctr = params["ctr"]
    pad = HEAD_C - (NUM_REG + 1)
    head_w = jnp.concatenate(
        [w_reg, w_ctr, jnp.zeros((3, 3, C, pad), jnp.float32)], axis=-1)
    head_w = head_w.reshape(9, C, HEAD_C).astype(jnp.bfloat16)          # (9, C, 8)
    head_bias = jnp.concatenate(
        [b_reg, b_ctr, jnp.zeros((pad,), jnp.float32)])                 # (8,)
    # Per-channel lower bound: 0 for bbox_reg channels (ReLU), -inf elsewhere.
    head_lb = jnp.concatenate(
        [jnp.zeros((NUM_REG,), jnp.float32),
         jnp.full((HEAD_C - NUM_REG,), -jnp.inf, jnp.float32)])
    head_b = jnp.stack([head_bias, head_lb])                            # (2, 8)

    # One-hot group membership: channel c -> group c // (C // NUM_GROUPS).
    mem = (jnp.arange(C)[:, None] // (C // NUM_GROUPS)
           == jnp.arange(NUM_GROUPS)[None, :]).astype(jnp.float32)      # (C, G)
    return dict(conv_w=conv_w, conv_b=conv_b, conv_gamma=conv_gamma,
                conv_beta=conv_beta, head_w=head_w, head_b=head_b,
                mem=mem, mem_t=jnp.transpose(mem))


# ----------------------------------------------------------------------------
# FCOSRegressionHead.forward
# ----------------------------------------------------------------------------
def fcos_regression_head(packed, feature_maps_nchw):
    regression_outputs = []
    centerness_outputs = []
    for fm in feature_maps_nchw:
        x = jnp.transpose(fm, (0, 2, 3, 1))          # NCHW -> NHWC
        out = fcos_tower_level(packed, x)            # (N, H*W, 8)
        regression_outputs.append(out[..., :NUM_REG])   # == permute+reshape (N, HW, 4)
        centerness_outputs.append(out[..., NUM_REG])    # (N, HW)
    return regression_outputs, centerness_outputs


# ----------------------------------------------------------------------------
# Pure-JAX reference (for correctness check); run at HIGHEST precision.
# ----------------------------------------------------------------------------
def _ref_conv3x3(x, w, b):
    return lax.conv_general_dilated(
        x, w, (1, 1), "SAME",
        dimension_numbers=("NHWC", "HWIO", "NHWC"),
        precision=lax.Precision.HIGHEST) + b


def _ref_groupnorm(x, gamma, beta):
    N, H, W, C = x.shape
    xg = x.reshape(N, H, W, NUM_GROUPS, C // NUM_GROUPS)
    mean = xg.mean(axis=(1, 2, 4), keepdims=True)
    var = xg.var(axis=(1, 2, 4), keepdims=True)
    xg = (xg - mean) / jnp.sqrt(var + GN_EPS)
    return xg.reshape(N, H, W, C) * gamma + beta


def _ref_forward(params, feature_maps_nchw):
    regs, ctrs = [], []
    for fm in feature_maps_nchw:
        x = jnp.transpose(fm, (0, 2, 3, 1))
        for (w, b, gamma, beta) in params["conv"]:
            x = jax.nn.relu(_ref_groupnorm(_ref_conv3x3(x, w, b), gamma, beta))
        w, b = params["bbox_reg"]
        reg = jax.nn.relu(_ref_conv3x3(x, w, b))
        w, b = params["ctr"]
        ctr = _ref_conv3x3(x, w, b)
        N, H, W, _ = reg.shape
        regs.append(reg.reshape(N, H * W, 4))
        ctrs.append(ctr.reshape(N, H * W))
    return regs, ctrs


if __name__ == "__main__":
    key = jax.random.PRNGKey(0)
    pkey, k1, k2 = jax.random.split(key, 3)

    in_channels = 32   # must be a multiple of 16 (GroupNorm(16, C))
    batch = 2
    params = init_params(pkey, in_channels, num_convs=3)
    packed = pack_params(params)

    # Two pyramid levels, NCHW (matching the torch module's input convention).
    feats = [
        jax.random.normal(k1, (batch, in_channels, 16, 16), jnp.float32),
        jax.random.normal(k2, (batch, in_channels, 8, 8), jnp.float32),
    ]

    regs, ctrs = fcos_regression_head(packed, feats)
    jax.block_until_ready((regs, ctrs))

    # Validate shapes & numerics against the f32-HIGHEST reference.
    # Kernel uses bf16 MXU operands (f32 accumulation), hence the 3e-2 tolerance.
    r_regs, r_ctrs = _ref_forward(params, feats)
    for a, b in zip(regs, r_regs):
        assert a.shape == b.shape, (a.shape, b.shape)
        assert jnp.allclose(a, b, atol=3e-2, rtol=3e-2), float(jnp.max(jnp.abs(a - b)))
    for a, b in zip(ctrs, r_ctrs):
        assert a.shape == b.shape, (a.shape, b.shape)
        assert jnp.allclose(a, b, atol=3e-2, rtol=3e-2), float(jnp.max(jnp.abs(a - b)))

    print("KERNEL_OK")
</pallas_src>

<mosaic_0001>
module attributes {stable_mosaic.version = 11 : i64} {
  func.func @kernel(%arg0: i32, %arg1: memref<1x16x16x32xf32, #tpu.memory_space<vmem>>, %arg2: memref<27x32x32xbf16, #tpu.memory_space<vmem>>, %arg3: memref<3x1x32xf32, #tpu.memory_space<vmem>>, %arg4: memref<3x1x32xf32, #tpu.memory_space<vmem>>, %arg5: memref<3x1x32xf32, #tpu.memory_space<vmem>>, %arg6: memref<9x32x8xbf16, #tpu.memory_space<vmem>>, %arg7: memref<2x8xf32, #tpu.memory_space<vmem>>, %arg8: memref<32x16xf32, #tpu.memory_space<vmem>>, %arg9: memref<16x32xf32, #tpu.memory_space<vmem>>, %arg10: memref<1x256x8xf32, #tpu.memory_space<vmem>>, %arg11: memref<18x25x32xf32, #tpu.memory_space<vmem>>) attributes {dimension_semantics = [#tpu.dimension_semantics<parallel>], iteration_bounds = array<i64: 2>, scalar_prefetch = 0 : i64, scratch_operands = 1 : i64, tpu.core_type = #tpu.core_type<tc>, window_params = [{transform_indices = @transform_0, window_bounds = array<i64: 1, 16, 16, 32>}, {pipeline_mode = #tpu.pipeline_mode<synchronous>, transform_indices = @transform_1, window_bounds = array<i64: 27, 32, 32>}, {pipeline_mode = #tpu.pipeline_mode<synchronous>, transform_indices = @transform_2, window_bounds = array<i64: 3, 1, 32>}, {pipeline_mode = #tpu.pipeline_mode<synchronous>, transform_indices = @transform_3, window_bounds = array<i64: 3, 1, 32>}, {pipeline_mode = #tpu.pipeline_mode<synchronous>, transform_indices = @transform_4, window_bounds = array<i64: 3, 1, 32>}, {pipeline_mode = #tpu.pipeline_mode<synchronous>, transform_indices = @transform_5, window_bounds = array<i64: 9, 32, 8>}, {pipeline_mode = #tpu.pipeline_mode<synchronous>, transform_indices = @transform_6, window_bounds = array<i64: 2, 8>}, {pipeline_mode = #tpu.pipeline_mode<synchronous>, transform_indices = @transform_7, window_bounds = array<i64: 32, 16>}, {pipeline_mode = #tpu.pipeline_mode<synchronous>, transform_indices = @transform_8, window_bounds = array<i64: 16, 32>}, {transform_indices = @transform_9, window_bounds = array<i64: 1, 256, 8>}]} {
    %cst = arith.constant 0.000000e+00 : f32
    %0 = vector.broadcast %cst : f32 to vector<18x25x32xf32>
    %c0 = arith.constant 0 : index
    %c0_0 = arith.constant 0 : index
    %c0_1 = arith.constant 0 : index
    %1 = vector.load %arg11[%c0, %c0_0, %c0_1] : memref<18x25x32xf32, #tpu.memory_space<vmem>>, vector<18x25x32xf32>
    tpu.vector_store %arg11[%c0, %c0_0, %c0_1], %0 {strides = array<i32>} : memref<18x25x32xf32, #tpu.memory_space<vmem>>, vector<18x25x32xf32>,
    %c0_2 = arith.constant 0 : index
    %c0_3 = arith.constant 0 : index
    %c0_4 = arith.constant 0 : index
    %c0_5 = arith.constant 0 : index
    %2 = vector.load %arg1[%c0_2, %c0_3, %c0_4, %c0_5] : memref<1x16x16x32xf32, #tpu.memory_space<vmem>>, vector<1x16x16x32xf32>
    %3 = vector.shape_cast %2 : vector<1x16x16x32xf32> to vector<16x16x32xf32>
    %c1 = arith.constant 1 : index
    %c8 = arith.constant 8 : index
    %c0_6 = arith.constant 0 : index
    %4 = vector.load %arg11[%c1, %c8, %c0_6] : memref<18x25x32xf32, #tpu.memory_space<vmem>>, vector<16x16x32xf32>
    tpu.vector_store %arg11[%c1, %c8, %c0_6], %3 {strides = array<i32>} : memref<18x25x32xf32, #tpu.memory_space<vmem>>, vector<16x16x32xf32>,
    %c0_7 = arith.constant 0 : index
    %c0_8 = arith.constant 0 : index
    %5 = vector.load %arg8[%c0_7, %c0_8] : memref<32x16xf32, #tpu.memory_space<vmem>>, vector<32x16xf32>
    %c0_9 = arith.constant 0 : index
    %c0_10 = arith.constant 0 : index
    %6 = vector.load %arg9[%c0_9, %c0_10] : memref<16x32xf32, #tpu.memory_space<vmem>>, vector<16x32xf32>
    %cst_11 = arith.constant 0.000000e+00 : f32
    %7 = vector.broadcast %cst_11 : f32 to vector<256x32xf32>
    %c0_12 = arith.constant 0 : index
    %c7 = arith.constant 7 : index
    %c0_13 = arith.constant 0 : index
    %8 = vector.load %arg11[%c0_12, %c7, %c0_13] : memref<18x25x32xf32, #tpu.memory_space<vmem>>, vector<16x16x32xf32>
    %9 = vector.shape_cast %8 : vector<16x16x32xf32> to vector<256x32xf32>
    %10 = arith.truncf %9 : vector<256x32xf32> to vector<256x32xbf16>
    %c0_14 = arith.constant 0 : index
    %c0_15 = arith.constant 0 : index
    %c0_16 = arith.constant 0 : index
    %11 = vector.load %arg2[%c0_14, %c0_15, %c0_16] : memref<27x32x32xbf16, #tpu.memory_space<vmem>>, vector<1x32x32xbf16>
    %12 = vector.shape_cast %11 : vector<1x32x32xbf16> to vector<32x32xbf16>
    %cst_17 = arith.constant dense<0.000000e+00> : vector<256x32xf32>
    %13 = tpu.matmul %10, %12, %cst_17 {dimension_numbers = #tpu.dot_dimension_numbers<[1], [0], [0], [1], [0, 0, 1, 1], [], []>} : vector<256x32xbf16>, vector<32x32xbf16>, vector<256x32xf32> -> vector<256x32xf32>
    %14 = arith.addf %7, %13 : vector<256x32xf32>
    %c0_18 = arith.constant 0 : index
    %c8_19 = arith.constant 8 : index
    %c0_20 = arith.constant 0 : index
    %15 = vector.load %arg11[%c0_18, %c8_19, %c0_20] : memref<18x25x32xf32, #tpu.memory_space<vmem>>, vector<16x16x32xf32>
    %16 = vector.shape_cast %15 : vector<16x16x32xf32> to vector<256x32xf32>
    %17 = arith.truncf %16 : vector<256x32xf32> to vector<256x32xbf16>
    %c1_21 = arith.constant 1 : index
    %c0_22 = arith.constant 0 : index
    %c0_23 = arith.constant 0 : index
    %18 = vector.load %arg2[%c1_21, %c0_22, %c0_23] : memref<27x32x32xbf16, #tpu.memory_space<vmem>>, vector<1x32x32xbf16>
    %19 = vector.shape_cast %18 : vector<1x32x32xbf16> to vector<32x32xbf16>
    %cst_24 = arith.constant dense<0.000000e+00> : vector<256x32xf32>
    %20 = tpu.matmul %17, %19, %cst_24 {dimension_numbers = #tpu.dot_dimension_numbers<[1], [0], [0], [1], [0, 0, 1, 1], [], []>} : vector<256x32xbf16>, vector<32x32xbf16>, vector<256x32xf32> -> vector<256x32xf32>
    %21 = arith.addf %14, %20 : vector<256x32xf32>
    %c0_25 = arith.constant 0 : index
    %c9 = arith.constant 9 : index
    %c0_26 = arith.constant 0 : index
    %22 = vector.load %arg11[%c0_25, %c9, %c0_26] : memref<18x25x32xf32, #tpu.memory_space<vmem>>, vector<16x16x32xf32>
    %23 = vector.shape_cast %22 : vector<16x16x32xf32> to vector<256x32xf32>
    %24 = arith.truncf %23 : vector<256x32xf32> to vector<256x32xbf16>
    %c2 = arith.constant 2 : index
    %c0_27 = arith.constant 0 : index
    %c0_28 = arith.constant 0 : index
    %25 = vector.load %arg2[%c2, %c0_27, %c0_28] : memref<27x32x32xbf16, #tpu.memory_space<vmem>>, vector<1x32x32xbf16>
    %26 = vector.shape_cast %25 : vector<1x32x32xbf16> to vector<32x32xbf16>
    %cst_29 = arith.constant dense<0.000000e+00> : vector<256x32xf32>
    %27 = tpu.matmul %24, %26, %cst_29 {dimension_numbers = #tpu.dot_dimension_numbers<[1], [0], [0], [1], [0, 0, 1, 1], [], []>} : vector<256x32xbf16>, vector<32x32xbf16>, vector<256x32xf32> -> vector<256x32xf32>
    %28 = arith.addf %21, %27 : vector<256x32xf32>
    %c1_30 = arith.constant 1 : index
    %c7_31 = arith.constant 7 : index
    %c0_32 = arith.constant 0 : index
    %29 = vector.load %arg11[%c1_30, %c7_31, %c0_32] : memref<18x25x32xf32, #tpu.memory_space<vmem>>, vector<16x16x32xf32>
    %30 = vector.shape_cast %29 : vector<16x16x32xf32> to vector<256x32xf32>
    %31 = arith.truncf %30 : vector<256x32xf32> to vector<256x32xbf16>
    %c3 = arith.constant 3 : index
    %c0_33 = arith.constant 0 : index
    %c0_34 = arith.constant 0 : index
    %32 = vector.load %arg2[%c3, %c0_33, %c0_34] : memref<27x32x32xbf16, #tpu.memory_space<vmem>>, vector<1x32x32xbf16>
    %33 = vector.shape_cast %32 : vector<1x32x32xbf16> to vector<32x32xbf16>
    %cst_35 = arith.constant dense<0.000000e+00> : vector<256x32xf32>
    %34 = tpu.matmul %31, %33, %cst_35 {dimension_numbers = #tpu.dot_dimension_numbers<[1], [0], [0], [1], [0, 0, 1, 1], [], []>} : vector<256x32xbf16>, vector<32x32xbf16>, vector<256x32xf32> -> vector<256x32xf32>
    %35 = arith.addf %28, %34 : vector<256x32xf32>
    %c1_36 = arith.constant 1 : index
    %c8_37 = arith.constant 8 : index
    %c0_38 = arith.constant 0 : index
    %36 = vector.load %arg11[%c1_36, %c8_37, %c0_38] : memref<18x25x32xf32, #tpu.memory_space<vmem>>, vector<16x16x32xf32>
    %37 = vector.shape_cast %36 : vector<16x16x32xf32> to vector<256x32xf32>
    %38 = arith.truncf %37 : vector<256x32xf32> to vector<256x32xbf16>
    %c4 = arith.constant 4 : index
    %c0_39 = arith.constant 0 : index
    %c0_40 = arith.constant 0 : index
    %39 = vector.load %arg2[%c4, %c0_39, %c0_40] : memref<27x32x32xbf16, #tpu.memory_space<vmem>>, vector<1x32x32xbf16>
    %40 = vector.shape_cast %39 : vector<1x32x32xbf16> to vector<32x32xbf16>
    %cst_41 = arith.constant dense<0.000000e+00> : vector<256x32xf32>
    %41 = tpu.matmul %38, %40, %cst_41 {dimension_numbers = #tpu.dot_dimension_numbers<[1], [0], [0], [1], [0, 0, 1, 1], [], []>} : vector<256x32xbf16>, vector<32x32xbf16>, vector<256x32xf32> -> vector<256x32xf32>
    %42 = arith.addf %35, %41 : vector<256x32xf32>
    %c1_42 = arith.constant 1 : index
    %c9_43 = arith.constant 9 : index
    %c0_44 = arith.constant 0 : index
    %43 = vector.load %arg11[%c1_42, %c9_43, %c0_44] : memref<18x25x32xf32, #tpu.memory_space<vmem>>, vector<16x16x32xf32>
    %44 = vector.shape_cast %43 : vector<16x16x32xf32> to vector<256x32xf32>
    %45 = arith.truncf %44 : vector<256x32xf32> to vector<256x32xbf16>
    %c5 = arith.constant 5 : index
    %c0_45 = arith.constant 0 : index
    %c0_46 = arith.constant 0 : index
    %46 = vector.load %arg2[%c5, %c0_45, %c0_46] : memref<27x32x32xbf16, #tpu.memory_space<vmem>>, vector<1x32x32xbf16>
    %47 = vector.shape_cast %46 : vector<1x32x32xbf16> to vector<32x32xbf16>
    %cst_47 = arith.constant dense<0.000000e+00> : vector<256x32xf32>
    %48 = tpu.matmul %45, %47, %cst_47 {dimension_numbers = #tpu.dot_dimension_numbers<[1], [0], [0], [1], [0, 0, 1, 1], [], []>} : vector<256x32xbf16>, vector<32x32xbf16>, vector<256x32xf32> -> vector<256x32xf32>
    %49 = arith.addf %42, %48 : vector<256x32xf32>
    %c2_48 = arith.constant 2 : index
    %c7_49 = arith.constant 7 : index
    %c0_50 = arith.constant 0 : index
    %50 = vector.load %arg11[%c2_48, %c7_49, %c0_50] : memref<18x25x32xf32, #tpu.memory_space<vmem>>, vector<16x16x32xf32>
    %51 = vector.shape_cast %50 : vector<16x16x32xf32> to vector<256x32xf32>
    %52 = arith.truncf %51 : vector<256x32xf32> to vector<256x32xbf16>
    %c6 = arith.constant 6 : index
    %c0_51 = arith.constant 0 : index
    %c0_52 = arith.constant 0 : index
    %53 = vector.load %arg2[%c6, %c0_51, %c0_52] : memref<27x32x32xbf16, #tpu.memory_space<vmem>>, vector<1x32x32xbf16>
    %54 = vector.shape_cast %53 : vector<1x32x32xbf16> to vector<32x32xbf16>
    %cst_53 = arith.constant dense<0.000000e+00> : vector<256x32xf32>
    %55 = tpu.matmul %52, %54, %cst_53 {dimension_numbers = #tpu.dot_dimension_numbers<[1], [0], [0], [1], [0, 0, 1, 1], [], []>} : vector<256x32xbf16>, vector<32x32xbf16>, vector<256x32xf32> -> vector<256x32xf32>
    %56 = arith.addf %49, %55 : vector<256x32xf32>
    %c2_54 = arith.constant 2 : index
    %c8_55 = arith.constant 8 : index
    %c0_56 = arith.constant 0 : index
    %57 = vector.load %arg11[%c2_54, %c8_55, %c0_56] : memref<18x25x32xf32, #tpu.memory_space<vmem>>, vector<16x16x32xf32>
    %58 = vector.shape_cast %57 : vector<16x16x32xf32> to vector<256x32xf32>
    %59 = arith.truncf %58 : vector<256x32xf32> to vector<256x32xbf16>
    %c7_57 = arith.constant 7 : index
    %c0_58 = arith.constant 0 : index
    %c0_59 = arith.constant 0 : index
    %60 = vector.load %arg2[%c7_57, %c0_58, %c0_59] : memref<27x32x32xbf16, #tpu.memory_space<vmem>>, vector<1x32x32xbf16>
    %61 = vector.shape_cast %60 : vector<1x32x32xbf16> to vector<32x32xbf16>
    %cst_60 = arith.constant dense<0.000000e+00> : vector<256x32xf32>
    %62 = tpu.matmul %59, %61, %cst_60 {dimension_numbers = #tpu.dot_dimension_numbers<[1], [0], [0], [1], [0, 0, 1, 1], [], []>} : vector<256x32xbf16>, vector<32x32xbf16>, vector<256x32xf32> -> vector<256x32xf32>
    %63 = arith.addf %56, %62 : vector<256x32xf32>
    %c2_61 = arith.constant 2 : index
    %c9_62 = arith.constant 9 : index
    %c0_63 = arith.constant 0 : index
    %64 = vector.load %arg11[%c2_61, %c9_62, %c0_63] : memref<18x25x32xf32, #tpu.memory_space<vmem>>, vector<16x16x32xf32>
    %65 = vector.shape_cast %64 : vector<16x16x32xf32> to vector<256x32xf32>
    %66 = arith.truncf %65 : vector<256x32xf32> to vector<256x32xbf16>
    %c8_64 = arith.constant 8 : index
    %c0_65 = arith.constant 0 : index
    %c0_66 = arith.constant 0 : index
    %67 = vector.load %arg2[%c8_64, %c0_65, %c0_66] : memref<27x32x32xbf16, #tpu.memory_space<vmem>>, vector<1x32x32xbf16>
    %68 = vector.shape_cast %67 : vector<1x32x32xbf16> to vector<32x32xbf16>
    %cst_67 = arith.constant dense<0.000000e+00> : vector<256x32xf32>
    %69 = tpu.matmul %66, %68, %cst_67 {dimension_numbers = #tpu.dot_dimension_numbers<[1], [0], [0], [1], [0, 0, 1, 1], [], []>} : vector<256x32xbf16>, vector<32x32xbf16>, vector<256x32xf32> -> vector<256x32xf32>
    %70 = arith.addf %63, %69 : vector<256x32xf32>
    %c0_68 = arith.constant 0 : index
    %c0_69 = arith.constant 0 : index
    %c0_70 = arith.constant 0 : index
    %71 = vector.load %arg3[%c0_68, %c0_69, %c0_70] : memref<3x1x32xf32, #tpu.memory_space<vmem>>, vector<1x1x32xf32>
    %72 = vector.shape_cast %71 : vector<1x1x32xf32> to vector<1x32xf32>
    %cst_71 = arith.constant dense<0.000000e+00> : vector<32xf32>
    %73 = vector.multi_reduction <add>, %70, %cst_71 [0] : vector<256x32xf32> to vector<32xf32>
    %74 = vector.shape_cast %73 : vector<32xf32> to vector<1x32xf32>
    %75 = arith.mulf %70, %70 : vector<256x32xf32>
    %cst_72 = arith.constant dense<0.000000e+00> : vector<32xf32>
    %76 = vector.multi_reduction <add>, %75, %cst_72 [0] : vector<256x32xf32> to vector<32xf32>
    %77 = vector.shape_cast %76 : vector<32xf32> to vector<1x32xf32>
    %cst_73 = arith.constant 2.560000e+02 : f32
    %78 = vector.broadcast %cst_73 : f32 to vector<1x32xf32>
    %79 = arith.mulf %78, %72 : vector<1x32xf32>
    %80 = arith.addf %74, %79 : vector<1x32xf32>
    %cst_74 = arith.constant 2.000000e+00 : f32
    %81 = vector.broadcast %cst_74 : f32 to vector<1x32xf32>
    %82 = arith.mulf %81, %72 : vector<1x32xf32>
    %83 = arith.mulf %82, %74 : vector<1x32xf32>
    %84 = arith.addf %77, %83 : vector<1x32xf32>
    %85 = arith.mulf %72, %72 : vector<1x32xf32>
    %cst_75 = arith.constant 2.560000e+02 : f32
    %86 = vector.broadcast %cst_75 : f32 to vector<1x32xf32>
    %87 = arith.mulf %86, %85 : vector<1x32xf32>
    %88 = arith.addf %84, %87 : vector<1x32xf32>
    %cst_76 = arith.constant dense<0.000000e+00> : vector<1x16xf32>
    %89 = tpu.matmul %80, %5, %cst_76 {dimension_numbers = #tpu.dot_dimension_numbers<[1], [0], [0], [1], [0, 0, 1, 1], [], []>} : vector<1x32xf32>, vector<32x16xf32>, vector<1x16xf32> -> vector<1x16xf32>
    %cst_77 = arith.constant 0.001953125 : f32
    %90 = vector.broadcast %cst_77 : f32 to vector<1x16xf32>
    %91 = arith.mulf %89, %90 : vector<1x16xf32>
    %cst_78 = arith.constant dense<0.000000e+00> : vector<1x16xf32>
    %92 = tpu.matmul %88, %5, %cst_78 {dimension_numbers = #tpu.dot_dimension_numbers<[1], [0], [0], [1], [0, 0, 1, 1], [], []>} : vector<1x32xf32>, vector<32x16xf32>, vector<1x16xf32> -> vector<1x16xf32>
    %cst_79 = arith.constant 0.001953125 : f32
    %93 = vector.broadcast %cst_79 : f32 to vector<1x16xf32>
    %94 = arith.mulf %92, %93 : vector<1x16xf32>
    %95 = arith.mulf %91, %91 : vector<1x16xf32>
    %96 = arith.subf %94, %95 : vector<1x16xf32>
    %cst_80 = arith.constant dense<0.000000e+00> : vector<1x32xf32>
    %97 = tpu.matmul %91, %6, %cst_80 {dimension_numbers = #tpu.dot_dimension_numbers<[1], [0], [0], [1], [0, 0, 1, 1], [], []>} : vector<1x16xf32>, vector<16x32xf32>, vector<1x32xf32> -> vector<1x32xf32>
    %cst_81 = arith.constant dense<0.000000e+00> : vector<1x32xf32>
    %98 = tpu.matmul %96, %6, %cst_81 {dimension_numbers = #tpu.dot_dimension_numbers<[1], [0], [0], [1], [0, 0, 1, 1], [], []>} : vector<1x16xf32>, vector<16x32xf32>, vector<1x32xf32> -> vector<1x32xf32>
    %cst_82 = arith.constant 9.99999974E-6 : f32
    %99 = vector.broadcast %cst_82 : f32 to vector<1x32xf32>
    %100 = arith.addf %98, %99 : vector<1x32xf32>
    %101 = math.rsqrt %100 : vector<1x32xf32>
    %c0_83 = arith.constant 0 : index
    %c0_84 = arith.constant 0 : index
    %c0_85 = arith.constant 0 : index
    %102 = vector.load %arg4[%c0_83, %c0_84, %c0_85] : memref<3x1x32xf32, #tpu.memory_space<vmem>>, vector<1x1x32xf32>
    %103 = vector.shape_cast %102 : vector<1x1x32xf32> to vector<1x32xf32>
    %104 = arith.mulf %101, %103 : vector<1x32xf32>
    %105 = arith.subf %72, %97 : vector<1x32xf32>
    %106 = arith.mulf %105, %104 : vector<1x32xf32>
    %c0_86 = arith.constant 0 : index
    %c0_87 = arith.constant 0 : index
    %c0_88 = arith.constant 0 : index
    %107 = vector.load %arg5[%c0_86, %c0_87, %c0_88] : memref<3x1x32xf32, #tpu.memory_space<vmem>>, vector<1x1x32xf32>
    %108 = vector.shape_cast %107 : vector<1x1x32xf32> to vector<1x32xf32>
    %109 = arith.addf %106, %108 : vector<1x32xf32>
    %110 = vector.broadcast %104 : vector<1x32xf32> to vector<256x32xf32>
    %111 = arith.mulf %70, %110 : vector<256x32xf32>
    %112 = vector.broadcast %109 : vector<1x32xf32> to vector<256x32xf32>
    %113 = arith.addf %111, %112 : vector<256x32xf32>
    %cst_89 = arith.constant 0.000000e+00 : f32
    %114 = vector.broadcast %cst_89 : f32 to vector<256x32xf32>
    %115 = arith.maximumf %113, %114 : vector<256x32xf32>
    %116 = vector.shape_cast %115 : vector<256x32xf32> to vector<16x16x32xf32>
    %c1_90 = arith.constant 1 : index
    %c8_91 = arith.constant 8 : index
    %c0_92 = arith.constant 0 : index
    %117 = vector.load %arg11[%c1_90, %c8_91, %c0_92] : memref<18x25x32xf32, #tpu.memory_space<vmem>>, vector<16x16x32xf32>
    tpu.vector_store %arg11[%c1_90, %c8_91, %c0_92], %116 {strides = array<i32>} : memref<18x25x32xf32, #tpu.memory_space<vmem>>, vector<16x16x32xf32>,
    %cst_93 = arith.constant 0.000000e+00 : f32
    %118 = vector.broadcast %cst_93 : f32 to vector<256x32xf32>
    %c0_94 = arith.constant 0 : index
    %c7_95 = arith.constant 7 : index
    %c0_96 = arith.constant 0 : index
    %119 = vector.load %arg11[%c0_94, %c7_95, %c0_96] : memref<18x25x32xf32, #tpu.memory_space<vmem>>, vector<16x16x32xf32>
    %120 = vector.shape_cast %119 : vector<16x16x32xf32> to vector<256x32xf32>
    %121 = arith.truncf %120 : vector<256x32xf32> to vector<256x32xbf16>
    %c9_97 = arith.constant 9 : index
    %c0_98 = arith.constant 0 : index
    %c0_99 = arith.constant 0 : index
    %122 = vector.load %arg2[%c9_97, %c0_98, %c0_99] : memref<27x32x32xbf16, #tpu.memory_space<vmem>>, vector<1x32x32xbf16>
    %123 = vector.shape_cast %122 : vector<1x32x32xbf16> to vector<32x32xbf16>
    %cst_100 = arith.constant dense<0.000000e+00> : vector<256x32xf32>
    %124 = tpu.matmul %121, %123, %cst_100 {dimension_numbers = #tpu.dot_dimension_numbers<[1], [0], [0], [1], [0, 0, 1, 1], [], []>} : vector<256x32xbf16>, vector<32x32xbf16>, vector<256x32xf32> -> vector<256x32xf32>
    %125 = arith.addf %118, %124 : vector<256x32xf32>
    %c0_101 = arith.constant 0 : index
    %c8_102 = arith.constant 8 : index
    %c0_103 = arith.constant 0 : index
    %126 = vector.load %arg11[%c0_101, %c8_102, %c0_103] : memref<18x25x32xf32, #tpu.memory_space<vmem>>, vector<16x16x32xf32>
    %127 = vector.shape_cast %126 : vector<16x16x32xf32> to vector<256x32xf32>
    %128 = arith.truncf %127 : vector<256x32xf32> to vector<256x32xbf16>
    %c10 = arith.constant 10 : index
    %c0_104 = arith.constant 0 : index
    %c0_105 = arith.constant 0 : index
    %129 = vector.load %arg2[%c10, %c0_104, %c0_105] : memref<27x32x32xbf16, #tpu.memory_space<vmem>>, vector<1x32x32xbf16>
    %130 = vector.shape_cast %129 : vector<1x32x32xbf16> to vector<32x32xbf16>
    %cst_106 = arith.constant dense<0.000000e+00> : vector<256x32xf32>
    %131 = tpu.matmul %128, %130, %cst_106 {dimension_numbers = #tpu.dot_dimension_numbers<[1], [0], [0], [1], [0, 0, 1, 1], [], []>} : vector<256x32xbf16>, vector<32x32xbf16>, vector<256x32xf32> -> vector<256x32xf32>
    %132 = arith.addf %125, %131 : vector<256x32xf32>
    %c0_107 = arith.constant 0 : index
    %c9_108 = arith.constant 9 : index
    %c0_109 = arith.constant 0 : index
    %133 = vector.load %arg11[%c0_107, %c9_108, %c0_109] : memref<18x25x32xf32, #tpu.memory_space<vmem>>, vector<16x16x32xf32>
    %134 = vector.shape_cast %133 : vector<16x16x32xf32> to vector<256x32xf32>
    %135 = arith.truncf %134 : vector<256x32xf32> to vector<256x32xbf16>
    %c11 = arith.constant 11 : index
    %c0_110 = arith.constant 0 : index
    %c0_111 = arith.constant 0 : index
    %136 = vector.load %arg2[%c11, %c0_110, %c0_111] : memref<27x32x32xbf16, #tpu.memory_space<vmem>>, vector<1x32x32xbf16>
    %137 = vector.shape_cast %136 : vector<1x32x32xbf16> to vector<32x32xbf16>
    %cst_112 = arith.constant dense<0.000000e+00> : vector<256x32xf32>
    %138 = tpu.matmul %135, %137, %cst_112 {dimension_numbers = #tpu.dot_dimension_numbers<[1], [0], [0], [1], [0, 0, 1, 1], [], []>} : vector<256x32xbf16>, vector<32x32xbf16>, vector<256x32xf32> -> vector<256x32xf32>
    %139 = arith.addf %132, %138 : vector<256x32xf32>
    %c1_113 = arith.constant 1 : index
    %c7_114 = arith.constant 7 : index
    %c0_115 = arith.constant 0 : index
    %140 = vector.load %arg11[%c1_113, %c7_114, %c0_115] : memref<18x25x32xf32, #tpu.memory_space<vmem>>, vector<16x16x32xf32>
    %141 = vector.shape_cast %140 : vector<16x16x32xf32> to vector<256x32xf32>
    %142 = arith.truncf %141 : vector<256x32xf32> to vector<256x32xbf16>
    %c12 = arith.constant 12 : index
    %c0_116 = arith.constant 0 : index
    %c0_117 = arith.constant 0 : index
    %143 = vector.load %arg2[%c12, %c0_116, %c0_117] : memref<27x32x32xbf16, #tpu.memory_space<vmem>>, vector<1x32x32xbf16>
    %144 = vector.shape_cast %143 : vector<1x32x32xbf16> to vector<32x32xbf16>
    %cst_118 = arith.constant dense<0.000000e+00> : vector<256x32xf32>
    %145 = tpu.matmul %142, %144, %cst_118 {dimension_numbers = #tpu.dot_dimension_numbers<[1], [0], [0], [1], [0, 0, 1, 1], [], []>} : vector<256x32xbf16>, vector<32x32xbf16>, vector<256x32xf32> -> vector<256x32xf32>
    %146 = arith.addf %139, %145 : vector<256x32xf32>
    %c1_119 = arith.constant 1 : index
    %c8_120 = arith.constant 8 : index
    %c0_121 = arith.constant 0 : index
    %147 = vector.load %arg11[%c1_119, %c8_120, %c0_121] : memref<18x25x32xf32, #tpu.memory_space<vmem>>, vector<16x16x32xf32>
    %148 = vector.shape_cast %147 : vector<16x16x32xf32> to vector<256x32xf32>
    %149 = arith.truncf %148 : vector<256x32xf32> to vector<256x32xbf16>
    %c13 = arith.constant 13 : index
    %c0_122 = arith.constant 0 : index
    %c0_123 = arith.constant 0 : index
    %150 = vector.load %arg2[%c13, %c0_122, %c0_123] : memref<27x32x32xbf16, #tpu.memory_space<vmem>>, vector<1x32x32xbf16>
    %151 = vector.shape_cast %150 : vector<1x32x32xbf16> to vector<32x32xbf16>
    %cst_124 = arith.constant dense<0.000000e+00> : vector<256x32xf32>
    %152 = tpu.matmul %149, %151, %cst_124 {dimension_numbers = #tpu.dot_dimension_numbers<[1], [0], [0], [1], [0, 0, 1, 1], [], []>} : vector<256x32xbf16>, vector<32x32xbf16>, vector<256x32xf32> -> vector<256x32xf32>
    %153 = arith.addf %146, %152 : vector<256x32xf32>
    %c1_125 = arith.constant 1 : index
    %c9_126 = arith.constant 9 : index
    %c0_127 = arith.constant 0 : index
    %154 = vector.load %arg11[%c1_125, %c9_126, %c0_127] : memref<18x25x32xf32, #tpu.memory_space<vmem>>, vector<16x16x32xf32>
    %155 = vector.shape_cast %154 : vector<16x16x32xf32> to vector<256x32xf32>
    %156 = arith.truncf %155 : vector<256x32xf32> to vector<256x32xbf16>
    %c14 = arith.constant 14 : index
    %c0_128 = arith.constant 0 : index
    %c0_129 = arith.constant 0 : index
    %157 = vector.load %arg2[%c14, %c0_128, %c0_129] : memref<27x32x32xbf16, #tpu.memory_space<vmem>>, vector<1x32x32xbf16>
    %158 = vector.shape_cast %157 : vector<1x32x32xbf16> to vector<32x32xbf16>
    %cst_130 = arith.constant dense<0.000000e+00> : vector<256x32xf32>
    %159 = tpu.matmul %156, %158, %cst_130 {dimension_numbers = #tpu.dot_dimension_numbers<[1], [0], [0], [1], [0, 0, 1, 1], [], []>} : vector<256x32xbf16>, vector<32x32xbf16>, vector<256x32xf32> -> vector<256x32xf32>
    %160 = arith.addf %153, %159 : vector<256x32xf32>
    %c2_131 = arith.constant 2 : index
    %c7_132 = arith.constant 7 : index
    %c0_133 = arith.constant 0 : index
    %161 = vector.load %arg11[%c2_131, %c7_132, %c0_133] : memref<18x25x32xf32, #tpu.memory_space<vmem>>, vector<16x16x32xf32>
    %162 = vector.shape_cast %161 : vector<16x16x32xf32> to vector<256x32xf32>
    %163 = arith.truncf %162 : vector<256x32xf32> to vector<256x32xbf16>
    %c15 = arith.constant 15 : index
    %c0_134 = arith.constant 0 : index
    %c0_135 = arith.constant 0 : index
    %164 = vector.load %arg2[%c15, %c0_134, %c0_135] : memref<27x32x32xbf16, #tpu.memory_space<vmem>>, vector<1x32x32xbf16>
    %165 = vector.shape_cast %164 : vector<1x32x32xbf16> to vector<32x32xbf16>
    %cst_136 = arith.constant dense<0.000000e+00> : vector<256x32xf32>
    %166 = tpu.matmul %163, %165, %cst_136 {dimension_numbers = #tpu.dot_dimension_numbers<[1], [0], [0], [1], [0, 0, 1, 1], [], []>} : vector<256x32xbf16>, vector<32x32xbf16>, vector<256x32xf32> -> vector<256x32xf32>
    %167 = arith.addf %160, %166 : vector<256x32xf32>
    %c2_137 = arith.constant 2 : index
    %c8_138 = arith.constant 8 : index
    %c0_139 = arith.constant 0 : index
    %168 = vector.load %arg11[%c2_137, %c8_138, %c0_139] : memref<18x25x32xf32, #tpu.memory_space<vmem>>, vector<16x16x32xf32>
    %169 = vector.shape_cast %168 : vector<16x16x32xf32> to vector<256x32xf32>
    %170 = arith.truncf %169 : vector<256x32xf32> to vector<256x32xbf16>
    %c16 = arith.constant 16 : index
    %c0_140 = arith.constant 0 : index
    %c0_141 = arith.constant 0 : index
    %171 = vector.load %arg2[%c16, %c0_140, %c0_141] : memref<27x32x32xbf16, #tpu.memory_space<vmem>>, vector<1x32x32xbf16>
    %172 = vector.shape_cast %171 : vector<1x32x32xbf16> to vector<32x32xbf16>
    %cst_142 = arith.constant dense<0.000000e+00> : vector<256x32xf32>
    %173 = tpu.matmul %170, %172, %cst_142 {dimension_numbers = #tpu.dot_dimension_numbers<[1], [0], [0], [1], [0, 0, 1, 1], [], []>} : vector<256x32xbf16>, vector<32x32xbf16>, vector<256x32xf32> -> vector<256x32xf32>
    %174 = arith.addf %167, %173 : vector<256x32xf32>
    %c2_143 = arith.constant 2 : index
    %c9_144 = arith.constant 9 : index
    %c0_145 = arith.constant 0 : index
    %175 = vector.load %arg11[%c2_143, %c9_144, %c0_145] : memref<18x25x32xf32, #tpu.memory_space<vmem>>, vector<16x16x32xf32>
    %176 = vector.shape_cast %175 : vector<16x16x32xf32> to vector<256x32xf32>
    %177 = arith.truncf %176 : vector<256x32xf32> to vector<256x32xbf16>
    %c17 = arith.constant 17 : index
    %c0_146 = arith.constant 0 : index
    %c0_147 = arith.constant 0 : index
    %178 = vector.load %arg2[%c17, %c0_146, %c0_147] : memref<27x32x32xbf16, #tpu.memory_space<vmem>>, vector<1x32x32xbf16>
    %179 = vector.shape_cast %178 : vector<1x32x32xbf16> to vector<32x32xbf16>
    %cst_148 = arith.constant dense<0.000000e+00> : vector<256x32xf32>
    %180 = tpu.matmul %177, %179, %cst_148 {dimension_numbers = #tpu.dot_dimension_numbers<[1], [0], [0], [1], [0, 0, 1, 1], [], []>} : vector<256x32xbf16>, vector<32x32xbf16>, vector<256x32xf32> -> vector<256x32xf32>
    %181 = arith.addf %174, %180 : vector<256x32xf32>
    %c1_149 = arith.constant 1 : index
    %c0_150 = arith.constant 0 : index
    %c0_151 = arith.constant 0 : index
    %182 = vector.load %arg3[%c1_149, %c0_150, %c0_151] : memref<3x1x32xf32, #tpu.memory_space<vmem>>, vector<1x1x32xf32>
    %183 = vector.shape_cast %182 : vector<1x1x32xf32> to vector<1x32xf32>
    %cst_152 = arith.constant dense<0.000000e+00> : vector<32xf32>
    %184 = vector.multi_reduction <add>, %181, %cst_152 [0] : vector<256x32xf32> to vector<32xf32>
    %185 = vector.shape_cast %184 : vector<32xf32> to vector<1x32xf32>
    %186 = arith.mulf %181, %181 : vector<256x32xf32>
    %cst_153 = arith.constant dense<0.000000e+00> : vector<32xf32>
    %187 = vector.multi_reduction <add>, %186, %cst_153 [0] : vector<256x32xf32> to vector<32xf32>
    %188 = vector.shape_cast %187 : vector<32xf32> to vector<1x32xf32>
    %cst_154 = arith.constant 2.560000e+02 : f32
    %189 = vector.broadcast %cst_154 : f32 to vector<1x32xf32>
    %190 = arith.mulf %189, %183 : vector<1x32xf32>
    %191 = arith.addf %185, %190 : vector<1x32xf32>
    %cst_155 = arith.constant 2.000000e+00 : f32
    %192 = vector.broadcast %cst_155 : f32 to vector<1x32xf32>
    %193 = arith.mulf %192, %183 : vector<1x32xf32>
    %194 = arith.mulf %193, %185 : vector<1x32xf32>
    %195 = arith.addf %188, %194 : vector<1x32xf32>
    %196 = arith.mulf %183, %183 : vector<1x32xf32>
    %cst_156 = arith.constant 2.560000e+02 : f32
    %197 = vector.broadcast %cst_156 : f32 to vector<1x32xf32>
    %198 = arith.mulf %197, %196 : vector<1x32xf32>
    %199 = arith.addf %195, %198 : vector<1x32xf32>
    %cst_157 = arith.constant dense<0.000000e+00> : vector<1x16xf32>
    %200 = tpu.matmul %191, %5, %cst_157 {dimension_numbers = #tpu.dot_dimension_numbers<[1], [0], [0], [1], [0, 0, 1, 1], [], []>} : vector<1x32xf32>, vector<32x16xf32>, vector<1x16xf32> -> vector<1x16xf32>
    %cst_158 = arith.constant 0.001953125 : f32
    %201 = vector.broadcast %cst_158 : f32 to vector<1x16xf32>
    %202 = arith.mulf %200, %201 : vector<1x16xf32>
    %cst_159 = arith.constant dense<0.000000e+00> : vector<1x16xf32>
    %203 = tpu.matmul %199, %5, %cst_159 {dimension_numbers = #tpu.dot_dimension_numbers<[1], [0], [0], [1], [0, 0, 1, 1], [], []>} : vector<1x32xf32>, vector<32x16xf32>, vector<1x16xf32> -> vector<1x16xf32>
    %cst_160 = arith.constant 0.001953125 : f32
    %204 = vector.broadcast %cst_160 : f32 to vector<1x16xf32>
    %205 = arith.mulf %203, %204 : vector<1x16xf32>
    %206 = arith.mulf %202, %202 : vector<1x16xf32>
    %207 = arith.subf %205, %206 : vector<1x16xf32>
    %cst_161 = arith.constant dense<0.000000e+00> : vector<1x32xf32>
    %208 = tpu.matmul %202, %6, %cst_161 {dimension_numbers = #tpu.dot_dimension_numbers<[1], [0], [0], [1], [0, 0, 1, 1], [], []>} : vector<1x16xf32>, vector<16x32xf32>, vector<1x32xf32> -> vector<1x32xf32>
    %cst_162 = arith.constant dense<0.000000e+00> : vector<1x32xf32>
    %209 = tpu.matmul %207, %6, %cst_162 {dimension_numbers = #tpu.dot_dimension_numbers<[1], [0], [0], [1], [0, 0, 1, 1], [], []>} : vector<1x16xf32>, vector<16x32xf32>, vector<1x32xf32> -> vector<1x32xf32>
    %cst_163 = arith.constant 9.99999974E-6 : f32
    %210 = vector.broadcast %cst_163 : f32 to vector<1x32xf32>
    %211 = arith.addf %209, %210 : vector<1x32xf32>
    %212 = math.rsqrt %211 : vector<1x32xf32>
    %c1_164 = arith.constant 1 : index
    %c0_165 = arith.constant 0 : index
    %c0_166 = arith.constant 0 : index
    %213 = vector.load %arg4[%c1_164, %c0_165, %c0_166] : memref<3x1x32xf32, #tpu.memory_space<vmem>>, vector<1x1x32xf32>
    %214 = vector.shape_cast %213 : vector<1x1x32xf32> to vector<1x32xf32>
    %215 = arith.mulf %212, %214 : vector<1x32xf32>
    %216 = arith.subf %183, %208 : vector<1x32xf32>
    %217 = arith.mulf %216, %215 : vector<1x32xf32>
    %c1_167 = arith.constant 1 : index
    %c0_168 = arith.constant 0 : index
    %c0_169 = arith.constant 0 : index
    %218 = vector.load %arg5[%c1_167, %c0_168, %c0_169] : memref<3x1x32xf32, #tpu.memory_space<vmem>>, vector<1x1x32xf32>
    %219 = vector.shape_cast %218 : vector<1x1x32xf32> to vector<1x32xf32>
    %220 = arith.addf %217, %219 : vector<1x32xf32>
    %221 = vector.broadcast %215 : vector<1x32xf32> to vector<256x32xf32>
    %222 = arith.mulf %181, %221 : vector<256x32xf32>
    %223 = vector.broadcast %220 : vector<1x32xf32> to vector<256x32xf32>
    %224 = arith.addf %222, %223 : vector<256x32xf32>
    %cst_170 = arith.constant 0.000000e+00 : f32
    %225 = vector.broadcast %cst_170 : f32 to vector<256x32xf32>
    %226 = arith.maximumf %224, %225 : vector<256x32xf32>
    %227 = vector.shape_cast %226 : vector<256x32xf32> to vector<16x16x32xf32>
    %c1_171 = arith.constant 1 : index
    %c8_172 = arith.constant 8 : index
    %c0_173 = arith.constant 0 : index
    %228 = vector.load %arg11[%c1_171, %c8_172, %c0_173] : memref<18x25x32xf32, #tpu.memory_space<vmem>>, vector<16x16x32xf32>
    tpu.vector_store %arg11[%c1_171, %c8_172, %c0_173], %227 {strides = array<i32>} : memref<18x25x32xf32, #tpu.memory_space<vmem>>, vector<16x16x32xf32>,
    %cst_174 = arith.constant 0.000000e+00 : f32
    %229 = vector.broadcast %cst_174 : f32 to vector<256x32xf32>
    %c0_175 = arith.constant 0 : index
    %c7_176 = arith.constant 7 : index
    %c0_177 = arith.constant 0 : index
    %230 = vector.load %arg11[%c0_175, %c7_176, %c0_177] : memref<18x25x32xf32, #tpu.memory_space<vmem>>, vector<16x16x32xf32>
    %231 = vector.shape_cast %230 : vector<16x16x32xf32> to vector<256x32xf32>
    %232 = arith.truncf %231 : vector<256x32xf32> to vector<256x32xbf16>
    %c18 = arith.constant 18 : index
    %c0_178 = arith.constant 0 : index
    %c0_179 = arith.constant 0 : index
    %233 = vector.load %arg2[%c18, %c0_178, %c0_179] : memref<27x32x32xbf16, #tpu.memory_space<vmem>>, vector<1x32x32xbf16>
    %234 = vector.shape_cast %233 : vector<1x32x32xbf16> to vector<32x32xbf16>
    %cst_180 = arith.constant dense<0.000000e+00> : vector<256x32xf32>
    %235 = tpu.matmul %232, %234, %cst_180 {dimension_numbers = #tpu.dot_dimension_numbers<[1], [0], [0], [1], [0, 0, 1, 1], [], []>} : vector<256x32xbf16>, vector<32x32xbf16>, vector<256x32xf32> -> vector<256x32xf32>
    %236 = arith.addf %229, %235 : vector<256x32xf32>
    %c0_181 = arith.constant 0 : index
    %c8_182 = arith.constant 8 : index
    %c0_183 = arith.constant 0 : index
    %237 = vector.load %arg11[%c0_181, %c8_182, %c0_183] : memref<18x25x32xf32, #tpu.memory_space<vmem>>, vector<16x16x32xf32>
    %238 = vector.shape_cast %237 : vector<16x16x32xf32> to vector<256x32xf32>
    %239 = arith.truncf %238 : vector<256x32xf32> to vector<256x32xbf16>
    %c19 = arith.constant 19 : index
    %c0_184 = arith.constant 0 : index
    %c0_185 = arith.constant 0 : index
    %240 = vector.load %arg2[%c19, %c0_184, %c0_185] : memref<27x32x32xbf16, #tpu.memory_space<vmem>>, vector<1x32x32xbf16>
    %241 = vector.shape_cast %240 : vector<1x32x32xbf16> to vector<32x32xbf16>
    %cst_186 = arith.constant dense<0.000000e+00> : vector<256x32xf32>
    %242 = tpu.matmul %239, %241, %cst_186 {dimension_numbers = #tpu.dot_dimension_numbers<[1], [0], [0], [1], [0, 0, 1, 1], [], []>} : vector<256x32xbf16>, vector<32x32xbf16>, vector<256x32xf32> -> vector<256x32xf32>
    %243 = arith.addf %236, %242 : vector<256x32xf32>
    %c0_187 = arith.constant 0 : index
    %c9_188 = arith.constant 9 : index
    %c0_189 = arith.constant 0 : index
    %244 = vector.load %arg11[%c0_187, %c9_188, %c0_189] : memref<18x25x32xf32, #tpu.memory_space<vmem>>, vector<16x16x32xf32>
    %245 = vector.shape_cast %244 : vector<16x16x32xf32> to vector<256x32xf32>
    %246 = arith.truncf %245 : vector<256x32xf32> to vector<256x32xbf16>
    %c20 = arith.constant 20 : index
    %c0_190 = arith.constant 0 : index
    %c0_191 = arith.constant 0 : index
    %247 = vector.load %arg2[%c20, %c0_190, %c0_191] : memref<27x32x32xbf16, #tpu.memory_space<vmem>>, vector<1x32x32xbf16>
    %248 = vector.shape_cast %247 : vector<1x32x32xbf16> to vector<32x32xbf16>
    %cst_192 = arith.constant dense<0.000000e+00> : vector<256x32xf32>
    %249 = tpu.matmul %246, %248, %cst_192 {dimension_numbers = #tpu.dot_dimension_numbers<[1], [0], [0], [1], [0, 0, 1, 1], [], []>} : vector<256x32xbf16>, vector<32x32xbf16>, vector<256x32xf32> -> vector<256x32xf32>
    %250 = arith.addf %243, %249 : vector<256x32xf32>
    %c1_193 = arith.constant 1 : index
    %c7_194 = arith.constant 7 : index
    %c0_195 = arith.constant 0 : index
    %251 = vector.load %arg11[%c1_193, %c7_194, %c0_195] : memref<18x25x32xf32, #tpu.memory_space<vmem>>, vector<16x16x32xf32>
    %252 = vector.shape_cast %251 : vector<16x16x32xf32> to vector<256x32xf32>
    %253 = arith.truncf %252 : vector<256x32xf32> to vector<256x32xbf16>
    %c21 = arith.constant 21 : index
    %c0_196 = arith.constant 0 : index
    %c0_197 = arith.constant 0 : index
    %254 = vector.load %arg2[%c21, %c0_196, %c0_197] : memref<27x32x32xbf16, #tpu.memory_space<vmem>>, vector<1x32x32xbf16>
    %255 = vector.shape_cast %254 : vector<1x32x32xbf16> to vector<32x32xbf16>
    %cst_198 = arith.constant dense<0.000000e+00> : vector<256x32xf32>
    %256 = tpu.matmul %253, %255, %cst_198 {dimension_numbers = #tpu.dot_dimension_numbers<[1], [0], [0], [1], [0, 0, 1, 1], [], []>} : vector<256x32xbf16>, vector<32x32xbf16>, vector<256x32xf32> -> vector<256x32xf32>
    %257 = arith.addf %250, %256 : vector<256x32xf32>
    %c1_199 = arith.constant 1 : index
    %c8_200 = arith.constant 8 : index
    %c0_201 = arith.constant 0 : index
    %258 = vector.load %arg11[%c1_199, %c8_200, %c0_201] : memref<18x25x32xf32, #tpu.memory_space<vmem>>, vector<16x16x32xf32>
    %259 = vector.shape_cast %258 : vector<16x16x32xf32> to vector<256x32xf32>
    %260 = arith.truncf %259 : vector<256x32xf32> to vector<256x32xbf16>
    %c22 = arith.constant 22 : index
    %c0_202 = arith.constant 0 : index
    %c0_203 = arith.constant 0 : index
    %261 = vector.load %arg2[%c22, %c0_202, %c0_203] : memref<27x32x32xbf16, #tpu.memory_space<vmem>>, vector<1x32x32xbf16>
    %262 = vector.shape_cast %261 : vector<1x32x32xbf16> to vector<32x32xbf16>
    %cst_204 = arith.constant dense<0.000000e+00> : vector<256x32xf32>
    %263 = tpu.matmul %260, %262, %cst_204 {dimension_numbers = #tpu.dot_dimension_numbers<[1], [0], [0], [1], [0, 0, 1, 1], [], []>} : vector<256x32xbf16>, vector<32x32xbf16>, vector<256x32xf32> -> vector<256x32xf32>
    %264 = arith.addf %257, %263 : vector<256x32xf32>
    %c1_205 = arith.constant 1 : index
    %c9_206 = arith.constant 9 : index
    %c0_207 = arith.constant 0 : index
    %265 = vector.load %arg11[%c1_205, %c9_206, %c0_207] : memref<18x25x32xf32, #tpu.memory_space<vmem>>, vector<16x16x32xf32>
    %266 = vector.shape_cast %265 : vector<16x16x32xf32> to vector<256x32xf32>
    %267 = arith.truncf %266 : vector<256x32xf32> to vector<256x32xbf16>
    %c23 = arith.constant 23 : index
    %c0_208 = arith.constant 0 : index
    %c0_209 = arith.constant 0 : index
    %268 = vector.load %arg2[%c23, %c0_208, %c0_209] : memref<27x32x32xbf16, #tpu.memory_space<vmem>>, vector<1x32x32xbf16>
    %269 = vector.shape_cast %268 : vector<1x32x32xbf16> to vector<32x32xbf16>
    %cst_210 = arith.constant dense<0.000000e+00> : vector<256x32xf32>
    %270 = tpu.matmul %267, %269, %cst_210 {dimension_numbers = #tpu.dot_dimension_numbers<[1], [0], [0], [1], [0, 0, 1, 1], [], []>} : vector<256x32xbf16>, vector<32x32xbf16>, vector<256x32xf32> -> vector<256x32xf32>
    %271 = arith.addf %264, %270 : vector<256x32xf32>
    %c2_211 = arith.constant 2 : index
    %c7_212 = arith.constant 7 : index
    %c0_213 = arith.constant 0 : index
    %272 = vector.load %arg11[%c2_211, %c7_212, %c0_213] : memref<18x25x32xf32, #tpu.memory_space<vmem>>, vector<16x16x32xf32>
    %273 = vector.shape_cast %272 : vector<16x16x32xf32> to vector<256x32xf32>
    %274 = arith.truncf %273 : vector<256x32xf32> to vector<256x32xbf16>
    %c24 = arith.constant 24 : index
    %c0_214 = arith.constant 0 : index
    %c0_215 = arith.constant 0 : index
    %275 = vector.load %arg2[%c24, %c0_214, %c0_215] : memref<27x32x32xbf16, #tpu.memory_space<vmem>>, vector<1x32x32xbf16>
    %276 = vector.shape_cast %275 : vector<1x32x32xbf16> to vector<32x32xbf16>
    %cst_216 = arith.constant dense<0.000000e+00> : vector<256x32xf32>
    %277 = tpu.matmul %274, %276, %cst_216 {dimension_numbers = #tpu.dot_dimension_numbers<[1], [0], [0], [1], [0, 0, 1, 1], [], []>} : vector<256x32xbf16>, vector<32x32xbf16>, vector<256x32xf32> -> vector<256x32xf32>
    %278 = arith.addf %271, %277 : vector<256x32xf32>
    %c2_217 = arith.constant 2 : index
    %c8_218 = arith.constant 8 : index
    %c0_219 = arith.constant 0 : index
    %279 = vector.load %arg11[%c2_217, %c8_218, %c0_219] : memref<18x25x32xf32, #tpu.memory_space<vmem>>, vector<16x16x32xf32>
    %280 = vector.shape_cast %279 : vector<16x16x32xf32> to vector<256x32xf32>
    %281 = arith.truncf %280 : vector<256x32xf32> to vector<256x32xbf16>
    %c25 = arith.constant 25 : index
    %c0_220 = arith.constant 0 : index
    %c0_221 = arith.constant 0 : index
    %282 = vector.load %arg2[%c25, %c0_220, %c0_221] : memref<27x32x32xbf16, #tpu.memory_space<vmem>>, vector<1x32x32xbf16>
    %283 = vector.shape_cast %282 : vector<1x32x32xbf16> to vector<32x32xbf16>
    %cst_222 = arith.constant dense<0.000000e+00> : vector<256x32xf32>
    %284 = tpu.matmul %281, %283, %cst_222 {dimension_numbers = #tpu.dot_dimension_numbers<[1], [0], [0], [1], [0, 0, 1, 1], [], []>} : vector<256x32xbf16>, vector<32x32xbf16>, vector<256x32xf32> -> vector<256x32xf32>
    %285 = arith.addf %278, %284 : vector<256x32xf32>
    %c2_223 = arith.constant 2 : index
    %c9_224 = arith.constant 9 : index
    %c0_225 = arith.constant 0 : index
    %286 = vector.load %arg11[%c2_223, %c9_224, %c0_225] : memref<18x25x32xf32, #tpu.memory_space<vmem>>, vector<16x16x32xf32>
    %287 = vector.shape_cast %286 : vector<16x16x32xf32> to vector<256x32xf32>
    %288 = arith.truncf %287 : vector<256x32xf32> to vector<256x32xbf16>
    %c26 = arith.constant 26 : index
    %c0_226 = arith.constant 0 : index
    %c0_227 = arith.constant 0 : index
    %289 = vector.load %arg2[%c26, %c0_226, %c0_227] : memref<27x32x32xbf16, #tpu.memory_space<vmem>>, vector<1x32x32xbf16>
    %290 = vector.shape_cast %289 : vector<1x32x32xbf16> to vector<32x32xbf16>
    %cst_228 = arith.constant dense<0.000000e+00> : vector<256x32xf32>
    %291 = tpu.matmul %288, %290, %cst_228 {dimension_numbers = #tpu.dot_dimension_numbers<[1], [0], [0], [1], [0, 0, 1, 1], [], []>} : vector<256x32xbf16>, vector<32x32xbf16>, vector<256x32xf32> -> vector<256x32xf32>
    %292 = arith.addf %285, %291 : vector<256x32xf32>
    %c2_229 = arith.constant 2 : index
    %c0_230 = arith.constant 0 : index
    %c0_231 = arith.constant 0 : index
    %293 = vector.load %arg3[%c2_229, %c0_230, %c0_231] : memref<3x1x32xf32, #tpu.memory_space<vmem>>, vector<1x1x32xf32>
    %294 = vector.shape_cast %293 : vector<1x1x32xf32> to vector<1x32xf32>
    %cst_232 = arith.constant dense<0.000000e+00> : vector<32xf32>
    %295 = vector.multi_reduction <add>, %292, %cst_232 [0] : vector<256x32xf32> to vector<32xf32>
    %296 = vector.shape_cast %295 : vector<32xf32> to vector<1x32xf32>
    %297 = arith.mulf %292, %292 : vector<256x32xf32>
    %cst_233 = arith.constant dense<0.000000e+00> : vector<32xf32>
    %298 = vector.multi_reduction <add>, %297, %cst_233 [0] : vector<256x32xf32> to vector<32xf32>
    %299 = vector.shape_cast %298 : vector<32xf32> to vector<1x32xf32>
    %cst_234 = arith.constant 2.560000e+02 : f32
    %300 = vector.broadcast %cst_234 : f32 to vector<1x32xf32>
    %301 = arith.mulf %300, %294 : vector<1x32xf32>
    %302 = arith.addf %296, %301 : vector<1x32xf32>
    %cst_235 = arith.constant 2.000000e+00 : f32
    %303 = vector.broadcast %cst_235 : f32 to vector<1x32xf32>
    %304 = arith.mulf %303, %294 : vector<1x32xf32>
    %305 = arith.mulf %304, %296 : vector<1x32xf32>
    %306 = arith.addf %299, %305 : vector<1x32xf32>
    %307 = arith.mulf %294, %294 : vector<1x32xf32>
    %cst_236 = arith.constant 2.560000e+02 : f32
    %308 = vector.broadcast %cst_236 : f32 to vector<1x32xf32>
    %309 = arith.mulf %308, %307 : vector<1x32xf32>
    %310 = arith.addf %306, %309 : vector<1x32xf32>
    %cst_237 = arith.constant dense<0.000000e+00> : vector<1x16xf32>
    %311 = tpu.matmul %302, %5, %cst_237 {dimension_numbers = #tpu.dot_dimension_numbers<[1], [0], [0], [1], [0, 0, 1, 1], [], []>} : vector<1x32xf32>, vector<32x16xf32>, vector<1x16xf32> -> vector<1x16xf32>
    %cst_238 = arith.constant 0.001953125 : f32
    %312 = vector.broadcast %cst_238 : f32 to vector<1x16xf32>
    %313 = arith.mulf %311, %312 : vector<1x16xf32>
    %cst_239 = arith.constant dense<0.000000e+00> : vector<1x16xf32>
    %314 = tpu.matmul %310, %5, %cst_239 {dimension_numbers = #tpu.dot_dimension_numbers<[1], [0], [0], [1], [0, 0, 1, 1], [], []>} : vector<1x32xf32>, vector<32x16xf32>, vector<1x16xf32> -> vector<1x16xf32>
    %cst_240 = arith.constant 0.001953125 : f32
    %315 = vector.broadcast %cst_240 : f32 to vector<1x16xf32>
    %316 = arith.mulf %314, %315 : vector<1x16xf32>
    %317 = arith.mulf %313, %313 : vector<1x16xf32>
    %318 = arith.subf %316, %317 : vector<1x16xf32>
    %cst_241 = arith.constant dense<0.000000e+00> : vector<1x32xf32>
    %319 = tpu.matmul %313, %6, %cst_241 {dimension_numbers = #tpu.dot_dimension_numbers<[1], [0], [0], [1], [0, 0, 1, 1], [], []>} : vector<1x16xf32>, vector<16x32xf32>, vector<1x32xf32> -> vector<1x32xf32>
    %cst_242 = arith.constant dense<0.000000e+00> : vector<1x32xf32>
    %320 = tpu.matmul %318, %6, %cst_242 {dimension_numbers = #tpu.dot_dimension_numbers<[1], [0], [0], [1], [0, 0, 1, 1], [], []>} : vector<1x16xf32>, vector<16x32xf32>, vector<1x32xf32> -> vector<1x32xf32>
    %cst_243 = arith.constant 9.99999974E-6 : f32
    %321 = vector.broadcast %cst_243 : f32 to vector<1x32xf32>
    %322 = arith.addf %320, %321 : vector<1x32xf32>
    %323 = math.rsqrt %322 : vector<1x32xf32>
    %c2_244 = arith.constant 2 : index
    %c0_245 = arith.constant 0 : index
    %c0_246 = arith.constant 0 : index
    %324 = vector.load %arg4[%c2_244, %c0_245, %c0_246] : memref<3x1x32xf32, #tpu.memory_space<vmem>>, vector<1x1x32xf32>
    %325 = vector.shape_cast %324 : vector<1x1x32xf32> to vector<1x32xf32>
    %326 = arith.mulf %323, %325 : vector<1x32xf32>
    %327 = arith.subf %294, %319 : vector<1x32xf32>
    %328 = arith.mulf %327, %326 : vector<1x32xf32>
    %c2_247 = arith.constant 2 : index
    %c0_248 = arith.constant 0 : index
    %c0_249 = arith.constant 0 : index
    %329 = vector.load %arg5[%c2_247, %c0_248, %c0_249] : memref<3x1x32xf32, #tpu.memory_space<vmem>>, vector<1x1x32xf32>
    %330 = vector.shape_cast %329 : vector<1x1x32xf32> to vector<1x32xf32>
    %331 = arith.addf %328, %330 : vector<1x32xf32>
    %332 = vector.broadcast %326 : vector<1x32xf32> to vector<256x32xf32>
    %333 = arith.mulf %292, %332 : vector<256x32xf32>
    %334 = vector.broadcast %331 : vector<1x32xf32> to vector<256x32xf32>
    %335 = arith.addf %333, %334 : vector<256x32xf32>
    %cst_250 = arith.constant 0.000000e+00 : f32
    %336 = vector.broadcast %cst_250 : f32 to vector<256x32xf32>
    %337 = arith.maximumf %335, %336 : vector<256x32xf32>
    %338 = vector.shape_cast %337 : vector<256x32xf32> to vector<16x16x32xf32>
    %c1_251 = arith.constant 1 : index
    %c8_252 = arith.constant 8 : index
    %c0_253 = arith.constant 0 : index
    %339 = vector.load %arg11[%c1_251, %c8_252, %c0_253] : memref<18x25x32xf32, #tpu.memory_space<vmem>>, vector<16x16x32xf32>
    tpu.vector_store %arg11[%c1_251, %c8_252, %c0_253], %338 {strides = array<i32>} : memref<18x25x32xf32, #tpu.memory_space<vmem>>, vector<16x16x32xf32>,
    %cst_254 = arith.constant 0.000000e+00 : f32
    %340 = vector.broadcast %cst_254 : f32 to vector<256x8xf32>
    %c0_255 = arith.constant 0 : index
    %c7_256 = arith.constant 7 : index
    %c0_257 = arith.constant 0 : index
    %341 = vector.load %arg11[%c0_255, %c7_256, %c0_257] : memref<18x25x32xf32, #tpu.memory_space<vmem>>, vector<16x16x32xf32>
    %342 = vector.shape_cast %341 : vector<16x16x32xf32> to vector<256x32xf32>
    %343 = arith.truncf %342 : vector<256x32xf32> to vector<256x32xbf16>
    %c0_258 = arith.constant 0 : index
    %c0_259 = arith.constant 0 : index
    %c0_260 = arith.constant 0 : index
    %344 = vector.load %arg6[%c0_258, %c0_259, %c0_260] : memref<9x32x8xbf16, #tpu.memory_space<vmem>>, vector<1x32x8xbf16>
    %345 = vector.shape_cast %344 : vector<1x32x8xbf16> to vector<32x8xbf16>
    %cst_261 = arith.constant dense<0.000000e+00> : vector<256x8xf32>
    %346 = tpu.matmul %343, %345, %cst_261 {dimension_numbers = #tpu.dot_dimension_numbers<[1], [0], [0], [1], [0, 0, 1, 1], [], []>} : vector<256x32xbf16>, vector<32x8xbf16>, vector<256x8xf32> -> vector<256x8xf32>
    %347 = arith.addf %340, %346 : vector<256x8xf32>
    %c0_262 = arith.constant 0 : index
    %c8_263 = arith.constant 8 : index
    %c0_264 = arith.constant 0 : index
    %348 = vector.load %arg11[%c0_262, %c8_263, %c0_264] : memref<18x25x32xf32, #tpu.memory_space<vmem>>, vector<16x16x32xf32>
    %349 = vector.shape_cast %348 : vector<16x16x32xf32> to vector<256x32xf32>
    %350 = arith.truncf %349 : vector<256x32xf32> to vector<256x32xbf16>
    %c1_265 = arith.constant 1 : index
    %c0_266 = arith.constant 0 : index
    %c0_267 = arith.constant 0 : index
    %351 = vector.load %arg6[%c1_265, %c0_266, %c0_267] : memref<9x32x8xbf16, #tpu.memory_space<vmem>>, vector<1x32x8xbf16>
    %352 = vector.shape_cast %351 : vector<1x32x8xbf16> to vector<32x8xbf16>
    %cst_268 = arith.constant dense<0.000000e+00> : vector<256x8xf32>
    %353 = tpu.matmul %350, %352, %cst_268 {dimension_numbers = #tpu.dot_dimension_numbers<[1], [0], [0], [1], [0, 0, 1, 1], [], []>} : vector<256x32xbf16>, vector<32x8xbf16>, vector<256x8xf32> -> vector<256x8xf32>
    %354 = arith.addf %347, %353 : vector<256x8xf32>
    %c0_269 = arith.constant 0 : index
    %c9_270 = arith.constant 9 : index
    %c0_271 = arith.constant 0 : index
    %355 = vector.load %arg11[%c0_269, %c9_270, %c0_271] : memref<18x25x32xf32, #tpu.memory_space<vmem>>, vector<16x16x32xf32>
    %356 = vector.shape_cast %355 : vector<16x16x32xf32> to vector<256x32xf32>
    %357 = arith.truncf %356 : vector<256x32xf32> to vector<256x32xbf16>
    %c2_272 = arith.constant 2 : index
    %c0_273 = arith.constant 0 : index
    %c0_274 = arith.constant 0 : index
    %358 = vector.load %arg6[%c2_272, %c0_273, %c0_274] : memref<9x32x8xbf16, #tpu.memory_space<vmem>>, vector<1x32x8xbf16>
    %359 = vector.shape_cast %358 : vector<1x32x8xbf16> to vector<32x8xbf16>
    %cst_275 = arith.constant dense<0.000000e+00> : vector<256x8xf32>
    %360 = tpu.matmul %357, %359, %cst_275 {dimension_numbers = #tpu.dot_dimension_numbers<[1], [0], [0], [1], [0, 0, 1, 1], [], []>} : vector<256x32xbf16>, vector<32x8xbf16>, vector<256x8xf32> -> vector<256x8xf32>
    %361 = arith.addf %354, %360 : vector<256x8xf32>
    %c1_276 = arith.constant 1 : index
    %c7_277 = arith.constant 7 : index
    %c0_278 = arith.constant 0 : index
    %362 = vector.load %arg11[%c1_276, %c7_277, %c0_278] : memref<18x25x32xf32, #tpu.memory_space<vmem>>, vector<16x16x32xf32>
    %363 = vector.shape_cast %362 : vector<16x16x32xf32> to vector<256x32xf32>
    %364 = arith.truncf %363 : vector<256x32xf32> to vector<256x32xbf16>
    %c3_279 = arith.constant 3 : index
    %c0_280 = arith.constant 0 : index
    %c0_281 = arith.constant 0 : index
    %365 = vector.load %arg6[%c3_279, %c0_280, %c0_281] : memref<9x32x8xbf16, #tpu.memory_space<vmem>>, vector<1x32x8xbf16>
    %366 = vector.shape_cast %365 : vector<1x32x8xbf16> to vector<32x8xbf16>
    %cst_282 = arith.constant dense<0.000000e+00> : vector<256x8xf32>
    %367 = tpu.matmul %364, %366, %cst_282 {dimension_numbers = #tpu.dot_dimension_numbers<[1], [0], [0], [1], [0, 0, 1, 1], [], []>} : vector<256x32xbf16>, vector<32x8xbf16>, vector<256x8xf32> -> vector<256x8xf32>
    %368 = arith.addf %361, %367 : vector<256x8xf32>
    %c1_283 = arith.constant 1 : index
    %c8_284 = arith.constant 8 : index
    %c0_285 = arith.constant 0 : index
    %369 = vector.load %arg11[%c1_283, %c8_284, %c0_285] : memref<18x25x32xf32, #tpu.memory_space<vmem>>, vector<16x16x32xf32>
    %370 = vector.shape_cast %369 : vector<16x16x32xf32> to vector<256x32xf32>
    %371 = arith.truncf %370 : vector<256x32xf32> to vector<256x32xbf16>
    %c4_286 = arith.constant 4 : index
    %c0_287 = arith.constant 0 : index
    %c0_288 = arith.constant 0 : index
    %372 = vector.load %arg6[%c4_286, %c0_287, %c0_288] : memref<9x32x8xbf16, #tpu.memory_space<vmem>>, vector<1x32x8xbf16>
    %373 = vector.shape_cast %372 : vector<1x32x8xbf16> to vector<32x8xbf16>
    %cst_289 = arith.constant dense<0.000000e+00> : vector<256x8xf32>
    %374 = tpu.matmul %371, %373, %cst_289 {dimension_numbers = #tpu.dot_dimension_numbers<[1], [0], [0], [1], [0, 0, 1, 1], [], []>} : vector<256x32xbf16>, vector<32x8xbf16>, vector<256x8xf32> -> vector<256x8xf32>
    %375 = arith.addf %368, %374 : vector<256x8xf32>
    %c1_290 = arith.constant 1 : index
    %c9_291 = arith.constant 9 : index
    %c0_292 = arith.constant 0 : index
    %376 = vector.load %arg11[%c1_290, %c9_291, %c0_292] : memref<18x25x32xf32, #tpu.memory_space<vmem>>, vector<16x16x32xf32>
    %377 = vector.shape_cast %376 : vector<16x16x32xf32> to vector<256x32xf32>
    %378 = arith.truncf %377 : vector<256x32xf32> to vector<256x32xbf16>
    %c5_293 = arith.constant 5 : index
    %c0_294 = arith.constant 0 : index
    %c0_295 = arith.constant 0 : index
    %379 = vector.load %arg6[%c5_293, %c0_294, %c0_295] : memref<9x32x8xbf16, #tpu.memory_space<vmem>>, vector<1x32x8xbf16>
    %380 = vector.shape_cast %379 : vector<1x32x8xbf16> to vector<32x8xbf16>
    %cst_296 = arith.constant dense<0.000000e+00> : vector<256x8xf32>
    %381 = tpu.matmul %378, %380, %cst_296 {dimension_numbers = #tpu.dot_dimension_numbers<[1], [0], [0], [1], [0, 0, 1, 1], [], []>} : vector<256x32xbf16>, vector<32x8xbf16>, vector<256x8xf32> -> vector<256x8xf32>
    %382 = arith.addf %375, %381 : vector<256x8xf32>
    %c2_297 = arith.constant 2 : index
    %c7_298 = arith.constant 7 : index
    %c0_299 = arith.constant 0 : index
    %383 = vector.load %arg11[%c2_297, %c7_298, %c0_299] : memref<18x25x32xf32, #tpu.memory_space<vmem>>, vector<16x16x32xf32>
    %384 = vector.shape_cast %383 : vector<16x16x32xf32> to vector<256x32xf32>
    %385 = arith.truncf %384 : vector<256x32xf32> to vector<256x32xbf16>
    %c6_300 = arith.constant 6 : index
    %c0_301 = arith.constant 0 : index
    %c0_302 = arith.constant 0 : index
    %386 = vector.load %arg6[%c6_300, %c0_301, %c0_302] : memref<9x32x8xbf16, #tpu.memory_space<vmem>>, vector<1x32x8xbf16>
    %387 = vector.shape_cast %386 : vector<1x32x8xbf16> to vector<32x8xbf16>
    %cst_303 = arith.constant dense<0.000000e+00> : vector<256x8xf32>
    %388 = tpu.matmul %385, %387, %cst_303 {dimension_numbers = #tpu.dot_dimension_numbers<[1], [0], [0], [1], [0, 0, 1, 1], [], []>} : vector<256x32xbf16>, vector<32x8xbf16>, vector<256x8xf32> -> vector<256x8xf32>
    %389 = arith.addf %382, %388 : vector<256x8xf32>
    %c2_304 = arith.constant 2 : index
    %c8_305 = arith.constant 8 : index
    %c0_306 = arith.constant 0 : index
    %390 = vector.load %arg11[%c2_304, %c8_305, %c0_306] : memref<18x25x32xf32, #tpu.memory_space<vmem>>, vector<16x16x32xf32>
    %391 = vector.shape_cast %390 : vector<16x16x32xf32> to vector<256x32xf32>
    %392 = arith.truncf %391 : vector<256x32xf32> to vector<256x32xbf16>
    %c7_307 = arith.constant 7 : index
    %c0_308 = arith.constant 0 : index
    %c0_309 = arith.constant 0 : index
    %393 = vector.load %arg6[%c7_307, %c0_308, %c0_309] : memref<9x32x8xbf16, #tpu.memory_space<vmem>>, vector<1x32x8xbf16>
    %394 = vector.shape_cast %393 : vector<1x32x8xbf16> to vector<32x8xbf16>
    %cst_310 = arith.constant dense<0.000000e+00> : vector<256x8xf32>
    %395 = tpu.matmul %392, %394, %cst_310 {dimension_numbers = #tpu.dot_dimension_numbers<[1], [0], [0], [1], [0, 0, 1, 1], [], []>} : vector<256x32xbf16>, vector<32x8xbf16>, vector<256x8xf32> -> vector<256x8xf32>
    %396 = arith.addf %389, %395 : vector<256x8xf32>
    %c2_311 = arith.constant 2 : index
    %c9_312 = arith.constant 9 : index
    %c0_313 = arith.constant 0 : index
    %397 = vector.load %arg11[%c2_311, %c9_312, %c0_313] : memref<18x25x32xf32, #tpu.memory_space<vmem>>, vector<16x16x32xf32>
    %398 = vector.shape_cast %397 : vector<16x16x32xf32> to vector<256x32xf32>
    %399 = arith.truncf %398 : vector<256x32xf32> to vector<256x32xbf16>
    %c8_314 = arith.constant 8 : index
    %c0_315 = arith.constant 0 : index
    %c0_316 = arith.constant 0 : index
    %400 = vector.load %arg6[%c8_314, %c0_315, %c0_316] : memref<9x32x8xbf16, #tpu.memory_space<vmem>>, vector<1x32x8xbf16>
    %401 = vector.shape_cast %400 : vector<1x32x8xbf16> to vector<32x8xbf16>
    %cst_317 = arith.constant dense<0.000000e+00> : vector<256x8xf32>
    %402 = tpu.matmul %399, %401, %cst_317 {dimension_numbers = #tpu.dot_dimension_numbers<[1], [0], [0], [1], [0, 0, 1, 1], [], []>} : vector<256x32xbf16>, vector<32x8xbf16>, vector<256x8xf32> -> vector<256x8xf32>
    %403 = arith.addf %396, %402 : vector<256x8xf32>
    %c0_318 = arith.constant 0 : index
    %c0_319 = arith.constant 0 : index
    %404 = vector.load %arg7[%c0_318, %c0_319] : memref<2x8xf32, #tpu.memory_space<vmem>>, vector<1x8xf32>
    %405 = vector.broadcast %404 : vector<1x8xf32> to vector<256x8xf32>
    %406 = arith.addf %403, %405 : vector<256x8xf32>
    %c1_320 = arith.constant 1 : index
    %c0_321 = arith.constant 0 : index
    %407 = vector.load %arg7[%c1_320, %c0_321] : memref<2x8xf32, #tpu.memory_space<vmem>>, vector<1x8xf32>
    %408 = vector.broadcast %407 : vector<1x8xf32> to vector<256x8xf32>
    %409 = arith.maximumf %406, %408 : vector<256x8xf32>
    %c0_322 = arith.constant 0 : index
    %c0_323 = arith.constant 0 : index
    %c0_324 = arith.constant 0 : index
    %410 = vector.load %arg10[%c0_322, %c0_323, %c0_324] : memref<1x256x8xf32, #tpu.memory_space<vmem>>, vector<1x256x8xf32>
    %411 = vector.shape_cast %410 : vector<1x256x8xf32> to vector<256x8xf32>
    %412 = vector.shape_cast %409 : vector<256x8xf32> to vector<1x256x8xf32>
    tpu.vector_store %arg10[%c0_322, %c0_323, %c0_324], %412 {strides = array<i32>} : memref<1x256x8xf32, #tpu.memory_space<vmem>>, vector<1x256x8xf32>,
    return
  }
  func.func @transform_0(%arg0: i32) -> (i32, i32, i32, i32) {
    %c0_i32 = arith.constant 0 : i32
    %c0_i32_0 = arith.constant 0 : i32
    %c0_i32_1 = arith.constant 0 : i32
    %c0_i32_2 = arith.constant 0 : i32
    return %arg0, %c0_i32, %c0_i32_0, %c0_i32_1 : i32, i32, i32, i32
  }
  func.func @transform_1(%arg0: i32) -> (i32, i32, i32) {
    %c0_i32 = arith.constant 0 : i32
    %c0_i32_0 = arith.constant 0 : i32
    %c0_i32_1 = arith.constant 0 : i32
    %c0_i32_2 = arith.constant 0 : i32
    return %c0_i32, %c0_i32_0, %c0_i32_1 : i32, i32, i32
  }
  func.func @transform_2(%arg0: i32) -> (i32, i32, i32) {
    %c0_i32 = arith.constant 0 : i32
    %c0_i32_0 = arith.constant 0 : i32
    %c0_i32_1 = arith.constant 0 : i32
    %c0_i32_2 = arith.constant 0 : i32
    return %c0_i32, %c0_i32_0, %c0_i32_1 : i32, i32, i32
  }
  func.func @transform_3(%arg0: i32) -> (i32, i32, i32) {
    %c0_i32 = arith.constant 0 : i32
    %c0_i32_0 = arith.constant 0 : i32
    %c0_i32_1 = arith.constant 0 : i32
    %c0_i32_2 = arith.constant 0 : i32
    return %c0_i32, %c0_i32_0, %c0_i32_1 : i32, i32, i32
  }
  func.func @transform_4(%arg0: i32) -> (i32, i32, i32) {
    %c0_i32 = arith.constant 0 : i32
    %c0_i32_0 = arith.constant 0 : i32
    %c0_i32_1 = arith.constant 0 : i32
    %c0_i32_2 = arith.constant 0 : i32
    return %c0_i32, %c0_i32_0, %c0_i32_1 : i32, i32, i32
  }
  func.func @transform_5(%arg0: i32) -> (i32, i32, i32) {
    %c0_i32 = arith.constant 0 : i32
    %c0_i32_0 = arith.constant 0 : i32
    %c0_i32_1 = arith.constant 0 : i32
    %c0_i32_2 = arith.constant 0 : i32
    return %c0_i32, %c0_i32_0, %c0_i32_1 : i32, i32, i32
  }
  func.func @transform_6(%arg0: i32) -> (i32, i32) {
    %c0_i32 = arith.constant 0 : i32
    %c0_i32_0 = arith.constant 0 : i32
    %c0_i32_1 = arith.constant 0 : i32
    return %c0_i32, %c0_i32_0 : i32, i32
  }
  func.func @transform_7(%arg0: i32) -> (i32, i32) {
    %c0_i32 = arith.constant 0 : i32
    %c0_i32_0 = arith.constant 0 : i32
    %c0_i32_1 = arith.constant 0 : i32
    return %c0_i32, %c0_i32_0 : i32, i32
  }
  func.func @transform_8(%arg0: i32) -> (i32, i32) {
    %c0_i32 = arith.constant 0 : i32
    %c0_i32_0 = arith.constant 0 : i32
    %c0_i32_1 = arith.constant 0 : i32
    return %c0_i32, %c0_i32_0 : i32, i32
  }
  func.func @transform_9(%arg0: i32) -> (i32, i32, i32) {
    %c0_i32 = arith.constant 0 : i32
    %c0_i32_0 = arith.constant 0 : i32
    %c0_i32_1 = arith.constant 0 : i32
    return %arg0, %c0_i32, %c0_i32_0 : i32, i32, i32
  }
}

</mosaic_0001>

<bundles_post_ra>
// kernel: tpu_custom_call.1
= control target key start
LH: loop header
LB: loop body
LE: loop exit
PB: predicated region body
PF: predicated region fallthrough
CT: control target
= control target key end

     0   :  { %14 = vsyncpa [#allocation4], 0  ;;  %s20722_s0 = inlined_call_operand.hbm [shape: f32[2,16,16,32], index: 0, kind: input, shape index: {}]   ;;  %s20723_s1 = inlined_call_operand.hbm [shape: bf16[27,32,32], index: 1, kind: input, shape index: {}]   ;;  %s20724_s2 = inlined_call_operand.vmem [shape: f32[3,1,32], index: 2, kind: input, shape index: {}]   ;;  %s20725_s3 = inlined_call_operand.vmem [shape: f32[3,1,32], index: 3, kind: input, shape index: {}]   ;;  %s20726_s4 = inlined_call_operand.vmem [shape: f32[3,1,32], index: 4, kind: input, shape index: {}]   ;;  %s20727_s5 = inlined_call_operand.vmem [shape: bf16[9,32,8], index: 5, kind: input, shape index: {}]   ;;  %s20728_s6 = inlined_call_operand.vmem [shape: f32[2,8], index: 6, kind: input, shape index: {}]   ;;  %s20729_s7 = inlined_call_operand.vmem [shape: f32[32,16], index: 7, kind: input, shape index: {}]   ;;  %s20730_s8 = inlined_call_operand.vmem [shape: f32[16,32], index: 8, kind: input, shape index: {}]   ;;  %s20731_s9 = inlined_call_operand.vmem [shape: f32[2,256,8], index: 9, kind: output, shape index: {}]  }
   0x1   :  { %16 = vsyncpa [#allocation4 + $0x1], 0 }
   0x2   :  { %17 = vsyncpa [#allocation6], 0  ;;  %s17510_s30 = smov 0   ;;  %s17512_s10 = smov 0  }
   0x3   :  { %s17514_s11 = smov 0   ;;  %s17516_s12 = smov 0  }
   0x4 LB: > { %s17529_s13 = sadd.s32 4294967295, %s17449_s12   ;;  %p43_p0 = scmp.ne.s32.totalorder %s17441_s10, %s17437_s30  ;;  %s17449_s12 = sphi %s17516_s12, %s20746_s12   ;;  %s17445_s11 = sphi %s17514_s11, %s20749_s11   ;;  %s17441_s10 = sphi %s17512_s10, %s20748_s10   ;;  %s17437_s30 = sphi %s17510_s30, %s20747_s30  }
   0x5   : > { %p20732_p1 = scmp.eq.s32.totalorder %s17529_s13, 0  ;;  %p13325_p2 = scmp.ge.s32.totalorder %s17449_s12, 1 }
   0x6   : > { %p248_p3 = scmp.lt.s32.totalorder %s17449_s12, 3  ;;  %s17451_s16 = smov [#allocation5]  }
   0x7   : > { %p17537_p4 = por %p20732_p1, %p43_p0  ;;  %s260_s17 = sshll.u32 %s17451_s16, 4  ;;  %s261_s17 = int_to_ptr.vmem [resolvable:$true] %s260_s17 }
   0x8   : > { %p17541_p5 = pnand %p13325_p2, %p248_p3  ;;  %s17554_s19 = sadd.s32 1, %s17449_s12  }
   0x9   : > { %s20737_s14 = scalar_select %p17537_p4, 1, 0 }
   0xa   : > { %s20738_s15 = scalar_select %p17541_p5, 1, 0 }
   0xb   : > { %p17224_p6 = pneg %p17541_p5  ;;  %20740 = sst [smem:[#allocation9_spill]] %s17554_s19 }
   0xc   : > { %s30_s20 = sadd.s32 1, %s17445_s11  ;;  %s27_s21 = ssub.s32 %s17449_s12, %s17554_s19 }
   0xd   : > { %p17549_p7 = pnand %p17224_p6, %p20732_p1  ;;  %s17353_s24 = scalar_lea.hbm %s20723_s1, 6912 }
   0xe   : > { %p17354_p8 = scmp.ne.s32.totalorder %s20723_s1, %s17353_s24  ;;  %p17360_p12 = scmp.lt.u32.totalorder %s17353_s24, %s20723_s1 }
   0xf   : > { %p17355_p9 = pneg %p17549_p7 }
  0x11   : > { %p17356_p10 = pnand %p17355_p9, %p17354_p8 }
  0x13   : > { %p17357_p11 = pneg %p17356_p10 }
  0x15   : > { %p17362_p13 = pnand %p17360_p12, %p17357_p11 }
  0x17   : > { %17365 = shalt.err (!%p17362_p13)
}
  0x18   : > { %s17366_s29 = scalar_lea.vmem %s261_s17, 6912  ;;  %p17374_p6 = scmp.lt.s32.totalorder %s261_s17, %s261_s17 }
  0x19   : > { %p17367_p0 = scmp.ne.s32.totalorder %s261_s17, %s17366_s29  ;;  %p17375_p1 = scmp.lt.s32.totalorder %s17366_s29, %s17366_s29 }
  0x1b   : > { %p17369_p2 = pnand %p17367_p0, %p17355_p9  ;;  %p17376_p4 = por %p17375_p1, %p17374_p6 }
  0x1d   : > { %p17370_p3 = pneg %p17369_p2 }
  0x1f   : > { %p17377_p5 = pnand %p17376_p4, %p17370_p3 }
  0x21   : > { %17380 = shalt.err (!%p17377_p5)
}
  0x22   : > { %s17452_s30 = smov 64   ;;  %s17453_s16 = smov 4  }
  0x23   : > { %17227 = dma.hbm_to_vmem [thread:$0]  (!%p17549_p7), %s20723_s1, 6912, %s261_s17, [#allocation6], %s17452_s30, %s17452_s30, %s17453_s16  }
  0x24   : > { %p28_p8 = scmp.eq.s32.totalorder %s27_s21, 0  ;;  %p37_p9 = scmp.ne.s32.totalorder %s17445_s11, %s17441_s10 }
  0x25   : > { %p38_p1 = scmp.eq.s32.totalorder %s17449_s12, 0  ;;  %p17233_p4 = scmp.lt.s32.totalorder %s17449_s12, 2 }
  0x26   : > { %s17580_s24 = scalar_select %p28_p8, %s17445_s11, %s30_s20  }
  0x27   : > { %p39_p5 = por %p38_p1, %p37_p9  ;;  %s295_s25 = sand.u32 1, %s17445_s11  }
  0x28   : > { %s13328_s26 = sshll.u32 %s295_s25, 8  ;;  %s14038_s27 = sshll.u32 %s17449_s12, 12 }
  0x29   : > { %s17587_s19 = scalar_lea.hbm %s20722_s0, %s14038_s27  ;;  %s299_s17 = scalar_lea.vmem [#allocation3], %s13328_s26 }
  0x2a   : > { %s306_s18 = sshll.u32 %s299_s17, 4  ;;  %p17591_p7 = pnand %p17233_p4, %p39_p5  ;;  %s17589_s18 = int_to_ptr.vmem [resolvable:$true] %s306_s18 }
  0x2b   : > { %s17595_s12 = scalar_lea.sflag [#allocation4], %s295_s25  ;;  %s17381_s21 = scalar_lea.hbm %s17587_s19, 4096 }
  0x2c   : > { %p17382_p10 = scmp.ne.s32.totalorder %s17587_s19, %s17381_s21  ;;  %p17383_p11 = pneg %p17591_p7 }
  0x2d   : > { %s17386_s22 = scalar_lea.hbm %s20722_s0, 8192  ;;  %p17387_p0 = scmp.lt.u32.totalorder %s17587_s19, %s20722_s0 }
  0x2e   : > { %p17384_p12 = pnand %p17383_p11, %p17382_p10  ;;  %p17388_p2 = scmp.lt.u32.totalorder %s17386_s22, %s17381_s21 }
  0x2f   : > { %p17390_p6 = scmp.lt.u32.totalorder %s17381_s21, %s17587_s19 }
  0x30   : > { %p17385_p13 = pneg %p17384_p12  ;;  %p17389_p3 = por %p17388_p2, %p17387_p0 }
  0x32   : > { %p17391_p8 = por %p17390_p6, %p17389_p3 }
  0x34   : > { %p17392_p9 = pnand %p17391_p8, %p17385_p13 }
  0x36   : > { %17395 = shalt.err (!%p17392_p9)
}
  0x37   : > { %s17396_s25 = scalar_lea.vmem %s17589_s18, 4096  ;;  %s17454_s27 = smov [#allocation3]  }
  0x38   : > { %p17397_p1 = scmp.ne.s32.totalorder %s17589_s18, %s17396_s25  ;;  %s17401_s28 = sshll.u32 %s17454_s27, 4  ;;  %s17402_s28 = int_to_ptr.vmem [resolvable:$false] %s17401_s28 }
  0x39   : > { %s17403_s29 = scalar_lea.vmem %s17402_s28, 8192  ;;  %p17404_p10 = scmp.lt.s32.totalorder %s17589_s18, %s17402_s28 }
  0x3a   : > { %p17399_p4 = pnand %p17397_p1, %p17383_p11  ;;  %p17405_p12 = scmp.lt.s32.totalorder %s17403_s29, %s17396_s25 }
  0x3c   : > { %p17400_p5 = pneg %p17399_p4  ;;  %p17406_p0 = por %p17405_p12, %p17404_p10 }
  0x3e   : > { %p17407_p2 = pnand %p17406_p0, %p17400_p5 }
  0x40   : > { %17410 = shalt.err (!%p17407_p2)
}
  0x41   : > { %s17455_s17 = smov 128   ;;  %s17456_s21 = smov 8  }
  0x42   : > { %17231 = dma.hbm_to_vmem [thread:$0]  (!%p17591_p7), %s17587_s19, 4096, %s17589_s18, %s17595_s12, %s17455_s17, %s17455_s17, %s17456_s21  }
  0x43   : > { %p20742_p11 = scmp.ne.s32.totalorder %s20738_s15, 0 }
  0x44   : > { %s320_s30 = sand.u32 (!%p20742_p11), 1, %s17441_s10   ;;  %p20743_p13 = scmp.ne.s32.totalorder (!%p20742_p11), %s20737_s14, 0 }
  0x45   : > { %318 = sbr.rel (%p20742_p11) target bundleno = 4767 (0x129f), region = 56  ;;  %s13332_s16 = sshll.u32 (!%p20742_p11), %s320_s30, 8 }
  0x46   : > { %s321_s22 = scalar_lea.sflag (!%p20742_p11), [#allocation4], %s320_s30  ;;  %s17626_s23 = scalar_lea.vmem (!%p20742_p11), [#allocation3], %s13332_s16 }
  0x4c   : > { %17428 = dma.done.wait (%p20743_p13), %s321_s22, 4096  }
  0x4d   : > { %17430 = vsyncadd (%p20743_p13), %s321_s22, 4294963200  ;;  %p20744_p3 = scmp.eq.s32.totalorder %s17529_s13, 0 }
  0x4f   : > { %17432 = dma.done.wait (%p20744_p3), [#allocation6], 6912   ;;  %p20745_p7 = pmov %p20744_p3 }
  0x50   : > { %vm369_vm0 = vcmask 261120   ;;  %v17457_v0 = vmov 0.0   ;;  %v17275_v1 = vld [vmem:[#allocation5 + $0x10] sm:$0xff]   ;;  %v17276_v2 = vld [vmem:[#allocation5 + $0x18] sm:$0xff]   ;;  %v443_v5 = vld [vmem:[%s17626_s23] sm:$0xff]  ;;  %vm373_vm1 = vcmask 253952  }
  0x51   : > { %17434 = vsyncadd (%p20745_p7), [#allocation6], 4294960384  ;;  %371 = vst.msk [vmem:[#allocation2 + $0x8] sm:$0xff] %vm369_vm0, %v17457_v0  ;;  %14736 = vmatprep.subr.bf16.mxu0 %v17275_v1  ;;  %v444_v7 = vld [vmem:[%s17626_s23 + $0x8] sm:$0xff]  ;;  %v17277_v8 = vld [vmem:[#allocation5] sm:$0xff]   ;;  %vm17459_vm2 = vmmov 0  }
  0x52   : > { %372 = vst.msk [vmem:[#allocation2 + $0x10] sm:$0xff] %vm369_vm0, %v17457_v0  ;;  %370 = vst.msk [vmem:[#allocation2] sm:$0xff] %vm369_vm0, %v17457_v0  ;;  %14737 = vmatpush3.bf16.msra.mxu0 %v17275_v1  ;;  %v445_v9 = vld [vmem:[%s17626_s23 + $0x10] sm:$0xff]  ;;  %v446_v10 = vld [vmem:[%s17626_s23 + $0x18] sm:$0xff]  ;;  %15079 = vmatprep.mubr.msk.f32.mxu1 %vm17459_vm2, %v17457_v0  ;;  %vm3533_vm3 = vcmask 130048   ;;  %p363_p6 = scmp.lt.s32.totalorder %s17529_s13, 1 }
  0x53   : > { %375 = vst.msk [vmem:[#allocation2 + $0x20] sm:$0xff] %vm369_vm0, %v17457_v0  ;;  %376 = vst.msk [vmem:[#allocation2 + $0x28] sm:$0xff] %vm369_vm0, %v17457_v0  ;;  %14738 = vmatprep.subr.bf16.mxu0 %v17276_v2  ;;  %v447_v11 = vld [vmem:[%s17626_s23 + $0x20] sm:$0xff]  ;;  %v448_v12 = vld [vmem:[%s17626_s23 + $0x28] sm:$0xff]  ;;  %vm13214_vm4 = vcmask 64512  }
  0x54   : > { %377 = vst.msk [vmem:[#allocation2 + $0x30] sm:$0xff] %vm369_vm0, %v17457_v0  ;;  %379 = vst.msk [vmem:[#allocation2 + $0x40] sm:$0xff] %vm369_vm0, %v17457_v0  ;;  %v449_v13 = vld [vmem:[%s17626_s23 + $0x30] sm:$0xff]  ;;  %v450_v14 = vld [vmem:[%s17626_s23 + $0x38] sm:$0xff]  ;;  %s20751_s13 = smov (!%p363_p6, %s17529_s13), 1 }
  0x55   : > { %380 = vst.msk [vmem:[#allocation2 + $0x48] sm:$0xff] %vm369_vm0, %v17457_v0  ;;  %381 = vst.msk [vmem:[#allocation2 + $0x50] sm:$0xff] %vm369_vm0, %v17457_v0  ;;  %v451_v15 = vld [vmem:[%s17626_s23 + $0x40] sm:$0xff]  ;;  %v452_v16 = vld [vmem:[%s17626_s23 + $0x48] sm:$0xff]  ;;  %s14039_s14 = sshll.u32 %s20751_s13, 8 }
  0x56   : > { %383 = vst.msk [vmem:[#allocation2 + $0x60] sm:$0xff] %vm369_vm0, %v17457_v0  ;;  %384 = vst.msk [vmem:[#allocation2 + $0x68] sm:$0xff] %vm369_vm0, %v17457_v0  ;;  %14739 = vmatpush3.bf16.msra.mxu0 %v17276_v2  ;;  %v453_v17 = vld [vmem:[%s17626_s23 + $0x50] sm:$0xff]  ;;  %v454_v18 = vld [vmem:[%s17626_s23 + $0x58] sm:$0xff]  ;;  %s20580_s12 = scalar_lea.vmem %s20731_s9, %s14039_s14 }
  0x57   : > { %385 = vst.msk [vmem:[#allocation2 + $0x70] sm:$0xff] %vm369_vm0, %v17457_v0  ;;  %387 = vst.msk [vmem:[#allocation2 + $0x80] sm:$0xff] %vm369_vm0, %v17457_v0  ;;  %v455_v19 = vld [vmem:[%s17626_s23 + $0x60] sm:$0xff]  ;;  %14772 = vmatprep.subr.bf16.mxu0 %v17277_v8  ;;  %v456_v20 = vld [vmem:[%s17626_s23 + $0x68] sm:$0xff] }
  0x58   : > { %388 = vst.msk [vmem:[#allocation2 + $0x88] sm:$0xff] %vm369_vm0, %v17457_v0  ;;  %389 = vst.msk [vmem:[#allocation2 + $0x90] sm:$0xff] %vm369_vm0, %v17457_v0  ;;  %v566_v3 = vld [vmem:[#allocation2 + $0x8] sm:$0xff]  ;;  %v457_v21 = vld [vmem:[%s17626_s23 + $0x70] sm:$0xff] }
  0x59   : > { %391 = vst.msk [vmem:[#allocation2 + $0xa0] sm:$0xff] %vm369_vm0, %v17457_v0  ;;  %392 = vst.msk [vmem:[#allocation2 + $0xa8] sm:$0xff] %vm369_vm0, %v17457_v0  ;;  %v567_v4 = vld [vmem:[#allocation2 + $0x10] sm:$0xff]  ;;  %v458_v22 = vld [vmem:[%s17626_s23 + $0x78] sm:$0xff] }
  0x5a   : > { %393 = vst.msk [vmem:[#allocation2 + $0xb0] sm:$0xff] %vm369_vm0, %v17457_v0  ;;  %395 = vst.msk [vmem:[#allocation2 + $0xc0] sm:$0xff] %vm369_vm0, %v17457_v0  ;;  %v598_v6 = vpack.c.bf16 %v567_v4, %v566_v3  ;;  %v459_v23 = vld [vmem:[%s17626_s23 + $0x80] sm:$0xff]  ;;  %v460_v24 = vld [vmem:[%s17626_s23 + $0x88] sm:$0xff] }
  0x5b   : > { %396 = vst.msk [vmem:[#allocation2 + $0xc8] sm:$0xff] %vm369_vm0, %v17457_v0  ;;  %397 = vst.msk [vmem:[#allocation2 + $0xd0] sm:$0xff] %vm369_vm0, %v17457_v0  ;;  %v17278_v26 = vld [vmem:[#allocation5 + $0x8] sm:$0xff]   ;;  %v461_v28 = vld [vmem:[%s17626_s23 + $0x90] sm:$0xff] }
  0x5c   : > { %399 = vst.msk [vmem:[#allocation2 + $0xe0] sm:$0xff] %vm369_vm0, %v17457_v0  ;;  %400 = vst.msk [vmem:[#allocation2 + $0xe8] sm:$0xff] %vm369_vm0, %v17457_v0  ;;  %14740 = vmatprep.mubr.msk.bf16.mxu0 %vm369_vm0, %v598_v6  ;;  %v462_v29 = vld [vmem:[%s17626_s23 + $0x98] sm:$0xff]  ;;  %v463_v33 = vld [vmem:[%s17626_s23 + $0xa0] sm:$0xff] }
  0x5d   : > { %401 = vst.msk [vmem:[#allocation2 + $0xf0] sm:$0xff] %vm369_vm0, %v17457_v0  ;;  %403 = vst.msk [vmem:[#allocation2 + $0x100] sm:$0xff] %vm369_vm0, %v17457_v0  ;;  %v464_v39 = vld [vmem:[%s17626_s23 + $0xa8] sm:$0xff]  ;;  %v465_v41 = vld [vmem:[%s17626_s23 + $0xb0] sm:$0xff] }
  0x5e   : > { %404 = vst.msk [vmem:[#allocation2 + $0x108] sm:$0xff] %vm369_vm0, %v17457_v0  ;;  %405 = vst.msk [vmem:[#allocation2 + $0x110] sm:$0xff] %vm369_vm0, %v17457_v0  ;;  %v466_v42 = vld [vmem:[%s17626_s23 + $0xb8] sm:$0xff]  ;;  %v467_v43 = vld [vmem:[%s17626_s23 + $0xc0] sm:$0xff] }
  0x5f   : > { %407 = vst.msk [vmem:[#allocation2 + $0x120] sm:$0xff] %vm369_vm0, %v17457_v0  ;;  %408 = vst.msk [vmem:[#allocation2 + $0x128] sm:$0xff] %vm369_vm0, %v17457_v0  ;;  %v468_v45 = vld [vmem:[%s17626_s23 + $0xc8] sm:$0xff]  ;;  %v469_v46 = vld [vmem:[%s17626_s23 + $0xd0] sm:$0xff] }
  0x60   : > { %409 = vst.msk [vmem:[#allocation2 + $0x130] sm:$0xff] %vm369_vm0, %v17457_v0  ;;  %411 = vst.msk [vmem:[#allocation2 + $0x140] sm:$0xff] %vm369_vm0, %v17457_v0  ;;  %v470_v47 = vld [vmem:[%s17626_s23 + $0xd8] sm:$0xff]  ;;  %v471_v48 = vld [vmem:[%s17626_s23 + $0xe0] sm:$0xff] }
  0x61   : > { %412 = vst.msk [vmem:[#allocation2 + $0x148] sm:$0xff] %vm369_vm0, %v17457_v0  ;;  %413 = vst.msk [vmem:[#allocation2 + $0x150] sm:$0xff] %vm369_vm0, %v17457_v0  ;;  %v472_v49 = vld [vmem:[%s17626_s23 + $0xe8] sm:$0xff]  ;;  %v17279_v52 = vld [vmem:[#allocation5 + $0x20] sm:$0xff]  }
  0x62   : > { %415 = vst.msk [vmem:[#allocation2 + $0x160] sm:$0xff] %vm369_vm0, %v17457_v0  ;;  %416 = vst.msk [vmem:[#allocation2 + $0x168] sm:$0xff] %vm369_vm0, %v17457_v0 }
  0x63   : > { %417 = vst.msk [vmem:[#allocation2 + $0x170] sm:$0xff] %vm369_vm0, %v17457_v0  ;;  %419 = vst.msk [vmem:[#allocation2 + $0x180] sm:$0xff] %vm369_vm0, %v17457_v0 }
  0x64   : > { %420 = vst.msk [vmem:[#allocation2 + $0x188] sm:$0xff] %vm369_vm0, %v17457_v0  ;;  %421 = vst.msk [vmem:[#allocation2 + $0x190] sm:$0xff] %vm369_vm0, %v17457_v0 }
  0x65   : > { %423 = vst.msk [vmem:[#allocation2 + $0x1a0] sm:$0xff] %vm369_vm0, %v17457_v0  ;;  %424 = vst.msk [vmem:[#allocation2 + $0x1a8] sm:$0xff] %vm369_vm0, %v17457_v0 }
  0x66   : > { %425 = vst.msk [vmem:[#allocation2 + $0x1b0] sm:$0xff] %vm369_vm0, %v17457_v0  ;;  %427 = vst.msk [vmem:[#allocation2 + $0x1c0] sm:$0xff] %vm369_vm0, %v17457_v0 }
  0x67   : > { %428 = vst.msk [vmem:[#allocation2 + $0x1c8] sm:$0xff] %vm369_vm0, %v17457_v0  ;;  %429 = vst.msk [vmem:[#allocation2 + $0x1d0] sm:$0xff] %vm369_vm0, %v17457_v0 }
  0x68   : > { %431 = vst.msk [vmem:[#allocation2 + $0x1e0] sm:$0xff] %vm369_vm0, %v17457_v0  ;;  %432 = vst.msk [vmem:[#allocation2 + $0x1e8] sm:$0xff] %vm369_vm0, %v17457_v0 }
  0x69   : > { %433 = vst.msk [vmem:[#allocation2 + $0x1f0] sm:$0xff] %vm369_vm0, %v17457_v0  ;;  %435 = vst.msk [vmem:[#allocation2 + $0x200] sm:$0xff] %vm369_vm0, %v17457_v0 }
  0x6a   : > { %436 = vst.msk [vmem:[#allocation2 + $0x208] sm:$0xff] %vm369_vm0, %v17457_v0  ;;  %437 = vst.msk [vmem:[#allocation2 + $0x210] sm:$0xff] %vm369_vm0, %v17457_v0 }
  0x6b   : > { %439 = vst.msk [vmem:[#allocation2 + $0x220] sm:$0xff] %vm369_vm0, %v17457_v0  ;;  %440 = vst.msk [vmem:[#allocation2 + $0x228] sm:$0xff] %vm369_vm0, %v17457_v0 }
  0x6c   : > { %441 = vst.msk [vmem:[#allocation2 + $0x230] sm:$0xff] %vm369_vm0, %v17457_v0  ;;  %476 = vst.msk [vmem:[#allocation2 + $0x28] sm:$0xff] %vm369_vm0, %v443_v5 }
  0x6d   : > { %374 = vst.msk [vmem:[#allocation2 + $0x18] sm:$0x1] %vm373_vm1, %v17457_v0  ;;  %378 = vst.msk [vmem:[#allocation2 + $0x38] sm:$0x1] %vm373_vm1, %v17457_v0 }
  0x6e   : > { %382 = vst.msk [vmem:[#allocation2 + $0x58] sm:$0x1] %vm373_vm1, %v17457_v0  ;;  %386 = vst.msk [vmem:[#allocation2 + $0x78] sm:$0x1] %vm373_vm1, %v17457_v0 }
  0x6f   : > { %390 = vst.msk [vmem:[#allocation2 + $0x98] sm:$0x1] %vm373_vm1, %v17457_v0  ;;  %394 = vst.msk [vmem:[#allocation2 + $0xb8] sm:$0x1] %vm373_vm1, %v17457_v0 }
  0x70   : > { %398 = vst.msk [vmem:[#allocation2 + $0xd8] sm:$0x1] %vm373_vm1, %v17457_v0  ;;  %402 = vst.msk [vmem:[#allocation2 + $0xf8] sm:$0x1] %vm373_vm1, %v17457_v0 }
  0x71   : > { %406 = vst.msk [vmem:[#allocation2 + $0x118] sm:$0x1] %vm373_vm1, %v17457_v0  ;;  %410 = vst.msk [vmem:[#allocation2 + $0x138] sm:$0x1] %vm373_vm1, %v17457_v0 }
  0x72   : > { %414 = vst.msk [vmem:[#allocation2 + $0x158] sm:$0x1] %vm373_vm1, %v17457_v0  ;;  %418 = vst.msk [vmem:[#allocation2 + $0x178] sm:$0x1] %vm373_vm1, %v17457_v0 }
  0x73   : > { %422 = vst.msk [vmem:[#allocation2 + $0x198] sm:$0x1] %vm373_vm1, %v17457_v0  ;;  %426 = vst.msk [vmem:[#allocation2 + $0x1b8] sm:$0x1] %vm373_vm1, %v17457_v0  ;;  %v568_v25 = vld [vmem:[#allocation2 + $0x28] sm:$0xff] }
  0x74   : > { %430 = vst.msk [vmem:[#allocation2 + $0x1d8] sm:$0x1] %vm373_vm1, %v17457_v0  ;;  %434 = vst.msk [vmem:[#allocation2 + $0x1f8] sm:$0x1] %vm373_vm1, %v17457_v0 }
  0x75   : > { %438 = vst.msk [vmem:[#allocation2 + $0x218] sm:$0x1] %vm373_vm1, %v17457_v0  ;;  %442 = vst.msk [vmem:[#allocation2 + $0x238] sm:$0x1] %vm373_vm1, %v17457_v0 }
  0x76   : > { %477 = vst.msk [vmem:[#allocation2 + $0x30] sm:$0xff] %vm369_vm0, %v444_v7  ;;  %478 = vst.msk [vmem:[#allocation2 + $0x48] sm:$0xff] %vm369_vm0, %v445_v9 }
  0x77   : > { %479 = vst.msk [vmem:[#allocation2 + $0x50] sm:$0xff] %vm369_vm0, %v446_v10  ;;  %480 = vst.msk [vmem:[#allocation2 + $0x68] sm:$0xff] %vm369_vm0, %v447_v11 }
  0x78   : > { %481 = vst.msk [vmem:[#allocation2 + $0x70] sm:$0xff] %vm369_vm0, %v448_v12  ;;  %482 = vst.msk [vmem:[#allocation2 + $0x88] sm:$0xff] %vm369_vm0, %v449_v13 }
  0x79   : > { %483 = vst.msk [vmem:[#allocation2 + $0x90] sm:$0xff] %vm369_vm0, %v450_v14  ;;  %484 = vst.msk [vmem:[#allocation2 + $0xa8] sm:$0xff] %vm369_vm0, %v451_v15 }
  0x7a   : > { %485 = vst.msk [vmem:[#allocation2 + $0xb0] sm:$0xff] %vm369_vm0, %v452_v16  ;;  %486 = vst.msk [vmem:[#allocation2 + $0xc8] sm:$0xff] %vm369_vm0, %v453_v17 }
  0x7b   : > { %487 = vst.msk [vmem:[#allocation2 + $0xd0] sm:$0xff] %vm369_vm0, %v454_v18  ;;  %488 = vst.msk [vmem:[#allocation2 + $0xe8] sm:$0xff] %vm369_vm0, %v455_v19  ;;  %v514_v18 = vld [vmem:[#allocation2 + $0x7] sm:$0xff]  ;;  %v515_v19 = vld [vmem:[#allocation2 + $0xf] sm:$0xff] }
  0x7c   : > { %489 = vst.msk [vmem:[#allocation2 + $0xf0] sm:$0xff] %vm369_vm0, %v456_v20  ;;  %490 = vst.msk [vmem:[#allocation2 + $0x108] sm:$0xff] %vm369_vm0, %v457_v21 }
  0x7d   : > { %491 = vst.msk [vmem:[#allocation2 + $0x110] sm:$0xff] %vm369_vm0, %v458_v22  ;;  %492 = vst.msk [vmem:[#allocation2 + $0x128] sm:$0xff] %vm369_vm0, %v459_v23  ;;  %v569_v27 = vld [vmem:[#allocation2 + $0x30] sm:$0xff]  ;;  %v570_v31 = vld [vmem:[#allocation2 + $0x48] sm:$0xff]  ;;  %v546_v23 = vpack.c.bf16 %v515_v19, %v514_v18 }
  0x7e   : > { %493 = vst.msk [vmem:[#allocation2 + $0x130] sm:$0xff] %vm369_vm0, %v460_v24  ;;  %v17819_v30 = vpack.c.bf16 %v569_v27, %v568_v25  ;;  %v571_v32 = vld [vmem:[#allocation2 + $0x50] sm:$0xff]  ;;  %494 = vst.msk [vmem:[#allocation2 + $0x148] sm:$0xff] %vm369_vm0, %v461_v28  ;;  %v572_v35 = vld [vmem:[#allocation2 + $0x68] sm:$0xff] }
  0x7f   : > { %495 = vst.msk [vmem:[#allocation2 + $0x150] sm:$0xff] %vm369_vm0, %v462_v29  ;;  %v17824_v34 = vpack.c.bf16 %v571_v32, %v570_v31  ;;  %496 = vst.msk [vmem:[#allocation2 + $0x168] sm:$0xff] %vm369_vm0, %v463_v33  ;;  %v573_v36 = vld [vmem:[#allocation2 + $0x70] sm:$0xff]  ;;  %v574_v37 = vld [vmem:[#allocation2 + $0x88] sm:$0xff] }
  0x80   : > { %14741 = vmatmul.mubr.msk.bf16.vlgmr.msra.gmra.mrb[0].mxu0 %vm369_vm0, %v17819_v30  ;;  %v575_v38 = vld [vmem:[#allocation2 + $0x90] sm:$0xff]  ;;  %v17832_v40 = vpack.c.bf16 %v573_v36, %v572_v35  ;;  %497 = vst.msk [vmem:[#allocation2 + $0x170] sm:$0xff] %vm369_vm0, %v464_v39  ;;  %498 = vst.msk [vmem:[#allocation2 + $0x188] sm:$0xff] %vm369_vm0, %v465_v41  ;;  %v576_v50 = vld [vmem:[#allocation2 + $0xa8] sm:$0xff] }
  0x81   : > { %14773 = vmatpush3.bf16.msra.mxu0 %v17277_v8  ;;  %14744 = vmatprep.mubr.msk.bf16.mxu0 %vm369_vm0, %v17824_v34  ;;  %v17838_v44 = vpack.c.bf16 %v575_v38, %v574_v37  ;;  %499 = vst.msk [vmem:[#allocation2 + $0x190] sm:$0xff] %vm369_vm0, %v466_v42  ;;  %500 = vst.msk [vmem:[#allocation2 + $0x1a8] sm:$0xff] %vm369_vm0, %v467_v43  ;;  %v577_v51 = vld [vmem:[#allocation2 + $0xb0] sm:$0xff]  ;;  %v578_v53 = vld [vmem:[#allocation2 + $0xc8] sm:$0xff] }
  0x82   : > { %14774 = vmatprep.subr.bf16.mxu0 %v17278_v26  ;;  %501 = vst.msk [vmem:[#allocation2 + $0x1b0] sm:$0xff] %vm369_vm0, %v468_v45  ;;  %502 = vst.msk [vmem:[#allocation2 + $0x1c8] sm:$0xff] %vm369_vm0, %v469_v46  ;;  %v579_v54 = vld [vmem:[#allocation2 + $0xd0] sm:$0xff]  ;;  %v17857_v55 = vpack.c.bf16 %v577_v51, %v576_v50  ;;  %v580_v57 = vld [vmem:[#allocation2 + $0xe8] sm:$0xff] }
  0x83   : > { %503 = vst.msk [vmem:[#allocation2 + $0x1d0] sm:$0xff] %vm369_vm0, %v470_v47  ;;  %504 = vst.msk [vmem:[#allocation2 + $0x1e8] sm:$0xff] %vm369_vm0, %v471_v48  ;;  %v17859_v56 = vpack.c.bf16 %v579_v54, %v578_v53  ;;  %v581_v58 = vld [vmem:[#allocation2 + $0xf0] sm:$0xff]  ;;  %v582_v59 = vld [vmem:[#allocation2 + $0x108] sm:$0xff] }
  0x84   : > { %505 = vst.msk [vmem:[#allocation2 + $0x1f0] sm:$0xff] %vm369_vm0, %v472_v49  ;;  %v583_v60 = vld [vmem:[#allocation2 + $0x110] sm:$0xff]  ;;  %v17865_v61 = vpack.c.bf16 %v581_v58, %v580_v57  ;;  %v584_v63 = vld [vmem:[#allocation2 + $0x128] sm:$0xff] }
  0x85   : > { %14775 = vmatpush3.bf16.msra.mxu0 %v17278_v26  ;;  %v17867_v62 = vpack.c.bf16 %v583_v60, %v582_v59  ;;  %v585_v1 = vld [vmem:[#allocation2 + $0x130] sm:$0xff]  ;;  %v586_v2 = vld [vmem:[#allocation2 + $0x148] sm:$0xff] }
  0x86   : > { %14808 = vmatprep.subr.bf16.mxu0 %v17279_v52  ;;  %v587_v3 = vld [vmem:[#allocation2 + $0x150] sm:$0xff]  ;;  %v17873_v4 = vpack.c.bf16 %v585_v1, %v584_v63  ;;  %v588_v6 = vld [vmem:[#allocation2 + $0x168] sm:$0xff] }
  0x87   : > { %v17875_v5 = vpack.c.bf16 %v587_v3, %v586_v2  ;;  %v589_v7 = vld [vmem:[#allocation2 + $0x170] sm:$0xff]  ;;  %v590_v8 = vld [vmem:[#allocation2 + $0x188] sm:$0xff] }
  0x88   : > { %14745 = vmatmul.mubr.msk.bf16.gmra.mrb[4].mxu0 %vm369_vm0, %v17832_v40  ;;  %v591_v9 = vld [vmem:[#allocation2 + $0x190] sm:$0xff]  ;;  %v17881_v10 = vpack.c.bf16 %v589_v7, %v588_v6  ;;  %v592_v12 = vld [vmem:[#allocation2 + $0x1a8] sm:$0xff] }
  0x89   : > { %14748 = vmatprep.mubr.msk.bf16.mxu0 %vm369_vm0, %v17838_v44  ;;  %v17883_v11 = vpack.c.bf16 %v591_v9, %v590_v8  ;;  %v593_v13 = vld [vmem:[#allocation2 + $0x1b0] sm:$0xff]  ;;  %v594_v14 = vld [vmem:[#allocation2 + $0x1c8] sm:$0xff] }
  0x8a   : > { %v595_v15 = vld [vmem:[#allocation2 + $0x1d0] sm:$0xff]  ;;  %v17889_v16 = vpack.c.bf16 %v593_v13, %v592_v12  ;;  %v596_v20 = vld [vmem:[#allocation2 + $0x1e8] sm:$0xff] }
  0x8b   : > { %v17891_v17 = vpack.c.bf16 %v595_v15, %v594_v14  ;;  %v597_v21 = vld [vmem:[#allocation2 + $0x1f0] sm:$0xff]  ;;  %v516_v24 = vld [vmem:[#allocation2 + $0x27] sm:$0xff] }
  0x8c   : > { %v17897_v22 = vpack.c.bf16 %v597_v21, %v596_v20  ;;  %v517_v25 = vld [vmem:[#allocation2 + $0x2f] sm:$0xff]  ;;  %v518_v26 = vld [vmem:[#allocation2 + $0x47] sm:$0xff]  ;;  %v474_v20 = vld [vmem:[%s17626_s23 + $0xf8] sm:$0xff] }
  0x8d   : > { %v519_v27 = vld [vmem:[#allocation2 + $0x4f] sm:$0xff]  ;;  %v17902_v28 = vpack.c.bf16 %v517_v25, %v516_v24  ;;  %v520_v32 = vld [vmem:[#allocation2 + $0x67] sm:$0xff]  ;;  %507 = vst.msk [vmem:[#allocation2 + $0x210] sm:$0xff] %vm369_vm0, %v474_v20 }
  0x8e   : > { %v17280_v29 = vld [vmem:[#allocation5 + $0x28] sm:$0xff]   ;;  %v17904_v31 = vpack.c.bf16 %v519_v27, %v518_v26  ;;  %v17908_v37 = vld [vmem:[#allocation5 + $0x30] sm:$0xff]  }
  0x8f   : > { %v521_v33 = vld [vmem:[#allocation2 + $0x6f] sm:$0xff]  ;;  %v522_v35 = vld [vmem:[#allocation2 + $0x87] sm:$0xff] }
  0x90   : > { %14749 = vmatmul.mubr.msk.bf16.gmra.mrb[8].mxu0 %vm369_vm0, %v17857_v55  ;;  %v523_v36 = vld [vmem:[#allocation2 + $0x8f] sm:$0xff]  ;;  %v17912_v38 = vpack.c.bf16 %v521_v33, %v520_v32  ;;  %v524_v41 = vld [vmem:[#allocation2 + $0xa7] sm:$0xff] }
  0x91   : > { %14752 = vmatprep.mubr.msk.bf16.mxu0 %vm369_vm0, %v17859_v56  ;;  %v17914_v39 = vpack.c.bf16 %v523_v36, %v522_v35  ;;  %v525_v42 = vld [vmem:[#allocation2 + $0xaf] sm:$0xff]  ;;  %v526_v43 = vld [vmem:[#allocation2 + $0xc7] sm:$0xff] }
  0x92   : > { %v527_v45 = vld [vmem:[#allocation2 + $0xcf] sm:$0xff]  ;;  %v17921_v46 = vpack.c.bf16 %v525_v42, %v524_v41  ;;  %v528_v48 = vld [vmem:[#allocation2 + $0xe7] sm:$0xff]  ;;  %v17282_v42 = vld [vmem:[#allocation5 + $0x38] sm:$0xff]  }
  0x93   : > { %v17923_v47 = vpack.c.bf16 %v527_v45, %v526_v43  ;;  %v529_v49 = vld [vmem:[#allocation2 + $0xef] sm:$0xff]  ;;  %v530_v50 = vld [vmem:[#allocation2 + $0x107] sm:$0xff] }
  0x94   : > { %v531_v51 = vld [vmem:[#allocation2 + $0x10f] sm:$0xff]  ;;  %v532_v54 = vld [vmem:[#allocation2 + $0x127] sm:$0xff] }
  0x95   : > { %v17931_v53 = vpack.c.bf16 %v531_v51, %v530_v50  ;;  %v533_v57 = vld [vmem:[#allocation2 + $0x12f] sm:$0xff]  ;;  %v534_v58 = vld [vmem:[#allocation2 + $0x147] sm:$0xff] }
  0x96   : > { %v535_v59 = vld [vmem:[#allocation2 + $0x14f] sm:$0xff]  ;;  %v17937_v60 = vpack.c.bf16 %v533_v57, %v532_v54  ;;  %v536_v1 = vld [vmem:[#allocation2 + $0x167] sm:$0xff] }
  0x97   : > { %v17939_v63 = vpack.c.bf16 %v535_v59, %v534_v58  ;;  %v537_v2 = vld [vmem:[#allocation2 + $0x16f] sm:$0xff]  ;;  %v538_v3 = vld [vmem:[#allocation2 + $0x187] sm:$0xff] }
  0x98   : > { %14753 = vmatmul.mubr.msk.bf16.gmra.mrb[12].mxu0 %vm369_vm0, %v17865_v61  ;;  %v539_v6 = vld [vmem:[#allocation2 + $0x18f] sm:$0xff]  ;;  %v17945_v7 = vpack.c.bf16 %v537_v2, %v536_v1  ;;  %v540_v9 = vld [vmem:[#allocation2 + $0x1a7] sm:$0xff] }
  0x99   : > { %14756 = vmatprep.mubr.msk.bf16.mxu0 %vm369_vm0, %v17867_v62  ;;  %v17947_v8 = vpack.c.bf16 %v539_v6, %v538_v3  ;;  %v541_v12 = vld [vmem:[#allocation2 + $0x1af] sm:$0xff]  ;;  %v542_v13 = vld [vmem:[#allocation2 + $0x1c7] sm:$0xff] }
  0x9a   : > { %v543_v14 = vld [vmem:[#allocation2 + $0x1cf] sm:$0xff]  ;;  %v17953_v15 = vpack.c.bf16 %v541_v12, %v540_v9  ;;  %v544_v21 = vld [vmem:[#allocation2 + $0x1e7] sm:$0xff] }
  0x9b   : > { %v17955_v18 = vpack.c.bf16 %v543_v14, %v542_v13  ;;  %v473_v19 = vld [vmem:[%s17626_s23 + $0xf0] sm:$0xff]  ;;  %v17283_v50 = vld [vmem:[#allocation5 + $0x40] sm:$0xff]  }
  0x9c   : > { %506 = vst.msk [vmem:[#allocation2 + $0x208] sm:$0xff] %vm369_vm0, %v473_v19  ;;  %v1061_v24 = vld [vmem:[#allocation2 + $0x9] sm:$0xff]  ;;  %v1062_v25 = vld [vmem:[#allocation2 + $0x11] sm:$0xff] }
  0x9d   : > { %v1093_v27 = vpack.c.bf16 %v1062_v25, %v1061_v24  ;;  %v1064_v32 = vld [vmem:[#allocation2 + $0x31] sm:$0xff]  ;;  %v1065_v33 = vld [vmem:[#allocation2 + $0x49] sm:$0xff] }
  0x9e   : > { %v1066_v35 = vld [vmem:[#allocation2 + $0x51] sm:$0xff]  ;;  %v1067_v43 = vld [vmem:[#allocation2 + $0x69] sm:$0xff] }
  0x9f   : > { %v17972_v41 = vpack.c.bf16 %v1066_v35, %v1065_v33  ;;  %v1068_v45 = vld [vmem:[#allocation2 + $0x71] sm:$0xff]  ;;  %v1073_v58 = vld [vmem:[#allocation2 + $0xc9] sm:$0xff] }
  0xa0   : > { %14757 = vmatmul.mubr.msk.bf16.gmra.mrb[16].mxu0 %vm369_vm0, %v17873_v4  ;;  %v17979_v51 = vpack.c.bf16 %v1068_v45, %v1067_v43  ;;  %v1072_v57 = vld [vmem:[#allocation2 + $0xb1] sm:$0xff]  ;;  %v1075_v3 = vld [vmem:[#allocation2 + $0xe9] sm:$0xff] }
  0xa1   : > { %14760 = vmatprep.mubr.msk.bf16.mxu0 %vm369_vm0, %v17875_v5  ;;  %v1074_v59 = vld [vmem:[#allocation2 + $0xd1] sm:$0xff]  ;;  %v1077_v9 = vld [vmem:[#allocation2 + $0x109] sm:$0xff] }
  0xa2   : > { %v17989_v2 = vpack.c.bf16 %v1074_v59, %v1073_v58  ;;  %v1076_v6 = vld [vmem:[#allocation2 + $0xf1] sm:$0xff]  ;;  %v1079_v19 = vld [vmem:[#allocation2 + $0x129] sm:$0xff] }
  0xa3   : > { %v1078_v12 = vld [vmem:[#allocation2 + $0x111] sm:$0xff]  ;;  %v17995_v13 = vpack.c.bf16 %v1076_v6, %v1075_v3  ;;  %v1087_v43 = vld [vmem:[#allocation2 + $0x1a9] sm:$0xff] }
  0xa4   : > { %v17997_v14 = vpack.c.bf16 %v1078_v12, %v1077_v9  ;;  %v1080_v20 = vld [vmem:[#allocation2 + $0x131] sm:$0xff]  ;;  %v1091_v58 = vld [vmem:[#allocation2 + $0x1e9] sm:$0xff] }
  0xa5   : > { %v18003_v24 = vpack.c.bf16 %v1080_v20, %v1079_v19  ;;  %v1086_v33 = vld [vmem:[#allocation2 + $0x191] sm:$0xff]  ;;  %v17284_v6 = vld [vmem:[#allocation5 + $0x48] sm:$0xff]   ;;  %v17287_v20 = vld [vmem:[#allocation5 + $0x60] sm:$0xff]  }
  0xa6   : > { %v1088_v45 = vld [vmem:[#allocation2 + $0x1b1] sm:$0xff] }
  0xa7   : > { %v1092_v59 = vld [vmem:[#allocation2 + $0x1f1] sm:$0xff] }
  0xa8   : > { %14761 = vmatmul.mubr.msk.bf16.gmra.mrb[20].mxu0 %vm369_vm0, %v17881_v10  ;;  %v18027_v3 = vpack.c.bf16 %v1092_v59, %v1091_v58  ;;  %v17285_v9 = vld [vmem:[#allocation5 + $0x50] sm:$0xff]   ;;  %v17286_v19 = vld [vmem:[#allocation5 + $0x58] sm:$0xff]   ;;  %v2610_v59 = vld [vmem:[#allocation2 + $0x168] sm:$0xff] }
  0xa9   : > { %14764 = vmatprep.mubr.msk.bf16.mxu0 %vm369_vm0, %v17883_v11 }
  0xb0   : > { %14765 = vmatmul.mubr.msk.bf16.gmra.mrb[24].mxu0 %vm369_vm0, %v17889_v16 }
  0xb1   : > { %14768 = vmatprep.mubr.msk.bf16.mxu0 %vm369_vm0, %v17891_v17 }
  0xb8   : > { %14769 = vmatmul.mubr.msk.bf16.gmra.mrb[28].mxu0 %vm369_vm0, %v17897_v22 }
  0xb9   : > { %14776 = vmatprep.mubr.msk.bf16.mxu0 %vm369_vm0, %v546_v23  ;;  %v545_v23 = vld [vmem:[#allocation2 + $0x1ef] sm:$0xff] }
  0xba   : > { %v17965_v26 = vpack.c.bf16 %v545_v23, %v544_v21  ;;  %v1081_v21 = vld [vmem:[#allocation2 + $0x149] sm:$0xff]  ;;  %v1082_v23 = vld [vmem:[#allocation2 + $0x151] sm:$0xff] }
  0xbb   : > { %v18005_v25 = vpack.c.bf16 %v1082_v23, %v1081_v21  ;;  %v2603_v21 = vld [vmem:[#allocation2 + $0xf0] sm:$0xff]  ;;  %v2604_v23 = vld [vmem:[#allocation2 + $0x108] sm:$0xff] }
  0xc0   : > { %14777 = vmatmul.mubr.msk.bf16.vlgmr.msra.gmra.mrb[0].mxu0 %vm369_vm0, %v17902_v28 }
  0xc1   : > { %14809 = vmatpush3.bf16.msra.mxu0 %v17279_v52  ;;  %14780 = vmatprep.mubr.msk.bf16.mxu0 %vm369_vm0, %v17904_v31  ;;  %v17929_v52 = vpack.c.bf16 %v529_v49, %v528_v48  ;;  %v1069_v48 = vld [vmem:[#allocation2 + $0x89] sm:$0xff]  ;;  %v1070_v49 = vld [vmem:[#allocation2 + $0x91] sm:$0xff] }
  0xc2   : > { %14810 = vmatprep.subr.bf16.mxu0 %v17280_v29  ;;  %v17981_v54 = vpack.c.bf16 %v1070_v49, %v1069_v48  ;;  %v1089_v48 = vld [vmem:[#allocation2 + $0x1c9] sm:$0xff]  ;;  %v1090_v49 = vld [vmem:[#allocation2 + $0x1d1] sm:$0xff] }
  0xc5   : > { %14811 = vmatpush3.bf16.msra.mxu0 %v17280_v29  ;;  %v1063_v29 = vld [vmem:[#allocation2 + $0x29] sm:$0xff] }
  0xc6   : > { %14844 = vmatprep.subr.bf16.mxu0 %v17908_v37  ;;  %v17970_v36 = vpack.c.bf16 %v1064_v32, %v1063_v29  ;;  %v1084_v29 = vld [vmem:[#allocation2 + $0x171] sm:$0xff]  ;;  %v1085_v32 = vld [vmem:[#allocation2 + $0x189] sm:$0xff] }
  0xc8   : > { %14781 = vmatmul.mubr.msk.bf16.gmra.mrb[4].mxu0 %vm369_vm0, %v17912_v38 }
  0xc9   : > { %14784 = vmatprep.mubr.msk.bf16.mxu0 %vm369_vm0, %v17914_v39 }
  0xd0   : > { %14785 = vmatmul.mubr.msk.bf16.gmra.mrb[8].mxu0 %vm369_vm0, %v17921_v46 }
  0xd1   : > { %14788 = vmatprep.mubr.msk.bf16.mxu0 %vm369_vm0, %v17923_v47 }
  0xd8   : > { %14789 = vmatmul.mubr.msk.bf16.gmra.mrb[12].mxu0 %vm369_vm0, %v17929_v52 }
  0xd9   : > { %14792 = vmatprep.mubr.msk.bf16.mxu0 %vm369_vm0, %v17931_v53 }
  0xe0   : > { %14793 = vmatmul.mubr.msk.bf16.gmra.mrb[16].mxu0 %vm369_vm0, %v17937_v60 }
  0xe1   : > { %14796 = vmatprep.mubr.msk.bf16.mxu0 %vm369_vm0, %v17939_v63 }
  0xe8   : > { %14797 = vmatmul.mubr.msk.bf16.gmra.mrb[20].mxu0 %vm369_vm0, %v17945_v7 }
  0xe9   : > { %14800 = vmatprep.mubr.msk.bf16.mxu0 %vm369_vm0, %v17947_v8 }
  0xf0   : > { %14801 = vmatmul.mubr.msk.bf16.gmra.mrb[24].mxu0 %vm369_vm0, %v17953_v15 }
  0xf1   : > { %14804 = vmatprep.mubr.msk.bf16.mxu0 %vm369_vm0, %v17955_v18 }
  0xf8   : > { %14805 = vmatmul.mubr.msk.bf16.gmra.mrb[28].mxu0 %vm369_vm0, %v17965_v26 }
  0xf9   : > { %14812 = vmatprep.mubr.msk.bf16.mxu0 %vm369_vm0, %v1093_v27  ;;  %v1083_v27 = vld [vmem:[#allocation2 + $0x169] sm:$0xff] }
  0xfa   : > { %v18011_v35 = vpack.c.bf16 %v1084_v29, %v1083_v27  ;;  %v2605_v27 = vld [vmem:[#allocation2 + $0x110] sm:$0xff] }
 0x100   : > { %14813 = vmatmul.mubr.msk.bf16.vlgmr.msra.gmra.mrb[0].mxu0 %vm369_vm0, %v17970_v36 }
 0x101   : > { %14845 = vmatpush3.bf16.msra.mxu0 %v17908_v37  ;;  %14816 = vmatprep.mubr.msk.bf16.mxu0 %vm369_vm0, %v17972_v41  ;;  %v1071_v37 = vld [vmem:[#allocation2 + $0xa9] sm:$0xff] }
 0x102   : > { %14846 = vmatprep.subr.bf16.mxu0 %v17282_v42  ;;  %v17987_v1 = vpack.c.bf16 %v1072_v57, %v1071_v37  ;;  %v18019_v37 = vpack.c.bf16 %v1088_v45, %v1087_v43  ;;  %v18021_v57 = vpack.c.bf16 %v1090_v49, %v1089_v48  ;;  %v2607_v43 = vld [vmem:[#allocation2 + $0x130] sm:$0xff]  ;;  %v2608_v45 = vld [vmem:[#allocation2 + $0x148] sm:$0xff] }
 0x103   : > { %v2609_v48 = vld [vmem:[#allocation2 + $0x150] sm:$0xff] }
 0x104   : > { %v2632_v58 = vpack.c.bf16 %v2609_v48, %v2608_v45 }
 0x105   : > { %14847 = vmatpush3.bf16.msra.mxu0 %v17282_v42  ;;  %v18013_v42 = vpack.c.bf16 %v1086_v33, %v1085_v32  ;;  %v2630_v32 = vpack.c.bf16 %v2605_v27, %v2604_v23  ;;  %v2606_v33 = vld [vmem:[#allocation2 + $0x128] sm:$0xff] }
 0x106   : > { %14880 = vmatprep.subr.bf16.mxu0 %v17283_v50  ;;  %v2631_v49 = vpack.c.bf16 %v2607_v43, %v2606_v33 }
 0x108   : > { %14817 = vmatmul.mubr.msk.bf16.gmra.mrb[4].mxu0 %vm369_vm0, %v17979_v51 }
 0x109   : > { %14820 = vmatprep.mubr.msk.bf16.mxu0 %vm369_vm0, %v17981_v54 }
 0x110   : > { %14821 = vmatmul.mubr.msk.bf16.gmra.mrb[8].mxu0 %vm369_vm0, %v17987_v1 }
 0x111   : > { %14824 = vmatprep.mubr.msk.bf16.mxu0 %vm369_vm0, %v17989_v2 }
 0x118   : > { %14825 = vmatmul.mubr.msk.bf16.gmra.mrb[12].mxu0 %vm369_vm0, %v17995_v13 }
 0x119   : > { %14828 = vmatprep.mubr.msk.bf16.mxu0 %vm369_vm0, %v17997_v14 }
 0x120   : > { %14829 = vmatmul.mubr.msk.bf16.gmra.mrb[16].mxu0 %vm369_vm0, %v18003_v24 }
 0x121   : > { %14832 = vmatprep.mubr.msk.bf16.mxu0 %vm369_vm0, %v18005_v25 }
 0x128   : > { %14833 = vmatmul.mubr.msk.bf16.gmra.mrb[20].mxu0 %vm369_vm0, %v18011_v35 }
 0x129   : > { %14836 = vmatprep.mubr.msk.bf16.mxu0 %vm369_vm0, %v18013_v42 }
 0x130   : > { %14837 = vmatmul.mubr.msk.bf16.gmra.mrb[24].mxu0 %vm369_vm0, %v18019_v37 }
 0x131   : > { %14840 = vmatprep.mubr.msk.bf16.mxu0 %vm369_vm0, %v18021_v57 }
 0x138   : > { %14841 = vmatmul.mubr.msk.bf16.gmra.mrb[28].mxu0 %vm369_vm0, %v18027_v3 }
 0x139   : > { %14848 = vmatprep.mubr.msk.bf16.mxu0 %vm369_vm0, %v17902_v28  ;;  %v1397_v28 = vld [vmem:[#allocation2 + $0x207] sm:$0xff] }
 0x140   : > { %14849 = vmatmul.mubr.msk.bf16.vlgmr.msra.gmra.mrb[0].mxu0 %vm369_vm0, %v17904_v31 }
 0x141   : > { %14881 = vmatpush3.bf16.msra.mxu0 %v17283_v50  ;;  %14852 = vmatprep.mubr.msk.bf16.mxu0 %vm369_vm0, %v17912_v38  ;;  %v1398_v50 = vld [vmem:[#allocation2 + $0x20f] sm:$0xff] }
 0x142   : > { %14882 = vmatprep.subr.bf16.mxu0 %v17284_v6  ;;  %v18061_v12 = vpack.c.bf16 %v1398_v50, %v1397_v28  ;;  %v2613_v28 = vld [vmem:[#allocation2 + $0x190] sm:$0xff] }
 0x145   : > { %14883 = vmatpush3.bf16.msra.mxu0 %v17284_v6  ;;  %v2611_v6 = vld [vmem:[#allocation2 + $0x170] sm:$0xff] }
 0x146   : > { %14916 = vmatprep.subr.bf16.mxu0 %v17285_v9  ;;  %v2633_v50 = vpack.c.bf16 %v2611_v6, %v2610_v59 }
 0x148   : > { %14853 = vmatmul.mubr.msk.bf16.gmra.mrb[4].mxu0 %vm369_vm0, %v17914_v39 }
 0x149   : > { %14856 = vmatprep.mubr.msk.bf16.mxu0 %vm369_vm0, %v17921_v46 }
 0x150   : > { %14857 = vmatmul.mubr.msk.bf16.gmra.mrb[8].mxu0 %vm369_vm0, %v17923_v47 }
 0x151   : > { %14860 = vmatprep.mubr.msk.bf16.mxu0 %vm369_vm0, %v17929_v52 }
 0x158   : > { %14861 = vmatmul.mubr.msk.bf16.gmra.mrb[12].mxu0 %vm369_vm0, %v17931_v53 }
 0x159   : > { %14864 = vmatprep.mubr.msk.bf16.mxu0 %vm369_vm0, %v17937_v60 }
 0x160   : > { %14865 = vmatmul.mubr.msk.bf16.gmra.mrb[16].mxu0 %vm369_vm0, %v17939_v63 }
 0x161   : > { %14868 = vmatprep.mubr.msk.bf16.mxu0 %vm369_vm0, %v17945_v7 }
 0x168   : > { %14869 = vmatmul.mubr.msk.bf16.gmra.mrb[20].mxu0 %vm369_vm0, %v17947_v8 }
 0x169   : > { %14872 = vmatprep.mubr.msk.bf16.mxu0 %vm369_vm0, %v17953_v15 }
 0x170   : > { %14873 = vmatmul.mubr.msk.bf16.gmra.mrb[24].mxu0 %vm369_vm0, %v17955_v18 }
 0x171   : > { %14876 = vmatprep.mubr.msk.bf16.mxu0 %vm369_vm0, %v17965_v26 }
 0x178   : > { %14877 = vmatmul.mubr.msk.bf16.gmra.mrb[28].mxu0 %vm369_vm0, %v18061_v12 }
 0x179   : > { %14884 = vmatprep.mubr.msk.bf16.mxu0 %vm369_vm0, %v17819_v30  ;;  %v1703_v30 = vld [vmem:[#allocation2 + $0x208] sm:$0xff] }
 0x180   : > { %14885 = vmatmul.mubr.msk.bf16.vlgmr.msra.gmra.mrb[0].mxu0 %vm369_vm0, %v17824_v34  ;;  %v1704_v34 = vld [vmem:[#allocation2 + $0x210] sm:$0xff] }
 0x181   : > { %14917 = vmatpush3.bf16.msra.mxu0 %v17285_v9  ;;  %14888 = vmatprep.mubr.msk.bf16.mxu0 %vm369_vm0, %v17832_v40  ;;  %v18095_v40 = vpack.c.bf16 %v1704_v34, %v1703_v30  ;;  %v2612_v9 = vld [vmem:[#allocation2 + $0x188] sm:$0xff]  ;;  %v2617_v34 = vld [vmem:[#allocation2 + $0x1d0] sm:$0xff] }
 0x182   : > { %14918 = vmatprep.subr.bf16.mxu0 %v17286_v19  ;;  %v2616_v30 = vld [vmem:[#allocation2 + $0x1c8] sm:$0xff] }
 0x185   : > { %14919 = vmatpush3.bf16.msra.mxu0 %v17286_v19  ;;  %v2614_v19 = vld [vmem:[#allocation2 + $0x1a8] sm:$0xff] }
 0x186   : > { %14952 = vmatprep.subr.bf16.mxu0 %v17287_v20 }
 0x188   : > { %14889 = vmatmul.mubr.msk.bf16.gmra.mrb[4].mxu0 %vm369_vm0, %v17838_v44  ;;  %v17288_v44 = vld [vmem:[#allocation5 + $0x68] sm:$0xff]  }
 0x189   : > { %14892 = vmatprep.mubr.msk.bf16.mxu0 %vm369_vm0, %v17857_v55  ;;  %v17289_v55 = vld [vmem:[#allocation5 + $0x70] sm:$0xff]  }
 0x190   : > { %14893 = vmatmul.mubr.msk.bf16.gmra.mrb[8].mxu0 %vm369_vm0, %v17859_v56  ;;  %v2009_v56 = vld [vmem:[#allocation2 + $0x209] sm:$0xff] }
 0x191   : > { %14896 = vmatprep.mubr.msk.bf16.mxu0 %vm369_vm0, %v17865_v61  ;;  %v2010_v61 = vld [vmem:[#allocation2 + $0x211] sm:$0xff] }
 0x198   : > { %14897 = vmatmul.mubr.msk.bf16.gmra.mrb[12].mxu0 %vm369_vm0, %v17867_v62  ;;  %v18129_v62 = vpack.c.bf16 %v2010_v61, %v2009_v56  ;;  %v2618_v56 = vld [vmem:[#allocation2 + $0x1e8] sm:$0xff]  ;;  %v2619_v61 = vld [vmem:[#allocation2 + $0x1f0] sm:$0xff] }
 0x199   : > { %14900 = vmatprep.mubr.msk.bf16.mxu0 %vm369_vm0, %v17873_v4  ;;  %v17290_v4 = vld [vmem:[#allocation5 + $0x78] sm:$0xff]  }
 0x1a0   : > { %14901 = vmatmul.mubr.msk.bf16.gmra.mrb[16].mxu0 %vm369_vm0, %v17875_v5  ;;  %v17291_v5 = vld [vmem:[#allocation5 + $0x80] sm:$0xff]  }
 0x1a1   : > { %14904 = vmatprep.mubr.msk.bf16.mxu0 %vm369_vm0, %v17881_v10  ;;  %v2316_v10 = vld [vmem:[#allocation2 + $0x227] sm:$0xff] }
 0x1a8   : > { %14905 = vmatmul.mubr.msk.bf16.gmra.mrb[20].mxu0 %vm369_vm0, %v17883_v11  ;;  %v2317_v11 = vld [vmem:[#allocation2 + $0x22f] sm:$0xff] }
 0x1a9   : > { %14908 = vmatprep.mubr.msk.bf16.mxu0 %vm369_vm0, %v17889_v16  ;;  %v2592_v16 = vld [vmem:[#allocation2 + $0x48] sm:$0xff] }
 0x1b0   : > { %14909 = vmatmul.mubr.msk.bf16.gmra.mrb[24].mxu0 %vm369_vm0, %v17891_v17  ;;  %v2593_v17 = vld [vmem:[#allocation2 + $0x50] sm:$0xff] }
 0x1b1   : > { %14912 = vmatprep.mubr.msk.bf16.mxu0 %vm369_vm0, %v17897_v22  ;;  %v2333_v22 = vpack.c.bf16 %v2317_v11, %v2316_v10  ;;  %v2623_v10 = vld [vmem:[#allocation2 + $0x230] sm:$0xff] }
 0x1b8   : > { %14913 = vmatmul.mubr.msk.bf16.gmra.mrb[28].mxu0 %vm369_vm0, %v18095_v40 }
 0x1b9   : > { %14920 = vmatprep.mubr.msk.bf16.mxu0 %vm369_vm0, %v17970_v36  ;;  %v2602_v36 = vld [vmem:[#allocation2 + $0xe8] sm:$0xff] }
 0x1ba   : > { %v2629_v29 = vpack.c.bf16 %v2603_v21, %v2602_v36 }
 0x1c0   : > { %14921 = vmatmul.mubr.msk.bf16.vlgmr.msra.gmra.mrb[0].mxu0 %vm369_vm0, %v17972_v41 }
 0x1c1   : > { %14953 = vmatpush3.bf16.msra.mxu0 %v17287_v20  ;;  %14924 = vmatprep.mubr.msk.bf16.mxu0 %vm369_vm0, %v17979_v51  ;;  %v2615_v20 = vld [vmem:[#allocation2 + $0x1b0] sm:$0xff] }
 0x1c2   : > { %14954 = vmatprep.subr.bf16.mxu0 %v17288_v44 }
 0x1c5   : > { %14955 = vmatpush3.bf16.msra.mxu0 %v17288_v44  ;;  %v2635_v44 = vpack.c.bf16 %v2615_v20, %v2614_v19 }
 0x1c6   : > { %14988 = vmatprep.subr.bf16.mxu0 %v17289_v55 }
 0x1c8   : > { %14925 = vmatmul.mubr.msk.bf16.gmra.mrb[4].mxu0 %vm369_vm0, %v17981_v54 }
 0x1c9   : > { %14928 = vmatprep.mubr.msk.bf16.mxu0 %vm369_vm0, %v17987_v1 }
 0x1d0   : > { %14929 = vmatmul.mubr.msk.bf16.gmra.mrb[8].mxu0 %vm369_vm0, %v17989_v2 }
 0x1d1   : > { %14932 = vmatprep.mubr.msk.bf16.mxu0 %vm369_vm0, %v17995_v13 }
 0x1d8   : > { %14933 = vmatmul.mubr.msk.bf16.gmra.mrb[12].mxu0 %vm369_vm0, %v17997_v14 }
 0x1d9   : > { %14936 = vmatprep.mubr.msk.bf16.mxu0 %vm369_vm0, %v18003_v24 }
 0x1e0   : > { %14937 = vmatmul.mubr.msk.bf16.gmra.mrb[16].mxu0 %vm369_vm0, %v18005_v25 }
 0x1e1   : > { %14940 = vmatprep.mubr.msk.bf16.mxu0 %vm369_vm0, %v18011_v35 }
 0x1e8   : > { %14941 = vmatmul.mubr.msk.bf16.gmra.mrb[20].mxu0 %vm369_vm0, %v18013_v42 }
 0x1e9   : > { %14944 = vmatprep.mubr.msk.bf16.mxu0 %vm369_vm0, %v18019_v37 }
 0x1f0   : > { %14945 = vmatmul.mubr.msk.bf16.gmra.mrb[24].mxu0 %vm369_vm0, %v18021_v57 }
 0x1f1   : > { %14948 = vmatprep.mubr.msk.bf16.mxu0 %vm369_vm0, %v18027_v3 }
 0x1f8   : > { %14949 = vmatmul.mubr.msk.bf16.gmra.mrb[28].mxu0 %vm369_vm0, %v18129_v62 }
 0x1f9   : > { %14956 = vmatprep.mubr.msk.bf16.mxu0 %vm369_vm0, %v17904_v31  ;;  %v2624_v31 = vpack.c.bf16 %v2593_v17, %v2592_v16 }
 0x200   : > { %14957 = vmatmul.mubr.msk.bf16.vlgmr.msra.gmra.mrb[0].mxu0 %vm369_vm0, %v17912_v38  ;;  %v2594_v38 = vld [vmem:[#allocation2 + $0x68] sm:$0xff] }
 0x201   : > { %14989 = vmatpush3.bf16.msra.mxu0 %v17289_v55  ;;  %14960 = vmatprep.mubr.msk.bf16.mxu0 %vm369_vm0, %v17914_v39  ;;  %v2595_v39 = vld [vmem:[#allocation2 + $0x70] sm:$0xff]  ;;  %v2636_v55 = vpack.c.bf16 %v2617_v34, %v2616_v30 }
 0x202   : > { %14990 = vmatprep.subr.bf16.mxu0 %v17290_v4 }
 0x205   : > { %14991 = vmatpush3.bf16.msra.mxu0 %v17290_v4  ;;  %v2637_v4 = vpack.c.bf16 %v2619_v61, %v2618_v56 }
 0x206   : > { %15024 = vmatprep.subr.bf16.mxu0 %v17291_v5 }
 0x208   : > { %14961 = vmatmul.mubr.msk.bf16.gmra.mrb[4].mxu0 %vm369_vm0, %v17921_v46  ;;  %v2596_v46 = vld [vmem:[#allocation2 + $0x88] sm:$0xff] }
 0x209   : > { %14964 = vmatprep.mubr.msk.bf16.mxu0 %vm369_vm0, %v17923_v47  ;;  %v2597_v47 = vld [vmem:[#allocation2 + $0x90] sm:$0xff] }
 0x210   : > { %14965 = vmatmul.mubr.msk.bf16.gmra.mrb[8].mxu0 %vm369_vm0, %v17929_v52  ;;  %v2625_v52 = vpack.c.bf16 %v2595_v39, %v2594_v38 }
 0x211   : > { %14968 = vmatprep.mubr.msk.bf16.mxu0 %vm369_vm0, %v17931_v53  ;;  %v2626_v53 = vpack.c.bf16 %v2597_v47, %v2596_v46 }
 0x218   : > { %14969 = vmatmul.mubr.msk.bf16.gmra.mrb[12].mxu0 %vm369_vm0, %v17937_v60  ;;  %v17292_v60 = vld [vmem:[#allocation5 + $0x88] sm:$0xff]  }
 0x219   : > { %14972 = vmatprep.mubr.msk.bf16.mxu0 %vm369_vm0, %v17939_v63  ;;  %v2598_v63 = vld [vmem:[#allocation2 + $0xa8] sm:$0xff] }
 0x220   : > { %14973 = vmatmul.mubr.msk.bf16.gmra.mrb[16].mxu0 %vm369_vm0, %v17945_v7  ;;  %v2599_v7 = vld [vmem:[#allocation2 + $0xb0] sm:$0xff] }
 0x221   : > { %14976 = vmatprep.mubr.msk.bf16.mxu0 %vm369_vm0, %v17947_v8  ;;  %v2600_v8 = vld [vmem:[#allocation2 + $0xc8] sm:$0xff] }
 0x228   : > { %14977 = vmatmul.mubr.msk.bf16.gmra.mrb[20].mxu0 %vm369_vm0, %v17953_v15  ;;  %v2601_v15 = vld [vmem:[#allocation2 + $0xd0] sm:$0xff] }
 0x229   : > { %14980 = vmatprep.mubr.msk.bf16.mxu0 %vm369_vm0, %v17955_v18  ;;  %v2627_v18 = vpack.c.bf16 %v2599_v7, %v2598_v63 }
 0x230   : > { %14981 = vmatmul.mubr.msk.bf16.gmra.mrb[24].mxu0 %vm369_vm0, %v17965_v26  ;;  %v2628_v26 = vpack.c.bf16 %v2601_v15, %v2600_v8 }
 0x231   : > { %14984 = vmatprep.mubr.msk.bf16.mxu0 %vm369_vm0, %v18061_v12  ;;  %v2634_v12 = vpack.c.bf16 %v2613_v28, %v2612_v9 }
 0x238   : > { %14985 = vmatmul.mubr.msk.bf16.gmra.mrb[28].mxu0 %vm369_vm0, %v2333_v22 }
 0x239   : > { %14992 = vmatprep.mubr.msk.bf16.mxu0 %vm369_vm0, %v2624_v31 }
 0x240   : > { %14993 = vmatmul.mubr.msk.bf16.vlgmr.msra.gmra.mrb[0].mxu0 %vm369_vm0, %v2625_v52 }
 0x241   : > { %15025 = vmatpush3.bf16.msra.mxu0 %v17291_v5  ;;  %14996 = vmatprep.mubr.msk.bf16.mxu0 %vm369_vm0, %v2626_v53  ;;  %v2622_v5 = vld [vmem:[#allocation2 + $0x228] sm:$0xff] }
 0x242   : > { %15026 = vmatprep.subr.bf16.mxu0 %v17292_v60  ;;  %v2639_v11 = vpack.c.bf16 %v2623_v10, %v2622_v5 }
 0x245   : > { %15027 = vmatpush3.bf16.msra.mxu0 %v17292_v60 }
 0x248   : > { %14997 = vmatmul.mubr.msk.bf16.gmra.mrb[4].mxu0 %vm369_vm0, %v2627_v18 }
 0x249   : > { %15000 = vmatprep.mubr.msk.bf16.mxu0 %vm369_vm0, %v2628_v26 }
 0x250   : > { %15001 = vmatmul.mubr.msk.bf16.gmra.mrb[8].mxu0 %vm369_vm0, %v2629_v29 }
 0x251   : > { %15004 = vmatprep.mubr.msk.bf16.mxu0 %vm369_vm0, %v2630_v32 }
 0x258   : > { %15005 = vmatmul.mubr.msk.bf16.gmra.mrb[12].mxu0 %vm369_vm0, %v2631_v49 }
 0x259   : > { %15008 = vmatprep.mubr.msk.bf16.mxu0 %vm369_vm0, %v2632_v58 }
 0x260   : > { %15009 = vmatmul.mubr.msk.bf16.gmra.mrb[16].mxu0 %vm369_vm0, %v2633_v50 }
 0x261   : > { %15012 = vmatprep.mubr.msk.bf16.mxu0 %vm369_vm0, %v2634_v12 }
 0x268   : > { %15013 = vmatmul.mubr.msk.bf16.gmra.mrb[20].mxu0 %vm369_vm0, %v2635_v44 }
 0x269   : > { %15016 = vmatprep.mubr.msk.bf16.mxu0 %vm369_vm0, %v2636_v55 }
 0x270   : > { %15017 = vmatmul.mubr.msk.bf16.gmra.mrb[24].mxu0 %vm369_vm0, %v2637_v4 }
 0x271   : > { %15020 = vmatprep.mubr.msk.bf16.mxu0 %vm369_vm0, %v18095_v40 }
 0x278   : > { %15021 = vmatmul.mubr.msk.bf16.gmra.mrb[28].mxu0 %vm369_vm0, %v2639_v11 }
 0x279   : > { %15028 = vmatprep.mubr.msk.bf16.mxu0 %vm369_vm0, %v17972_v41  ;;  %v2928_v41 = vld [vmem:[#allocation2 + $0x229] sm:$0xff] }
 0x280   : > { %15029 = vmatmul.mubr.msk.bf16.vlgmr.msra.gmra.mrb[0].mxu0 %vm369_vm0, %v17979_v51  ;;  %v2929_v51 = vld [vmem:[#allocation2 + $0x231] sm:$0xff] }
 0x281   : > { %15032 = vmatprep.mubr.msk.bf16.mxu0 %vm369_vm0, %v17981_v54  ;;  %v2945_v54 = vpack.c.bf16 %v2929_v51, %v2928_v41 }
 0x288   : > { %15033 = vmatmul.mubr.msk.bf16.gmra.mrb[4].mxu0 %vm369_vm0, %v17987_v1  ;;  %v508_v1 = vld [vmem:[%s20729_s7] sm:$0xff] }
 0x289   : > { %15036 = vmatprep.mubr.msk.bf16.mxu0 %vm369_vm0, %v17989_v2  ;;  %v509_v2 = vld [vmem:[%s20729_s7 + $0x8] sm:$0xff] }
 0x290   : > { %15037 = vmatmul.mubr.msk.bf16.gmra.mrb[8].mxu0 %vm369_vm0, %v17995_v13  ;;  %v17458_v13 = vmov 0.0|0.0  }
 0x291   : > { %15040 = vmatprep.mubr.msk.bf16.mxu0 %vm369_vm0, %v17997_v14  ;;  %16140 = vmatprep.subr.bf16.mxu0 %v17458_v13  ;;  %v18219_v14 = vpack.c.bf16 %v509_v2, %v508_v1 }
 0x292   : > { %16146 = vmatprep.subr.bf16.mxu1 %v17458_v13 }
 0x293   : > { %16142 = vmatpush3.bf16.msra.mxu0 %v18219_v14  ;;  %16148 = vmatpush3.bf16.msra.mxu1 %v18219_v14 }
 0x294   : > { %16143 = vmatprep.subr.bf16.mxu0 %v17458_v13  ;;  %16149 = vmatprep.subr.bf16.mxu1 %v17458_v13 }
 0x298   : > { %15041 = vmatmul.mubr.msk.bf16.gmra.mrb[12].mxu0 %vm369_vm0, %v18003_v24  ;;  %v510_v24 = vld [vmem:[%s20729_s7 + $0x10] sm:$0xff] }
 0x299   : > { %15044 = vmatprep.mubr.msk.bf16.mxu0 %vm369_vm0, %v18005_v25  ;;  %v511_v25 = vld [vmem:[%s20729_s7 + $0x18] sm:$0xff] }
 0x2a0   : > { %15045 = vmatmul.mubr.msk.bf16.gmra.mrb[16].mxu0 %vm369_vm0, %v18011_v35  ;;  %v18232_v35 = vpack.c.bf16 %v511_v25, %v510_v24 }
 0x2a1   : > { %15048 = vmatprep.mubr.msk.bf16.mxu0 %vm369_vm0, %v18013_v42 }
 0x2a2   : > { %16145 = vmatpush3.bf16.msra.mxu0 %v18232_v35  ;;  %16151 = vmatpush3.bf16.msra.mxu1 %v18232_v35 }
 0x2a3   : > { %16152 = vmatprep.subr.bf16.mxu0 %v17458_v13  ;;  %16155 = vmatprep.subr.bf16.mxu1 %v17458_v13 }
 0x2a8   : > { %15049 = vmatmul.mubr.msk.bf16.gmra.mrb[20].mxu0 %vm369_vm0, %v18019_v37 }
 0x2a9   : > { %15052 = vmatprep.mubr.msk.bf16.mxu0 %vm369_vm0, %v18021_v57 }
 0x2b0   : > { %15053 = vmatmul.mubr.msk.bf16.gmra.mrb[24].mxu0 %vm369_vm0, %v18027_v3 }
 0x2b1   : > { %15056 = vmatprep.mubr.msk.bf16.mxu0 %vm369_vm0, %v18129_v62 }
 0x2b8   : > { %15057 = vmatmul.mubr.msk.bf16.gmra.mrb[28].mxu0 %vm369_vm0, %v2945_v54 }
 0x2b9   : > { %15068 = vmatprep.mubr.msk.f32.mxu0 %vm17459_vm2, %v17457_v0 }
 0x353   : > { %v18242_v42 = vpop.f32.mrb[0].mxu0 }
 0x354   : > { %v18244_v37 = vpop.f32.mrb[1].mxu0  ;;  %v3276_v62 = vmul.f32 %v18242_v42, %v18242_v42  ;;  %v3208_v38 = vsel %vm369_vm0, %v18242_v42, 0.0 }
 0x355   : > { %v3274_v57 = vmul.f32 %v18244_v37, %v18244_v37  ;;  %v18248_v3 = vpop.f32.mrb[2].mxu0  ;;  %v3205_v16 = vsel %vm369_vm0, %v18244_v37, 0.0 }
 0x356   : > { %v18250_v40 = vpop.f32.mrb[3].mxu0  ;;  %v3277_v46 = vmul.f32 %v18248_v3, %v18248_v3  ;;  %v3309_v60 = vsel %vm369_vm0, %v3276_v62, 0.0  ;;  %v3210_v63 = vsel %vm369_vm0, %v18248_v3, 0.0 }
 0x357   : > { %v3206_v17 = vsel %vm369_vm0, %v18250_v40, 0.0  ;;  %v3275_v22 = vmul.f32 %v18250_v40, %v18250_v40  ;;  %v3306_v39 = vsel %vm369_vm0, %v3274_v57, 0.0 }
 0x358   : > { %v3207_v31 = vadd.f32 %v3206_v17, %v3205_v16  ;;  %v3311_v26 = vsel %vm369_vm0, %v3277_v46, 0.0 }
 0x359   : > { %v3307_v47 = vsel %vm369_vm0, %v3275_v22, 0.0 }
 0x35a   : > { %v3209_v52 = vadd.f32 %v3208_v38, %v3207_v31  ;;  %v3308_v53 = vadd.f32 %v3307_v47, %v3306_v39 }
 0x35b   : > { %v18269_v7 = vpop.f32.mrb[4].mxu0 }
 0x35c   : > { %v3310_v8 = vadd.f32 %v3309_v60, %v3308_v53  ;;  %v18271_v15 = vpop.f32.mrb[5].mxu0  ;;  %v3211_v18 = vadd.f32 %v3210_v63, %v3209_v52  ;;  %v3280_v33 = vmul.f32 %v18269_v7, %v18269_v7  ;;  %v3216_v59 = vsel %vm369_vm0, %v18269_v7, 0.0 }
 0x35d   : > { %v3212_v36 = vsel %vm369_vm0, %v18271_v15, 0.0  ;;  %v3278_v21 = vmul.f32 %v18271_v15, %v18271_v15  ;;  %v18278_v23 = vpop.f32.mrb[6].mxu0 }
 0x35e   : > { %v3213_v27 = vadd.f32 %v3212_v36, %v3211_v18  ;;  %v3312_v29 = vadd.f32 %v3311_v26, %v3310_v8  ;;  %v18280_v32 = vpop.f32.mrb[7].mxu0  ;;  %v3281_v6 = vmul.f32 %v18278_v23, %v18278_v23  ;;  %v3317_v12 = vsel %vm369_vm0, %v3280_v33, 0.0 }
 0x35f   : > { %v3313_v43 = vsel %vm369_vm0, %v3278_v21, 0.0  ;;  %v3214_v45 = vsel %vm369_vm0, %v18280_v32, 0.0  ;;  %v3279_v48 = vmul.f32 %v18280_v32, %v18280_v32  ;;  %v3218_v19 = vsel %vm369_vm0, %v18278_v23, 0.0 }
 0x360   : > { %v3314_v49 = vadd.f32 %v3313_v43, %v3312_v29  ;;  %v3215_v58 = vadd.f32 %v3214_v45, %v3213_v27  ;;  %v3319_v55 = vsel %vm369_vm0, %v3281_v6, 0.0 }
 0x361   : > { %v3315_v9 = vsel %vm369_vm0, %v3279_v48, 0.0 }
 0x362   : > { %v3217_v28 = vadd.f32 %v3216_v59, %v3215_v58  ;;  %v3316_v50 = vadd.f32 %v3315_v9, %v3314_v49 }
 0x363   : > { %v18297_v20 = vpop.f32.mrb[8].mxu0 }
 0x364   : > { %v3318_v30 = vadd.f32 %v3317_v12, %v3316_v50  ;;  %v18299_v34 = vpop.f32.mrb[9].mxu0  ;;  %v3219_v44 = vadd.f32 %v3218_v19, %v3217_v28  ;;  %v3284_v41 = vmul.f32 %v18297_v20, %v18297_v20  ;;  %v3224_v25 = vsel %vm369_vm0, %v18297_v20, 0.0 }
 0x365   : > { %v3220_v56 = vsel %vm369_vm0, %v18299_v34, 0.0  ;;  %v3282_v61 = vmul.f32 %v18299_v34, %v18299_v34  ;;  %v18306_v4 = vpop.f32.mrb[10].mxu0 }
 0x366   : > { %v3221_v5 = vadd.f32 %v3220_v56, %v3219_v44  ;;  %v3320_v10 = vadd.f32 %v3319_v55, %v3318_v30  ;;  %v18308_v11 = vpop.f32.mrb[11].mxu0  ;;  %v3285_v57 = vmul.f32 %v18306_v4, %v18306_v4  ;;  %v3325_v22 = vsel %vm369_vm0, %v3284_v41, 0.0 }
 0x367   : > { %v3321_v51 = vsel %vm369_vm0, %v3282_v61, 0.0  ;;  %v3222_v54 = vsel %vm369_vm0, %v18308_v11, 0.0  ;;  %v3283_v1 = vmul.f32 %v18308_v11, %v18308_v11  ;;  %v3226_v31 = vsel %vm369_vm0, %v18306_v4, 0.0 }
 0x368   : > { %v3322_v2 = vadd.f32 %v3321_v51, %v3320_v10  ;;  %v3223_v24 = vadd.f32 %v3222_v54, %v3221_v5  ;;  %v3327_v52 = vsel %vm369_vm0, %v3285_v57, 0.0 }
 0x369   : > { %v3323_v62 = vsel %vm369_vm0, %v3283_v1, 0.0 }
 0x36a   : > { %v3225_v16 = vadd.f32 %v3224_v25, %v3223_v24  ;;  %v3324_v17 = vadd.f32 %v3323_v62, %v3322_v2 }
 0x36b   : > { %v18325_v38 = vpop.f32.mrb[12].mxu0 }
 0x36c   : > { %v3326_v39 = vadd.f32 %v3325_v22, %v3324_v17  ;;  %v18327_v46 = vpop.f32.mrb[13].mxu0  ;;  %v3227_v47 = vadd.f32 %v3226_v31, %v3225_v16  ;;  %v3288_v36 = vmul.f32 %v18325_v38, %v18325_v38  ;;  %v3232_v45 = vsel %vm369_vm0, %v18325_v38, 0.0 }
 0x36d   : > { %v3228_v53 = vsel %vm369_vm0, %v18327_v46, 0.0  ;;  %v3286_v60 = vmul.f32 %v18327_v46, %v18327_v46  ;;  %v18334_v63 = vpop.f32.mrb[14].mxu0 }
 0x36e   : > { %v3229_v8 = vadd.f32 %v3228_v53, %v3227_v47  ;;  %v3328_v18 = vadd.f32 %v3327_v52, %v3326_v39  ;;  %v18336_v26 = vpop.f32.mrb[15].mxu0  ;;  %v3289_v48 = vmul.f32 %v18334_v63, %v18334_v63  ;;  %v3333_v6 = vsel %vm369_vm0, %v3288_v36, 0.0 }
 0x36f   : > { %v3329_v21 = vsel %vm369_vm0, %v3286_v60, 0.0  ;;  %v3230_v27 = vsel %vm369_vm0, %v18336_v26, 0.0  ;;  %v3287_v29 = vmul.f32 %v18336_v26, %v18336_v26  ;;  %v3234_v9 = vsel %vm369_vm0, %v18334_v63, 0.0 }
 0x370   : > { %v3330_v33 = vadd.f32 %v3329_v21, %v3328_v18  ;;  %v3231_v43 = vadd.f32 %v3230_v27, %v3229_v8  ;;  %v3335_v30 = vsel %vm369_vm0, %v3289_v48, 0.0 }
 0x371   : > { %v3331_v49 = vsel %vm369_vm0, %v3287_v29, 0.0 }
 0x372   : > { %v3233_v58 = vadd.f32 %v3232_v45, %v3231_v43  ;;  %v3332_v59 = vadd.f32 %v3331_v49, %v3330_v33 }
 0x373   : > { %v18353_v28 = vpop.f32.mrb[16].mxu0 }
 0x374   : > { %v3334_v50 = vadd.f32 %v3333_v6, %v3332_v59  ;;  %v18355_v12 = vpop.f32.mrb[17].mxu0  ;;  %v3235_v19 = vadd.f32 %v3234_v9, %v3233_v58  ;;  %v3292_v41 = vmul.f32 %v18353_v28, %v18353_v28  ;;  %v3240_v25 = vsel %vm369_vm0, %v18353_v28, 0.0 }
 0x375   : > { %v3236_v44 = vsel %vm369_vm0, %v18355_v12, 0.0  ;;  %v3290_v55 = vmul.f32 %v18355_v12, %v18355_v12  ;;  %v18362_v56 = vpop.f32.mrb[18].mxu0 }
 0x376   : > { %v3237_v61 = vadd.f32 %v3236_v44, %v3235_v19  ;;  %v3336_v5 = vadd.f32 %v3335_v30, %v3334_v50  ;;  %v18364_v10 = vpop.f32.mrb[19].mxu0  ;;  %v3293_v57 = vmul.f32 %v18362_v56, %v18362_v56  ;;  %v3341_v22 = vsel %vm369_vm0, %v3292_v41, 0.0 }
 0x377   : > { %v3337_v51 = vsel %vm369_vm0, %v3290_v55, 0.0  ;;  %v3238_v54 = vsel %vm369_vm0, %v18364_v10, 0.0  ;;  %v3291_v1 = vmul.f32 %v18364_v10, %v18364_v10  ;;  %v3242_v31 = vsel %vm369_vm0, %v18362_v56, 0.0 }
 0x378   : > { %v3338_v2 = vadd.f32 %v3337_v51, %v3336_v5  ;;  %v3239_v24 = vadd.f32 %v3238_v54, %v3237_v61  ;;  %v3343_v60 = vsel %vm369_vm0, %v3293_v57, 0.0 }
 0x379   : > { %v3339_v62 = vsel %vm369_vm0, %v3291_v1, 0.0 }
 0x37a   : > { %v3241_v16 = vadd.f32 %v3240_v25, %v3239_v24  ;;  %v3340_v17 = vadd.f32 %v3339_v62, %v3338_v2 }
 0x37b   : > { %v18381_v39 = vpop.f32.mrb[20].mxu0 }
 0x37c   : > { %v3342_v47 = vadd.f32 %v3341_v22, %v3340_v17  ;;  %v18383_v52 = vpop.f32.mrb[21].mxu0  ;;  %v3243_v53 = vadd.f32 %v3242_v31, %v3241_v16  ;;  %v3296_v33 = vmul.f32 %v18381_v39, %v18381_v39  ;;  %v3248_v59 = vsel %vm369_vm0, %v18381_v39, 0.0 }
 0x37d   : > { %v3244_v8 = vsel %vm369_vm0, %v18383_v52, 0.0  ;;  %v3294_v18 = vmul.f32 %v18383_v52, %v18383_v52  ;;  %v18390_v36 = vpop.f32.mrb[22].mxu0 }
 0x37e   : > { %v3245_v21 = vadd.f32 %v3244_v8, %v3243_v53  ;;  %v3344_v27 = vadd.f32 %v3343_v60, %v3342_v47  ;;  %v18392_v29 = vpop.f32.mrb[23].mxu0  ;;  %v3297_v6 = vmul.f32 %v18390_v36, %v18390_v36  ;;  %v3349_v30 = vsel %vm369_vm0, %v3296_v33, 0.0 }
 0x37f   : > { %v3345_v43 = vsel %vm369_vm0, %v3294_v18, 0.0  ;;  %v3246_v45 = vsel %vm369_vm0, %v18392_v29, 0.0  ;;  %v3295_v48 = vmul.f32 %v18392_v29, %v18392_v29  ;;  %v3250_v44 = vsel %vm369_vm0, %v18390_v36, 0.0 }
 0x380   : > { %v3346_v49 = vadd.f32 %v3345_v43, %v3344_v27  ;;  %v3247_v58 = vadd.f32 %v3246_v45, %v3245_v21  ;;  %v3351_v51 = vsel %vm369_vm0, %v3297_v6, 0.0 }
 0x381   : > { %v3347_v9 = vsel %vm369_vm0, %v3295_v48, 0.0 }
 0x382   : > { %v3249_v50 = vadd.f32 %v3248_v59, %v3247_v58  ;;  %v3348_v19 = vadd.f32 %v3347_v9, %v3346_v49 }
 0x383   : > { %v18409_v55 = vpop.f32.mrb[24].mxu0 }
 0x384   : > { %v3350_v61 = vadd.f32 %v3349_v30, %v3348_v19  ;;  %v18411_v5 = vpop.f32.mrb[25].mxu0  ;;  %v3251_v41 = vadd.f32 %v3250_v44, %v3249_v50  ;;  %v3300_v62 = vmul.f32 %v18409_v55, %v18409_v55  ;;  %v3256_v53 = vsel %vm369_vm0, %v18409_v55, 0.0 }
 0x385   : > { %v3252_v54 = vsel %vm369_vm0, %v18411_v5, 0.0  ;;  %v3298_v1 = vmul.f32 %v18411_v5, %v18411_v5  ;;  %v18418_v2 = vpop.f32.mrb[26].mxu0 }
 0x386   : > { %v3253_v24 = vadd.f32 %v3252_v54, %v3251_v41  ;;  %v3352_v25 = vadd.f32 %v3351_v51, %v3350_v61  ;;  %v18420_v57 = vpop.f32.mrb[27].mxu0  ;;  %v3301_v60 = vmul.f32 %v18418_v2, %v18418_v2  ;;  %v3357_v27 = vsel %vm369_vm0, %v3300_v62, 0.0 }
 0x387   : > { %v3353_v16 = vsel %vm369_vm0, %v3298_v1, 0.0  ;;  %v3254_v17 = vsel %vm369_vm0, %v18420_v57, 0.0  ;;  %v3299_v22 = vmul.f32 %v18420_v57, %v18420_v57  ;;  %v3258_v33 = vsel %vm369_vm0, %v18418_v2, 0.0 }
 0x388   : > { %v3354_v31 = vadd.f32 %v3353_v16, %v3352_v25  ;;  %v3255_v47 = vadd.f32 %v3254_v17, %v3253_v24  ;;  %v3359_v58 = vsel %vm369_vm0, %v3301_v60, 0.0 }
 0x389   : > { %v3355_v8 = vsel %vm369_vm0, %v3299_v22, 0.0 }
 0x38a   : > { %v3257_v18 = vadd.f32 %v3256_v53, %v3255_v47  ;;  %v3356_v21 = vadd.f32 %v3355_v8, %v3354_v31 }
 0x38b   : > { %v18437_v43 = vpop.f32.mrb[28].mxu0 }
 0x38c   : > { %v3358_v45 = vadd.f32 %v3357_v27, %v3356_v21  ;;  %v18439_v48 = vpop.f32.mrb[29].mxu0  ;;  %v3259_v49 = vadd.f32 %v3258_v33, %v3257_v18  ;;  %v3304_v44 = vmul.f32 %v18437_v43, %v18437_v43  ;;  %v3264_v24 = vsel %vm369_vm0, %v18437_v43, 0.0  ;;  %v18469_v33 = vld [vmem:[%s20724_s2] sm:$0x1] }
 0x38d   : > { %v3260_v59 = vsel %vm369_vm0, %v18439_v48, 0.0  ;;  %v3302_v6 = vmul.f32 %v18439_v48, %v18439_v48  ;;  %v18446_v9 = vpop.f32.mrb[30].mxu0 }
 0x38e   : > { %v3261_v50 = vadd.f32 %v3260_v59, %v3259_v49  ;;  %v3360_v19 = vadd.f32 %v3359_v58, %v3358_v45  ;;  %v18448_v30 = vpop.f32.mrb[31].mxu0  ;;  %v3305_v25 = vmul.f32 %v18446_v9, %v18446_v9  ;;  %v3365_v22 = vsel %vm369_vm0, %v3304_v44, 0.0 }
 0x38f   : > { %v3361_v61 = vsel %vm369_vm0, %v3302_v6, 0.0  ;;  %v3262_v41 = vsel %vm369_vm0, %v18448_v30, 0.0  ;;  %v3303_v51 = vmul.f32 %v18448_v30, %v18448_v30  ;;  %v3266_v31 = vsel %vm369_vm0, %v18446_v9, 0.0 }
 0x390   : > { %v3362_v54 = vadd.f32 %v3361_v61, %v3360_v19  ;;  %v3263_v1 = vadd.f32 %v3262_v41, %v3261_v50  ;;  %v3367_v60 = vsel %vm369_vm0, %v3305_v25, 0.0  ;;  %v3375_v6 = vmul.f32 256.0, %v18469_v33 }
 0x391   : > { %v3363_v62 = vsel %vm369_vm0, %v3303_v51, 0.0  ;;  %v3377_v44 = vmul.f32 2.0, %v18469_v33  ;;  %v3380_v61 = vmul.f32 %v18469_v33, %v18469_v33 }
 0x392   : > { %v3265_v16 = vadd.f32 %v3264_v24, %v3263_v1  ;;  %v3364_v17 = vadd.f32 %v3363_v62, %v3362_v54 }
 0x393   : > { %v3381_v25 = vmul.f32 256.0, %v3380_v61 }
 0x394   : > { %v3267_v47 = vadd.f32 %v3266_v31, %v3265_v16  ;;  %v3366_v53 = vadd.f32 %v3365_v22, %v3364_v17  ;;  %v512_v17 = vld [vmem:[%s20730_s8] sm:$0xff]  ;;  %v513_v22 = vld [vmem:[%s20730_s8 + $0x8] sm:$0xff] }
 0x395   : > { %v18487_v31 = vpack.c.bf16 %v513_v22, %v512_v17 }
 0x396   : > { %v3268_v8 = vrot.slane %v3267_v47, 4  ;;  %v3368_v18 = vadd.f32 %v3367_v60, %v3366_v53 }
 0x398   : > { %v3269_v21 = vadd.f32 %v3268_v8, %v3267_v47  ;;  %v3369_v27 = vrot.slane %v3368_v18, 4 }
 0x39a   : > { %v3270_v45 = vrot.slane %v3269_v21, 2  ;;  %v3370_v49 = vadd.f32 %v3369_v27, %v3368_v18 }
 0x39c   : > { %v3271_v58 = vadd.f32 %v3270_v45, %v3269_v21  ;;  %v3371_v59 = vrot.slane %v3370_v49, 2 }
 0x39e   : > { %v3272_v50 = vrot.slane %v3271_v58, 1  ;;  %v3372_v19 = vadd.f32 %v3371_v59, %v3370_v49  ;;  %v17293_v49 = vld [vmem:[#allocation5 + $0xa0] sm:$0xff]   ;;  %v3878_v59 = vld [vmem:[#allocation2 + $0x8] sm:$0xff] }
 0x3a0   : > { %v3273_v41 = vadd.f32 %v3272_v50, %v3271_v58  ;;  %v3373_v51 = vrot.slane %v3372_v19, 1  ;;  %v17294_v58 = vld [vmem:[#allocation5 + $0xa8] sm:$0xff]  }
 0x3a2   : > { %v3376_v54 = vadd.f32 %v3375_v6, %v3273_v41  ;;  %v3374_v1 = vadd.f32 %v3373_v51, %v3372_v19  ;;  %v3378_v24 = vmul.f32 %v3377_v44, %v3273_v41  ;;  %v3879_v6 = vld [vmem:[#allocation2 + $0x10] sm:$0xff] }
 0x3a3   : > { %v3910_v50 = vpack.c.bf16 %v3879_v6, %v3878_v59  ;;  %v18500_v19 = vld [vmem:[#allocation5 + $0x90] sm:$0xff]  }
 0x3a4   : > { %15069 = vmatmul.mubr.msk.f32.vlgmr.msra.gmra.mrb[32].mxu0 %vm369_vm0, %v3376_v54  ;;  %v3379_v62 = vadd.f32 %v3378_v24, %v3374_v1  ;;  %v3687_v1 = vlaneseq }
 0x3a5   : > { %15086 = vmatprep.mubr.msk.f32.mxu0 %vm17459_vm2, %v17457_v0  ;;  %16154 = vmatpush3.bf16.msra.mxu0 %v18487_v31 }
 0x3a6   : > { %v3382_v16 = vadd.f32 %v3381_v25, %v3379_v62  ;;  %16158 = vmatprep.subr.bf16.mxu0 %v17458_v13  ;;  %v3688_v24 = vshrl.u32 %v3687_v1, 7  ;;  %v3681_v25 = vld [vmem:[%s20725_s3] sm:$0x1] }
 0x3a8   : > { %15080 = vmatmul.mubr.msk.f32.vlgmr.msra.gmra.mrb[0].mxu1 %vm369_vm0, %v3382_v16  ;;  %v18507_v62 = vsub.s32 0, %v3688_v24 }
 0x3a9   : > { %15093 = vmatprep.mubr.msk.f32.mxu1 %vm17459_vm2, %v17457_v0  ;;  %16157 = vmatpush3.bf16.msra.mxu1 %v18487_v31 }
 0x3aa   : > { %15096 = vmatprep.subr.bf16.mxu1 %v17293_v49 }
 0x477   : > { %v3452_v47 = vpop.f32.mrb[32].mxu0 }
 0x478   : > { %v3456_v53 = vmul.f32 0.001953125, %v3452_v47  ;;  %v15070_v60 = vpop.f32.mrb[33].mxu0  ;;  %v3685_v47 = vld [vmem:[%s20726_s4] sm:$0x1] }
 0x47a   : > { %15087 = vmatmul.mubr.msk.f32.vlgmr.msra.gmra.mrb[34].mxu0 %vm3533_vm3, %v3456_v53  ;;  %v3531_v18 = vmul.f32 %v3456_v53, %v3456_v53 }
 0x47b   : > { %v3526_v8 = vpop.f32.mrb[0].mxu1  ;;  %16160 = vmatpush3.bf16.msra.mxu0 %v18219_v14  ;;  %15428 = vmatprep.mubr.msk.f32.mxu0 %vm17459_vm2, %v17457_v0 }
 0x47c   : > { %v3530_v21 = vmul.f32 0.001953125, %v3526_v8  ;;  %v15081_v27 = vpop.f32.mrb[1].mxu1  ;;  %16161 = vmatprep.subr.bf16.mxu0 %v17458_v13 }
 0x47e   : > { %v3532_v45 = vsub.f32 %v3530_v21, %v3531_v18 }
 0x47f   : > { %16163 = vmatpush3.bf16.msra.mxu0 %v18232_v35 }
 0x480   : > { %15094 = vmatmul.mubr.msk.f32.vlgmr.msra.gmra.mrb[2].mxu1 %vm3533_vm3, %v3532_v45  ;;  %16164 = vmatprep.subr.bf16.mxu0 %v17458_v13 }
 0x481   : > { %15097 = vmatpush3.bf16.msra.mxu1 %v17293_v49  ;;  %15100 = vmatprep.mubr.msk.bf16.mxu1 %vm369_vm0, %v3910_v50 }
 0x482   : > { %15098 = vmatprep.subr.bf16.mxu1 %v17294_v58 }
 0x485   : > { %15099 = vmatpush3.bf16.msra.mxu1 %v17294_v58 }
 0x486   : > { %15132 = vmatprep.subr.bf16.mxu1 %v18500_v19 }
 0x54d   : > { %v3603_v44 = vpop.f32.mrb[34].mxu0 }
 0x54e   : > { %v15088_v61 = vpop.f32.mrb[35].mxu0  ;;  %v3683_v17 = vsub.f32 %v18469_v33, %v3603_v44 }
 0x553   : > { %v3676_v41 = vpop.f32.mrb[2].mxu1 }
 0x554   : > { %v3677_v51 = vadd.f32 1e-05, %v3676_v41  ;;  %v15095_v54 = vpop.f32.mrb[3].mxu1 }
 0x556   : > { %17347 = vrsqrt.f32 %v3677_v51 }
 0x560   : > { %v17348_v16 = vpop.eup %17347 }
 0x561   : > { %v3682_v22 = vmul.f32 %v17348_v16, %v3681_v25 }
 0x563   : > { %v3684_v53 = vmul.f32 %v3683_v17, %v3682_v22  ;;  %v3690_v60 = vrot.slane %v3682_v22, %v18507_v62 }
 0x565   : > { %v3686_v8 = vadd.f32 %v3685_v47, %v3684_v53  ;;  %v3691_v18 = vmul.f32 %v3690_v60, %v18244_v37  ;;  %v3692_v21 = vmul.f32 %v3690_v60, %v18250_v40  ;;  %v3693_v27 = vmul.f32 %v18242_v42, %v3690_v60 }
 0x566   : > { %v3694_v45 = vmul.f32 %v18248_v3, %v3690_v60  ;;  %v3695_v49 = vmul.f32 %v3690_v60, %v18271_v15  ;;  %v3696_v33 = vmul.f32 %v3690_v60, %v18280_v32  ;;  %v3697_v58 = vmul.f32 %v18269_v7, %v3690_v60 }
 0x567   : > { %v3727_v59 = vrot.slane %v3686_v8, %v18507_v62  ;;  %v3698_v6 = vmul.f32 %v18278_v23, %v3690_v60  ;;  %v3699_v50 = vmul.f32 %v3690_v60, %v18299_v34  ;;  %v3700_v37 = vmul.f32 %v3690_v60, %v18308_v11 }
 0x568   : > { %v3701_v40 = vmul.f32 %v18297_v20, %v3690_v60  ;;  %v3702_v42 = vmul.f32 %v18306_v4, %v3690_v60  ;;  %v3703_v3 = vmul.f32 %v3690_v60, %v18327_v46  ;;  %v3704_v15 = vmul.f32 %v3690_v60, %v18336_v26 }
 0x569   : > { %v3705_v32 = vmul.f32 %v18325_v38, %v3690_v60  ;;  %v3706_v7 = vmul.f32 %v18334_v63, %v3690_v60  ;;  %v3707_v44 = vmul.f32 %v3690_v60, %v18355_v12  ;;  %v3708_v23 = vmul.f32 %v3690_v60, %v18364_v10 }
 0x56a   : > { %v3709_v34 = vmul.f32 %v18353_v28, %v3690_v60  ;;  %v3710_v11 = vmul.f32 %v18362_v56, %v3690_v60  ;;  %v3711_v20 = vmul.f32 %v3690_v60, %v18383_v52  ;;  %v3712_v4 = vmul.f32 %v3690_v60, %v18392_v29 }
 0x56b   : > { %v3713_v46 = vmul.f32 %v18381_v39, %v3690_v60  ;;  %v3714_v26 = vmul.f32 %v18390_v36, %v3690_v60  ;;  %v3715_v38 = vmul.f32 %v3690_v60, %v18411_v5  ;;  %v3716_v63 = vmul.f32 %v3690_v60, %v18420_v57 }
 0x56c   : > { %v3717_v12 = vmul.f32 %v18409_v55, %v3690_v60  ;;  %v3718_v10 = vmul.f32 %v18418_v2, %v3690_v60  ;;  %v3719_v28 = vmul.f32 %v3690_v60, %v18439_v48  ;;  %v3720_v56 = vmul.f32 %v3690_v60, %v18448_v30 }
 0x56d   : > { %v3721_v52 = vmul.f32 %v18437_v43, %v3690_v60  ;;  %v3722_v29 = vmul.f32 %v18446_v9, %v3690_v60  ;;  %v3729_v61 = vadd.f32 %v3727_v59, %v3691_v18  ;;  %v3730_v39 = vadd.f32 %v3727_v59, %v3692_v21 }
 0x56e   : > { %v3731_v41 = vadd.f32 %v3727_v59, %v3693_v27  ;;  %v3732_v36 = vadd.f32 %v3727_v59, %v3694_v45  ;;  %v3733_v51 = vadd.f32 %v3727_v59, %v3695_v49  ;;  %v3734_v5 = vadd.f32 %v3727_v59, %v3696_v33 }
 0x56f   : > { %v3735_v54 = vadd.f32 %v3727_v59, %v3697_v58  ;;  %v3736_v57 = vadd.f32 %v3727_v59, %v3698_v6  ;;  %v3737_v1 = vadd.f32 %v3727_v59, %v3699_v50  ;;  %v3738_v55 = vadd.f32 %v3727_v59, %v3700_v37 }
 0x570   : > { %v3739_v24 = vadd.f32 %v3727_v59, %v3701_v40  ;;  %v3740_v2 = vadd.f32 %v3727_v59, %v3702_v42  ;;  %v3741_v25 = vadd.f32 %v3727_v59, %v3703_v3  ;;  %v3742_v48 = vadd.f32 %v3727_v59, %v3704_v15 }
 0x571   : > { %v3743_v16 = vadd.f32 %v3727_v59, %v3705_v32  ;;  %v3744_v30 = vadd.f32 %v3727_v59, %v3706_v7  ;;  %v3745_v17 = vadd.f32 %v3727_v59, %v3707_v44  ;;  %v3746_v43 = vadd.f32 %v3727_v59, %v3708_v23 }
 0x572   : > { %v18547_v22 = vadd.f32 %v3727_v59, %v3709_v34  ;;  %v18549_v9 = vadd.f32 %v3727_v59, %v3710_v11  ;;  %v18551_v47 = vadd.f32 %v3727_v59, %v3711_v20  ;;  %v18553_v53 = vadd.f32 %v3727_v59, %v3712_v4 }
 0x573   : > { %v18555_v60 = vadd.f32 %v3727_v59, %v3713_v46  ;;  %v18557_v8 = vadd.f32 %v3727_v59, %v3714_v26  ;;  %v18559_v18 = vadd.f32 %v3727_v59, %v3715_v38  ;;  %v18561_v21 = vadd.f32 %v3727_v59, %v3716_v63 }
 0x574   : > { %v18563_v27 = vadd.f32 %v3727_v59, %v3717_v12  ;;  %v18565_v45 = vadd.f32 %v3727_v59, %v3718_v10  ;;  %v18567_v49 = vadd.f32 %v3727_v59, %v3719_v28  ;;  %v18569_v33 = vadd.f32 %v3727_v59, %v3720_v56 }
 0x575   : > { %v18571_v58 = vadd.f32 %v3727_v59, %v3721_v52  ;;  %v18573_v6 = vadd.f32 %v3727_v59, %v3722_v29  ;;  %v3761_v50 = vmax.f32 %v3729_v61, 0.0  ;;  %v3762_v37 = vmax.f32 %v3730_v39, 0.0 }
 0x576   : > { %v3763_v40 = vmax.f32 %v3731_v41, 0.0  ;;  %v3764_v42 = vmax.f32 %v3732_v36, 0.0  ;;  %v3765_v3 = vmax.f32 %v3733_v51, 0.0  ;;  %v3766_v15 = vmax.f32 %v3734_v5, 0.0 }
 0x577   : > { %v3767_v32 = vmax.f32 %v3735_v54, 0.0  ;;  %v3768_v7 = vmax.f32 %v3736_v57, 0.0  ;;  %v3769_v44 = vmax.f32 %v3737_v1, 0.0  ;;  %v3770_v23 = vmax.f32 %v3738_v55, 0.0  ;;  %3793 = vst.msk [vmem:[#allocation2 + $0x28] sm:$0xff] %vm369_vm0, %v3761_v50  ;;  %3794 = vst.msk [vmem:[#allocation2 + $0x30] sm:$0xff] %vm369_vm0, %v3762_v37 }
 0x578   : > { %v3771_v34 = vmax.f32 %v3739_v24, 0.0  ;;  %v3772_v11 = vmax.f32 %v3740_v2, 0.0  ;;  %v3773_v20 = vmax.f32 %v3741_v25, 0.0  ;;  %v3774_v4 = vmax.f32 %v3742_v48, 0.0  ;;  %3795 = vst.msk [vmem:[#allocation2 + $0x48] sm:$0xff] %vm369_vm0, %v3763_v40  ;;  %3796 = vst.msk [vmem:[#allocation2 + $0x50] sm:$0xff] %vm369_vm0, %v3764_v42 }
 0x579   : > { %3797 = vst.msk [vmem:[#allocation2 + $0x68] sm:$0xff] %vm369_vm0, %v3765_v3  ;;  %3798 = vst.msk [vmem:[#allocation2 + $0x70] sm:$0xff] %vm369_vm0, %v3766_v15  ;;  %v3775_v59 = vmax.f32 %v3743_v16, 0.0  ;;  %v3776_v46 = vmax.f32 %v3744_v30, 0.0  ;;  %v3777_v26 = vmax.f32 %v3745_v17, 0.0  ;;  %v3778_v38 = vmax.f32 %v3746_v43, 0.0 }
 0x57a   : > { %3799 = vst.msk [vmem:[#allocation2 + $0x88] sm:$0xff] %vm369_vm0, %v3767_v32  ;;  %3800 = vst.msk [vmem:[#allocation2 + $0x90] sm:$0xff] %vm369_vm0, %v3768_v7  ;;  %v3779_v63 = vmax.f32 %v18547_v22, 0.0  ;;  %v3780_v12 = vmax.f32 %v18549_v9, 0.0  ;;  %v3781_v10 = vmax.f32 %v18551_v47, 0.0  ;;  %v3782_v28 = vmax.f32 %v18553_v53, 0.0 }
 0x57b   : > { %3801 = vst.msk [vmem:[#allocation2 + $0xa8] sm:$0xff] %vm369_vm0, %v3769_v44  ;;  %3802 = vst.msk [vmem:[#allocation2 + $0xb0] sm:$0xff] %vm369_vm0, %v3770_v23  ;;  %v3783_v56 = vmax.f32 %v18555_v60, 0.0  ;;  %v3784_v52 = vmax.f32 %v18557_v8, 0.0  ;;  %v3785_v29 = vmax.f32 %v18559_v18, 0.0  ;;  %v3786_v61 = vmax.f32 %v18561_v21, 0.0 }
 0x57c   : > { %3803 = vst.msk [vmem:[#allocation2 + $0xc8] sm:$0xff] %vm369_vm0, %v3771_v34  ;;  %3804 = vst.msk [vmem:[#allocation2 + $0xd0] sm:$0xff] %vm369_vm0, %v3772_v11  ;;  %v3787_v39 = vmax.f32 %v18563_v27, 0.0  ;;  %v3788_v41 = vmax.f32 %v18565_v45, 0.0  ;;  %v3789_v36 = vmax.f32 %v18567_v49, 0.0  ;;  %v3790_v51 = vmax.f32 %v18569_v33, 0.0 }
 0x57d   : > { %3805 = vst.msk [vmem:[#allocation2 + $0xe8] sm:$0xff] %vm369_vm0, %v3773_v20  ;;  %3806 = vst.msk [vmem:[#allocation2 + $0xf0] sm:$0xff] %vm369_vm0, %v3774_v4  ;;  %v3791_v5 = vmax.f32 %v18571_v58, 0.0  ;;  %v3792_v54 = vmax.f32 %v18573_v6, 0.0  ;;  %v17296_v25 = vld [vmem:[#allocation5 + $0x98] sm:$0xff]   ;;  %v18630_v16 = vld [vmem:[#allocation5 + $0xb0] sm:$0xff]  }
 0x57e   : > { %3807 = vst.msk [vmem:[#allocation2 + $0x108] sm:$0xff] %vm369_vm0, %v3775_v59  ;;  %3808 = vst.msk [vmem:[#allocation2 + $0x110] sm:$0xff] %vm369_vm0, %v3776_v46  ;;  %v3880_v57 = vld [vmem:[#allocation2 + $0x28] sm:$0xff]  ;;  %v3881_v1 = vld [vmem:[#allocation2 + $0x30] sm:$0xff] }
 0x57f   : > { %3809 = vst.msk [vmem:[#allocation2 + $0x128] sm:$0xff] %vm369_vm0, %v3777_v26  ;;  %3810 = vst.msk [vmem:[#allocation2 + $0x130] sm:$0xff] %vm369_vm0, %v3778_v38  ;;  %v18621_v55 = vpack.c.bf16 %v3881_v1, %v3880_v57  ;;  %v3882_v24 = vld [vmem:[#allocation2 + $0x48] sm:$0xff]  ;;  %v3883_v2 = vld [vmem:[#allocation2 + $0x50] sm:$0xff] }
 0x580   : > { %3811 = vst.msk [vmem:[#allocation2 + $0x148] sm:$0xff] %vm369_vm0, %v3779_v63  ;;  %3812 = vst.msk [vmem:[#allocation2 + $0x150] sm:$0xff] %vm369_vm0, %v3780_v12  ;;  %v18623_v48 = vpack.c.bf16 %v3883_v2, %v3882_v24  ;;  %v3884_v30 = vld [vmem:[#allocation2 + $0x68] sm:$0xff]  ;;  %v3885_v17 = vld [vmem:[#allocation2 + $0x70] sm:$0xff] }
 0x581   : > { %3813 = vst.msk [vmem:[#allocation2 + $0x168] sm:$0xff] %vm369_vm0, %v3781_v10  ;;  %3814 = vst.msk [vmem:[#allocation2 + $0x170] sm:$0xff] %vm369_vm0, %v3782_v28  ;;  %15101 = vmatmul.mubr.msk.bf16.vlgmr.msra.gmra.mrb[4].mxu1 %vm369_vm0, %v18621_v55  ;;  %v3886_v43 = vld [vmem:[#allocation2 + $0x88] sm:$0xff]  ;;  %v3887_v22 = vld [vmem:[#allocation2 + $0x90] sm:$0xff]  ;;  %v18632_v9 = vpack.c.bf16 %v3885_v17, %v3884_v30 }
 0x582   : > { %3815 = vst.msk [vmem:[#allocation2 + $0x188] sm:$0xff] %vm369_vm0, %v3783_v56  ;;  %3816 = vst.msk [vmem:[#allocation2 + $0x190] sm:$0xff] %vm369_vm0, %v3784_v52  ;;  %15104 = vmatprep.mubr.msk.bf16.mxu1 %vm369_vm0, %v18623_v48  ;;  %15133 = vmatpush3.bf16.msra.mxu1 %v18500_v19  ;;  %v18635_v47 = vpack.c.bf16 %v3887_v22, %v3886_v43  ;;  %v3888_v19 = vld [vmem:[#allocation2 + $0xa8] sm:$0xff]  ;;  %v3889_v53 = vld [vmem:[#allocation2 + $0xb0] sm:$0xff] }
 0x583   : > { %3817 = vst.msk [vmem:[#allocation2 + $0x1a8] sm:$0xff] %vm369_vm0, %v3785_v29  ;;  %3818 = vst.msk [vmem:[#allocation2 + $0x1b0] sm:$0xff] %vm369_vm0, %v3786_v61  ;;  %15134 = vmatprep.subr.bf16.mxu1 %v17296_v25  ;;  %v3890_v60 = vld [vmem:[#allocation2 + $0xc8] sm:$0xff]  ;;  %v3891_v8 = vld [vmem:[#allocation2 + $0xd0] sm:$0xff]  ;;  %v18641_v18 = vpack.c.bf16 %v3889_v53, %v3888_v19 }
 0x584   : > { %3819 = vst.msk [vmem:[#allocation2 + $0x1c8] sm:$0xff] %vm369_vm0, %v3787_v39  ;;  %3820 = vst.msk [vmem:[#allocation2 + $0x1d0] sm:$0xff] %vm369_vm0, %v3788_v41  ;;  %v18643_v21 = vpack.c.bf16 %v3891_v8, %v3890_v60  ;;  %v3892_v27 = vld [vmem:[#allocation2 + $0xe8] sm:$0xff]  ;;  %v3893_v45 = vld [vmem:[#allocation2 + $0xf0] sm:$0xff] }
 0x585   : > { %3821 = vst.msk [vmem:[#allocation2 + $0x1e8] sm:$0xff] %vm369_vm0, %v3789_v36  ;;  %3822 = vst.msk [vmem:[#allocation2 + $0x1f0] sm:$0xff] %vm369_vm0, %v3790_v51  ;;  %v3894_v49 = vld [vmem:[#allocation2 + $0x108] sm:$0xff]  ;;  %v3895_v33 = vld [vmem:[#allocation2 + $0x110] sm:$0xff]  ;;  %v18649_v58 = vpack.c.bf16 %v3893_v45, %v3892_v27 }
 0x586   : > { %3823 = vst.msk [vmem:[#allocation2 + $0x208] sm:$0xff] %vm369_vm0, %v3791_v5  ;;  %3824 = vst.msk [vmem:[#allocation2 + $0x210] sm:$0xff] %vm369_vm0, %v3792_v54  ;;  %15135 = vmatpush3.bf16.msra.mxu1 %v17296_v25  ;;  %v18651_v6 = vpack.c.bf16 %v3895_v33, %v3894_v49  ;;  %v3896_v50 = vld [vmem:[#allocation2 + $0x128] sm:$0xff]  ;;  %v3897_v37 = vld [vmem:[#allocation2 + $0x130] sm:$0xff] }
 0x587   : > { %15168 = vmatprep.subr.bf16.mxu1 %v18630_v16  ;;  %v3898_v40 = vld [vmem:[#allocation2 + $0x148] sm:$0xff]  ;;  %v3899_v42 = vld [vmem:[#allocation2 + $0x150] sm:$0xff]  ;;  %v18657_v3 = vpack.c.bf16 %v3897_v37, %v3896_v50  ;;  %v17298_v51 = vld [vmem:[#allocation5 + $0xb8] sm:$0xff]  }
 0x588   : > { %v18659_v15 = vpack.c.bf16 %v3899_v42, %v3898_v40  ;;  %v3900_v32 = vld [vmem:[#allocation2 + $0x168] sm:$0xff]  ;;  %v3901_v7 = vld [vmem:[#allocation2 + $0x170] sm:$0xff]  ;;  %v18695_v54 = vld [vmem:[#allocation5 + $0xc0] sm:$0xff]  }
 0x589   : > { %15105 = vmatmul.mubr.msk.bf16.gmra.mrb[8].mxu1 %vm369_vm0, %v18632_v9  ;;  %v3902_v44 = vld [vmem:[#allocation2 + $0x188] sm:$0xff]  ;;  %v3903_v23 = vld [vmem:[#allocation2 + $0x190] sm:$0xff]  ;;  %v18665_v34 = vpack.c.bf16 %v3901_v7, %v3900_v32 }
 0x58a   : > { %15108 = vmatprep.mubr.msk.bf16.mxu1 %vm369_vm0, %v18635_v47  ;;  %v18667_v11 = vpack.c.bf16 %v3903_v23, %v3902_v44  ;;  %v3904_v20 = vld [vmem:[#allocation2 + $0x1a8] sm:$0xff]  ;;  %v3905_v4 = vld [vmem:[#allocation2 + $0x1b0] sm:$0xff] }
 0x58b   : > { %v3906_v59 = vld [vmem:[#allocation2 + $0x1c8] sm:$0xff]  ;;  %v3907_v46 = vld [vmem:[#allocation2 + $0x1d0] sm:$0xff]  ;;  %v18673_v26 = vpack.c.bf16 %v3905_v4, %v3904_v20 }
 0x58c   : > { %v18675_v38 = vpack.c.bf16 %v3907_v46, %v3906_v59  ;;  %v3825_v63 = vld [vmem:[#allocation2 + $0x7] sm:$0xff]  ;;  %v3826_v12 = vld [vmem:[#allocation2 + $0xf] sm:$0xff] }
 0x58d   : > { %v3908_v10 = vld [vmem:[#allocation2 + $0x1e8] sm:$0xff]  ;;  %v3909_v28 = vld [vmem:[#allocation2 + $0x1f0] sm:$0xff]  ;;  %v3857_v56 = vpack.c.bf16 %v3826_v12, %v3825_v63 }
 0x58e   : > { %v18681_v52 = vpack.c.bf16 %v3909_v28, %v3908_v10  ;;  %v3827_v29 = vld [vmem:[#allocation2 + $0x27] sm:$0xff]  ;;  %v3828_v61 = vld [vmem:[#allocation2 + $0x2f] sm:$0xff] }
 0x58f   : > { %v3829_v39 = vld [vmem:[#allocation2 + $0x47] sm:$0xff]  ;;  %v3830_v41 = vld [vmem:[#allocation2 + $0x4f] sm:$0xff]  ;;  %v18686_v36 = vpack.c.bf16 %v3828_v61, %v3827_v29 }
 0x590   : > { %v18688_v5 = vpack.c.bf16 %v3830_v41, %v3829_v39  ;;  %v3831_v57 = vld [vmem:[#allocation2 + $0x67] sm:$0xff]  ;;  %v3832_v1 = vld [vmem:[#allocation2 + $0x6f] sm:$0xff] }
 0x591   : > { %15109 = vmatmul.mubr.msk.bf16.gmra.mrb[12].mxu1 %vm369_vm0, %v18641_v18  ;;  %v3833_v24 = vld [vmem:[#allocation2 + $0x87] sm:$0xff]  ;;  %v3834_v2 = vld [vmem:[#allocation2 + $0x8f] sm:$0xff]  ;;  %v18697_v25 = vpack.c.bf16 %v3832_v1, %v3831_v57 }
 0x592   : > { %15112 = vmatprep.mubr.msk.bf16.mxu1 %vm369_vm0, %v18643_v21  ;;  %v18700_v30 = vpack.c.bf16 %v3834_v2, %v3833_v24  ;;  %v3836_v17 = vld [vmem:[#allocation2 + $0xaf] sm:$0xff]  ;;  %v3837_v43 = vld [vmem:[#allocation2 + $0xc7] sm:$0xff] }
 0x593   : > { %v3838_v22 = vld [vmem:[#allocation2 + $0xcf] sm:$0xff]  ;;  %v3839_v60 = vld [vmem:[#allocation2 + $0xe7] sm:$0xff] }
 0x594   : > { %v18708_v53 = vpack.c.bf16 %v3838_v22, %v3837_v43  ;;  %v3840_v8 = vld [vmem:[#allocation2 + $0xef] sm:$0xff]  ;;  %v3841_v27 = vld [vmem:[#allocation2 + $0x107] sm:$0xff] }
 0x595   : > { %v3842_v45 = vld [vmem:[#allocation2 + $0x10f] sm:$0xff]  ;;  %v18714_v49 = vpack.c.bf16 %v3840_v8, %v3839_v60  ;;  %v3843_v50 = vld [vmem:[#allocation2 + $0x127] sm:$0xff] }
 0x596   : > { %v18716_v33 = vpack.c.bf16 %v3842_v45, %v3841_v27  ;;  %v3844_v37 = vld [vmem:[#allocation2 + $0x12f] sm:$0xff]  ;;  %v3845_v40 = vld [vmem:[#allocation2 + $0x147] sm:$0xff] }
 0x597   : > { %v3846_v42 = vld [vmem:[#allocation2 + $0x14f] sm:$0xff]  ;;  %v18722_v32 = vpack.c.bf16 %v3844_v37, %v3843_v50  ;;  %v3847_v44 = vld [vmem:[#allocation2 + $0x167] sm:$0xff] }
 0x598   : > { %v18724_v7 = vpack.c.bf16 %v3846_v42, %v3845_v40  ;;  %v3848_v23 = vld [vmem:[#allocation2 + $0x16f] sm:$0xff]  ;;  %v3849_v20 = vld [vmem:[#allocation2 + $0x187] sm:$0xff] }
 0x599   : > { %15113 = vmatmul.mubr.msk.bf16.gmra.mrb[16].mxu1 %vm369_vm0, %v18649_v58  ;;  %v3850_v4 = vld [vmem:[#allocation2 + $0x18f] sm:$0xff]  ;;  %v18730_v59 = vpack.c.bf16 %v3848_v23, %v3847_v44  ;;  %v3851_v63 = vld [vmem:[#allocation2 + $0x1a7] sm:$0xff] }
 0x59a   : > { %15116 = vmatprep.mubr.msk.bf16.mxu1 %vm369_vm0, %v18651_v6  ;;  %v18732_v46 = vpack.c.bf16 %v3850_v4, %v3849_v20  ;;  %v3852_v12 = vld [vmem:[#allocation2 + $0x1af] sm:$0xff]  ;;  %v3853_v10 = vld [vmem:[#allocation2 + $0x1c7] sm:$0xff] }
 0x59b   : > { %v3854_v28 = vld [vmem:[#allocation2 + $0x1cf] sm:$0xff]  ;;  %v3855_v41 = vld [vmem:[#allocation2 + $0x1e7] sm:$0xff] }
 0x59c   : > { %v18740_v29 = vpack.c.bf16 %v3854_v28, %v3853_v10  ;;  %v4373_v61 = vld [vmem:[#allocation2 + $0x9] sm:$0xff]  ;;  %v4374_v39 = vld [vmem:[#allocation2 + $0x11] sm:$0xff] }
 0x59d   : > { %v4405_v57 = vpack.c.bf16 %v4374_v39, %v4373_v61  ;;  %v4375_v24 = vld [vmem:[#allocation2 + $0x29] sm:$0xff]  ;;  %v4376_v2 = vld [vmem:[#allocation2 + $0x31] sm:$0xff] }
 0x59e   : > { %v18751_v43 = vpack.c.bf16 %v4376_v2, %v4375_v24  ;;  %v17300_v22 = vld [vmem:[#allocation5 + $0xc8] sm:$0xff]   ;;  %v17301_v8 = vld [vmem:[#allocation5 + $0xd0] sm:$0xff]  }
 0x59f   : > { %v4379_v27 = vld [vmem:[#allocation2 + $0x69] sm:$0xff]  ;;  %v4380_v45 = vld [vmem:[#allocation2 + $0x71] sm:$0xff] }
 0x5a0   : > { %v4381_v50 = vld [vmem:[#allocation2 + $0x89] sm:$0xff]  ;;  %v4382_v37 = vld [vmem:[#allocation2 + $0x91] sm:$0xff]  ;;  %v18760_v40 = vpack.c.bf16 %v4380_v45, %v4379_v27 }
 0x5a1   : > { %15117 = vmatmul.mubr.msk.bf16.gmra.mrb[20].mxu1 %vm369_vm0, %v18657_v3  ;;  %v18762_v42 = vpack.c.bf16 %v4382_v37, %v4381_v50  ;;  %v4383_v44 = vld [vmem:[#allocation2 + $0xa9] sm:$0xff]  ;;  %v4386_v20 = vld [vmem:[#allocation2 + $0xd1] sm:$0xff] }
 0x5a2   : > { %15120 = vmatprep.mubr.msk.bf16.mxu1 %vm369_vm0, %v18659_v15  ;;  %v4385_v23 = vld [vmem:[#allocation2 + $0xc9] sm:$0xff]  ;;  %v4388_v10 = vld [vmem:[#allocation2 + $0xf1] sm:$0xff] }
 0x5a3   : > { %v4389_v28 = vld [vmem:[#allocation2 + $0x109] sm:$0xff]  ;;  %v4390_v61 = vld [vmem:[#allocation2 + $0x111] sm:$0xff] }
 0x5a4   : > { %v4393_v24 = vld [vmem:[#allocation2 + $0x149] sm:$0xff]  ;;  %v4394_v2 = vld [vmem:[#allocation2 + $0x151] sm:$0xff] }
 0x5a5   : > { %v4396_v27 = vld [vmem:[#allocation2 + $0x171] sm:$0xff]  ;;  %v4397_v45 = vld [vmem:[#allocation2 + $0x189] sm:$0xff] }
 0x5a6   : > { %v4398_v50 = vld [vmem:[#allocation2 + $0x191] sm:$0xff] }
 0x5a9   : > { %15121 = vmatmul.mubr.msk.bf16.gmra.mrb[24].mxu1 %vm369_vm0, %v18665_v34 }
 0x5aa   : > { %15124 = vmatprep.mubr.msk.bf16.mxu1 %vm369_vm0, %v18667_v11 }
 0x5b1   : > { %15125 = vmatmul.mubr.msk.bf16.gmra.mrb[28].mxu1 %vm369_vm0, %v18673_v26 }
 0x5b2   : > { %15128 = vmatprep.mubr.msk.bf16.mxu1 %vm369_vm0, %v18675_v38 }
 0x5b9   : > { %15129 = vmatmul.mubr.msk.bf16.gmra.mrb[32].mxu1 %vm369_vm0, %v18681_v52 }
 0x5ba   : > { %15136 = vmatprep.mubr.msk.bf16.mxu1 %vm369_vm0, %v3857_v56  ;;  %v18738_v56 = vpack.c.bf16 %v3852_v12, %v3851_v63  ;;  %v18770_v63 = vpack.c.bf16 %v4386_v20, %v4385_v23  ;;  %v4387_v12 = vld [vmem:[#allocation2 + $0xe9] sm:$0xff]  ;;  %v4400_v23 = vld [vmem:[#allocation2 + $0x1b1] sm:$0xff] }
 0x5bb   : > { %v18776_v39 = vpack.c.bf16 %v4388_v10, %v4387_v12  ;;  %v4401_v20 = vld [vmem:[#allocation2 + $0x1c9] sm:$0xff]  ;;  %v4402_v12 = vld [vmem:[#allocation2 + $0x1d1] sm:$0xff] }
 0x5c1   : > { %15137 = vmatmul.mubr.msk.bf16.vlgmr.msra.gmra.mrb[4].mxu1 %vm369_vm0, %v18686_v36 }
 0x5c2   : > { %15140 = vmatprep.mubr.msk.bf16.mxu1 %vm369_vm0, %v18688_v5  ;;  %15169 = vmatpush3.bf16.msra.mxu1 %v18630_v16  ;;  %v3835_v16 = vld [vmem:[#allocation2 + $0xa7] sm:$0xff] }
 0x5c3   : > { %15170 = vmatprep.subr.bf16.mxu1 %v17298_v51  ;;  %v18706_v19 = vpack.c.bf16 %v3836_v17, %v3835_v16  ;;  %v4377_v16 = vld [vmem:[#allocation2 + $0x49] sm:$0xff]  ;;  %v4378_v17 = vld [vmem:[#allocation2 + $0x51] sm:$0xff] }
 0x5c4   : > { %v18753_v60 = vpack.c.bf16 %v4378_v17, %v4377_v16  ;;  %v18786_v17 = vpack.c.bf16 %v4394_v2, %v4393_v24  ;;  %v17302_v24 = vld [vmem:[#allocation5 + $0xd8] sm:$0xff]   ;;  %v17303_v2 = vld [vmem:[#allocation5 + $0xe0] sm:$0xff]  }
 0x5c6   : > { %15171 = vmatpush3.bf16.msra.mxu1 %v17298_v51  ;;  %v3856_v51 = vld [vmem:[#allocation2 + $0x1ef] sm:$0xff] }
 0x5c7   : > { %15204 = vmatprep.subr.bf16.mxu1 %v18695_v54  ;;  %v18746_v1 = vpack.c.bf16 %v3856_v51, %v3855_v41  ;;  %v18778_v41 = vpack.c.bf16 %v4390_v61, %v4389_v28  ;;  %v4391_v51 = vld [vmem:[#allocation2 + $0x129] sm:$0xff]  ;;  %v18802_v28 = vpack.c.bf16 %v4402_v12, %v4401_v20  ;;  %v17307_v20 = vld [vmem:[#allocation5 + $0x100] sm:$0xff]   ;;  %v5322_v12 = vld [vmem:[#allocation2 + $0x211] sm:$0xff] }
 0x5c8   : > { %v4403_v61 = vld [vmem:[#allocation2 + $0x1e9] sm:$0xff] }
 0x5c9   : > { %15141 = vmatmul.mubr.msk.bf16.gmra.mrb[8].mxu1 %vm369_vm0, %v18697_v25 }
 0x5ca   : > { %15144 = vmatprep.mubr.msk.bf16.mxu1 %vm369_vm0, %v18700_v30 }
 0x5d1   : > { %15145 = vmatmul.mubr.msk.bf16.gmra.mrb[12].mxu1 %vm369_vm0, %v18706_v19 }
 0x5d2   : > { %15148 = vmatprep.mubr.msk.bf16.mxu1 %vm369_vm0, %v18708_v53 }
 0x5d9   : > { %15149 = vmatmul.mubr.msk.bf16.gmra.mrb[16].mxu1 %vm369_vm0, %v18714_v49 }
 0x5da   : > { %15152 = vmatprep.mubr.msk.bf16.mxu1 %vm369_vm0, %v18716_v33 }
 0x5e1   : > { %15153 = vmatmul.mubr.msk.bf16.gmra.mrb[20].mxu1 %vm369_vm0, %v18722_v32 }
 0x5e2   : > { %15156 = vmatprep.mubr.msk.bf16.mxu1 %vm369_vm0, %v18724_v7 }
 0x5e9   : > { %15157 = vmatmul.mubr.msk.bf16.gmra.mrb[24].mxu1 %vm369_vm0, %v18730_v59 }
 0x5ea   : > { %15160 = vmatprep.mubr.msk.bf16.mxu1 %vm369_vm0, %v18732_v46 }
 0x5f1   : > { %15161 = vmatmul.mubr.msk.bf16.gmra.mrb[28].mxu1 %vm369_vm0, %v18738_v56 }
 0x5f2   : > { %15164 = vmatprep.mubr.msk.bf16.mxu1 %vm369_vm0, %v18740_v29 }
 0x5f9   : > { %15165 = vmatmul.mubr.msk.bf16.gmra.mrb[32].mxu1 %vm369_vm0, %v18746_v1 }
 0x5fa   : > { %15172 = vmatprep.mubr.msk.bf16.mxu1 %vm369_vm0, %v4405_v57  ;;  %v4392_v57 = vld [vmem:[#allocation2 + $0x131] sm:$0xff] }
 0x5fb   : > { %v18784_v16 = vpack.c.bf16 %v4392_v57, %v4391_v51  ;;  %v4404_v51 = vld [vmem:[#allocation2 + $0x1f1] sm:$0xff] }
 0x5fc   : > { %v18808_v57 = vpack.c.bf16 %v4404_v51, %v4403_v61  ;;  %v17308_v51 = vld [vmem:[#allocation5 + $0x108] sm:$0xff]  }
 0x601   : > { %15173 = vmatmul.mubr.msk.bf16.vlgmr.msra.gmra.mrb[4].mxu1 %vm369_vm0, %v18751_v43 }
 0x602   : > { %15176 = vmatprep.mubr.msk.bf16.mxu1 %vm369_vm0, %v18753_v60  ;;  %15205 = vmatpush3.bf16.msra.mxu1 %v18695_v54  ;;  %v4384_v54 = vld [vmem:[#allocation2 + $0xb1] sm:$0xff] }
 0x603   : > { %15206 = vmatprep.subr.bf16.mxu1 %v17300_v22  ;;  %v18768_v4 = vpack.c.bf16 %v4384_v54, %v4383_v44  ;;  %v18794_v44 = vpack.c.bf16 %v4398_v50, %v4397_v45  ;;  %v4399_v54 = vld [vmem:[#allocation2 + $0x1a9] sm:$0xff] }
 0x604   : > { %v18800_v10 = vpack.c.bf16 %v4400_v23, %v4399_v54  ;;  %v17305_v45 = vld [vmem:[#allocation5 + $0xf0] sm:$0xff]   ;;  %v17306_v23 = vld [vmem:[#allocation5 + $0xf8] sm:$0xff]  }
 0x605   : > { %v5016_v50 = vld [vmem:[#allocation2 + $0x210] sm:$0xff] }
 0x606   : > { %15207 = vmatpush3.bf16.msra.mxu1 %v17300_v22  ;;  %v4395_v22 = vld [vmem:[#allocation2 + $0x169] sm:$0xff] }
 0x607   : > { %15240 = vmatprep.subr.bf16.mxu1 %v17301_v8  ;;  %v18792_v37 = vpack.c.bf16 %v4396_v27, %v4395_v22  ;;  %v17304_v27 = vld [vmem:[#allocation5 + $0xe8] sm:$0xff]  }
 0x609   : > { %15177 = vmatmul.mubr.msk.bf16.gmra.mrb[8].mxu1 %vm369_vm0, %v18760_v40 }
 0x60a   : > { %15180 = vmatprep.mubr.msk.bf16.mxu1 %vm369_vm0, %v18762_v42 }
 0x611   : > { %15181 = vmatmul.mubr.msk.bf16.gmra.mrb[12].mxu1 %vm369_vm0, %v18768_v4 }
 0x612   : > { %15184 = vmatprep.mubr.msk.bf16.mxu1 %vm369_vm0, %v18770_v63 }
 0x619   : > { %15185 = vmatmul.mubr.msk.bf16.gmra.mrb[16].mxu1 %vm369_vm0, %v18776_v39 }
 0x61a   : > { %15188 = vmatprep.mubr.msk.bf16.mxu1 %vm369_vm0, %v18778_v41 }
 0x621   : > { %15189 = vmatmul.mubr.msk.bf16.gmra.mrb[20].mxu1 %vm369_vm0, %v18784_v16 }
 0x622   : > { %15192 = vmatprep.mubr.msk.bf16.mxu1 %vm369_vm0, %v18786_v17 }
 0x629   : > { %15193 = vmatmul.mubr.msk.bf16.gmra.mrb[24].mxu1 %vm369_vm0, %v18792_v37 }
 0x62a   : > { %15196 = vmatprep.mubr.msk.bf16.mxu1 %vm369_vm0, %v18794_v44 }
 0x631   : > { %15197 = vmatmul.mubr.msk.bf16.gmra.mrb[28].mxu1 %vm369_vm0, %v18800_v10 }
 0x632   : > { %15200 = vmatprep.mubr.msk.bf16.mxu1 %vm369_vm0, %v18802_v28 }
 0x639   : > { %15201 = vmatmul.mubr.msk.bf16.gmra.mrb[32].mxu1 %vm369_vm0, %v18808_v57 }
 0x63a   : > { %15208 = vmatprep.mubr.msk.bf16.mxu1 %vm369_vm0, %v18686_v36  ;;  %v4709_v36 = vld [vmem:[#allocation2 + $0x207] sm:$0xff] }
 0x641   : > { %15209 = vmatmul.mubr.msk.bf16.vlgmr.msra.gmra.mrb[4].mxu1 %vm369_vm0, %v18688_v5 }
 0x642   : > { %15212 = vmatprep.mubr.msk.bf16.mxu1 %vm369_vm0, %v18697_v25  ;;  %15241 = vmatpush3.bf16.msra.mxu1 %v17301_v8  ;;  %v4710_v8 = vld [vmem:[#allocation2 + $0x20f] sm:$0xff] }
 0x643   : > { %15242 = vmatprep.subr.bf16.mxu1 %v17302_v24  ;;  %v18842_v22 = vpack.c.bf16 %v4710_v8, %v4709_v36 }
 0x646   : > { %15243 = vmatpush3.bf16.msra.mxu1 %v17302_v24  ;;  %v17309_v24 = vld [vmem:[#allocation5 + $0x110] sm:$0xff]  }
 0x647   : > { %15276 = vmatprep.subr.bf16.mxu1 %v17303_v2 }
 0x649   : > { %15213 = vmatmul.mubr.msk.bf16.gmra.mrb[8].mxu1 %vm369_vm0, %v18700_v30 }
 0x64a   : > { %15216 = vmatprep.mubr.msk.bf16.mxu1 %vm369_vm0, %v18706_v19 }
 0x651   : > { %15217 = vmatmul.mubr.msk.bf16.gmra.mrb[12].mxu1 %vm369_vm0, %v18708_v53 }
 0x652   : > { %15220 = vmatprep.mubr.msk.bf16.mxu1 %vm369_vm0, %v18714_v49 }
 0x659   : > { %15221 = vmatmul.mubr.msk.bf16.gmra.mrb[16].mxu1 %vm369_vm0, %v18716_v33 }
 0x65a   : > { %15224 = vmatprep.mubr.msk.bf16.mxu1 %vm369_vm0, %v18722_v32 }
 0x661   : > { %15225 = vmatmul.mubr.msk.bf16.gmra.mrb[20].mxu1 %vm369_vm0, %v18724_v7 }
 0x662   : > { %15228 = vmatprep.mubr.msk.bf16.mxu1 %vm369_vm0, %v18730_v59 }
 0x669   : > { %15229 = vmatmul.mubr.msk.bf16.gmra.mrb[24].mxu1 %vm369_vm0, %v18732_v46 }
 0x66a   : > { %15232 = vmatprep.mubr.msk.bf16.mxu1 %vm369_vm0, %v18738_v56 }
 0x671   : > { %15233 = vmatmul.mubr.msk.bf16.gmra.mrb[28].mxu1 %vm369_vm0, %v18740_v29 }
 0x672   : > { %15236 = vmatprep.mubr.msk.bf16.mxu1 %vm369_vm0, %v18746_v1 }
 0x679   : > { %15237 = vmatmul.mubr.msk.bf16.gmra.mrb[32].mxu1 %vm369_vm0, %v18842_v22 }
 0x67a   : > { %15244 = vmatprep.mubr.msk.bf16.mxu1 %vm369_vm0, %v18621_v55  ;;  %v5015_v55 = vld [vmem:[#allocation2 + $0x208] sm:$0xff] }
 0x67b   : > { %v18876_v54 = vpack.c.bf16 %v5016_v50, %v5015_v55 }
 0x681   : > { %15245 = vmatmul.mubr.msk.bf16.vlgmr.msra.gmra.mrb[4].mxu1 %vm369_vm0, %v18623_v48 }
 0x682   : > { %15248 = vmatprep.mubr.msk.bf16.mxu1 %vm369_vm0, %v18632_v9  ;;  %15277 = vmatpush3.bf16.msra.mxu1 %v17303_v2 }
 0x683   : > { %15278 = vmatprep.subr.bf16.mxu1 %v17304_v27 }
 0x686   : > { %15279 = vmatpush3.bf16.msra.mxu1 %v17304_v27 }
 0x687   : > { %15312 = vmatprep.subr.bf16.mxu1 %v17305_v45 }
 0x689   : > { %15249 = vmatmul.mubr.msk.bf16.gmra.mrb[8].mxu1 %vm369_vm0, %v18635_v47 }
 0x68a   : > { %15252 = vmatprep.mubr.msk.bf16.mxu1 %vm369_vm0, %v18641_v18 }
 0x691   : > { %15253 = vmatmul.mubr.msk.bf16.gmra.mrb[12].mxu1 %vm369_vm0, %v18643_v21 }
 0x692   : > { %15256 = vmatprep.mubr.msk.bf16.mxu1 %vm369_vm0, %v18649_v58 }
 0x699   : > { %15257 = vmatmul.mubr.msk.bf16.gmra.mrb[16].mxu1 %vm369_vm0, %v18651_v6 }
 0x69a   : > { %15260 = vmatprep.mubr.msk.bf16.mxu1 %vm369_vm0, %v18657_v3 }
 0x6a1   : > { %15261 = vmatmul.mubr.msk.bf16.gmra.mrb[20].mxu1 %vm369_vm0, %v18659_v15 }
 0x6a2   : > { %15264 = vmatprep.mubr.msk.bf16.mxu1 %vm369_vm0, %v18665_v34 }
 0x6a9   : > { %15265 = vmatmul.mubr.msk.bf16.gmra.mrb[24].mxu1 %vm369_vm0, %v18667_v11 }
 0x6aa   : > { %15268 = vmatprep.mubr.msk.bf16.mxu1 %vm369_vm0, %v18673_v26 }
 0x6b1   : > { %15269 = vmatmul.mubr.msk.bf16.gmra.mrb[28].mxu1 %vm369_vm0, %v18675_v38 }
 0x6b2   : > { %15272 = vmatprep.mubr.msk.bf16.mxu1 %vm369_vm0, %v18681_v52 }
 0x6b9   : > { %15273 = vmatmul.mubr.msk.bf16.gmra.mrb[32].mxu1 %vm369_vm0, %v18876_v54 }
 0x6ba   : > { %15280 = vmatprep.mubr.msk.bf16.mxu1 %vm369_vm0, %v18751_v43  ;;  %v5321_v43 = vld [vmem:[#allocation2 + $0x209] sm:$0xff] }
 0x6bb   : > { %v18910_v61 = vpack.c.bf16 %v5322_v12, %v5321_v43 }
 0x6c1   : > { %15281 = vmatmul.mubr.msk.bf16.vlgmr.msra.gmra.mrb[4].mxu1 %vm369_vm0, %v18753_v60 }
 0x6c2   : > { %15284 = vmatprep.mubr.msk.bf16.mxu1 %vm369_vm0, %v18760_v40  ;;  %15313 = vmatpush3.bf16.msra.mxu1 %v17305_v45 }
 0x6c3   : > { %15314 = vmatprep.subr.bf16.mxu1 %v17306_v23 }
 0x6c6   : > { %15315 = vmatpush3.bf16.msra.mxu1 %v17306_v23 }
 0x6c7   : > { %15348 = vmatprep.subr.bf16.mxu1 %v17307_v20 }
 0x6c9   : > { %15285 = vmatmul.mubr.msk.bf16.gmra.mrb[8].mxu1 %vm369_vm0, %v18762_v42 }
 0x6ca   : > { %15288 = vmatprep.mubr.msk.bf16.mxu1 %vm369_vm0, %v18768_v4 }
 0x6d1   : > { %15289 = vmatmul.mubr.msk.bf16.gmra.mrb[12].mxu1 %vm369_vm0, %v18770_v63 }
 0x6d2   : > { %15292 = vmatprep.mubr.msk.bf16.mxu1 %vm369_vm0, %v18776_v39 }
 0x6d9   : > { %15293 = vmatmul.mubr.msk.bf16.gmra.mrb[16].mxu1 %vm369_vm0, %v18778_v41 }
 0x6da   : > { %15296 = vmatprep.mubr.msk.bf16.mxu1 %vm369_vm0, %v18784_v16 }
 0x6e1   : > { %15297 = vmatmul.mubr.msk.bf16.gmra.mrb[20].mxu1 %vm369_vm0, %v18786_v17 }
 0x6e2   : > { %15300 = vmatprep.mubr.msk.bf16.mxu1 %vm369_vm0, %v18792_v37 }
 0x6e9   : > { %15301 = vmatmul.mubr.msk.bf16.gmra.mrb[24].mxu1 %vm369_vm0, %v18794_v44 }
 0x6ea   : > { %15304 = vmatprep.mubr.msk.bf16.mxu1 %vm369_vm0, %v18800_v10 }
 0x6f1   : > { %15305 = vmatmul.mubr.msk.bf16.gmra.mrb[28].mxu1 %vm369_vm0, %v18802_v28 }
 0x6f2   : > { %15308 = vmatprep.mubr.msk.bf16.mxu1 %vm369_vm0, %v18808_v57 }
 0x6f9   : > { %15309 = vmatmul.mubr.msk.bf16.gmra.mrb[32].mxu1 %vm369_vm0, %v18910_v61 }
 0x6fa   : > { %15316 = vmatprep.mubr.msk.bf16.mxu1 %vm369_vm0, %v18688_v5  ;;  %v5627_v5 = vld [vmem:[#allocation2 + $0x227] sm:$0xff] }
 0x701   : > { %15317 = vmatmul.mubr.msk.bf16.vlgmr.msra.gmra.mrb[4].mxu1 %vm369_vm0, %v18697_v25  ;;  %v5628_v25 = vld [vmem:[#allocation2 + $0x22f] sm:$0xff] }
 0x702   : > { %15320 = vmatprep.mubr.msk.bf16.mxu1 %vm369_vm0, %v18700_v30  ;;  %15349 = vmatpush3.bf16.msra.mxu1 %v17307_v20  ;;  %v5644_v30 = vpack.c.bf16 %v5628_v25, %v5627_v5 }
 0x703   : > { %15350 = vmatprep.subr.bf16.mxu1 %v17308_v51 }
 0x706   : > { %15351 = vmatpush3.bf16.msra.mxu1 %v17308_v51 }
 0x707   : > { %15384 = vmatprep.subr.bf16.mxu1 %v17309_v24 }
 0x709   : > { %15321 = vmatmul.mubr.msk.bf16.gmra.mrb[8].mxu1 %vm369_vm0, %v18706_v19  ;;  %v17310_v19 = vld [vmem:[#allocation5 + $0x118] sm:$0xff]  }
 0x70a   : > { %15324 = vmatprep.mubr.msk.bf16.mxu1 %vm369_vm0, %v18708_v53 }
 0x711   : > { %15325 = vmatmul.mubr.msk.bf16.gmra.mrb[12].mxu1 %vm369_vm0, %v18714_v49 }
 0x712   : > { %15328 = vmatprep.mubr.msk.bf16.mxu1 %vm369_vm0, %v18716_v33 }
 0x719   : > { %15329 = vmatmul.mubr.msk.bf16.gmra.mrb[16].mxu1 %vm369_vm0, %v18722_v32 }
 0x71a   : > { %15332 = vmatprep.mubr.msk.bf16.mxu1 %vm369_vm0, %v18724_v7 }
 0x721   : > { %15333 = vmatmul.mubr.msk.bf16.gmra.mrb[20].mxu1 %vm369_vm0, %v18730_v59 }
 0x722   : > { %15336 = vmatprep.mubr.msk.bf16.mxu1 %vm369_vm0, %v18732_v46 }
 0x729   : > { %15337 = vmatmul.mubr.msk.bf16.gmra.mrb[24].mxu1 %vm369_vm0, %v18738_v56 }
 0x72a   : > { %15340 = vmatprep.mubr.msk.bf16.mxu1 %vm369_vm0, %v18740_v29 }
 0x731   : > { %15341 = vmatmul.mubr.msk.bf16.gmra.mrb[28].mxu1 %vm369_vm0, %v18746_v1 }
 0x732   : > { %15344 = vmatprep.mubr.msk.bf16.mxu1 %vm369_vm0, %v18842_v22 }
 0x739   : > { %15345 = vmatmul.mubr.msk.bf16.gmra.mrb[32].mxu1 %vm369_vm0, %v5644_v30 }
 0x73a   : > { %15352 = vmatprep.mubr.msk.bf16.mxu1 %vm369_vm0, %v18623_v48  ;;  %v5933_v48 = vld [vmem:[#allocation2 + $0x228] sm:$0xff] }
 0x741   : > { %15353 = vmatmul.mubr.msk.bf16.vlgmr.msra.gmra.mrb[4].mxu1 %vm369_vm0, %v18632_v9  ;;  %v5934_v9 = vld [vmem:[#allocation2 + $0x230] sm:$0xff] }
 0x742   : > { %15356 = vmatprep.mubr.msk.bf16.mxu1 %vm369_vm0, %v18635_v47  ;;  %15385 = vmatpush3.bf16.msra.mxu1 %v17309_v24  ;;  %v5950_v47 = vpack.c.bf16 %v5934_v9, %v5933_v48 }
 0x743   : > { %15386 = vmatprep.subr.bf16.mxu1 %v17310_v19 }
 0x746   : > { %15387 = vmatpush3.bf16.msra.mxu1 %v17310_v19 }
 0x747   : > { %16176 = vmatprep.subr.bf16.mxu1 %v17458_v13 }
 0x749   : > { %15357 = vmatmul.mubr.msk.bf16.gmra.mrb[8].mxu1 %vm369_vm0, %v18641_v18  ;;  %v6239_v18 = vld [vmem:[#allocation2 + $0x229] sm:$0xff] }
 0x74a   : > { %15360 = vmatprep.mubr.msk.bf16.mxu1 %vm369_vm0, %v18643_v21  ;;  %v6240_v21 = vld [vmem:[#allocation2 + $0x231] sm:$0xff] }
 0x751   : > { %15361 = vmatmul.mubr.msk.bf16.gmra.mrb[12].mxu1 %vm369_vm0, %v18649_v58  ;;  %v6256_v58 = vpack.c.bf16 %v6240_v21, %v6239_v18 }
 0x752   : > { %15364 = vmatprep.mubr.msk.bf16.mxu1 %vm369_vm0, %v18651_v6 }
 0x759   : > { %15365 = vmatmul.mubr.msk.bf16.gmra.mrb[16].mxu1 %vm369_vm0, %v18657_v3 }
 0x75a   : > { %15368 = vmatprep.mubr.msk.bf16.mxu1 %vm369_vm0, %v18659_v15 }
 0x761   : > { %15369 = vmatmul.mubr.msk.bf16.gmra.mrb[20].mxu1 %vm369_vm0, %v18665_v34 }
 0x762   : > { %15372 = vmatprep.mubr.msk.bf16.mxu1 %vm369_vm0, %v18667_v11 }
 0x769   : > { %15373 = vmatmul.mubr.msk.bf16.gmra.mrb[24].mxu1 %vm369_vm0, %v18673_v26 }
 0x76a   : > { %15376 = vmatprep.mubr.msk.bf16.mxu1 %vm369_vm0, %v18675_v38 }
 0x771   : > { %15377 = vmatmul.mubr.msk.bf16.gmra.mrb[28].mxu1 %vm369_vm0, %v18681_v52 }
 0x772   : > { %15380 = vmatprep.mubr.msk.bf16.mxu1 %vm369_vm0, %v18876_v54 }
 0x779   : > { %15381 = vmatmul.mubr.msk.bf16.gmra.mrb[32].mxu1 %vm369_vm0, %v5950_v47 }
 0x77a   : > { %15388 = vmatprep.mubr.msk.bf16.mxu1 %vm369_vm0, %v18753_v60 }
 0x781   : > { %15389 = vmatmul.mubr.msk.bf16.vlgmr.msra.gmra.mrb[4].mxu1 %vm369_vm0, %v18760_v40 }
 0x782   : > { %15392 = vmatprep.mubr.msk.bf16.mxu1 %vm369_vm0, %v18762_v42  ;;  %16178 = vmatpush3.bf16.msra.mxu1 %v18219_v14 }
 0x783   : > { %16179 = vmatprep.subr.bf16.mxu1 %v17458_v13 }
 0x786   : > { %16181 = vmatpush3.bf16.msra.mxu1 %v18232_v35 }
 0x787   : > { %16182 = vmatprep.subr.bf16.mxu1 %v17458_v13 }
 0x789   : > { %15393 = vmatmul.mubr.msk.bf16.gmra.mrb[8].mxu1 %vm369_vm0, %v18768_v4 }
 0x78a   : > { %15396 = vmatprep.mubr.msk.bf16.mxu1 %vm369_vm0, %v18770_v63 }
 0x791   : > { %15397 = vmatmul.mubr.msk.bf16.gmra.mrb[12].mxu1 %vm369_vm0, %v18776_v39 }
 0x792   : > { %15400 = vmatprep.mubr.msk.bf16.mxu1 %vm369_vm0, %v18778_v41 }
 0x799   : > { %15401 = vmatmul.mubr.msk.bf16.gmra.mrb[16].mxu1 %vm369_vm0, %v18784_v16 }
 0x79a   : > { %15404 = vmatprep.mubr.msk.bf16.mxu1 %vm369_vm0, %v18786_v17 }
 0x7a1   : > { %15405 = vmatmul.mubr.msk.bf16.gmra.mrb[20].mxu1 %vm369_vm0, %v18792_v37 }
 0x7a2   : > { %15408 = vmatprep.mubr.msk.bf16.mxu1 %vm369_vm0, %v18794_v44 }
 0x7a9   : > { %15409 = vmatmul.mubr.msk.bf16.gmra.mrb[24].mxu1 %vm369_vm0, %v18800_v10 }
 0x7aa   : > { %15412 = vmatprep.mubr.msk.bf16.mxu1 %vm369_vm0, %v18802_v28 }
 0x7b1   : > { %15413 = vmatmul.mubr.msk.bf16.gmra.mrb[28].mxu1 %vm369_vm0, %v18808_v57 }
 0x7b2   : > { %15416 = vmatprep.mubr.msk.bf16.mxu1 %vm369_vm0, %v18910_v61 }
 0x7b9   : > { %15417 = vmatmul.mubr.msk.bf16.gmra.mrb[32].mxu1 %vm369_vm0, %v6256_v58 }
 0x7ba   : > { %15788 = vmatprep.mubr.msk.f32.mxu1 %vm17459_vm2, %v17457_v0 }
 0x854   : > { %v19014_v6 = vpop.f32.mrb[4].mxu1 }
 0x855   : > { %v19016_v3 = vpop.f32.mrb[5].mxu1  ;;  %v6588_v26 = vmul.f32 %v19014_v6, %v19014_v6  ;;  %v6520_v33 = vsel %vm369_vm0, %v19014_v6, 0.0 }
 0x856   : > { %v6586_v15 = vmul.f32 %v19016_v3, %v19016_v3  ;;  %v19020_v34 = vpop.f32.mrb[6].mxu1  ;;  %v6517_v38 = vsel %vm369_vm0, %v19016_v3, 0.0 }
 0x857   : > { %v19022_v11 = vpop.f32.mrb[7].mxu1  ;;  %v6589_v7 = vmul.f32 %v19020_v34, %v19020_v34  ;;  %v6621_v29 = vsel %vm369_vm0, %v6588_v26, 0.0  ;;  %v6522_v1 = vsel %vm369_vm0, %v19020_v34, 0.0 }
 0x858   : > { %v6518_v52 = vsel %vm369_vm0, %v19022_v11, 0.0  ;;  %v6587_v53 = vmul.f32 %v19022_v11, %v19022_v11  ;;  %v6618_v32 = vsel %vm369_vm0, %v6586_v15, 0.0 }
 0x859   : > { %v6519_v49 = vadd.f32 %v6518_v52, %v6517_v38  ;;  %v6623_v63 = vsel %vm369_vm0, %v6589_v7, 0.0 }
 0x85a   : > { %v6619_v59 = vsel %vm369_vm0, %v6587_v53, 0.0 }
 0x85b   : > { %v6521_v46 = vadd.f32 %v6520_v33, %v6519_v49  ;;  %v6620_v56 = vadd.f32 %v6619_v59, %v6618_v32 }
 0x85c   : > { %v19041_v60 = vpop.f32.mrb[8].mxu1 }
 0x85d   : > { %v6622_v40 = vadd.f32 %v6621_v29, %v6620_v56  ;;  %v19043_v42 = vpop.f32.mrb[9].mxu1  ;;  %v6523_v4 = vadd.f32 %v6522_v1, %v6521_v46  ;;  %v6592_v10 = vmul.f32 %v19041_v60, %v19041_v60  ;;  %v6528_v22 = vsel %vm369_vm0, %v19041_v60, 0.0 }
 0x85e   : > { %v6524_v39 = vsel %vm369_vm0, %v19043_v42, 0.0  ;;  %v6590_v41 = vmul.f32 %v19043_v42, %v19043_v42  ;;  %v19050_v16 = vpop.f32.mrb[10].mxu1 }
 0x85f   : > { %v6525_v17 = vadd.f32 %v6524_v39, %v6523_v4  ;;  %v6624_v37 = vadd.f32 %v6623_v63, %v6622_v40  ;;  %v19052_v44 = vpop.f32.mrb[11].mxu1  ;;  %v6593_v27 = vmul.f32 %v19050_v16, %v19050_v16  ;;  %v6629_v54 = vsel %vm369_vm0, %v6592_v10, 0.0 }
 0x860   : > { %v6625_v28 = vsel %vm369_vm0, %v6590_v41, 0.0  ;;  %v6526_v57 = vsel %vm369_vm0, %v19052_v44, 0.0  ;;  %v6591_v2 = vmul.f32 %v19052_v44, %v19052_v44  ;;  %v6530_v23 = vsel %vm369_vm0, %v19050_v16, 0.0 }
 0x861   : > { %v6626_v36 = vadd.f32 %v6625_v28, %v6624_v37  ;;  %v6527_v8 = vadd.f32 %v6526_v57, %v6525_v17  ;;  %v6631_v51 = vsel %vm369_vm0, %v6593_v27, 0.0 }
 0x862   : > { %v6627_v45 = vsel %vm369_vm0, %v6591_v2, 0.0 }
 0x863   : > { %v6529_v55 = vadd.f32 %v6528_v22, %v6527_v8  ;;  %v6628_v50 = vadd.f32 %v6627_v45, %v6626_v36 }
 0x864   : > { %v19069_v20 = vpop.f32.mrb[12].mxu1 }
 0x865   : > { %v6630_v43 = vadd.f32 %v6629_v54, %v6628_v50  ;;  %v19071_v12 = vpop.f32.mrb[13].mxu1  ;;  %v6531_v61 = vadd.f32 %v6530_v23, %v6529_v55  ;;  %v6596_v9 = vmul.f32 %v19069_v20, %v19069_v20  ;;  %v6536_v26 = vsel %vm369_vm0, %v19069_v20, 0.0 }
 0x866   : > { %v6532_v24 = vsel %vm369_vm0, %v19071_v12, 0.0  ;;  %v6594_v5 = vmul.f32 %v19071_v12, %v19071_v12  ;;  %v19078_v25 = vpop.f32.mrb[14].mxu1 }
 0x867   : > { %v6533_v30 = vadd.f32 %v6532_v24, %v6531_v61  ;;  %v6632_v19 = vadd.f32 %v6631_v51, %v6630_v43  ;;  %v19080_v48 = vpop.f32.mrb[15].mxu1  ;;  %v6597_v38 = vmul.f32 %v19078_v25, %v19078_v25  ;;  %v6637_v33 = vsel %vm369_vm0, %v6596_v9, 0.0 }
 0x868   : > { %v6633_v47 = vsel %vm369_vm0, %v6594_v5, 0.0  ;;  %v6534_v18 = vsel %vm369_vm0, %v19080_v48, 0.0  ;;  %v6595_v21 = vmul.f32 %v19080_v48, %v19080_v48  ;;  %v6538_v32 = vsel %vm369_vm0, %v19078_v25, 0.0 }
 0x869   : > { %v6634_v58 = vadd.f32 %v6633_v47, %v6632_v19  ;;  %v6535_v15 = vadd.f32 %v6534_v18, %v6533_v30  ;;  %v6639_v29 = vsel %vm369_vm0, %v6597_v38, 0.0 }
 0x86a   : > { %v6635_v52 = vsel %vm369_vm0, %v6595_v21, 0.0 }
 0x86b   : > { %v6537_v53 = vadd.f32 %v6536_v26, %v6535_v15  ;;  %v6636_v49 = vadd.f32 %v6635_v52, %v6634_v58 }
 0x86c   : > { %v19097_v7 = vpop.f32.mrb[16].mxu1 }
 0x86d   : > { %v6638_v59 = vadd.f32 %v6637_v33, %v6636_v49  ;;  %v19099_v46 = vpop.f32.mrb[17].mxu1  ;;  %v6539_v56 = vadd.f32 %v6538_v32, %v6537_v53  ;;  %v6600_v17 = vmul.f32 %v19097_v7, %v19097_v7  ;;  %v6544_v36 = vsel %vm369_vm0, %v19097_v7, 0.0 }
 0x86e   : > { %v6540_v1 = vsel %vm369_vm0, %v19099_v46, 0.0  ;;  %v6598_v40 = vmul.f32 %v19099_v46, %v19099_v46  ;;  %v19106_v4 = vpop.f32.mrb[18].mxu1 }
 0x86f   : > { %v6541_v63 = vadd.f32 %v6540_v1, %v6539_v56  ;;  %v6640_v39 = vadd.f32 %v6639_v29, %v6638_v59  ;;  %v19108_v41 = vpop.f32.mrb[19].mxu1  ;;  %v6601_v8 = vmul.f32 %v19106_v4, %v19106_v4  ;;  %v6645_v55 = vsel %vm369_vm0, %v6600_v17, 0.0 }
 0x870   : > { %v6641_v37 = vsel %vm369_vm0, %v6598_v40, 0.0  ;;  %v6542_v10 = vsel %vm369_vm0, %v19108_v41, 0.0  ;;  %v6599_v28 = vmul.f32 %v19108_v41, %v19108_v41  ;;  %v6546_v50 = vsel %vm369_vm0, %v19106_v4, 0.0 }
 0x871   : > { %v6642_v57 = vadd.f32 %v6641_v37, %v6640_v39  ;;  %v6543_v2 = vadd.f32 %v6542_v10, %v6541_v63  ;;  %v6647_v51 = vsel %vm369_vm0, %v6601_v8, 0.0 }
 0x872   : > { %v6643_v22 = vsel %vm369_vm0, %v6599_v28, 0.0 }
 0x873   : > { %v6545_v27 = vadd.f32 %v6544_v36, %v6543_v2  ;;  %v6644_v45 = vadd.f32 %v6643_v22, %v6642_v57 }
 0x874   : > { %v19125_v54 = vpop.f32.mrb[20].mxu1 }
 0x875   : > { %v6646_v23 = vadd.f32 %v6645_v55, %v6644_v45  ;;  %v19127_v43 = vpop.f32.mrb[21].mxu1  ;;  %v6547_v61 = vadd.f32 %v6546_v50, %v6545_v27  ;;  %v6604_v18 = vmul.f32 %v19125_v54, %v19125_v54  ;;  %v6552_v52 = vsel %vm369_vm0, %v19125_v54, 0.0 }
 0x876   : > { %v6548_v24 = vsel %vm369_vm0, %v19127_v43, 0.0  ;;  %v6602_v5 = vmul.f32 %v19127_v43, %v19127_v43  ;;  %v19134_v30 = vpop.f32.mrb[22].mxu1 }
 0x877   : > { %v6549_v19 = vadd.f32 %v6548_v24, %v6547_v61  ;;  %v6648_v9 = vadd.f32 %v6647_v51, %v6646_v23  ;;  %v19136_v47 = vpop.f32.mrb[23].mxu1  ;;  %v6605_v53 = vmul.f32 %v19134_v30, %v19134_v30  ;;  %v6653_v59 = vsel %vm369_vm0, %v6604_v18, 0.0 }
 0x878   : > { %v6649_v21 = vsel %vm369_vm0, %v6602_v5, 0.0  ;;  %v6550_v58 = vsel %vm369_vm0, %v19136_v47, 0.0  ;;  %v6603_v15 = vmul.f32 %v19136_v47, %v19136_v47  ;;  %v6554_v56 = vsel %vm369_vm0, %v19134_v30, 0.0 }
 0x879   : > { %v6650_v26 = vadd.f32 %v6649_v21, %v6648_v9  ;;  %v6551_v38 = vadd.f32 %v6550_v58, %v6549_v19  ;;  %v6655_v39 = vsel %vm369_vm0, %v6605_v53, 0.0 }
 0x87a   : > { %v6651_v49 = vsel %vm369_vm0, %v6603_v15, 0.0 }
 0x87b   : > { %v6553_v33 = vadd.f32 %v6552_v52, %v6551_v38  ;;  %v6652_v32 = vadd.f32 %v6651_v49, %v6650_v26 }
 0x87c   : > { %v19153_v29 = vpop.f32.mrb[24].mxu1 }
 0x87d   : > { %v6654_v1 = vadd.f32 %v6653_v59, %v6652_v32  ;;  %v19155_v40 = vpop.f32.mrb[25].mxu1  ;;  %v6555_v63 = vadd.f32 %v6554_v56, %v6553_v33  ;;  %v6608_v36 = vmul.f32 %v19153_v29, %v19153_v29  ;;  %v6560_v50 = vsel %vm369_vm0, %v19153_v29, 0.0 }
 0x87e   : > { %v6556_v17 = vsel %vm369_vm0, %v19155_v40, 0.0  ;;  %v6606_v37 = vmul.f32 %v19155_v40, %v19155_v40  ;;  %v19162_v10 = vpop.f32.mrb[26].mxu1 }
 0x87f   : > { %v6557_v28 = vadd.f32 %v6556_v17, %v6555_v63  ;;  %v6656_v57 = vadd.f32 %v6655_v39, %v6654_v1  ;;  %v19164_v2 = vpop.f32.mrb[27].mxu1  ;;  %v6609_v23 = vmul.f32 %v19162_v10, %v19162_v10  ;;  %v6661_v5 = vsel %vm369_vm0, %v6608_v36, 0.0 }
 0x880   : > { %v6657_v8 = vsel %vm369_vm0, %v6606_v37, 0.0  ;;  %v6558_v22 = vsel %vm369_vm0, %v19164_v2, 0.0  ;;  %v6607_v27 = vmul.f32 %v19164_v2, %v19164_v2  ;;  %v6562_v19 = vsel %vm369_vm0, %v19162_v10, 0.0 }
 0x881   : > { %v6658_v45 = vadd.f32 %v6657_v8, %v6656_v57  ;;  %v6559_v55 = vadd.f32 %v6558_v22, %v6557_v28  ;;  %v6663_v15 = vsel %vm369_vm0, %v6609_v23, 0.0 }
 0x882   : > { %v6659_v61 = vsel %vm369_vm0, %v6607_v27, 0.0 }
 0x883   : > { %v6561_v51 = vadd.f32 %v6560_v50, %v6559_v55  ;;  %v6660_v24 = vadd.f32 %v6659_v61, %v6658_v45 }
 0x884   : > { %v19181_v9 = vpop.f32.mrb[28].mxu1 }
 0x885   : > { %v6662_v18 = vadd.f32 %v6661_v5, %v6660_v24  ;;  %v19183_v21 = vpop.f32.mrb[29].mxu1  ;;  %v6563_v58 = vadd.f32 %v6562_v19, %v6561_v51  ;;  %v6612_v32 = vmul.f32 %v19181_v9, %v19181_v9  ;;  %v6568_v17 = vsel %vm369_vm0, %v19181_v9, 0.0 }
 0x886   : > { %v6564_v26 = vsel %vm369_vm0, %v19183_v21, 0.0  ;;  %v6610_v38 = vmul.f32 %v19183_v21, %v19183_v21  ;;  %v19190_v52 = vpop.f32.mrb[30].mxu1 }
 0x887   : > { %v6565_v53 = vadd.f32 %v6564_v26, %v6563_v58  ;;  %v6664_v49 = vadd.f32 %v6663_v15, %v6662_v18  ;;  %v19192_v33 = vpop.f32.mrb[31].mxu1  ;;  %v6613_v37 = vmul.f32 %v19190_v52, %v19190_v52  ;;  %v6669_v8 = vsel %vm369_vm0, %v6612_v32, 0.0 }
 0x888   : > { %v6665_v59 = vsel %vm369_vm0, %v6610_v38, 0.0  ;;  %v6566_v56 = vsel %vm369_vm0, %v19192_v33, 0.0  ;;  %v6611_v1 = vmul.f32 %v19192_v33, %v19192_v33  ;;  %v6570_v22 = vsel %vm369_vm0, %v19190_v52, 0.0 }
 0x889   : > { %v6666_v63 = vadd.f32 %v6665_v59, %v6664_v49  ;;  %v6567_v39 = vadd.f32 %v6566_v56, %v6565_v53  ;;  %v6671_v23 = vsel %vm369_vm0, %v6613_v37, 0.0 }
 0x88a   : > { %v6667_v28 = vsel %vm369_vm0, %v6611_v1, 0.0 }
 0x88b   : > { %v6569_v57 = vadd.f32 %v6568_v17, %v6567_v39  ;;  %v6668_v36 = vadd.f32 %v6667_v28, %v6666_v63 }
 0x88c   : > { %v19209_v27 = vpop.f32.mrb[32].mxu1 }
 0x88d   : > { %v6670_v45 = vadd.f32 %v6669_v8, %v6668_v36  ;;  %v19211_v55 = vpop.f32.mrb[33].mxu1  ;;  %v6571_v50 = vadd.f32 %v6570_v22, %v6569_v57  ;;  %v6616_v58 = vmul.f32 %v19209_v27, %v19209_v27  ;;  %v6576_v32 = vsel %vm369_vm0, %v19209_v27, 0.0 }
 0x88e   : > { %v6572_v61 = vsel %vm369_vm0, %v19211_v55, 0.0  ;;  %v6614_v51 = vmul.f32 %v19211_v55, %v19211_v55  ;;  %v19218_v24 = vpop.f32.mrb[34].mxu1 }
 0x88f   : > { %v6573_v5 = vadd.f32 %v6572_v61, %v6571_v50  ;;  %v6672_v19 = vadd.f32 %v6671_v23, %v6670_v45  ;;  %v19220_v18 = vpop.f32.mrb[35].mxu1  ;;  %v6617_v59 = vmul.f32 %v19218_v24, %v19218_v24  ;;  %v6677_v39 = vsel %vm369_vm0, %v6616_v58, 0.0  ;;  %v13664_v61 = vld [vmem:[%s20724_s2 + $0x1] sm:$0x1] }
 0x890   : > { %v6673_v15 = vsel %vm369_vm0, %v6614_v51, 0.0  ;;  %v6574_v26 = vsel %vm369_vm0, %v19220_v18, 0.0  ;;  %v6615_v38 = vmul.f32 %v19220_v18, %v19220_v18  ;;  %v6578_v17 = vsel %vm369_vm0, %v19218_v24, 0.0 }
 0x891   : > { %v6674_v53 = vadd.f32 %v6673_v15, %v6672_v19  ;;  %v6575_v49 = vadd.f32 %v6574_v26, %v6573_v5  ;;  %v6679_v57 = vsel %vm369_vm0, %v6617_v59, 0.0  ;;  %v6687_v15 = vmul.f32 256.0, %v13664_v61 }
 0x892   : > { %v6675_v56 = vsel %vm369_vm0, %v6615_v38, 0.0  ;;  %v6689_v26 = vmul.f32 2.0, %v13664_v61 }
 0x893   : > { %v6577_v1 = vadd.f32 %v6576_v32, %v6575_v49  ;;  %v6676_v63 = vadd.f32 %v6675_v56, %v6674_v53  ;;  %v6692_v56 = vmul.f32 %v13664_v61, %v13664_v61 }
 0x895   : > { %v6579_v37 = vadd.f32 %v6578_v17, %v6577_v1  ;;  %v6678_v28 = vadd.f32 %v6677_v39, %v6676_v63  ;;  %v6693_v63 = vmul.f32 256.0, %v6692_v56 }
 0x897   : > { %v6580_v36 = vrot.slane %v6579_v37, 4  ;;  %v6680_v8 = vadd.f32 %v6679_v57, %v6678_v28 }
 0x899   : > { %v6581_v22 = vadd.f32 %v6580_v36, %v6579_v37  ;;  %v6681_v45 = vrot.slane %v6680_v8, 4 }
 0x89b   : > { %v6582_v50 = vrot.slane %v6581_v22, 2  ;;  %v6682_v23 = vadd.f32 %v6681_v45, %v6680_v8 }
 0x89d   : > { %v6583_v51 = vadd.f32 %v6582_v50, %v6581_v22  ;;  %v6683_v5 = vrot.slane %v6682_v23, 2  ;;  %v17311_v50 = vld [vmem:[#allocation5 + $0x130] sm:$0xff]  }
 0x89f   : > { %v6584_v19 = vrot.slane %v6583_v51, 1  ;;  %v6684_v58 = vadd.f32 %v6683_v5, %v6682_v23  ;;  %v17312_v23 = vld [vmem:[#allocation5 + $0x138] sm:$0xff]   ;;  %v7192_v5 = vld [vmem:[#allocation2 + $0x10] sm:$0xff] }
 0x8a1   : > { %v6685_v38 = vrot.slane %v6684_v58, 1  ;;  %v6585_v53 = vadd.f32 %v6584_v19, %v6583_v51  ;;  %v7191_v51 = vld [vmem:[#allocation2 + $0x8] sm:$0xff] }
 0x8a2   : > { %v7223_v19 = vpack.c.bf16 %v7192_v5, %v7191_v51 }
 0x8a3   : > { %v6688_v49 = vadd.f32 %v6687_v15, %v6585_v53  ;;  %v6686_v32 = vadd.f32 %v6685_v38, %v6684_v58  ;;  %v6690_v59 = vmul.f32 %v6689_v26, %v6585_v53  ;;  %v19258_v58 = vld [vmem:[#allocation5 + $0x120] sm:$0xff]  }
 0x8a5   : > { %15429 = vmatmul.mubr.msk.f32.vlgmr.msra.gmra.mrb[36].mxu0 %vm369_vm0, %v6688_v49  ;;  %v6691_v1 = vadd.f32 %v6690_v59, %v6686_v32  ;;  %v13669_v32 = vld [vmem:[%s20725_s3 + $0x1] sm:$0x1] }
 0x8a6   : > { %16166 = vmatpush3.bf16.msra.mxu0 %v18219_v14  ;;  %15439 = vmatprep.mubr.msk.f32.mxu0 %vm17459_vm2, %v17457_v0 }
 0x8a7   : > { %16167 = vmatprep.subr.bf16.mxu0 %v17458_v13  ;;  %v6694_v39 = vadd.f32 %v6693_v63, %v6691_v1  ;;  %v13670_v63 = vld [vmem:[%s20726_s4 + $0x1] sm:$0x1] }
 0x8aa   : > { %16169 = vmatpush3.bf16.msra.mxu0 %v18232_v35 }
 0x8ab   : > { %16170 = vmatprep.subr.bf16.mxu0 %v17458_v13 }
 0x8ad   : > { %15440 = vmatmul.mubr.msk.f32.vlgmr.msra.gmra.mrb[38].mxu0 %vm369_vm0, %v6694_v39 }
 0x8ae   : > { %16172 = vmatpush3.bf16.msra.mxu0 %v18487_v31  ;;  %15446 = vmatprep.mubr.msk.f32.mxu0 %vm17459_vm2, %v17457_v0 }
 0x8af   : > { %16173 = vmatprep.subr.bf16.mxu0 %v17458_v13 }
 0x978   : > { %v6764_v17 = vpop.f32.mrb[36].mxu0 }
 0x979   : > { %v6768_v37 = vmul.f32 0.001953125, %v6764_v17  ;;  %v15430_v28 = vpop.f32.mrb[37].mxu0 }
 0x97b   : > { %15447 = vmatmul.mubr.msk.f32.vlgmr.msra.gmra.mrb[40].mxu0 %vm3533_vm3, %v6768_v37  ;;  %v6843_v36 = vmul.f32 %v6768_v37, %v6768_v37 }
 0x97c   : > { %16175 = vmatpush3.bf16.msra.mxu0 %v18487_v31  ;;  %15453 = vmatprep.mubr.msk.f32.mxu0 %vm17459_vm2, %v17457_v0 }
 0x97d   : > { %15456 = vmatprep.subr.bf16.mxu0 %v17311_v50 }
 0x980   : > { %v6838_v57 = vpop.f32.mrb[38].mxu0 }
 0x981   : > { %v6842_v8 = vmul.f32 0.001953125, %v6838_v57  ;;  %v15441_v22 = vpop.f32.mrb[39].mxu0 }
 0x983   : > { %v6844_v45 = vsub.f32 %v6842_v8, %v6843_v36 }
 0x985   : > { %15454 = vmatmul.mubr.msk.f32.vlgmr.msra.gmra.mrb[42].mxu0 %vm3533_vm3, %v6844_v45 }
 0x986   : > { %15457 = vmatpush3.bf16.msra.mxu0 %v17311_v50  ;;  %15460 = vmatprep.mubr.msk.bf16.mxu0 %vm369_vm0, %v7223_v19 }
 0x987   : > { %15458 = vmatprep.subr.bf16.mxu0 %v17312_v23 }
 0x98a   : > { %15459 = vmatpush3.bf16.msra.mxu0 %v17312_v23 }
 0x98b   : > { %15492 = vmatprep.subr.bf16.mxu0 %v19258_v58 }
 0xa4e   : > { %v6914_v15 = vpop.f32.mrb[40].mxu0 }
 0xa4f   : > { %v15448_v26 = vpop.f32.mrb[41].mxu0  ;;  %v6995_v56 = vsub.f32 %v13664_v61, %v6914_v15 }
 0xa58   : > { %v6987_v38 = vpop.f32.mrb[42].mxu0 }
 0xa59   : > { %v6988_v53 = vadd.f32 1e-05, %v6987_v38  ;;  %v15455_v49 = vpop.f32.mrb[43].mxu0 }
 0xa5b   : > { %17349 = vrsqrt.f32 %v6988_v53 }
 0xa65   : > { %v17350_v59 = vpop.eup %17349 }
 0xa66   : > { %v6994_v1 = vmul.f32 %v17350_v59, %v13669_v32 }
 0xa68   : > { %v6996_v39 = vmul.f32 %v6995_v56, %v6994_v1  ;;  %v7003_v17 = vrot.slane %v6994_v1, %v18507_v62 }
 0xa6a   : > { %v6999_v37 = vadd.f32 %v13670_v63, %v6996_v39  ;;  %v7004_v28 = vmul.f32 %v7003_v17, %v19016_v3  ;;  %v7005_v57 = vmul.f32 %v7003_v17, %v19022_v11  ;;  %v7006_v36 = vmul.f32 %v19014_v6, %v7003_v17 }
 0xa6b   : > { %v7007_v8 = vmul.f32 %v19020_v34, %v7003_v17  ;;  %v7008_v22 = vmul.f32 %v7003_v17, %v19043_v42  ;;  %v7009_v61 = vmul.f32 %v7003_v17, %v19052_v44  ;;  %v7010_v45 = vmul.f32 %v19041_v60, %v7003_v17 }
 0xa6c   : > { %v7040_v50 = vrot.slane %v6999_v37, %v18507_v62  ;;  %v7011_v23 = vmul.f32 %v19050_v16, %v7003_v17  ;;  %v7012_v51 = vmul.f32 %v7003_v17, %v19071_v12  ;;  %v7013_v3 = vmul.f32 %v7003_v17, %v19080_v48 }
 0xa6d   : > { %v7014_v11 = vmul.f32 %v19069_v20, %v7003_v17  ;;  %v7015_v6 = vmul.f32 %v19078_v25, %v7003_v17  ;;  %v7016_v34 = vmul.f32 %v7003_v17, %v19099_v46  ;;  %v7017_v42 = vmul.f32 %v7003_v17, %v19108_v41 }
 0xa6e   : > { %v7018_v44 = vmul.f32 %v19097_v7, %v7003_v17  ;;  %v7019_v60 = vmul.f32 %v19106_v4, %v7003_v17  ;;  %v7020_v5 = vmul.f32 %v7003_v17, %v19127_v43  ;;  %v7021_v16 = vmul.f32 %v7003_v17, %v19136_v47 }
 0xa6f   : > { %v7022_v12 = vmul.f32 %v19125_v54, %v7003_v17  ;;  %v7023_v48 = vmul.f32 %v19134_v30, %v7003_v17  ;;  %v7024_v20 = vmul.f32 %v7003_v17, %v19155_v40  ;;  %v7025_v25 = vmul.f32 %v7003_v17, %v19164_v2 }
 0xa70   : > { %v7026_v46 = vmul.f32 %v19153_v29, %v7003_v17  ;;  %v7027_v41 = vmul.f32 %v19162_v10, %v7003_v17  ;;  %v7028_v7 = vmul.f32 %v7003_v17, %v19183_v21  ;;  %v7029_v4 = vmul.f32 %v7003_v17, %v19192_v33 }
 0xa71   : > { %v7030_v43 = vmul.f32 %v19181_v9, %v7003_v17  ;;  %v7031_v47 = vmul.f32 %v19190_v52, %v7003_v17  ;;  %v7032_v54 = vmul.f32 %v7003_v17, %v19211_v55  ;;  %v7033_v30 = vmul.f32 %v7003_v17, %v19220_v18 }
 0xa72   : > { %v7034_v40 = vmul.f32 %v19209_v27, %v7003_v17  ;;  %v7035_v2 = vmul.f32 %v19218_v24, %v7003_v17  ;;  %v7042_v19 = vadd.f32 %v7040_v50, %v7004_v28  ;;  %v7043_v29 = vadd.f32 %v7040_v50, %v7005_v57 }
 0xa73   : > { %v7044_v15 = vadd.f32 %v7040_v50, %v7006_v36  ;;  %v7045_v10 = vadd.f32 %v7040_v50, %v7007_v8  ;;  %v7046_v26 = vadd.f32 %v7040_v50, %v7008_v22  ;;  %v7047_v21 = vadd.f32 %v7040_v50, %v7009_v61 }
 0xa74   : > { %v7048_v38 = vadd.f32 %v7040_v50, %v7010_v45  ;;  %v7049_v33 = vadd.f32 %v7040_v50, %v7011_v23  ;;  %v7050_v53 = vadd.f32 %v7040_v50, %v7012_v51  ;;  %v7051_v9 = vadd.f32 %v7040_v50, %v7013_v3 }
 0xa75   : > { %v7052_v49 = vadd.f32 %v7040_v50, %v7014_v11  ;;  %v7053_v52 = vadd.f32 %v7040_v50, %v7015_v6  ;;  %v7054_v32 = vadd.f32 %v7040_v50, %v7016_v34  ;;  %v7055_v55 = vadd.f32 %v7040_v50, %v7017_v42 }
 0xa76   : > { %v7056_v59 = vadd.f32 %v7040_v50, %v7018_v44  ;;  %v7057_v18 = vadd.f32 %v7040_v50, %v7019_v60  ;;  %v7058_v56 = vadd.f32 %v7040_v50, %v7020_v5  ;;  %v7059_v27 = vadd.f32 %v7040_v50, %v7021_v16 }
 0xa77   : > { %v19302_v1 = vadd.f32 %v7040_v50, %v7022_v12  ;;  %v19304_v24 = vadd.f32 %v7040_v50, %v7023_v48  ;;  %v19306_v63 = vadd.f32 %v7040_v50, %v7024_v20  ;;  %v19308_v39 = vadd.f32 %v7040_v50, %v7025_v25 }
 0xa78   : > { %v19310_v17 = vadd.f32 %v7040_v50, %v7026_v46  ;;  %v19312_v37 = vadd.f32 %v7040_v50, %v7027_v41  ;;  %v19314_v28 = vadd.f32 %v7040_v50, %v7028_v7  ;;  %v19316_v57 = vadd.f32 %v7040_v50, %v7029_v4 }
 0xa79   : > { %v19318_v36 = vadd.f32 %v7040_v50, %v7030_v43  ;;  %v19320_v8 = vadd.f32 %v7040_v50, %v7031_v47  ;;  %v19322_v22 = vadd.f32 %v7040_v50, %v7032_v54  ;;  %v19324_v61 = vadd.f32 %v7040_v50, %v7033_v30 }
 0xa7a   : > { %v19326_v45 = vadd.f32 %v7040_v50, %v7034_v40  ;;  %v19328_v23 = vadd.f32 %v7040_v50, %v7035_v2  ;;  %v7074_v51 = vmax.f32 %v7042_v19, 0.0  ;;  %v7075_v3 = vmax.f32 %v7043_v29, 0.0 }
 0xa7b   : > { %v7076_v11 = vmax.f32 %v7044_v15, 0.0  ;;  %v7077_v6 = vmax.f32 %v7045_v10, 0.0  ;;  %v7078_v34 = vmax.f32 %v7046_v26, 0.0  ;;  %v7079_v42 = vmax.f32 %v7047_v21, 0.0 }
 0xa7c   : > { %v7080_v44 = vmax.f32 %v7048_v38, 0.0  ;;  %v7081_v60 = vmax.f32 %v7049_v33, 0.0  ;;  %v7082_v5 = vmax.f32 %v7050_v53, 0.0  ;;  %v7083_v16 = vmax.f32 %v7051_v9, 0.0  ;;  %7106 = vst.msk [vmem:[#allocation2 + $0x28] sm:$0xff] %vm369_vm0, %v7074_v51  ;;  %7107 = vst.msk [vmem:[#allocation2 + $0x30] sm:$0xff] %vm369_vm0, %v7075_v3 }
 0xa7d   : > { %v7084_v12 = vmax.f32 %v7052_v49, 0.0  ;;  %v7085_v48 = vmax.f32 %v7053_v52, 0.0  ;;  %v7086_v20 = vmax.f32 %v7054_v32, 0.0  ;;  %v7087_v25 = vmax.f32 %v7055_v55, 0.0  ;;  %7108 = vst.msk [vmem:[#allocation2 + $0x48] sm:$0xff] %vm369_vm0, %v7076_v11  ;;  %7109 = vst.msk [vmem:[#allocation2 + $0x50] sm:$0xff] %vm369_vm0, %v7077_v6 }
 0xa7e   : > { %7110 = vst.msk [vmem:[#allocation2 + $0x68] sm:$0xff] %vm369_vm0, %v7078_v34  ;;  %7111 = vst.msk [vmem:[#allocation2 + $0x70] sm:$0xff] %vm369_vm0, %v7079_v42  ;;  %v7088_v50 = vmax.f32 %v7056_v59, 0.0  ;;  %v7089_v46 = vmax.f32 %v7057_v18, 0.0  ;;  %v7090_v41 = vmax.f32 %v7058_v56, 0.0  ;;  %v7091_v7 = vmax.f32 %v7059_v27, 0.0 }
 0xa7f   : > { %7112 = vst.msk [vmem:[#allocation2 + $0x88] sm:$0xff] %vm369_vm0, %v7080_v44  ;;  %7113 = vst.msk [vmem:[#allocation2 + $0x90] sm:$0xff] %vm369_vm0, %v7081_v60  ;;  %v7092_v4 = vmax.f32 %v19302_v1, 0.0  ;;  %v7093_v43 = vmax.f32 %v19304_v24, 0.0  ;;  %v7094_v47 = vmax.f32 %v19306_v63, 0.0  ;;  %v7095_v54 = vmax.f32 %v19308_v39, 0.0 }
 0xa80   : > { %7114 = vst.msk [vmem:[#allocation2 + $0xa8] sm:$0xff] %vm369_vm0, %v7082_v5  ;;  %7115 = vst.msk [vmem:[#allocation2 + $0xb0] sm:$0xff] %vm369_vm0, %v7083_v16  ;;  %v7096_v30 = vmax.f32 %v19310_v17, 0.0  ;;  %v7097_v40 = vmax.f32 %v19312_v37, 0.0  ;;  %v7098_v2 = vmax.f32 %v19314_v28, 0.0  ;;  %v7099_v19 = vmax.f32 %v19316_v57, 0.0 }
 0xa81   : > { %7116 = vst.msk [vmem:[#allocation2 + $0xc8] sm:$0xff] %vm369_vm0, %v7084_v12  ;;  %7117 = vst.msk [vmem:[#allocation2 + $0xd0] sm:$0xff] %vm369_vm0, %v7085_v48  ;;  %v7100_v29 = vmax.f32 %v19318_v36, 0.0  ;;  %v7101_v15 = vmax.f32 %v19320_v8, 0.0  ;;  %v7102_v10 = vmax.f32 %v19322_v22, 0.0  ;;  %v7103_v26 = vmax.f32 %v19324_v61, 0.0 }
 0xa82   : > { %7118 = vst.msk [vmem:[#allocation2 + $0xe8] sm:$0xff] %vm369_vm0, %v7086_v20  ;;  %7119 = vst.msk [vmem:[#allocation2 + $0xf0] sm:$0xff] %vm369_vm0, %v7087_v25  ;;  %v7104_v21 = vmax.f32 %v19326_v45, 0.0  ;;  %v7105_v38 = vmax.f32 %v19328_v23, 0.0  ;;  %v17314_v32 = vld [vmem:[#allocation5 + $0x128] sm:$0xff]   ;;  %v19385_v59 = vld [vmem:[#allocation5 + $0x140] sm:$0xff]  }
 0xa83   : > { %7120 = vst.msk [vmem:[#allocation2 + $0x108] sm:$0xff] %vm369_vm0, %v7088_v50  ;;  %7121 = vst.msk [vmem:[#allocation2 + $0x110] sm:$0xff] %vm369_vm0, %v7089_v46  ;;  %v7193_v33 = vld [vmem:[#allocation2 + $0x28] sm:$0xff]  ;;  %v7194_v53 = vld [vmem:[#allocation2 + $0x30] sm:$0xff] }
 0xa84   : > { %7122 = vst.msk [vmem:[#allocation2 + $0x128] sm:$0xff] %vm369_vm0, %v7090_v41  ;;  %7123 = vst.msk [vmem:[#allocation2 + $0x130] sm:$0xff] %vm369_vm0, %v7091_v7  ;;  %v19376_v9 = vpack.c.bf16 %v7194_v53, %v7193_v33  ;;  %v7195_v49 = vld [vmem:[#allocation2 + $0x48] sm:$0xff]  ;;  %v7196_v52 = vld [vmem:[#allocation2 + $0x50] sm:$0xff] }
 0xa85   : > { %7124 = vst.msk [vmem:[#allocation2 + $0x148] sm:$0xff] %vm369_vm0, %v7092_v4  ;;  %7125 = vst.msk [vmem:[#allocation2 + $0x150] sm:$0xff] %vm369_vm0, %v7093_v43  ;;  %v19378_v55 = vpack.c.bf16 %v7196_v52, %v7195_v49  ;;  %v7197_v18 = vld [vmem:[#allocation2 + $0x68] sm:$0xff]  ;;  %v7198_v56 = vld [vmem:[#allocation2 + $0x70] sm:$0xff] }
 0xa86   : > { %7126 = vst.msk [vmem:[#allocation2 + $0x168] sm:$0xff] %vm369_vm0, %v7094_v47  ;;  %7127 = vst.msk [vmem:[#allocation2 + $0x170] sm:$0xff] %vm369_vm0, %v7095_v54  ;;  %15461 = vmatmul.mubr.msk.bf16.vlgmr.msra.gmra.mrb[44].mxu0 %vm369_vm0, %v19376_v9  ;;  %v7199_v27 = vld [vmem:[#allocation2 + $0x88] sm:$0xff]  ;;  %v7200_v1 = vld [vmem:[#allocation2 + $0x90] sm:$0xff]  ;;  %v19387_v24 = vpack.c.bf16 %v7198_v56, %v7197_v18 }
 0xa87   : > { %7128 = vst.msk [vmem:[#allocation2 + $0x188] sm:$0xff] %vm369_vm0, %v7096_v30  ;;  %7129 = vst.msk [vmem:[#allocation2 + $0x190] sm:$0xff] %vm369_vm0, %v7097_v40  ;;  %15464 = vmatprep.mubr.msk.bf16.mxu0 %vm369_vm0, %v19378_v55  ;;  %15493 = vmatpush3.bf16.msra.mxu0 %v19258_v58  ;;  %v19390_v63 = vpack.c.bf16 %v7200_v1, %v7199_v27  ;;  %v7201_v58 = vld [vmem:[#allocation2 + $0xa8] sm:$0xff]  ;;  %v7202_v39 = vld [vmem:[#allocation2 + $0xb0] sm:$0xff] }
 0xa88   : > { %7130 = vst.msk [vmem:[#allocation2 + $0x1a8] sm:$0xff] %vm369_vm0, %v7098_v2  ;;  %7131 = vst.msk [vmem:[#allocation2 + $0x1b0] sm:$0xff] %vm369_vm0, %v7099_v19  ;;  %15494 = vmatprep.subr.bf16.mxu0 %v17314_v32  ;;  %v7203_v17 = vld [vmem:[#allocation2 + $0xc8] sm:$0xff]  ;;  %v7204_v37 = vld [vmem:[#allocation2 + $0xd0] sm:$0xff]  ;;  %v19396_v28 = vpack.c.bf16 %v7202_v39, %v7201_v58 }
 0xa89   : > { %7132 = vst.msk [vmem:[#allocation2 + $0x1c8] sm:$0xff] %vm369_vm0, %v7100_v29  ;;  %7133 = vst.msk [vmem:[#allocation2 + $0x1d0] sm:$0xff] %vm369_vm0, %v7101_v15  ;;  %v19398_v57 = vpack.c.bf16 %v7204_v37, %v7203_v17  ;;  %v7205_v36 = vld [vmem:[#allocation2 + $0xe8] sm:$0xff]  ;;  %v7206_v8 = vld [vmem:[#allocation2 + $0xf0] sm:$0xff] }
 0xa8a   : > { %7134 = vst.msk [vmem:[#allocation2 + $0x1e8] sm:$0xff] %vm369_vm0, %v7102_v10  ;;  %7135 = vst.msk [vmem:[#allocation2 + $0x1f0] sm:$0xff] %vm369_vm0, %v7103_v26  ;;  %v7207_v22 = vld [vmem:[#allocation2 + $0x108] sm:$0xff]  ;;  %v7208_v61 = vld [vmem:[#allocation2 + $0x110] sm:$0xff]  ;;  %v19404_v45 = vpack.c.bf16 %v7206_v8, %v7205_v36 }
 0xa8b   : > { %7136 = vst.msk [vmem:[#allocation2 + $0x208] sm:$0xff] %vm369_vm0, %v7104_v21  ;;  %7137 = vst.msk [vmem:[#allocation2 + $0x210] sm:$0xff] %vm369_vm0, %v7105_v38  ;;  %15495 = vmatpush3.bf16.msra.mxu0 %v17314_v32  ;;  %v19406_v23 = vpack.c.bf16 %v7208_v61, %v7207_v22  ;;  %v7209_v51 = vld [vmem:[#allocation2 + $0x128] sm:$0xff]  ;;  %v7210_v3 = vld [vmem:[#allocation2 + $0x130] sm:$0xff] }
 0xa8c   : > { %15528 = vmatprep.subr.bf16.mxu0 %v19385_v59  ;;  %v7211_v11 = vld [vmem:[#allocation2 + $0x148] sm:$0xff]  ;;  %v7212_v6 = vld [vmem:[#allocation2 + $0x150] sm:$0xff]  ;;  %v19412_v34 = vpack.c.bf16 %v7210_v3, %v7209_v51 }
 0xa8d   : > { %v19414_v42 = vpack.c.bf16 %v7212_v6, %v7211_v11  ;;  %v7213_v44 = vld [vmem:[#allocation2 + $0x168] sm:$0xff]  ;;  %v7214_v60 = vld [vmem:[#allocation2 + $0x170] sm:$0xff] }
 0xa8e   : > { %15465 = vmatmul.mubr.msk.bf16.gmra.mrb[48].mxu0 %vm369_vm0, %v19387_v24  ;;  %v7215_v5 = vld [vmem:[#allocation2 + $0x188] sm:$0xff]  ;;  %v7216_v16 = vld [vmem:[#allocation2 + $0x190] sm:$0xff]  ;;  %v19420_v12 = vpack.c.bf16 %v7214_v60, %v7213_v44 }
 0xa8f   : > { %15468 = vmatprep.mubr.msk.bf16.mxu0 %vm369_vm0, %v19390_v63  ;;  %v19422_v48 = vpack.c.bf16 %v7216_v16, %v7215_v5  ;;  %v7217_v20 = vld [vmem:[#allocation2 + $0x1a8] sm:$0xff]  ;;  %v7218_v25 = vld [vmem:[#allocation2 + $0x1b0] sm:$0xff] }
 0xa90   : > { %v7219_v50 = vld [vmem:[#allocation2 + $0x1c8] sm:$0xff]  ;;  %v7220_v46 = vld [vmem:[#allocation2 + $0x1d0] sm:$0xff]  ;;  %v19428_v41 = vpack.c.bf16 %v7218_v25, %v7217_v20 }
 0xa91   : > { %v19430_v7 = vpack.c.bf16 %v7220_v46, %v7219_v50  ;;  %v7138_v4 = vld [vmem:[#allocation2 + $0x7] sm:$0xff]  ;;  %v7139_v43 = vld [vmem:[#allocation2 + $0xf] sm:$0xff] }
 0xa92   : > { %v7221_v47 = vld [vmem:[#allocation2 + $0x1e8] sm:$0xff]  ;;  %v7222_v54 = vld [vmem:[#allocation2 + $0x1f0] sm:$0xff]  ;;  %v7170_v30 = vpack.c.bf16 %v7139_v43, %v7138_v4 }
 0xa93   : > { %v19436_v40 = vpack.c.bf16 %v7222_v54, %v7221_v47  ;;  %v7140_v2 = vld [vmem:[#allocation2 + $0x27] sm:$0xff]  ;;  %v7141_v19 = vld [vmem:[#allocation2 + $0x2f] sm:$0xff] }
 0xa94   : > { %v7142_v29 = vld [vmem:[#allocation2 + $0x47] sm:$0xff]  ;;  %v7143_v15 = vld [vmem:[#allocation2 + $0x4f] sm:$0xff]  ;;  %v19441_v10 = vpack.c.bf16 %v7141_v19, %v7140_v2 }
 0xa95   : > { %v17316_v26 = vld [vmem:[#allocation5 + $0x148] sm:$0xff]   ;;  %v19443_v21 = vpack.c.bf16 %v7143_v15, %v7142_v29  ;;  %v19450_v38 = vld [vmem:[#allocation5 + $0x150] sm:$0xff]  }
 0xa96   : > { %15469 = vmatmul.mubr.msk.bf16.gmra.mrb[52].mxu0 %vm369_vm0, %v19396_v28  ;;  %v7144_v33 = vld [vmem:[#allocation2 + $0x67] sm:$0xff]  ;;  %v7145_v53 = vld [vmem:[#allocation2 + $0x6f] sm:$0xff] }
 0xa97   : > { %15472 = vmatprep.mubr.msk.bf16.mxu0 %vm369_vm0, %v19398_v57  ;;  %v7146_v49 = vld [vmem:[#allocation2 + $0x87] sm:$0xff]  ;;  %v7147_v52 = vld [vmem:[#allocation2 + $0x8f] sm:$0xff]  ;;  %v19452_v32 = vpack.c.bf16 %v7145_v53, %v7144_v33 }
 0xa98   : > { %v19455_v18 = vpack.c.bf16 %v7147_v52, %v7146_v49  ;;  %v7149_v56 = vld [vmem:[#allocation2 + $0xaf] sm:$0xff]  ;;  %v7150_v27 = vld [vmem:[#allocation2 + $0xc7] sm:$0xff] }
 0xa99   : > { %v7151_v1 = vld [vmem:[#allocation2 + $0xcf] sm:$0xff]  ;;  %v7152_v17 = vld [vmem:[#allocation2 + $0xe7] sm:$0xff] }
 0xa9a   : > { %v19463_v39 = vpack.c.bf16 %v7151_v1, %v7150_v27  ;;  %v7153_v37 = vld [vmem:[#allocation2 + $0xef] sm:$0xff]  ;;  %v7154_v36 = vld [vmem:[#allocation2 + $0x107] sm:$0xff]  ;;  %v17318_v1 = vld [vmem:[#allocation5 + $0x158] sm:$0xff]  }
 0xa9b   : > { %v7155_v8 = vld [vmem:[#allocation2 + $0x10f] sm:$0xff]  ;;  %v19469_v22 = vpack.c.bf16 %v7153_v37, %v7152_v17  ;;  %v7156_v51 = vld [vmem:[#allocation2 + $0x127] sm:$0xff] }
 0xa9c   : > { %v19471_v61 = vpack.c.bf16 %v7155_v8, %v7154_v36  ;;  %v7157_v3 = vld [vmem:[#allocation2 + $0x12f] sm:$0xff]  ;;  %v7158_v11 = vld [vmem:[#allocation2 + $0x147] sm:$0xff] }
 0xa9d   : > { %v7159_v6 = vld [vmem:[#allocation2 + $0x14f] sm:$0xff]  ;;  %v19477_v44 = vpack.c.bf16 %v7157_v3, %v7156_v51  ;;  %v7160_v5 = vld [vmem:[#allocation2 + $0x167] sm:$0xff] }
 0xa9e   : > { %15473 = vmatmul.mubr.msk.bf16.gmra.mrb[56].mxu0 %vm369_vm0, %v19404_v45  ;;  %v19479_v60 = vpack.c.bf16 %v7159_v6, %v7158_v11  ;;  %v7161_v16 = vld [vmem:[#allocation2 + $0x16f] sm:$0xff]  ;;  %v7162_v20 = vld [vmem:[#allocation2 + $0x187] sm:$0xff] }
 0xa9f   : > { %15476 = vmatprep.mubr.msk.bf16.mxu0 %vm369_vm0, %v19406_v23  ;;  %v7163_v25 = vld [vmem:[#allocation2 + $0x18f] sm:$0xff]  ;;  %v19485_v50 = vpack.c.bf16 %v7161_v16, %v7160_v5  ;;  %v7164_v4 = vld [vmem:[#allocation2 + $0x1a7] sm:$0xff] }
 0xaa0   : > { %v19487_v46 = vpack.c.bf16 %v7163_v25, %v7162_v20  ;;  %v7165_v43 = vld [vmem:[#allocation2 + $0x1af] sm:$0xff]  ;;  %v7166_v47 = vld [vmem:[#allocation2 + $0x1c7] sm:$0xff] }
 0xaa1   : > { %v7167_v54 = vld [vmem:[#allocation2 + $0x1cf] sm:$0xff]  ;;  %v7168_v15 = vld [vmem:[#allocation2 + $0x1e7] sm:$0xff] }
 0xaa2   : > { %v19495_v2 = vpack.c.bf16 %v7167_v54, %v7166_v47  ;;  %v7686_v19 = vld [vmem:[#allocation2 + $0x9] sm:$0xff]  ;;  %v7687_v29 = vld [vmem:[#allocation2 + $0x11] sm:$0xff]  ;;  %v17319_v37 = vld [vmem:[#allocation5 + $0x160] sm:$0xff]  }
 0xaa3   : > { %v7718_v33 = vpack.c.bf16 %v7687_v29, %v7686_v19  ;;  %v7688_v49 = vld [vmem:[#allocation2 + $0x29] sm:$0xff]  ;;  %v7689_v52 = vld [vmem:[#allocation2 + $0x31] sm:$0xff] }
 0xaa4   : > { %v19506_v27 = vpack.c.bf16 %v7689_v52, %v7688_v49  ;;  %v7692_v36 = vld [vmem:[#allocation2 + $0x69] sm:$0xff]  ;;  %v7693_v8 = vld [vmem:[#allocation2 + $0x71] sm:$0xff] }
 0xaa5   : > { %v7694_v51 = vld [vmem:[#allocation2 + $0x89] sm:$0xff]  ;;  %v7695_v3 = vld [vmem:[#allocation2 + $0x91] sm:$0xff]  ;;  %v19515_v11 = vpack.c.bf16 %v7693_v8, %v7692_v36 }
 0xaa6   : > { %15477 = vmatmul.mubr.msk.bf16.gmra.mrb[60].mxu0 %vm369_vm0, %v19412_v34  ;;  %v19517_v6 = vpack.c.bf16 %v7695_v3, %v7694_v51  ;;  %v7696_v5 = vld [vmem:[#allocation2 + $0xa9] sm:$0xff]  ;;  %v7699_v20 = vld [vmem:[#allocation2 + $0xd1] sm:$0xff] }
 0xaa7   : > { %15480 = vmatprep.mubr.msk.bf16.mxu0 %vm369_vm0, %v19414_v42  ;;  %v7698_v16 = vld [vmem:[#allocation2 + $0xc9] sm:$0xff]  ;;  %v7701_v47 = vld [vmem:[#allocation2 + $0xf1] sm:$0xff] }
 0xaa8   : > { %v7702_v54 = vld [vmem:[#allocation2 + $0x109] sm:$0xff]  ;;  %v7703_v19 = vld [vmem:[#allocation2 + $0x111] sm:$0xff] }
 0xaa9   : > { %v7706_v49 = vld [vmem:[#allocation2 + $0x149] sm:$0xff]  ;;  %v7707_v52 = vld [vmem:[#allocation2 + $0x151] sm:$0xff] }
 0xaaa   : > { %v7709_v36 = vld [vmem:[#allocation2 + $0x171] sm:$0xff]  ;;  %v7710_v8 = vld [vmem:[#allocation2 + $0x189] sm:$0xff] }
 0xaab   : > { %v7711_v51 = vld [vmem:[#allocation2 + $0x191] sm:$0xff] }
 0xaae   : > { %15481 = vmatmul.mubr.msk.bf16.gmra.mrb[64].mxu0 %vm369_vm0, %v19420_v12 }
 0xaaf   : > { %15484 = vmatprep.mubr.msk.bf16.mxu0 %vm369_vm0, %v19422_v48 }
 0xab6   : > { %15485 = vmatmul.mubr.msk.bf16.gmra.mrb[68].mxu0 %vm369_vm0, %v19428_v41 }
 0xab7   : > { %15488 = vmatprep.mubr.msk.bf16.mxu0 %vm369_vm0, %v19430_v7 }
 0xabe   : > { %15489 = vmatmul.mubr.msk.bf16.gmra.mrb[72].mxu0 %vm369_vm0, %v19436_v40 }
 0xabf   : > { %15496 = vmatprep.mubr.msk.bf16.mxu0 %vm369_vm0, %v7170_v30  ;;  %v19493_v30 = vpack.c.bf16 %v7165_v43, %v7164_v4  ;;  %v19525_v4 = vpack.c.bf16 %v7699_v20, %v7698_v16  ;;  %v7700_v43 = vld [vmem:[#allocation2 + $0xe9] sm:$0xff]  ;;  %v7713_v16 = vld [vmem:[#allocation2 + $0x1b1] sm:$0xff] }
 0xac0   : > { %v19531_v29 = vpack.c.bf16 %v7701_v47, %v7700_v43  ;;  %v7714_v20 = vld [vmem:[#allocation2 + $0x1c9] sm:$0xff]  ;;  %v7715_v43 = vld [vmem:[#allocation2 + $0x1d1] sm:$0xff] }
 0xac6   : > { %15497 = vmatmul.mubr.msk.bf16.vlgmr.msra.gmra.mrb[44].mxu0 %vm369_vm0, %v19441_v10 }
 0xac7   : > { %15500 = vmatprep.mubr.msk.bf16.mxu0 %vm369_vm0, %v19443_v21  ;;  %15529 = vmatpush3.bf16.msra.mxu0 %v19385_v59  ;;  %v7148_v59 = vld [vmem:[#allocation2 + $0xa7] sm:$0xff] }
 0xac8   : > { %15530 = vmatprep.subr.bf16.mxu0 %v17316_v26  ;;  %v19461_v58 = vpack.c.bf16 %v7149_v56, %v7148_v59  ;;  %v7690_v59 = vld [vmem:[#allocation2 + $0x49] sm:$0xff]  ;;  %v7691_v56 = vld [vmem:[#allocation2 + $0x51] sm:$0xff] }
 0xac9   : > { %v19508_v17 = vpack.c.bf16 %v7691_v56, %v7690_v59  ;;  %v19541_v56 = vpack.c.bf16 %v7707_v52, %v7706_v49  ;;  %v17320_v49 = vld [vmem:[#allocation5 + $0x168] sm:$0xff]   ;;  %v17321_v52 = vld [vmem:[#allocation5 + $0x170] sm:$0xff]  }
 0xacb   : > { %15531 = vmatpush3.bf16.msra.mxu0 %v17316_v26  ;;  %v7169_v26 = vld [vmem:[#allocation2 + $0x1ef] sm:$0xff] }
 0xacc   : > { %15564 = vmatprep.subr.bf16.mxu0 %v19450_v38  ;;  %v19501_v53 = vpack.c.bf16 %v7169_v26, %v7168_v15  ;;  %v19533_v15 = vpack.c.bf16 %v7703_v19, %v7702_v54  ;;  %v7704_v26 = vld [vmem:[#allocation2 + $0x129] sm:$0xff]  ;;  %v19557_v54 = vpack.c.bf16 %v7715_v43, %v7714_v20  ;;  %v8635_v43 = vld [vmem:[#allocation2 + $0x211] sm:$0xff] }
 0xacd   : > { %v7716_v19 = vld [vmem:[#allocation2 + $0x1e9] sm:$0xff] }
 0xace   : > { %15501 = vmatmul.mubr.msk.bf16.gmra.mrb[48].mxu0 %vm369_vm0, %v19452_v32  ;;  %v17325_v20 = vld [vmem:[#allocation5 + $0x190] sm:$0xff]  }
 0xacf   : > { %15504 = vmatprep.mubr.msk.bf16.mxu0 %vm369_vm0, %v19455_v18 }
 0xad6   : > { %15505 = vmatmul.mubr.msk.bf16.gmra.mrb[52].mxu0 %vm369_vm0, %v19461_v58 }
 0xad7   : > { %15508 = vmatprep.mubr.msk.bf16.mxu0 %vm369_vm0, %v19463_v39 }
 0xade   : > { %15509 = vmatmul.mubr.msk.bf16.gmra.mrb[56].mxu0 %vm369_vm0, %v19469_v22 }
 0xadf   : > { %15512 = vmatprep.mubr.msk.bf16.mxu0 %vm369_vm0, %v19471_v61 }
 0xae6   : > { %15513 = vmatmul.mubr.msk.bf16.gmra.mrb[60].mxu0 %vm369_vm0, %v19477_v44 }
 0xae7   : > { %15516 = vmatprep.mubr.msk.bf16.mxu0 %vm369_vm0, %v19479_v60 }
 0xaee   : > { %15517 = vmatmul.mubr.msk.bf16.gmra.mrb[64].mxu0 %vm369_vm0, %v19485_v50 }
 0xaef   : > { %15520 = vmatprep.mubr.msk.bf16.mxu0 %vm369_vm0, %v19487_v46 }
 0xaf6   : > { %15521 = vmatmul.mubr.msk.bf16.gmra.mrb[68].mxu0 %vm369_vm0, %v19493_v30 }
 0xaf7   : > { %15524 = vmatprep.mubr.msk.bf16.mxu0 %vm369_vm0, %v19495_v2 }
 0xafe   : > { %15525 = vmatmul.mubr.msk.bf16.gmra.mrb[72].mxu0 %vm369_vm0, %v19501_v53 }
 0xaff   : > { %15532 = vmatprep.mubr.msk.bf16.mxu0 %vm369_vm0, %v7718_v33  ;;  %v7705_v33 = vld [vmem:[#allocation2 + $0x131] sm:$0xff] }
 0xb00   : > { %v19539_v59 = vpack.c.bf16 %v7705_v33, %v7704_v26  ;;  %v7717_v26 = vld [vmem:[#allocation2 + $0x1f1] sm:$0xff] }
 0xb01   : > { %v19563_v33 = vpack.c.bf16 %v7717_v26, %v7716_v19  ;;  %v17326_v26 = vld [vmem:[#allocation5 + $0x198] sm:$0xff]  }
 0xb06   : > { %15533 = vmatmul.mubr.msk.bf16.vlgmr.msra.gmra.mrb[44].mxu0 %vm369_vm0, %v19506_v27 }
 0xb07   : > { %15536 = vmatprep.mubr.msk.bf16.mxu0 %vm369_vm0, %v19508_v17  ;;  %15565 = vmatpush3.bf16.msra.mxu0 %v19450_v38  ;;  %v7697_v38 = vld [vmem:[#allocation2 + $0xb1] sm:$0xff] }
 0xb08   : > { %15566 = vmatprep.subr.bf16.mxu0 %v17318_v1  ;;  %v19523_v25 = vpack.c.bf16 %v7697_v38, %v7696_v5  ;;  %v19549_v5 = vpack.c.bf16 %v7711_v51, %v7710_v8  ;;  %v7712_v38 = vld [vmem:[#allocation2 + $0x1a9] sm:$0xff]  ;;  %v17323_v8 = vld [vmem:[#allocation5 + $0x180] sm:$0xff]  }
 0xb09   : > { %v19555_v47 = vpack.c.bf16 %v7713_v16, %v7712_v38  ;;  %v8329_v51 = vld [vmem:[#allocation2 + $0x210] sm:$0xff]  ;;  %v17324_v16 = vld [vmem:[#allocation5 + $0x188] sm:$0xff]  }
 0xb0b   : > { %15567 = vmatpush3.bf16.msra.mxu0 %v17318_v1  ;;  %v7708_v1 = vld [vmem:[#allocation2 + $0x169] sm:$0xff] }
 0xb0c   : > { %15600 = vmatprep.subr.bf16.mxu0 %v17319_v37  ;;  %v19547_v3 = vpack.c.bf16 %v7709_v36, %v7708_v1  ;;  %v17322_v36 = vld [vmem:[#allocation5 + $0x178] sm:$0xff]  }
 0xb0e   : > { %15537 = vmatmul.mubr.msk.bf16.gmra.mrb[48].mxu0 %vm369_vm0, %v19515_v11 }
 0xb0f   : > { %15540 = vmatprep.mubr.msk.bf16.mxu0 %vm369_vm0, %v19517_v6 }
 0xb16   : > { %15541 = vmatmul.mubr.msk.bf16.gmra.mrb[52].mxu0 %vm369_vm0, %v19523_v25 }
 0xb17   : > { %15544 = vmatprep.mubr.msk.bf16.mxu0 %vm369_vm0, %v19525_v4 }
 0xb1e   : > { %15545 = vmatmul.mubr.msk.bf16.gmra.mrb[56].mxu0 %vm369_vm0, %v19531_v29 }
 0xb1f   : > { %15548 = vmatprep.mubr.msk.bf16.mxu0 %vm369_vm0, %v19533_v15 }
 0xb26   : > { %15549 = vmatmul.mubr.msk.bf16.gmra.mrb[60].mxu0 %vm369_vm0, %v19539_v59 }
 0xb27   : > { %15552 = vmatprep.mubr.msk.bf16.mxu0 %vm369_vm0, %v19541_v56 }
 0xb2e   : > { %15553 = vmatmul.mubr.msk.bf16.gmra.mrb[64].mxu0 %vm369_vm0, %v19547_v3 }
 0xb2f   : > { %15556 = vmatprep.mubr.msk.bf16.mxu0 %vm369_vm0, %v19549_v5 }
 0xb36   : > { %15557 = vmatmul.mubr.msk.bf16.gmra.mrb[68].mxu0 %vm369_vm0, %v19555_v47 }
 0xb37   : > { %15560 = vmatprep.mubr.msk.bf16.mxu0 %vm369_vm0, %v19557_v54 }
 0xb3e   : > { %15561 = vmatmul.mubr.msk.bf16.gmra.mrb[72].mxu0 %vm369_vm0, %v19563_v33 }
 0xb3f   : > { %15568 = vmatprep.mubr.msk.bf16.mxu0 %vm369_vm0, %v19441_v10  ;;  %v8022_v10 = vld [vmem:[#allocation2 + $0x207] sm:$0xff] }
 0xb46   : > { %15569 = vmatmul.mubr.msk.bf16.vlgmr.msra.gmra.mrb[44].mxu0 %vm369_vm0, %v19443_v21 }
 0xb47   : > { %15572 = vmatprep.mubr.msk.bf16.mxu0 %vm369_vm0, %v19452_v32  ;;  %15601 = vmatpush3.bf16.msra.mxu0 %v17319_v37  ;;  %v8023_v37 = vld [vmem:[#allocation2 + $0x20f] sm:$0xff] }
 0xb48   : > { %15602 = vmatprep.subr.bf16.mxu0 %v17320_v49  ;;  %v19597_v1 = vpack.c.bf16 %v8023_v37, %v8022_v10 }
 0xb4b   : > { %15603 = vmatpush3.bf16.msra.mxu0 %v17320_v49  ;;  %v17327_v49 = vld [vmem:[#allocation5 + $0x1a0] sm:$0xff]  }
 0xb4c   : > { %15636 = vmatprep.subr.bf16.mxu0 %v17321_v52 }
 0xb4e   : > { %15573 = vmatmul.mubr.msk.bf16.gmra.mrb[48].mxu0 %vm369_vm0, %v19455_v18 }
 0xb4f   : > { %15576 = vmatprep.mubr.msk.bf16.mxu0 %vm369_vm0, %v19461_v58 }
 0xb56   : > { %15577 = vmatmul.mubr.msk.bf16.gmra.mrb[52].mxu0 %vm369_vm0, %v19463_v39 }
 0xb57   : > { %15580 = vmatprep.mubr.msk.bf16.mxu0 %vm369_vm0, %v19469_v22 }
 0xb5e   : > { %15581 = vmatmul.mubr.msk.bf16.gmra.mrb[56].mxu0 %vm369_vm0, %v19471_v61 }
 0xb5f   : > { %15584 = vmatprep.mubr.msk.bf16.mxu0 %vm369_vm0, %v19477_v44 }
 0xb66   : > { %15585 = vmatmul.mubr.msk.bf16.gmra.mrb[60].mxu0 %vm369_vm0, %v19479_v60 }
 0xb67   : > { %15588 = vmatprep.mubr.msk.bf16.mxu0 %vm369_vm0, %v19485_v50 }
 0xb6e   : > { %15589 = vmatmul.mubr.msk.bf16.gmra.mrb[64].mxu0 %vm369_vm0, %v19487_v46 }
 0xb6f   : > { %15592 = vmatprep.mubr.msk.bf16.mxu0 %vm369_vm0, %v19493_v30 }
 0xb76   : > { %15593 = vmatmul.mubr.msk.bf16.gmra.mrb[68].mxu0 %vm369_vm0, %v19495_v2 }
 0xb77   : > { %15596 = vmatprep.mubr.msk.bf16.mxu0 %vm369_vm0, %v19501_v53 }
 0xb7e   : > { %15597 = vmatmul.mubr.msk.bf16.gmra.mrb[72].mxu0 %vm369_vm0, %v19597_v1 }
 0xb7f   : > { %15604 = vmatprep.mubr.msk.bf16.mxu0 %vm369_vm0, %v19376_v9  ;;  %v8328_v9 = vld [vmem:[#allocation2 + $0x208] sm:$0xff] }
 0xb80   : > { %v19631_v38 = vpack.c.bf16 %v8329_v51, %v8328_v9 }
 0xb86   : > { %15605 = vmatmul.mubr.msk.bf16.vlgmr.msra.gmra.mrb[44].mxu0 %vm369_vm0, %v19378_v55 }
 0xb87   : > { %15608 = vmatprep.mubr.msk.bf16.mxu0 %vm369_vm0, %v19387_v24  ;;  %15637 = vmatpush3.bf16.msra.mxu0 %v17321_v52 }
 0xb88   : > { %15638 = vmatprep.subr.bf16.mxu0 %v17322_v36 }
 0xb8b   : > { %15639 = vmatpush3.bf16.msra.mxu0 %v17322_v36 }
 0xb8c   : > { %15672 = vmatprep.subr.bf16.mxu0 %v17323_v8 }
 0xb8e   : > { %15609 = vmatmul.mubr.msk.bf16.gmra.mrb[48].mxu0 %vm369_vm0, %v19390_v63 }
 0xb8f   : > { %15612 = vmatprep.mubr.msk.bf16.mxu0 %vm369_vm0, %v19396_v28 }
 0xb96   : > { %15613 = vmatmul.mubr.msk.bf16.gmra.mrb[52].mxu0 %vm369_vm0, %v19398_v57 }
 0xb97   : > { %15616 = vmatprep.mubr.msk.bf16.mxu0 %vm369_vm0, %v19404_v45 }
 0xb9e   : > { %15617 = vmatmul.mubr.msk.bf16.gmra.mrb[56].mxu0 %vm369_vm0, %v19406_v23 }
 0xb9f   : > { %15620 = vmatprep.mubr.msk.bf16.mxu0 %vm369_vm0, %v19412_v34 }
 0xba6   : > { %15621 = vmatmul.mubr.msk.bf16.gmra.mrb[60].mxu0 %vm369_vm0, %v19414_v42 }
 0xba7   : > { %15624 = vmatprep.mubr.msk.bf16.mxu0 %vm369_vm0, %v19420_v12 }
 0xbae   : > { %15625 = vmatmul.mubr.msk.bf16.gmra.mrb[64].mxu0 %vm369_vm0, %v19422_v48 }
 0xbaf   : > { %15628 = vmatprep.mubr.msk.bf16.mxu0 %vm369_vm0, %v19428_v41 }
 0xbb6   : > { %15629 = vmatmul.mubr.msk.bf16.gmra.mrb[68].mxu0 %vm369_vm0, %v19430_v7 }
 0xbb7   : > { %15632 = vmatprep.mubr.msk.bf16.mxu0 %vm369_vm0, %v19436_v40 }
 0xbbe   : > { %15633 = vmatmul.mubr.msk.bf16.gmra.mrb[72].mxu0 %vm369_vm0, %v19631_v38 }
 0xbbf   : > { %15640 = vmatprep.mubr.msk.bf16.mxu0 %vm369_vm0, %v19506_v27  ;;  %v8634_v27 = vld [vmem:[#allocation2 + $0x209] sm:$0xff] }
 0xbc0   : > { %v19665_v19 = vpack.c.bf16 %v8635_v43, %v8634_v27 }
 0xbc6   : > { %15641 = vmatmul.mubr.msk.bf16.vlgmr.msra.gmra.mrb[44].mxu0 %vm369_vm0, %v19508_v17 }
 0xbc7   : > { %15644 = vmatprep.mubr.msk.bf16.mxu0 %vm369_vm0, %v19515_v11  ;;  %15673 = vmatpush3.bf16.msra.mxu0 %v17323_v8 }
 0xbc8   : > { %15674 = vmatprep.subr.bf16.mxu0 %v17324_v16 }
 0xbcb   : > { %15675 = vmatpush3.bf16.msra.mxu0 %v17324_v16 }
 0xbcc   : > { %15708 = vmatprep.subr.bf16.mxu0 %v17325_v20 }
 0xbce   : > { %15645 = vmatmul.mubr.msk.bf16.gmra.mrb[48].mxu0 %vm369_vm0, %v19517_v6 }
 0xbcf   : > { %15648 = vmatprep.mubr.msk.bf16.mxu0 %vm369_vm0, %v19523_v25 }
 0xbd6   : > { %15649 = vmatmul.mubr.msk.bf16.gmra.mrb[52].mxu0 %vm369_vm0, %v19525_v4 }
 0xbd7   : > { %15652 = vmatprep.mubr.msk.bf16.mxu0 %vm369_vm0, %v19531_v29 }
 0xbde   : > { %15653 = vmatmul.mubr.msk.bf16.gmra.mrb[56].mxu0 %vm369_vm0, %v19533_v15 }
 0xbdf   : > { %15656 = vmatprep.mubr.msk.bf16.mxu0 %vm369_vm0, %v19539_v59 }
 0xbe6   : > { %15657 = vmatmul.mubr.msk.bf16.gmra.mrb[60].mxu0 %vm369_vm0, %v19541_v56 }
 0xbe7   : > { %15660 = vmatprep.mubr.msk.bf16.mxu0 %vm369_vm0, %v19547_v3 }
 0xbee   : > { %15661 = vmatmul.mubr.msk.bf16.gmra.mrb[64].mxu0 %vm369_vm0, %v19549_v5 }
 0xbef   : > { %15664 = vmatprep.mubr.msk.bf16.mxu0 %vm369_vm0, %v19555_v47 }
 0xbf6   : > { %15665 = vmatmul.mubr.msk.bf16.gmra.mrb[68].mxu0 %vm369_vm0, %v19557_v54 }
 0xbf7   : > { %15668 = vmatprep.mubr.msk.bf16.mxu0 %vm369_vm0, %v19563_v33 }
 0xbfe   : > { %15669 = vmatmul.mubr.msk.bf16.gmra.mrb[72].mxu0 %vm369_vm0, %v19665_v19 }
 0xbff   : > { %15676 = vmatprep.mubr.msk.bf16.mxu0 %vm369_vm0, %v19443_v21  ;;  %v8940_v21 = vld [vmem:[#allocation2 + $0x227] sm:$0xff] }
 0xc06   : > { %15677 = vmatmul.mubr.msk.bf16.vlgmr.msra.gmra.mrb[44].mxu0 %vm369_vm0, %v19452_v32  ;;  %v8941_v32 = vld [vmem:[#allocation2 + $0x22f] sm:$0xff] }
 0xc07   : > { %15680 = vmatprep.mubr.msk.bf16.mxu0 %vm369_vm0, %v19455_v18  ;;  %15709 = vmatpush3.bf16.msra.mxu0 %v17325_v20  ;;  %v8957_v18 = vpack.c.bf16 %v8941_v32, %v8940_v21 }
 0xc08   : > { %15710 = vmatprep.subr.bf16.mxu0 %v17326_v26 }
 0xc0b   : > { %15711 = vmatpush3.bf16.msra.mxu0 %v17326_v26 }
 0xc0c   : > { %15744 = vmatprep.subr.bf16.mxu0 %v17327_v49 }
 0xc0e   : > { %15681 = vmatmul.mubr.msk.bf16.gmra.mrb[48].mxu0 %vm369_vm0, %v19461_v58  ;;  %v17328_v58 = vld [vmem:[#allocation5 + $0x1a8] sm:$0xff]  }
 0xc0f   : > { %15684 = vmatprep.mubr.msk.bf16.mxu0 %vm369_vm0, %v19463_v39 }
 0xc16   : > { %15685 = vmatmul.mubr.msk.bf16.gmra.mrb[52].mxu0 %vm369_vm0, %v19469_v22 }
 0xc17   : > { %15688 = vmatprep.mubr.msk.bf16.mxu0 %vm369_vm0, %v19471_v61 }
 0xc1e   : > { %15689 = vmatmul.mubr.msk.bf16.gmra.mrb[56].mxu0 %vm369_vm0, %v19477_v44 }
 0xc1f   : > { %15692 = vmatprep.mubr.msk.bf16.mxu0 %vm369_vm0, %v19479_v60 }
 0xc26   : > { %15693 = vmatmul.mubr.msk.bf16.gmra.mrb[60].mxu0 %vm369_vm0, %v19485_v50 }
 0xc27   : > { %15696 = vmatprep.mubr.msk.bf16.mxu0 %vm369_vm0, %v19487_v46 }
 0xc2e   : > { %15697 = vmatmul.mubr.msk.bf16.gmra.mrb[64].mxu0 %vm369_vm0, %v19493_v30 }
 0xc2f   : > { %15700 = vmatprep.mubr.msk.bf16.mxu0 %vm369_vm0, %v19495_v2 }
 0xc36   : > { %15701 = vmatmul.mubr.msk.bf16.gmra.mrb[68].mxu0 %vm369_vm0, %v19501_v53 }
 0xc37   : > { %15704 = vmatprep.mubr.msk.bf16.mxu0 %vm369_vm0, %v19597_v1 }
 0xc3e   : > { %15705 = vmatmul.mubr.msk.bf16.gmra.mrb[72].mxu0 %vm369_vm0, %v8957_v18 }
 0xc3f   : > { %15712 = vmatprep.mubr.msk.bf16.mxu0 %vm369_vm0, %v19378_v55  ;;  %v9246_v55 = vld [vmem:[#allocation2 + $0x228] sm:$0xff] }
 0xc46   : > { %15713 = vmatmul.mubr.msk.bf16.vlgmr.msra.gmra.mrb[44].mxu0 %vm369_vm0, %v19387_v24  ;;  %v9247_v24 = vld [vmem:[#allocation2 + $0x230] sm:$0xff] }
 0xc47   : > { %15716 = vmatprep.mubr.msk.bf16.mxu0 %vm369_vm0, %v19390_v63  ;;  %15745 = vmatpush3.bf16.msra.mxu0 %v17327_v49  ;;  %v9263_v63 = vpack.c.bf16 %v9247_v24, %v9246_v55 }
 0xc48   : > { %15746 = vmatprep.subr.bf16.mxu0 %v17328_v58 }
 0xc4b   : > { %15747 = vmatpush3.bf16.msra.mxu0 %v17328_v58 }
 0xc4e   : > { %15717 = vmatmul.mubr.msk.bf16.gmra.mrb[48].mxu0 %vm369_vm0, %v19396_v28  ;;  %v9552_v28 = vld [vmem:[#allocation2 + $0x229] sm:$0xff] }
 0xc4f   : > { %15720 = vmatprep.mubr.msk.bf16.mxu0 %vm369_vm0, %v19398_v57  ;;  %v9553_v57 = vld [vmem:[#allocation2 + $0x231] sm:$0xff] }
 0xc56   : > { %15721 = vmatmul.mubr.msk.bf16.gmra.mrb[52].mxu0 %vm369_vm0, %v19404_v45  ;;  %v9569_v45 = vpack.c.bf16 %v9553_v57, %v9552_v28 }
 0xc57   : > { %15724 = vmatprep.mubr.msk.bf16.mxu0 %vm369_vm0, %v19406_v23 }
 0xc5e   : > { %15725 = vmatmul.mubr.msk.bf16.gmra.mrb[56].mxu0 %vm369_vm0, %v19412_v34 }
 0xc5f   : > { %15728 = vmatprep.mubr.msk.bf16.mxu0 %vm369_vm0, %v19414_v42 }
 0xc66   : > { %15729 = vmatmul.mubr.msk.bf16.gmra.mrb[60].mxu0 %vm369_vm0, %v19420_v12 }
 0xc67   : > { %15732 = vmatprep.mubr.msk.bf16.mxu0 %vm369_vm0, %v19422_v48 }
 0xc6e   : > { %15733 = vmatmul.mubr.msk.bf16.gmra.mrb[64].mxu0 %vm369_vm0, %v19428_v41 }
 0xc6f   : > { %15736 = vmatprep.mubr.msk.bf16.mxu0 %vm369_vm0, %v19430_v7 }
 0xc76   : > { %15737 = vmatmul.mubr.msk.bf16.gmra.mrb[68].mxu0 %vm369_vm0, %v19436_v40 }
 0xc77   : > { %15740 = vmatprep.mubr.msk.bf16.mxu0 %vm369_vm0, %v19631_v38 }
 0xc7e   : > { %15741 = vmatmul.mubr.msk.bf16.gmra.mrb[72].mxu0 %vm369_vm0, %v9263_v63 }
 0xc7f   : > { %15748 = vmatprep.mubr.msk.bf16.mxu0 %vm369_vm0, %v19508_v17 }
 0xc86   : > { %15749 = vmatmul.mubr.msk.bf16.vlgmr.msra.gmra.mrb[44].mxu0 %vm369_vm0, %v19515_v11 }
 0xc87   : > { %15752 = vmatprep.mubr.msk.bf16.mxu0 %vm369_vm0, %v19517_v6 }
 0xc8e   : > { %15753 = vmatmul.mubr.msk.bf16.gmra.mrb[48].mxu0 %vm369_vm0, %v19523_v25 }
 0xc8f   : > { %15756 = vmatprep.mubr.msk.bf16.mxu0 %vm369_vm0, %v19525_v4 }
 0xc96   : > { %15757 = vmatmul.mubr.msk.bf16.gmra.mrb[52].mxu0 %vm369_vm0, %v19531_v29 }
 0xc97   : > { %15760 = vmatprep.mubr.msk.bf16.mxu0 %vm369_vm0, %v19533_v15 }
 0xc9e   : > { %15761 = vmatmul.mubr.msk.bf16.gmra.mrb[56].mxu0 %vm369_vm0, %v19539_v59 }
 0xc9f   : > { %15764 = vmatprep.mubr.msk.bf16.mxu0 %vm369_vm0, %v19541_v56 }
 0xca6   : > { %15765 = vmatmul.mubr.msk.bf16.gmra.mrb[60].mxu0 %vm369_vm0, %v19547_v3 }
 0xca7   : > { %15768 = vmatprep.mubr.msk.bf16.mxu0 %vm369_vm0, %v19549_v5 }
 0xcae   : > { %15769 = vmatmul.mubr.msk.bf16.gmra.mrb[64].mxu0 %vm369_vm0, %v19555_v47 }
 0xcaf   : > { %15772 = vmatprep.mubr.msk.bf16.mxu0 %vm369_vm0, %v19557_v54 }
 0xcb6   : > { %15773 = vmatmul.mubr.msk.bf16.gmra.mrb[68].mxu0 %vm369_vm0, %v19563_v33 }
 0xcb7   : > { %15776 = vmatprep.mubr.msk.bf16.mxu0 %vm369_vm0, %v19665_v19 }
 0xcbe   : > { %15777 = vmatmul.mubr.msk.bf16.gmra.mrb[72].mxu0 %vm369_vm0, %v9569_v45 }
 0xd59   : > { %v19762_v23 = vpop.f32.mrb[44].mxu0 }
 0xd5a   : > { %v19764_v34 = vpop.f32.mrb[45].mxu0  ;;  %v9901_v41 = vmul.f32 %v19762_v23, %v19762_v23  ;;  %v9833_v61 = vsel %vm369_vm0, %v19762_v23, 0.0 }
 0xd5b   : > { %v9899_v42 = vmul.f32 %v19764_v34, %v19764_v34  ;;  %v19768_v12 = vpop.f32.mrb[46].mxu0  ;;  %v9830_v7 = vsel %vm369_vm0, %v19764_v34, 0.0 }
 0xd5c   : > { %v19770_v48 = vpop.f32.mrb[47].mxu0  ;;  %v9902_v60 = vmul.f32 %v19768_v12, %v19768_v12  ;;  %v9934_v2 = vsel %vm369_vm0, %v9901_v41, 0.0  ;;  %v9835_v53 = vsel %vm369_vm0, %v19768_v12, 0.0 }
 0xd5d   : > { %v9831_v40 = vsel %vm369_vm0, %v19770_v48, 0.0  ;;  %v9900_v39 = vmul.f32 %v19770_v48, %v19770_v48  ;;  %v9931_v44 = vsel %vm369_vm0, %v9899_v42, 0.0 }
 0xd5e   : > { %v9832_v22 = vadd.f32 %v9831_v40, %v9830_v7  ;;  %v9936_v4 = vsel %vm369_vm0, %v9902_v60, 0.0 }
 0xd5f   : > { %v9932_v50 = vsel %vm369_vm0, %v9900_v39, 0.0 }
 0xd60   : > { %v9834_v46 = vadd.f32 %v9833_v61, %v9832_v22  ;;  %v9933_v30 = vadd.f32 %v9932_v50, %v9931_v44 }
 0xd61   : > { %v19789_v17 = vpop.f32.mrb[48].mxu0 }
 0xd62   : > { %v9935_v11 = vadd.f32 %v9934_v2, %v9933_v30  ;;  %v19791_v6 = vpop.f32.mrb[49].mxu0  ;;  %v9836_v25 = vadd.f32 %v9835_v53, %v9834_v46  ;;  %v9905_v47 = vmul.f32 %v19789_v17, %v19789_v17  ;;  %v9841_v1 = vsel %vm369_vm0, %v19789_v17, 0.0 }
 0xd63   : > { %v9837_v29 = vsel %vm369_vm0, %v19791_v6, 0.0  ;;  %v9903_v15 = vmul.f32 %v19791_v6, %v19791_v6  ;;  %v19798_v59 = vpop.f32.mrb[50].mxu0 }
 0xd64   : > { %v9838_v56 = vadd.f32 %v9837_v29, %v9836_v25  ;;  %v9937_v3 = vadd.f32 %v9936_v4, %v9935_v11  ;;  %v19800_v5 = vpop.f32.mrb[51].mxu0  ;;  %v9906_v36 = vmul.f32 %v19798_v59, %v19798_v59  ;;  %v9942_v38 = vsel %vm369_vm0, %v9905_v47, 0.0 }
 0xd65   : > { %v9938_v54 = vsel %vm369_vm0, %v9903_v15, 0.0  ;;  %v9839_v33 = vsel %vm369_vm0, %v19800_v5, 0.0  ;;  %v9904_v52 = vmul.f32 %v19800_v5, %v19800_v5  ;;  %v9843_v16 = vsel %vm369_vm0, %v19798_v59, 0.0 }
 0xd66   : > { %v9939_v10 = vadd.f32 %v9938_v54, %v9937_v3  ;;  %v9840_v37 = vadd.f32 %v9839_v33, %v9838_v56  ;;  %v9944_v26 = vsel %vm369_vm0, %v9906_v36, 0.0 }
 0xd67   : > { %v9940_v8 = vsel %vm369_vm0, %v9904_v52, 0.0 }
 0xd68   : > { %v9842_v9 = vadd.f32 %v9841_v1, %v9840_v37  ;;  %v9941_v51 = vadd.f32 %v9940_v8, %v9939_v10 }
 0xd69   : > { %v19817_v20 = vpop.f32.mrb[52].mxu0 }
 0xd6a   : > { %v9943_v27 = vadd.f32 %v9942_v38, %v9941_v51  ;;  %v19819_v43 = vpop.f32.mrb[53].mxu0  ;;  %v9844_v19 = vadd.f32 %v9843_v16, %v9842_v9  ;;  %v9909_v24 = vmul.f32 %v19817_v20, %v19817_v20  ;;  %v9849_v41 = vsel %vm369_vm0, %v19817_v20, 0.0 }
 0xd6b   : > { %v9845_v49 = vsel %vm369_vm0, %v19819_v43, 0.0  ;;  %v9907_v21 = vmul.f32 %v19819_v43, %v19819_v43  ;;  %v19826_v32 = vpop.f32.mrb[54].mxu0 }
 0xd6c   : > { %v9846_v18 = vadd.f32 %v9845_v49, %v9844_v19  ;;  %v9945_v58 = vadd.f32 %v9944_v26, %v9943_v27  ;;  %v19828_v55 = vpop.f32.mrb[55].mxu0  ;;  %v9910_v7 = vmul.f32 %v19826_v32, %v19826_v32  ;;  %v9950_v61 = vsel %vm369_vm0, %v9909_v24, 0.0 }
 0xd6d   : > { %v9946_v63 = vsel %vm369_vm0, %v9907_v21, 0.0  ;;  %v9847_v28 = vsel %vm369_vm0, %v19828_v55, 0.0  ;;  %v9908_v57 = vmul.f32 %v19828_v55, %v19828_v55  ;;  %v9851_v44 = vsel %vm369_vm0, %v19826_v32, 0.0 }
 0xd6e   : > { %v9947_v45 = vadd.f32 %v9946_v63, %v9945_v58  ;;  %v9848_v42 = vadd.f32 %v9847_v28, %v9846_v18  ;;  %v9952_v2 = vsel %vm369_vm0, %v9910_v7, 0.0 }
 0xd6f   : > { %v9948_v40 = vsel %vm369_vm0, %v9908_v57, 0.0 }
 0xd70   : > { %v9850_v39 = vadd.f32 %v9849_v41, %v9848_v42  ;;  %v9949_v22 = vadd.f32 %v9948_v40, %v9947_v45 }
 0xd71   : > { %v19845_v60 = vpop.f32.mrb[56].mxu0 }
 0xd72   : > { %v9951_v50 = vadd.f32 %v9950_v61, %v9949_v22  ;;  %v19847_v46 = vpop.f32.mrb[57].mxu0  ;;  %v9852_v30 = vadd.f32 %v9851_v44, %v9850_v39  ;;  %v9913_v56 = vmul.f32 %v19845_v60, %v19845_v60  ;;  %v9857_v10 = vsel %vm369_vm0, %v19845_v60, 0.0 }
 0xd73   : > { %v9853_v53 = vsel %vm369_vm0, %v19847_v46, 0.0  ;;  %v9911_v11 = vmul.f32 %v19847_v46, %v19847_v46  ;;  %v19854_v25 = vpop.f32.mrb[58].mxu0 }
 0xd74   : > { %v9854_v4 = vadd.f32 %v9853_v53, %v9852_v30  ;;  %v9953_v29 = vadd.f32 %v9952_v2, %v9951_v50  ;;  %v19856_v15 = vpop.f32.mrb[59].mxu0  ;;  %v9914_v37 = vmul.f32 %v19854_v25, %v19854_v25  ;;  %v9958_v9 = vsel %vm369_vm0, %v9913_v56, 0.0 }
 0xd75   : > { %v9954_v3 = vsel %vm369_vm0, %v9911_v11, 0.0  ;;  %v9855_v47 = vsel %vm369_vm0, %v19856_v15, 0.0  ;;  %v9912_v54 = vmul.f32 %v19856_v15, %v19856_v15  ;;  %v9859_v51 = vsel %vm369_vm0, %v19854_v25, 0.0 }
 0xd76   : > { %v9955_v33 = vadd.f32 %v9954_v3, %v9953_v29  ;;  %v9856_v52 = vadd.f32 %v9855_v47, %v9854_v4  ;;  %v9960_v26 = vsel %vm369_vm0, %v9914_v37, 0.0 }
 0xd77   : > { %v9956_v1 = vsel %vm369_vm0, %v9912_v54, 0.0 }
 0xd78   : > { %v9858_v36 = vadd.f32 %v9857_v10, %v9856_v52  ;;  %v9957_v8 = vadd.f32 %v9956_v1, %v9955_v33 }
 0xd79   : > { %v19873_v38 = vpop.f32.mrb[60].mxu0 }
 0xd7a   : > { %v9959_v16 = vadd.f32 %v9958_v9, %v9957_v8  ;;  %v19875_v27 = vpop.f32.mrb[61].mxu0  ;;  %v9860_v19 = vadd.f32 %v9859_v51, %v9858_v36  ;;  %v9917_v28 = vmul.f32 %v19873_v38, %v19873_v38  ;;  %v9865_v40 = vsel %vm369_vm0, %v19873_v38, 0.0 }
 0xd7b   : > { %v9861_v49 = vsel %vm369_vm0, %v19875_v27, 0.0  ;;  %v9915_v21 = vmul.f32 %v19875_v27, %v19875_v27  ;;  %v19882_v18 = vpop.f32.mrb[62].mxu0 }
 0xd7c   : > { %v9862_v58 = vadd.f32 %v9861_v49, %v9860_v19  ;;  %v9961_v24 = vadd.f32 %v9960_v26, %v9959_v16  ;;  %v19884_v63 = vpop.f32.mrb[63].mxu0  ;;  %v9918_v39 = vmul.f32 %v19882_v18, %v19882_v18  ;;  %v9966_v50 = vsel %vm369_vm0, %v9917_v28, 0.0 }
 0xd7d   : > { %v9962_v57 = vsel %vm369_vm0, %v9915_v21, 0.0  ;;  %v9863_v45 = vsel %vm369_vm0, %v19884_v63, 0.0  ;;  %v9916_v42 = vmul.f32 %v19884_v63, %v19884_v63  ;;  %v9867_v30 = vsel %vm369_vm0, %v19882_v18, 0.0 }
 0xd7e   : > { %v9963_v41 = vadd.f32 %v9962_v57, %v9961_v24  ;;  %v9864_v7 = vadd.f32 %v9863_v45, %v9862_v58  ;;  %v9968_v29 = vsel %vm369_vm0, %v9918_v39, 0.0 }
 0xd7f   : > { %v9964_v22 = vsel %vm369_vm0, %v9916_v42, 0.0 }
 0xd80   : > { %v9866_v61 = vadd.f32 %v9865_v40, %v9864_v7  ;;  %v9965_v44 = vadd.f32 %v9964_v22, %v9963_v41 }
 0xd81   : > { %v19901_v2 = vpop.f32.mrb[64].mxu0 }
 0xd82   : > { %v9967_v53 = vadd.f32 %v9966_v50, %v9965_v44  ;;  %v19903_v11 = vpop.f32.mrb[65].mxu0  ;;  %v9868_v4 = vadd.f32 %v9867_v30, %v9866_v61  ;;  %v9921_v10 = vmul.f32 %v19901_v2, %v19901_v2  ;;  %v9873_v51 = vsel %vm369_vm0, %v19901_v2, 0.0 }
 0xd83   : > { %v9869_v56 = vsel %vm369_vm0, %v19903_v11, 0.0  ;;  %v9919_v3 = vmul.f32 %v19903_v11, %v19903_v11  ;;  %v19910_v47 = vpop.f32.mrb[66].mxu0 }
 0xd84   : > { %v9870_v54 = vadd.f32 %v9869_v56, %v9868_v4  ;;  %v9969_v33 = vadd.f32 %v9968_v29, %v9967_v53  ;;  %v19912_v52 = vpop.f32.mrb[67].mxu0  ;;  %v9922_v16 = vmul.f32 %v19910_v47, %v19910_v47  ;;  %v9974_v21 = vsel %vm369_vm0, %v9921_v10, 0.0 }
 0xd85   : > { %v9970_v37 = vsel %vm369_vm0, %v9919_v3, 0.0  ;;  %v9871_v1 = vsel %vm369_vm0, %v19912_v52, 0.0  ;;  %v9920_v36 = vmul.f32 %v19912_v52, %v19912_v52  ;;  %v9875_v58 = vsel %vm369_vm0, %v19910_v47, 0.0 }
 0xd86   : > { %v9971_v8 = vadd.f32 %v9970_v37, %v9969_v33  ;;  %v9872_v9 = vadd.f32 %v9871_v1, %v9870_v54  ;;  %v9976_v42 = vsel %vm369_vm0, %v9922_v16, 0.0 }
 0xd87   : > { %v9972_v19 = vsel %vm369_vm0, %v9920_v36, 0.0 }
 0xd88   : > { %v9874_v26 = vadd.f32 %v9873_v51, %v9872_v9  ;;  %v9973_v49 = vadd.f32 %v9972_v19, %v9971_v8 }
 0xd89   : > { %v19929_v24 = vpop.f32.mrb[68].mxu0 }
 0xd8a   : > { %v9975_v28 = vadd.f32 %v9974_v21, %v9973_v49  ;;  %v19931_v57 = vpop.f32.mrb[69].mxu0  ;;  %v9876_v45 = vadd.f32 %v9875_v58, %v9874_v26  ;;  %v9925_v44 = vmul.f32 %v19929_v24, %v19929_v24  ;;  %v9881_v56 = vsel %vm369_vm0, %v19929_v24, 0.0 }
 0xd8b   : > { %v9877_v41 = vsel %vm369_vm0, %v19931_v57, 0.0  ;;  %v9923_v7 = vmul.f32 %v19931_v57, %v19931_v57  ;;  %v19938_v40 = vpop.f32.mrb[70].mxu0 }
 0xd8c   : > { %v9878_v39 = vadd.f32 %v9877_v41, %v9876_v45  ;;  %v9977_v22 = vadd.f32 %v9976_v42, %v9975_v28  ;;  %v19940_v61 = vpop.f32.mrb[71].mxu0  ;;  %v9926_v3 = vmul.f32 %v19938_v40, %v19938_v40  ;;  %v9982_v37 = vsel %vm369_vm0, %v9925_v44, 0.0 }
 0xd8d   : > { %v9978_v50 = vsel %vm369_vm0, %v9923_v7, 0.0  ;;  %v9879_v30 = vsel %vm369_vm0, %v19940_v61, 0.0  ;;  %v9924_v53 = vmul.f32 %v19940_v61, %v19940_v61  ;;  %v9883_v1 = vsel %vm369_vm0, %v19938_v40, 0.0 }
 0xd8e   : > { %v9979_v4 = vadd.f32 %v9978_v50, %v9977_v22  ;;  %v9880_v29 = vadd.f32 %v9879_v30, %v9878_v39  ;;  %v9984_v16 = vsel %vm369_vm0, %v9926_v3, 0.0 }
 0xd8f   : > { %v9980_v54 = vsel %vm369_vm0, %v9924_v53, 0.0 }
 0xd90   : > { %v9882_v33 = vadd.f32 %v9881_v56, %v9880_v29  ;;  %v9981_v10 = vadd.f32 %v9980_v54, %v9979_v4 }
 0xd91   : > { %v19957_v36 = vpop.f32.mrb[72].mxu0 }
 0xd92   : > { %v9983_v8 = vadd.f32 %v9982_v37, %v9981_v10  ;;  %v19959_v9 = vpop.f32.mrb[73].mxu0  ;;  %v9884_v51 = vadd.f32 %v9883_v1, %v9882_v33  ;;  %v9929_v45 = vmul.f32 %v19957_v36, %v19957_v36  ;;  %v9889_v44 = vsel %vm369_vm0, %v19957_v36, 0.0 }
 0xd93   : > { %v9885_v19 = vsel %vm369_vm0, %v19959_v9, 0.0  ;;  %v9927_v26 = vmul.f32 %v19959_v9, %v19959_v9  ;;  %v19966_v49 = vpop.f32.mrb[74].mxu0 }
 0xd94   : > { %v9886_v21 = vadd.f32 %v9885_v19, %v9884_v51  ;;  %v9985_v58 = vadd.f32 %v9984_v16, %v9983_v8  ;;  %v19968_v28 = vpop.f32.mrb[75].mxu0  ;;  %v9930_v50 = vmul.f32 %v19966_v49, %v19966_v49  ;;  %v9990_v29 = vsel %vm369_vm0, %v9929_v45, 0.0  ;;  %v13833_v19 = vld [vmem:[%s20724_s2 + $0x2] sm:$0x1] }
 0xd95   : > { %v9986_v42 = vsel %vm369_vm0, %v9927_v26, 0.0  ;;  %v9887_v41 = vsel %vm369_vm0, %v19968_v28, 0.0  ;;  %v9928_v7 = vmul.f32 %v19968_v28, %v19968_v28  ;;  %v9891_v56 = vsel %vm369_vm0, %v19966_v49, 0.0 }
 0xd96   : > { %v9987_v39 = vadd.f32 %v9986_v42, %v9985_v58  ;;  %v9888_v22 = vadd.f32 %v9887_v41, %v9886_v21  ;;  %v9992_v33 = vsel %vm369_vm0, %v9930_v50, 0.0  ;;  %v10000_v42 = vmul.f32 256.0, %v13833_v19 }
 0xd97   : > { %v9988_v30 = vsel %vm369_vm0, %v9928_v7, 0.0  ;;  %v10002_v41 = vmul.f32 2.0, %v13833_v19 }
 0xd98   : > { %v9890_v53 = vadd.f32 %v9889_v44, %v9888_v22  ;;  %v9989_v4 = vadd.f32 %v9988_v30, %v9987_v39  ;;  %v10005_v30 = vmul.f32 %v13833_v19, %v13833_v19 }
 0xd9a   : > { %v9892_v3 = vadd.f32 %v9891_v56, %v9890_v53  ;;  %v9991_v54 = vadd.f32 %v9990_v29, %v9989_v4  ;;  %v10006_v4 = vmul.f32 256.0, %v10005_v30 }
 0xd9c   : > { %v9893_v10 = vrot.slane %v9892_v3, 4  ;;  %v9993_v37 = vadd.f32 %v9992_v33, %v9991_v54 }
 0xd9e   : > { %v9894_v1 = vadd.f32 %v9893_v10, %v9892_v3  ;;  %v9994_v8 = vrot.slane %v9993_v37, 4 }
 0xda0   : > { %v9895_v51 = vrot.slane %v9894_v1, 2  ;;  %v9995_v16 = vadd.f32 %v9994_v8, %v9993_v37  ;;  %v10504_v8 = vld [vmem:[#allocation2 + $0x10] sm:$0xff] }
 0xda2   : > { %v9896_v26 = vadd.f32 %v9895_v51, %v9894_v1  ;;  %v9996_v21 = vrot.slane %v9995_v16, 2  ;;  %v17330_v1 = vld [vmem:[%s20727_s5 + $0x18] sm:$0xff]   ;;  %v20015_v51 = vld [vmem:[%s20727_s5] sm:$0xff]  }
 0xda4   : > { %v9897_v58 = vrot.slane %v9896_v26, 1  ;;  %v9997_v45 = vadd.f32 %v9996_v21, %v9995_v16 }
 0xda6   : > { %v9898_v7 = vadd.f32 %v9897_v58, %v9896_v26  ;;  %v9998_v39 = vrot.slane %v9997_v45, 1 }
 0xda8   : > { %v9999_v22 = vadd.f32 %v9998_v39, %v9997_v45  ;;  %v10001_v44 = vadd.f32 %v10000_v42, %v9898_v7  ;;  %v10003_v50 = vmul.f32 %v10002_v41, %v9898_v7  ;;  %v13838_v42 = vld [vmem:[%s20725_s3 + $0x2] sm:$0x1] }
 0xdaa   : > { %15789 = vmatmul.mubr.msk.f32.vlgmr.msra.gmra.mrb[36].mxu1 %vm369_vm0, %v10001_v44  ;;  %v10004_v53 = vadd.f32 %v10003_v50, %v9999_v22  ;;  %v13839_v22 = vld [vmem:[%s20726_s4 + $0x2] sm:$0x1] }
 0xdab   : > { %16184 = vmatpush3.bf16.msra.mxu1 %v18219_v14  ;;  %15799 = vmatprep.mubr.msk.f32.mxu1 %vm17459_vm2, %v17457_v0 }
 0xdac   : > { %16185 = vmatprep.subr.bf16.mxu1 %v17458_v13  ;;  %v10007_v29 = vadd.f32 %v10006_v4, %v10004_v53 }
 0xdaf   : > { %16187 = vmatpush3.bf16.msra.mxu1 %v18232_v35 }
 0xdb0   : > { %16188 = vmatprep.subr.bf16.mxu1 %v17458_v13 }
 0xdb2   : > { %15800 = vmatmul.mubr.msk.f32.vlgmr.msra.gmra.mrb[38].mxu1 %vm369_vm0, %v10007_v29 }
 0xdb3   : > { %16190 = vmatpush3.bf16.msra.mxu1 %v18487_v31  ;;  %15806 = vmatprep.mubr.msk.f32.mxu1 %vm17459_vm2, %v17457_v0 }
 0xdb4   : > { %16191 = vmatprep.subr.bf16.mxu1 %v17458_v13  ;;  %v17329_v13 = vld [vmem:[%s20727_s5 + $0x10] sm:$0xff]  }
 0xe7d   : > { %v10077_v14 = vpop.f32.mrb[36].mxu1 }
 0xe7e   : > { %v10081_v56 = vmul.f32 0.001953125, %v10077_v14  ;;  %v15790_v3 = vpop.f32.mrb[37].mxu1 }
 0xe80   : > { %15807 = vmatmul.mubr.msk.f32.vlgmr.msra.gmra.mrb[40].mxu1 %vm3533_vm3, %v10081_v56  ;;  %v10156_v54 = vmul.f32 %v10081_v56, %v10081_v56 }
 0xe81   : > { %16193 = vmatpush3.bf16.msra.mxu1 %v18487_v31  ;;  %15813 = vmatprep.mubr.msk.f32.mxu1 %vm17459_vm2, %v17457_v0  ;;  %v10503_v31 = vld [vmem:[#allocation2 + $0x8] sm:$0xff] }
 0xe82   : > { %15816 = vmatprep.subr.bf16.mxu1 %v17329_v13  ;;  %v10535_v0 = vpack.c.bf16 %v10504_v8, %v10503_v31 }
 0xe85   : > { %v10151_v35 = vpop.f32.mrb[38].mxu1 }
 0xe86   : > { %v10155_v33 = vmul.f32 0.001953125, %v10151_v35  ;;  %v15801_v10 = vpop.f32.mrb[39].mxu1 }
 0xe88   : > { %v10157_v37 = vsub.f32 %v10155_v33, %v10156_v54 }
 0xe8a   : > { %15814 = vmatmul.mubr.msk.f32.vlgmr.msra.gmra.mrb[42].mxu1 %vm3533_vm3, %v10157_v37 }
 0xe8b   : > { %15817 = vmatpush3.bf16.msra.mxu1 %v17329_v13  ;;  %15820 = vmatprep.mubr.msk.bf16.mxu1 %vm369_vm0, %v10535_v0 }
 0xe8c   : > { %15818 = vmatprep.subr.bf16.mxu1 %v17330_v1 }
 0xe8f   : > { %15819 = vmatpush3.bf16.msra.mxu1 %v17330_v1 }
 0xe90   : > { %15852 = vmatprep.subr.bf16.mxu1 %v20015_v51 }
 0xf53   : > { %v10227_v16 = vpop.f32.mrb[40].mxu1 }
 0xf54   : > { %v15808_v26 = vpop.f32.mrb[41].mxu1  ;;  %v10308_v7 = vsub.f32 %v13833_v19, %v10227_v16 }
 0xf5d   : > { %v10300_v21 = vpop.f32.mrb[42].mxu1 }
 0xf5e   : > { %v10301_v58 = vadd.f32 1e-05, %v10300_v21  ;;  %v15815_v45 = vpop.f32.mrb[43].mxu1 }
 0xf60   : > { %17351 = vrsqrt.f32 %v10301_v58 }
 0xf6a   : > { %v17352_v41 = vpop.eup %17351 }
 0xf6b   : > { %v10307_v39 = vmul.f32 %v17352_v41, %v13838_v42 }
 0xf6d   : > { %v10309_v44 = vmul.f32 %v10308_v7, %v10307_v39  ;;  %v10316_v50 = vrot.slane %v10307_v39, %v18507_v62 }
 0xf6f   : > { %v10312_v30 = vadd.f32 %v13839_v22, %v10309_v44  ;;  %v10317_v53 = vmul.f32 %v10316_v50, %v19764_v34  ;;  %v10318_v4 = vmul.f32 %v10316_v50, %v19770_v48  ;;  %v10319_v29 = vmul.f32 %v19762_v23, %v10316_v50 }
 0xf70   : > { %v10320_v14 = vmul.f32 %v19768_v12, %v10316_v50  ;;  %v10321_v56 = vmul.f32 %v10316_v50, %v19791_v6  ;;  %v10322_v19 = vmul.f32 %v10316_v50, %v19800_v5  ;;  %v10323_v3 = vmul.f32 %v19789_v17, %v10316_v50 }
 0xf71   : > { %v10353_v35 = vrot.slane %v10312_v30, %v18507_v62  ;;  %v10324_v54 = vmul.f32 %v19798_v59, %v10316_v50  ;;  %v10325_v33 = vmul.f32 %v10316_v50, %v19819_v43  ;;  %v10326_v34 = vmul.f32 %v10316_v50, %v19828_v55 }
 0xf72   : > { %v10327_v48 = vmul.f32 %v19817_v20, %v10316_v50  ;;  %v10328_v23 = vmul.f32 %v19826_v32, %v10316_v50  ;;  %v10329_v12 = vmul.f32 %v10316_v50, %v19847_v46  ;;  %v10330_v6 = vmul.f32 %v10316_v50, %v19856_v15 }
 0xf73   : > { %v10331_v5 = vmul.f32 %v19845_v60, %v10316_v50  ;;  %v10332_v17 = vmul.f32 %v19854_v25, %v10316_v50  ;;  %v10333_v62 = vmul.f32 %v10316_v50, %v19875_v27  ;;  %v10334_v59 = vmul.f32 %v10316_v50, %v19884_v63 }
 0xf74   : > { %v10335_v43 = vmul.f32 %v19873_v38, %v10316_v50  ;;  %v10336_v55 = vmul.f32 %v19882_v18, %v10316_v50  ;;  %v10337_v20 = vmul.f32 %v10316_v50, %v19903_v11  ;;  %v10338_v32 = vmul.f32 %v10316_v50, %v19912_v52 }
 0xf75   : > { %v10339_v46 = vmul.f32 %v19901_v2, %v10316_v50  ;;  %v10340_v15 = vmul.f32 %v19910_v47, %v10316_v50  ;;  %v10341_v60 = vmul.f32 %v10316_v50, %v19931_v57  ;;  %v10342_v25 = vmul.f32 %v10316_v50, %v19940_v61 }
 0xf76   : > { %v10343_v27 = vmul.f32 %v19929_v24, %v10316_v50  ;;  %v10344_v63 = vmul.f32 %v19938_v40, %v10316_v50  ;;  %v10345_v38 = vmul.f32 %v10316_v50, %v19959_v9  ;;  %v10346_v18 = vmul.f32 %v10316_v50, %v19968_v28 }
 0xf77   : > { %v10347_v11 = vmul.f32 %v19957_v36, %v10316_v50  ;;  %v10348_v52 = vmul.f32 %v19966_v49, %v10316_v50  ;;  %v10355_v10 = vadd.f32 %v10353_v35, %v10317_v53  ;;  %v10356_v2 = vadd.f32 %v10353_v35, %v10318_v4 }
 0xf78   : > { %v10357_v37 = vadd.f32 %v10353_v35, %v10319_v29  ;;  %v10358_v47 = vadd.f32 %v10353_v35, %v10320_v14  ;;  %v10359_v13 = vadd.f32 %v10353_v35, %v10321_v56  ;;  %v10360_v57 = vadd.f32 %v10353_v35, %v10322_v19 }
 0xf79   : > { %v10361_v1 = vadd.f32 %v10353_v35, %v10323_v3  ;;  %v10362_v61 = vadd.f32 %v10353_v35, %v10324_v54  ;;  %v10363_v31 = vadd.f32 %v10353_v35, %v10325_v33  ;;  %v10364_v24 = vadd.f32 %v10353_v35, %v10326_v34 }
 0xf7a   : > { %v10365_v8 = vadd.f32 %v10353_v35, %v10327_v48  ;;  %v10366_v40 = vadd.f32 %v10353_v35, %v10328_v23  ;;  %v10367_v0 = vadd.f32 %v10353_v35, %v10329_v12  ;;  %v10368_v9 = vadd.f32 %v10353_v35, %v10330_v6 }
 0xf7b   : > { %v10369_v16 = vadd.f32 %v10353_v35, %v10331_v5  ;;  %v10370_v28 = vadd.f32 %v10353_v35, %v10332_v17  ;;  %v10371_v26 = vadd.f32 %v10353_v35, %v10333_v62  ;;  %v10372_v36 = vadd.f32 %v10353_v35, %v10334_v59 }
 0xf7c   : > { %v20059_v21 = vadd.f32 %v10353_v35, %v10335_v43  ;;  %v20061_v49 = vadd.f32 %v10353_v35, %v10336_v55  ;;  %v20063_v58 = vadd.f32 %v10353_v35, %v10337_v20  ;;  %v20065_v45 = vadd.f32 %v10353_v35, %v10338_v32 }
 0xf7d   : > { %v20067_v42 = vadd.f32 %v10353_v35, %v10339_v46  ;;  %v20069_v41 = vadd.f32 %v10353_v35, %v10340_v15  ;;  %v20071_v7 = vadd.f32 %v10353_v35, %v10341_v60  ;;  %v20073_v39 = vadd.f32 %v10353_v35, %v10342_v25 }
 0xf7e   : > { %v20075_v22 = vadd.f32 %v10353_v35, %v10343_v27  ;;  %v20077_v44 = vadd.f32 %v10353_v35, %v10344_v63  ;;  %v20079_v50 = vadd.f32 %v10353_v35, %v10345_v38  ;;  %v20081_v30 = vadd.f32 %v10353_v35, %v10346_v18 }
 0xf7f   : > { %v20083_v53 = vadd.f32 %v10353_v35, %v10347_v11  ;;  %v20085_v4 = vadd.f32 %v10353_v35, %v10348_v52  ;;  %v10387_v29 = vmax.f32 %v10355_v10, 0.0  ;;  %v10388_v14 = vmax.f32 %v10356_v2, 0.0 }
 0xf80   : > { %v10389_v56 = vmax.f32 %v10357_v37, 0.0  ;;  %v10390_v19 = vmax.f32 %v10358_v47, 0.0  ;;  %v10391_v3 = vmax.f32 %v10359_v13, 0.0  ;;  %v10392_v54 = vmax.f32 %v10360_v57, 0.0 }
 0xf81   : > { %v10393_v33 = vmax.f32 %v10361_v1, 0.0  ;;  %v10394_v34 = vmax.f32 %v10362_v61, 0.0  ;;  %v10395_v48 = vmax.f32 %v10363_v31, 0.0  ;;  %v10396_v23 = vmax.f32 %v10364_v24, 0.0  ;;  %10419 = vst.msk [vmem:[#allocation2 + $0x28] sm:$0xff] %vm369_vm0, %v10387_v29  ;;  %10420 = vst.msk [vmem:[#allocation2 + $0x30] sm:$0xff] %vm369_vm0, %v10388_v14 }
 0xf82   : > { %v10397_v12 = vmax.f32 %v10365_v8, 0.0  ;;  %v10398_v6 = vmax.f32 %v10366_v40, 0.0  ;;  %v10399_v5 = vmax.f32 %v10367_v0, 0.0  ;;  %v10400_v17 = vmax.f32 %v10368_v9, 0.0  ;;  %10421 = vst.msk [vmem:[#allocation2 + $0x48] sm:$0xff] %vm369_vm0, %v10389_v56  ;;  %10422 = vst.msk [vmem:[#allocation2 + $0x50] sm:$0xff] %vm369_vm0, %v10390_v19 }
 0xf83   : > { %10423 = vst.msk [vmem:[#allocation2 + $0x68] sm:$0xff] %vm369_vm0, %v10391_v3  ;;  %10424 = vst.msk [vmem:[#allocation2 + $0x70] sm:$0xff] %vm369_vm0, %v10392_v54  ;;  %v10401_v35 = vmax.f32 %v10369_v16, 0.0  ;;  %v10402_v62 = vmax.f32 %v10370_v28, 0.0  ;;  %v10403_v59 = vmax.f32 %v10371_v26, 0.0  ;;  %v10404_v43 = vmax.f32 %v10372_v36, 0.0 }
 0xf84   : > { %10425 = vst.msk [vmem:[#allocation2 + $0x88] sm:$0xff] %vm369_vm0, %v10393_v33  ;;  %10426 = vst.msk [vmem:[#allocation2 + $0x90] sm:$0xff] %vm369_vm0, %v10394_v34  ;;  %v10405_v55 = vmax.f32 %v20059_v21, 0.0  ;;  %v10406_v20 = vmax.f32 %v20061_v49, 0.0  ;;  %v10407_v32 = vmax.f32 %v20063_v58, 0.0  ;;  %v10408_v46 = vmax.f32 %v20065_v45, 0.0 }
 0xf85   : > { %10427 = vst.msk [vmem:[#allocation2 + $0xa8] sm:$0xff] %vm369_vm0, %v10395_v48  ;;  %10428 = vst.msk [vmem:[#allocation2 + $0xb0] sm:$0xff] %vm369_vm0, %v10396_v23  ;;  %v10409_v15 = vmax.f32 %v20067_v42, 0.0  ;;  %v10410_v60 = vmax.f32 %v20069_v41, 0.0  ;;  %v10411_v25 = vmax.f32 %v20071_v7, 0.0  ;;  %v10412_v27 = vmax.f32 %v20073_v39, 0.0 }
 0xf86   : > { %10429 = vst.msk [vmem:[#allocation2 + $0xc8] sm:$0xff] %vm369_vm0, %v10397_v12  ;;  %10430 = vst.msk [vmem:[#allocation2 + $0xd0] sm:$0xff] %vm369_vm0, %v10398_v6  ;;  %v10413_v63 = vmax.f32 %v20075_v22, 0.0  ;;  %v10414_v38 = vmax.f32 %v20077_v44, 0.0  ;;  %v10415_v18 = vmax.f32 %v20079_v50, 0.0  ;;  %v10416_v11 = vmax.f32 %v20081_v30, 0.0 }
 0xf87   : > { %10431 = vst.msk [vmem:[#allocation2 + $0xe8] sm:$0xff] %vm369_vm0, %v10399_v5  ;;  %10432 = vst.msk [vmem:[#allocation2 + $0xf0] sm:$0xff] %vm369_vm0, %v10400_v17  ;;  %v10417_v52 = vmax.f32 %v20083_v53, 0.0  ;;  %v10418_v10 = vmax.f32 %v20085_v4, 0.0  ;;  %v17332_v1 = vld [vmem:[%s20727_s5 + $0x8] sm:$0xff]   ;;  %v20148_v31 = vld [vmem:[%s20727_s5 + $0x20] sm:$0xff]  }
 0xf88   : > { %10433 = vst.msk [vmem:[#allocation2 + $0x108] sm:$0xff] %vm369_vm0, %v10401_v35  ;;  %10434 = vst.msk [vmem:[#allocation2 + $0x110] sm:$0xff] %vm369_vm0, %v10402_v62  ;;  %v10505_v2 = vld [vmem:[#allocation2 + $0x28] sm:$0xff]  ;;  %v10506_v37 = vld [vmem:[#allocation2 + $0x30] sm:$0xff] }
 0xf89   : > { %10435 = vst.msk [vmem:[#allocation2 + $0x128] sm:$0xff] %vm369_vm0, %v10403_v59  ;;  %10436 = vst.msk [vmem:[#allocation2 + $0x130] sm:$0xff] %vm369_vm0, %v10404_v43  ;;  %v20133_v47 = vpack.c.bf16 %v10506_v37, %v10505_v2  ;;  %v10507_v13 = vld [vmem:[#allocation2 + $0x48] sm:$0xff]  ;;  %v10508_v57 = vld [vmem:[#allocation2 + $0x50] sm:$0xff] }
 0xf8a   : > { %10437 = vst.msk [vmem:[#allocation2 + $0x148] sm:$0xff] %vm369_vm0, %v10405_v55  ;;  %10438 = vst.msk [vmem:[#allocation2 + $0x150] sm:$0xff] %vm369_vm0, %v10406_v20  ;;  %v20138_v61 = vpack.c.bf16 %v10508_v57, %v10507_v13  ;;  %v10509_v24 = vld [vmem:[#allocation2 + $0x68] sm:$0xff]  ;;  %v10510_v8 = vld [vmem:[#allocation2 + $0x70] sm:$0xff] }
 0xf8b   : > { %10439 = vst.msk [vmem:[#allocation2 + $0x168] sm:$0xff] %vm369_vm0, %v10407_v32  ;;  %10440 = vst.msk [vmem:[#allocation2 + $0x170] sm:$0xff] %vm369_vm0, %v10408_v46  ;;  %15821 = vmatmul.mubr.msk.bf16.vlgmr.msra.gmra.mrb[44].mxu1 %vm369_vm0, %v20133_v47  ;;  %v10511_v40 = vld [vmem:[#allocation2 + $0x88] sm:$0xff]  ;;  %v10512_v0 = vld [vmem:[#allocation2 + $0x90] sm:$0xff]  ;;  %v20150_v9 = vpack.c.bf16 %v10510_v8, %v10509_v24 }
 0xf8c   : > { %10441 = vst.msk [vmem:[#allocation2 + $0x188] sm:$0xff] %vm369_vm0, %v10409_v15  ;;  %10442 = vst.msk [vmem:[#allocation2 + $0x190] sm:$0xff] %vm369_vm0, %v10410_v60  ;;  %15824 = vmatprep.mubr.msk.bf16.mxu1 %vm369_vm0, %v20138_v61  ;;  %15853 = vmatpush3.bf16.msra.mxu1 %v20015_v51  ;;  %v20153_v16 = vpack.c.bf16 %v10512_v0, %v10511_v40  ;;  %v10513_v51 = vld [vmem:[#allocation2 + $0xa8] sm:$0xff]  ;;  %v10514_v28 = vld [vmem:[#allocation2 + $0xb0] sm:$0xff] }
 0xf8d   : > { %10443 = vst.msk [vmem:[#allocation2 + $0x1a8] sm:$0xff] %vm369_vm0, %v10411_v25  ;;  %10444 = vst.msk [vmem:[#allocation2 + $0x1b0] sm:$0xff] %vm369_vm0, %v10412_v27  ;;  %15854 = vmatprep.subr.bf16.mxu1 %v17332_v1  ;;  %v10515_v26 = vld [vmem:[#allocation2 + $0xc8] sm:$0xff]  ;;  %v10516_v36 = vld [vmem:[#allocation2 + $0xd0] sm:$0xff]  ;;  %v20159_v21 = vpack.c.bf16 %v10514_v28, %v10513_v51 }
 0xf8e   : > { %10445 = vst.msk [vmem:[#allocation2 + $0x1c8] sm:$0xff] %vm369_vm0, %v10413_v63  ;;  %10446 = vst.msk [vmem:[#allocation2 + $0x1d0] sm:$0xff] %vm369_vm0, %v10414_v38  ;;  %v20161_v49 = vpack.c.bf16 %v10516_v36, %v10515_v26  ;;  %v10517_v58 = vld [vmem:[#allocation2 + $0xe8] sm:$0xff]  ;;  %v10518_v45 = vld [vmem:[#allocation2 + $0xf0] sm:$0xff] }
 0xf8f   : > { %10447 = vst.msk [vmem:[#allocation2 + $0x1e8] sm:$0xff] %vm369_vm0, %v10415_v18  ;;  %10448 = vst.msk [vmem:[#allocation2 + $0x1f0] sm:$0xff] %vm369_vm0, %v10416_v11  ;;  %v10519_v42 = vld [vmem:[#allocation2 + $0x108] sm:$0xff]  ;;  %v10520_v41 = vld [vmem:[#allocation2 + $0x110] sm:$0xff]  ;;  %v20167_v7 = vpack.c.bf16 %v10518_v45, %v10517_v58 }
 0xf90   : > { %10449 = vst.msk [vmem:[#allocation2 + $0x208] sm:$0xff] %vm369_vm0, %v10417_v52  ;;  %10450 = vst.msk [vmem:[#allocation2 + $0x210] sm:$0xff] %vm369_vm0, %v10418_v10  ;;  %15855 = vmatpush3.bf16.msra.mxu1 %v17332_v1  ;;  %v20169_v39 = vpack.c.bf16 %v10520_v41, %v10519_v42  ;;  %v10521_v22 = vld [vmem:[#allocation2 + $0x128] sm:$0xff]  ;;  %v10522_v44 = vld [vmem:[#allocation2 + $0x130] sm:$0xff] }
 0xf91   : > { %15888 = vmatprep.subr.bf16.mxu1 %v20148_v31  ;;  %v10523_v50 = vld [vmem:[#allocation2 + $0x148] sm:$0xff]  ;;  %v10524_v30 = vld [vmem:[#allocation2 + $0x150] sm:$0xff]  ;;  %v20175_v53 = vpack.c.bf16 %v10522_v44, %v10521_v22 }
 0xf92   : > { %v20177_v4 = vpack.c.bf16 %v10524_v30, %v10523_v50  ;;  %v10525_v29 = vld [vmem:[#allocation2 + $0x168] sm:$0xff]  ;;  %v10526_v14 = vld [vmem:[#allocation2 + $0x170] sm:$0xff] }
 0xf93   : > { %15825 = vmatmul.mubr.msk.bf16.gmra.mrb[48].mxu1 %vm369_vm0, %v20150_v9  ;;  %v10527_v56 = vld [vmem:[#allocation2 + $0x188] sm:$0xff]  ;;  %v10528_v19 = vld [vmem:[#allocation2 + $0x190] sm:$0xff]  ;;  %v20183_v3 = vpack.c.bf16 %v10526_v14, %v10525_v29 }
 0xf94   : > { %15828 = vmatprep.mubr.msk.bf16.mxu1 %vm369_vm0, %v20153_v16  ;;  %v20185_v54 = vpack.c.bf16 %v10528_v19, %v10527_v56  ;;  %v10529_v33 = vld [vmem:[#allocation2 + $0x1a8] sm:$0xff]  ;;  %v10530_v34 = vld [vmem:[#allocation2 + $0x1b0] sm:$0xff] }
 0xf95   : > { %v10531_v48 = vld [vmem:[#allocation2 + $0x1c8] sm:$0xff]  ;;  %v10532_v23 = vld [vmem:[#allocation2 + $0x1d0] sm:$0xff]  ;;  %v20191_v12 = vpack.c.bf16 %v10530_v34, %v10529_v33 }
 0xf96   : > { %v20193_v6 = vpack.c.bf16 %v10532_v23, %v10531_v48  ;;  %v10451_v5 = vld [vmem:[#allocation2 + $0x7] sm:$0xff]  ;;  %v10452_v17 = vld [vmem:[#allocation2 + $0xf] sm:$0xff] }
 0xf97   : > { %v10533_v35 = vld [vmem:[#allocation2 + $0x1e8] sm:$0xff]  ;;  %v10534_v62 = vld [vmem:[#allocation2 + $0x1f0] sm:$0xff]  ;;  %v10483_v59 = vpack.c.bf16 %v10452_v17, %v10451_v5 }
 0xf98   : > { %v20199_v43 = vpack.c.bf16 %v10534_v62, %v10533_v35  ;;  %v10453_v55 = vld [vmem:[#allocation2 + $0x27] sm:$0xff]  ;;  %v10454_v20 = vld [vmem:[#allocation2 + $0x2f] sm:$0xff] }
 0xf99   : > { %v10455_v32 = vld [vmem:[#allocation2 + $0x47] sm:$0xff]  ;;  %v10456_v46 = vld [vmem:[#allocation2 + $0x4f] sm:$0xff]  ;;  %v20204_v15 = vpack.c.bf16 %v10454_v20, %v10453_v55 }
 0xf9a   : > { %v17334_v60 = vld [vmem:[%s20727_s5 + $0x28] sm:$0xff]   ;;  %v20209_v25 = vpack.c.bf16 %v10456_v46, %v10455_v32  ;;  %v20219_v27 = vld [vmem:[%s20727_s5 + $0x30] sm:$0xff]  }
 0xf9b   : > { %15829 = vmatmul.mubr.msk.bf16.gmra.mrb[52].mxu1 %vm369_vm0, %v20159_v21  ;;  %v10457_v63 = vld [vmem:[#allocation2 + $0x67] sm:$0xff]  ;;  %v10458_v38 = vld [vmem:[#allocation2 + $0x6f] sm:$0xff] }
 0xf9c   : > { %15832 = vmatprep.mubr.msk.bf16.mxu1 %vm369_vm0, %v20161_v49  ;;  %v10459_v18 = vld [vmem:[#allocation2 + $0x87] sm:$0xff]  ;;  %v10460_v11 = vld [vmem:[#allocation2 + $0x8f] sm:$0xff]  ;;  %v20221_v52 = vpack.c.bf16 %v10458_v38, %v10457_v63  ;;  %v17336_v38 = vld [vmem:[%s20727_s5 + $0x38] sm:$0xff]  }
 0xf9d   : > { %v20224_v10 = vpack.c.bf16 %v10460_v11, %v10459_v18  ;;  %v10461_v2 = vld [vmem:[#allocation2 + $0xa7] sm:$0xff]  ;;  %v10462_v37 = vld [vmem:[#allocation2 + $0xaf] sm:$0xff] }
 0xf9e   : > { %v10463_v13 = vld [vmem:[#allocation2 + $0xc7] sm:$0xff]  ;;  %v10464_v57 = vld [vmem:[#allocation2 + $0xcf] sm:$0xff]  ;;  %v20230_v1 = vpack.c.bf16 %v10462_v37, %v10461_v2 }
 0xf9f   : > { %v10465_v24 = vld [vmem:[#allocation2 + $0xe7] sm:$0xff]  ;;  %v10466_v8 = vld [vmem:[#allocation2 + $0xef] sm:$0xff] }
 0xfa0   : > { %v10467_v40 = vld [vmem:[#allocation2 + $0x107] sm:$0xff]  ;;  %v10468_v0 = vld [vmem:[#allocation2 + $0x10f] sm:$0xff]  ;;  %v20238_v51 = vpack.c.bf16 %v10466_v8, %v10465_v24 }
 0xfa1   : > { %v20240_v28 = vpack.c.bf16 %v10468_v0, %v10467_v40  ;;  %v10469_v26 = vld [vmem:[#allocation2 + $0x127] sm:$0xff]  ;;  %v10470_v36 = vld [vmem:[#allocation2 + $0x12f] sm:$0xff] }
 0xfa2   : > { %v10471_v58 = vld [vmem:[#allocation2 + $0x147] sm:$0xff]  ;;  %v10472_v45 = vld [vmem:[#allocation2 + $0x14f] sm:$0xff]  ;;  %v20246_v42 = vpack.c.bf16 %v10470_v36, %v10469_v26 }
 0xfa3   : > { %15833 = vmatmul.mubr.msk.bf16.gmra.mrb[56].mxu1 %vm369_vm0, %v20167_v7  ;;  %v20248_v41 = vpack.c.bf16 %v10472_v45, %v10471_v58  ;;  %v10473_v22 = vld [vmem:[#allocation2 + $0x167] sm:$0xff]  ;;  %v10474_v44 = vld [vmem:[#allocation2 + $0x16f] sm:$0xff] }
 0xfa4   : > { %15836 = vmatprep.mubr.msk.bf16.mxu1 %vm369_vm0, %v20169_v39  ;;  %v10475_v50 = vld [vmem:[#allocation2 + $0x187] sm:$0xff]  ;;  %v10476_v30 = vld [vmem:[#allocation2 + $0x18f] sm:$0xff]  ;;  %v20254_v29 = vpack.c.bf16 %v10474_v44, %v10473_v22 }
 0xfa5   : > { %v20256_v14 = vpack.c.bf16 %v10476_v30, %v10475_v50  ;;  %v10477_v56 = vld [vmem:[#allocation2 + $0x1a7] sm:$0xff]  ;;  %v10478_v19 = vld [vmem:[#allocation2 + $0x1af] sm:$0xff] }
 0xfa6   : > { %v10479_v33 = vld [vmem:[#allocation2 + $0x1c7] sm:$0xff]  ;;  %v10480_v34 = vld [vmem:[#allocation2 + $0x1cf] sm:$0xff]  ;;  %v20262_v48 = vpack.c.bf16 %v10478_v19, %v10477_v56 }
 0xfa7   : > { %v20264_v23 = vpack.c.bf16 %v10480_v34, %v10479_v33  ;;  %v10998_v5 = vld [vmem:[#allocation2 + $0x9] sm:$0xff]  ;;  %v10999_v17 = vld [vmem:[#allocation2 + $0x11] sm:$0xff]  ;;  %v17337_v11 = vld [vmem:[%s20727_s5 + $0x40] sm:$0xff]  }
 0xfa8   : > { %v10481_v35 = vld [vmem:[#allocation2 + $0x1e7] sm:$0xff]  ;;  %v10482_v62 = vld [vmem:[#allocation2 + $0x1ef] sm:$0xff] }
 0xfa9   : > { %v20270_v55 = vpack.c.bf16 %v10482_v62, %v10481_v35  ;;  %v11000_v20 = vld [vmem:[#allocation2 + $0x29] sm:$0xff]  ;;  %v11001_v32 = vld [vmem:[#allocation2 + $0x31] sm:$0xff] }
 0xfaa   : > { %v11002_v46 = vld [vmem:[#allocation2 + $0x49] sm:$0xff]  ;;  %v20275_v63 = vpack.c.bf16 %v11001_v32, %v11000_v20  ;;  %v11005_v37 = vld [vmem:[#allocation2 + $0x71] sm:$0xff] }
 0xfab   : > { %15837 = vmatmul.mubr.msk.bf16.gmra.mrb[60].mxu1 %vm369_vm0, %v20175_v53  ;;  %v11004_v2 = vld [vmem:[#allocation2 + $0x69] sm:$0xff]  ;;  %v11009_v40 = vld [vmem:[#allocation2 + $0xb1] sm:$0xff] }
 0xfac   : > { %15840 = vmatprep.mubr.msk.bf16.mxu1 %vm369_vm0, %v20177_v4  ;;  %v20290_v24 = vpack.c.bf16 %v11005_v37, %v11004_v2  ;;  %v11010_v0 = vld [vmem:[#allocation2 + $0xc9] sm:$0xff]  ;;  %v11011_v26 = vld [vmem:[#allocation2 + $0xd1] sm:$0xff] }
 0xfad   : > { %v20300_v58 = vpack.c.bf16 %v11011_v26, %v11010_v0  ;;  %v11012_v45 = vld [vmem:[#allocation2 + $0xe9] sm:$0xff]  ;;  %v11013_v22 = vld [vmem:[#allocation2 + $0xf1] sm:$0xff] }
 0xfae   : > { %v11014_v44 = vld [vmem:[#allocation2 + $0x109] sm:$0xff]  ;;  %v11015_v50 = vld [vmem:[#allocation2 + $0x111] sm:$0xff]  ;;  %v20306_v30 = vpack.c.bf16 %v11013_v22, %v11012_v45 }
 0xfaf   : > { %v20308_v56 = vpack.c.bf16 %v11015_v50, %v11014_v44  ;;  %v11016_v19 = vld [vmem:[#allocation2 + $0x129] sm:$0xff]  ;;  %v11017_v33 = vld [vmem:[#allocation2 + $0x131] sm:$0xff] }
 0xfb0   : > { %v11018_v34 = vld [vmem:[#allocation2 + $0x149] sm:$0xff]  ;;  %v11023_v32 = vld [vmem:[#allocation2 + $0x191] sm:$0xff] }
 0xfb1   : > { %v11020_v62 = vld [vmem:[#allocation2 + $0x169] sm:$0xff]  ;;  %v11025_v2 = vld [vmem:[#allocation2 + $0x1b1] sm:$0xff] }
 0xfb2   : > { %v11022_v20 = vld [vmem:[#allocation2 + $0x189] sm:$0xff]  ;;  %v11029_v0 = vld [vmem:[#allocation2 + $0x1f1] sm:$0xff] }
 0xfb3   : > { %15841 = vmatmul.mubr.msk.bf16.gmra.mrb[64].mxu1 %vm369_vm0, %v20183_v3  ;;  %v11026_v37 = vld [vmem:[#allocation2 + $0x1c9] sm:$0xff]  ;;  %v17340_v50 = vld [vmem:[%s20727_s5 + $0x58] sm:$0xff]  }
 0xfb4   : > { %15844 = vmatprep.mubr.msk.bf16.mxu1 %vm369_vm0, %v20185_v54  ;;  %v17338_v45 = vld [vmem:[%s20727_s5 + $0x48] sm:$0xff]   ;;  %v17339_v22 = vld [vmem:[%s20727_s5 + $0x50] sm:$0xff]  }
 0xfbb   : > { %15845 = vmatmul.mubr.msk.bf16.gmra.mrb[68].mxu1 %vm369_vm0, %v20191_v12 }
 0xfbc   : > { %15848 = vmatprep.mubr.msk.bf16.mxu1 %vm369_vm0, %v20193_v6 }
 0xfc3   : > { %15849 = vmatmul.mubr.msk.bf16.gmra.mrb[72].mxu1 %vm369_vm0, %v20199_v43 }
 0xfc4   : > { %15856 = vmatprep.mubr.msk.bf16.mxu1 %vm369_vm0, %v10483_v59  ;;  %v11030_v59 = vpack.c.bf16 %v10999_v17, %v10998_v5  ;;  %v11019_v5 = vld [vmem:[#allocation2 + $0x151] sm:$0xff]  ;;  %v20314_v17 = vpack.c.bf16 %v11017_v33, %v11016_v19  ;;  %v17341_v19 = vld [vmem:[%s20727_s5 + $0x60] sm:$0xff]  }
 0xfc5   : > { %v20316_v35 = vpack.c.bf16 %v11019_v5, %v11018_v34  ;;  %v11641_v33 = vld [vmem:[#allocation2 + $0x210] sm:$0xff]  ;;  %v17342_v5 = vld [vmem:[%s20727_s5 + $0x68] sm:$0xff]  }
 0xfcb   : > { %15857 = vmatmul.mubr.msk.bf16.vlgmr.msra.gmra.mrb[44].mxu1 %vm369_vm0, %v20204_v15 }
 0xfcc   : > { %15860 = vmatprep.mubr.msk.bf16.mxu1 %vm369_vm0, %v20209_v25  ;;  %15889 = vmatpush3.bf16.msra.mxu1 %v20148_v31  ;;  %v20232_v31 = vpack.c.bf16 %v10464_v57, %v10463_v13  ;;  %v11006_v13 = vld [vmem:[#allocation2 + $0x89] sm:$0xff]  ;;  %v11007_v57 = vld [vmem:[#allocation2 + $0x91] sm:$0xff] }
 0xfcd   : > { %15890 = vmatprep.subr.bf16.mxu1 %v17334_v60  ;;  %v20292_v8 = vpack.c.bf16 %v11007_v57, %v11006_v13  ;;  %v11027_v13 = vld [vmem:[#allocation2 + $0x1d1] sm:$0xff] }
 0xfd0   : > { %15891 = vmatpush3.bf16.msra.mxu1 %v17334_v60  ;;  %v11003_v60 = vld [vmem:[#allocation2 + $0x51] sm:$0xff] }
 0xfd1   : > { %15924 = vmatprep.subr.bf16.mxu1 %v20219_v27  ;;  %v20280_v18 = vpack.c.bf16 %v11003_v60, %v11002_v46  ;;  %v20324_v60 = vpack.c.bf16 %v11023_v32, %v11022_v20  ;;  %v17344_v32 = vld [vmem:[%s20727_s5 + $0x78] sm:$0xff]  }
 0xfd3   : > { %15861 = vmatmul.mubr.msk.bf16.gmra.mrb[48].mxu1 %vm369_vm0, %v20221_v52 }
 0xfd4   : > { %15864 = vmatprep.mubr.msk.bf16.mxu1 %vm369_vm0, %v20224_v10 }
 0xfdb   : > { %15865 = vmatmul.mubr.msk.bf16.gmra.mrb[52].mxu1 %vm369_vm0, %v20230_v1 }
 0xfdc   : > { %15868 = vmatprep.mubr.msk.bf16.mxu1 %vm369_vm0, %v20232_v31 }
 0xfe3   : > { %15869 = vmatmul.mubr.msk.bf16.gmra.mrb[56].mxu1 %vm369_vm0, %v20238_v51 }
 0xfe4   : > { %15872 = vmatprep.mubr.msk.bf16.mxu1 %vm369_vm0, %v20240_v28 }
 0xfeb   : > { %15873 = vmatmul.mubr.msk.bf16.gmra.mrb[60].mxu1 %vm369_vm0, %v20246_v42 }
 0xfec   : > { %15876 = vmatprep.mubr.msk.bf16.mxu1 %vm369_vm0, %v20248_v41 }
 0xff3   : > { %15877 = vmatmul.mubr.msk.bf16.gmra.mrb[64].mxu1 %vm369_vm0, %v20254_v29 }
 0xff4   : > { %15880 = vmatprep.mubr.msk.bf16.mxu1 %vm369_vm0, %v20256_v14 }
 0xffb   : > { %15881 = vmatmul.mubr.msk.bf16.gmra.mrb[68].mxu1 %vm369_vm0, %v20262_v48 }
 0xffc   : > { %15884 = vmatprep.mubr.msk.bf16.mxu1 %vm369_vm0, %v20264_v23 }
0x1003   : > { %15885 = vmatmul.mubr.msk.bf16.gmra.mrb[72].mxu1 %vm369_vm0, %v20270_v55 }
0x1004   : > { %15892 = vmatprep.mubr.msk.bf16.mxu1 %vm369_vm0, %v11030_v59  ;;  %v11021_v59 = vld [vmem:[#allocation2 + $0x171] sm:$0xff] }
0x1005   : > { %v20322_v46 = vpack.c.bf16 %v11021_v59, %v11020_v62  ;;  %v17343_v62 = vld [vmem:[%s20727_s5 + $0x70] sm:$0xff]  }
0x1006   : > { %v11947_v59 = vld [vmem:[#allocation2 + $0x211] sm:$0xff] }
0x100b   : > { %15893 = vmatmul.mubr.msk.bf16.vlgmr.msra.gmra.mrb[44].mxu1 %vm369_vm0, %v20275_v63 }
0x100c   : > { %15896 = vmatprep.mubr.msk.bf16.mxu1 %vm369_vm0, %v20280_v18  ;;  %15925 = vmatpush3.bf16.msra.mxu1 %v20219_v27  ;;  %v11008_v27 = vld [vmem:[#allocation2 + $0xa9] sm:$0xff] }
0x100d   : > { %15926 = vmatprep.subr.bf16.mxu1 %v17336_v38  ;;  %v20298_v36 = vpack.c.bf16 %v11009_v40, %v11008_v27  ;;  %v20332_v27 = vpack.c.bf16 %v11027_v13, %v11026_v37  ;;  %v11028_v40 = vld [vmem:[#allocation2 + $0x1e9] sm:$0xff] }
0x100e   : > { %v20338_v26 = vpack.c.bf16 %v11029_v0, %v11028_v40 }
0x1010   : > { %15927 = vmatpush3.bf16.msra.mxu1 %v17336_v38  ;;  %v11024_v38 = vld [vmem:[#allocation2 + $0x1a9] sm:$0xff] }
0x1011   : > { %15960 = vmatprep.subr.bf16.mxu1 %v17337_v11  ;;  %v20330_v57 = vpack.c.bf16 %v11025_v2, %v11024_v38  ;;  %v17345_v38 = vld [vmem:[%s20727_s5 + $0x80] sm:$0xff]  }
0x1013   : > { %15897 = vmatmul.mubr.msk.bf16.gmra.mrb[48].mxu1 %vm369_vm0, %v20290_v24 }
0x1014   : > { %15900 = vmatprep.mubr.msk.bf16.mxu1 %vm369_vm0, %v20292_v8 }
0x101b   : > { %15901 = vmatmul.mubr.msk.bf16.gmra.mrb[52].mxu1 %vm369_vm0, %v20298_v36 }
0x101c   : > { %15904 = vmatprep.mubr.msk.bf16.mxu1 %vm369_vm0, %v20300_v58 }
0x1023   : > { %15905 = vmatmul.mubr.msk.bf16.gmra.mrb[56].mxu1 %vm369_vm0, %v20306_v30 }
0x1024   : > { %15908 = vmatprep.mubr.msk.bf16.mxu1 %vm369_vm0, %v20308_v56 }
0x102b   : > { %15909 = vmatmul.mubr.msk.bf16.gmra.mrb[60].mxu1 %vm369_vm0, %v20314_v17 }
0x102c   : > { %15912 = vmatprep.mubr.msk.bf16.mxu1 %vm369_vm0, %v20316_v35 }
0x1033   : > { %15913 = vmatmul.mubr.msk.bf16.gmra.mrb[64].mxu1 %vm369_vm0, %v20322_v46 }
0x1034   : > { %15916 = vmatprep.mubr.msk.bf16.mxu1 %vm369_vm0, %v20324_v60 }
0x103b   : > { %15917 = vmatmul.mubr.msk.bf16.gmra.mrb[68].mxu1 %vm369_vm0, %v20330_v57 }
0x103c   : > { %15920 = vmatprep.mubr.msk.bf16.mxu1 %vm369_vm0, %v20332_v27 }
0x1043   : > { %15921 = vmatmul.mubr.msk.bf16.gmra.mrb[72].mxu1 %vm369_vm0, %v20338_v26 }
0x1044   : > { %15928 = vmatprep.mubr.msk.bf16.mxu1 %vm369_vm0, %v20204_v15  ;;  %v11334_v15 = vld [vmem:[#allocation2 + $0x207] sm:$0xff] }
0x104b   : > { %15929 = vmatmul.mubr.msk.bf16.vlgmr.msra.gmra.mrb[44].mxu1 %vm369_vm0, %v20209_v25 }
0x104c   : > { %15932 = vmatprep.mubr.msk.bf16.mxu1 %vm369_vm0, %v20221_v52  ;;  %15961 = vmatpush3.bf16.msra.mxu1 %v17337_v11  ;;  %v11335_v11 = vld [vmem:[#allocation2 + $0x20f] sm:$0xff] }
0x104d   : > { %15962 = vmatprep.subr.bf16.mxu1 %v17338_v45  ;;  %v20378_v44 = vpack.c.bf16 %v11335_v11, %v11334_v15 }
0x1050   : > { %15963 = vmatpush3.bf16.msra.mxu1 %v17338_v45 }
0x1051   : > { %15996 = vmatprep.subr.bf16.mxu1 %v17339_v22 }
0x1053   : > { %15933 = vmatmul.mubr.msk.bf16.gmra.mrb[48].mxu1 %vm369_vm0, %v20224_v10 }
0x1054   : > { %15936 = vmatprep.mubr.msk.bf16.mxu1 %vm369_vm0, %v20230_v1 }
0x105b   : > { %15937 = vmatmul.mubr.msk.bf16.gmra.mrb[52].mxu1 %vm369_vm0, %v20232_v31 }
0x105c   : > { %15940 = vmatprep.mubr.msk.bf16.mxu1 %vm369_vm0, %v20238_v51 }
0x1063   : > { %15941 = vmatmul.mubr.msk.bf16.gmra.mrb[56].mxu1 %vm369_vm0, %v20240_v28 }
0x1064   : > { %15944 = vmatprep.mubr.msk.bf16.mxu1 %vm369_vm0, %v20246_v42 }
0x106b   : > { %15945 = vmatmul.mubr.msk.bf16.gmra.mrb[60].mxu1 %vm369_vm0, %v20248_v41 }
0x106c   : > { %15948 = vmatprep.mubr.msk.bf16.mxu1 %vm369_vm0, %v20254_v29 }
0x1073   : > { %15949 = vmatmul.mubr.msk.bf16.gmra.mrb[64].mxu1 %vm369_vm0, %v20256_v14 }
0x1074   : > { %15952 = vmatprep.mubr.msk.bf16.mxu1 %vm369_vm0, %v20262_v48 }
0x107b   : > { %15953 = vmatmul.mubr.msk.bf16.gmra.mrb[68].mxu1 %vm369_vm0, %v20264_v23 }
0x107c   : > { %15956 = vmatprep.mubr.msk.bf16.mxu1 %vm369_vm0, %v20270_v55 }
0x1083   : > { %15957 = vmatmul.mubr.msk.bf16.gmra.mrb[72].mxu1 %vm369_vm0, %v20378_v44 }
0x1084   : > { %15964 = vmatprep.mubr.msk.bf16.mxu1 %vm369_vm0, %v20133_v47  ;;  %v11640_v47 = vld [vmem:[#allocation2 + $0x208] sm:$0xff] }
0x1085   : > { %v20418_v34 = vpack.c.bf16 %v11641_v33, %v11640_v47 }
0x108b   : > { %15965 = vmatmul.mubr.msk.bf16.vlgmr.msra.gmra.mrb[44].mxu1 %vm369_vm0, %v20138_v61 }
0x108c   : > { %15968 = vmatprep.mubr.msk.bf16.mxu1 %vm369_vm0, %v20150_v9  ;;  %15997 = vmatpush3.bf16.msra.mxu1 %v17339_v22 }
0x108d   : > { %15998 = vmatprep.subr.bf16.mxu1 %v17340_v50 }
0x1090   : > { %15999 = vmatpush3.bf16.msra.mxu1 %v17340_v50 }
0x1091   : > { %16032 = vmatprep.subr.bf16.mxu1 %v17341_v19 }
0x1093   : > { %15969 = vmatmul.mubr.msk.bf16.gmra.mrb[48].mxu1 %vm369_vm0, %v20153_v16 }
0x1094   : > { %15972 = vmatprep.mubr.msk.bf16.mxu1 %vm369_vm0, %v20159_v21 }
0x109b   : > { %15973 = vmatmul.mubr.msk.bf16.gmra.mrb[52].mxu1 %vm369_vm0, %v20161_v49 }
0x109c   : > { %15976 = vmatprep.mubr.msk.bf16.mxu1 %vm369_vm0, %v20167_v7 }
0x10a3   : > { %15977 = vmatmul.mubr.msk.bf16.gmra.mrb[56].mxu1 %vm369_vm0, %v20169_v39 }
0x10a4   : > { %15980 = vmatprep.mubr.msk.bf16.mxu1 %vm369_vm0, %v20175_v53 }
0x10ab   : > { %15981 = vmatmul.mubr.msk.bf16.gmra.mrb[60].mxu1 %vm369_vm0, %v20177_v4 }
0x10ac   : > { %15984 = vmatprep.mubr.msk.bf16.mxu1 %vm369_vm0, %v20183_v3 }
0x10b3   : > { %15985 = vmatmul.mubr.msk.bf16.gmra.mrb[64].mxu1 %vm369_vm0, %v20185_v54 }
0x10b4   : > { %15988 = vmatprep.mubr.msk.bf16.mxu1 %vm369_vm0, %v20191_v12 }
0x10bb   : > { %15989 = vmatmul.mubr.msk.bf16.gmra.mrb[68].mxu1 %vm369_vm0, %v20193_v6 }
0x10bc   : > { %15992 = vmatprep.mubr.msk.bf16.mxu1 %vm369_vm0, %v20199_v43 }
0x10c3   : > { %15993 = vmatmul.mubr.msk.bf16.gmra.mrb[72].mxu1 %vm369_vm0, %v20418_v34 }
0x10c4   : > { %16000 = vmatprep.mubr.msk.bf16.mxu1 %vm369_vm0, %v20275_v63  ;;  %v11946_v63 = vld [vmem:[#allocation2 + $0x209] sm:$0xff] }
0x10c5   : > { %v20458_v20 = vpack.c.bf16 %v11947_v59, %v11946_v63 }
0x10cb   : > { %16001 = vmatmul.mubr.msk.bf16.vlgmr.msra.gmra.mrb[44].mxu1 %vm369_vm0, %v20280_v18 }
0x10cc   : > { %16004 = vmatprep.mubr.msk.bf16.mxu1 %vm369_vm0, %v20290_v24  ;;  %16033 = vmatpush3.bf16.msra.mxu1 %v17341_v19 }
0x10cd   : > { %16034 = vmatprep.subr.bf16.mxu1 %v17342_v5 }
0x10d0   : > { %16035 = vmatpush3.bf16.msra.mxu1 %v17342_v5 }
0x10d1   : > { %16068 = vmatprep.subr.bf16.mxu1 %v17343_v62 }
0x10d3   : > { %16005 = vmatmul.mubr.msk.bf16.gmra.mrb[48].mxu1 %vm369_vm0, %v20292_v8 }
0x10d4   : > { %16008 = vmatprep.mubr.msk.bf16.mxu1 %vm369_vm0, %v20298_v36 }
0x10db   : > { %16009 = vmatmul.mubr.msk.bf16.gmra.mrb[52].mxu1 %vm369_vm0, %v20300_v58 }
0x10dc   : > { %16012 = vmatprep.mubr.msk.bf16.mxu1 %vm369_vm0, %v20306_v30 }
0x10e3   : > { %16013 = vmatmul.mubr.msk.bf16.gmra.mrb[56].mxu1 %vm369_vm0, %v20308_v56 }
0x10e4   : > { %16016 = vmatprep.mubr.msk.bf16.mxu1 %vm369_vm0, %v20314_v17 }
0x10eb   : > { %16017 = vmatmul.mubr.msk.bf16.gmra.mrb[60].mxu1 %vm369_vm0, %v20316_v35 }
0x10ec   : > { %16020 = vmatprep.mubr.msk.bf16.mxu1 %vm369_vm0, %v20322_v46 }
0x10f3   : > { %16021 = vmatmul.mubr.msk.bf16.gmra.mrb[64].mxu1 %vm369_vm0, %v20324_v60 }
0x10f4   : > { %16024 = vmatprep.mubr.msk.bf16.mxu1 %vm369_vm0, %v20330_v57 }
0x10fb   : > { %16025 = vmatmul.mubr.msk.bf16.gmra.mrb[68].mxu1 %vm369_vm0, %v20332_v27 }
0x10fc   : > { %16028 = vmatprep.mubr.msk.bf16.mxu1 %vm369_vm0, %v20338_v26 }
0x1103   : > { %16029 = vmatmul.mubr.msk.bf16.gmra.mrb[72].mxu1 %vm369_vm0, %v20458_v20 }
0x1104   : > { %16036 = vmatprep.mubr.msk.bf16.mxu1 %vm369_vm0, %v20209_v25  ;;  %v12252_v25 = vld [vmem:[#allocation2 + $0x227] sm:$0xff] }
0x110b   : > { %16037 = vmatmul.mubr.msk.bf16.vlgmr.msra.gmra.mrb[44].mxu1 %vm369_vm0, %v20221_v52  ;;  %v12253_v52 = vld [vmem:[#allocation2 + $0x22f] sm:$0xff] }
0x110c   : > { %16040 = vmatprep.mubr.msk.bf16.mxu1 %vm369_vm0, %v20224_v10  ;;  %16069 = vmatpush3.bf16.msra.mxu1 %v17343_v62  ;;  %v12269_v10 = vpack.c.bf16 %v12253_v52, %v12252_v25 }
0x110d   : > { %16070 = vmatprep.subr.bf16.mxu1 %v17344_v32 }
0x1110   : > { %16071 = vmatpush3.bf16.msra.mxu1 %v17344_v32 }
0x1111   : > { %16104 = vmatprep.subr.bf16.mxu1 %v17345_v38 }
0x1113   : > { %16041 = vmatmul.mubr.msk.bf16.gmra.mrb[48].mxu1 %vm369_vm0, %v20230_v1  ;;  %v17346_v1 = vld [vmem:[%s20727_s5 + $0x88] sm:$0xff]  }
0x1114   : > { %16044 = vmatprep.mubr.msk.bf16.mxu1 %vm369_vm0, %v20232_v31 }
0x111b   : > { %16045 = vmatmul.mubr.msk.bf16.gmra.mrb[52].mxu1 %vm369_vm0, %v20238_v51 }
0x111c   : > { %16048 = vmatprep.mubr.msk.bf16.mxu1 %vm369_vm0, %v20240_v28 }
0x1123   : > { %16049 = vmatmul.mubr.msk.bf16.gmra.mrb[56].mxu1 %vm369_vm0, %v20246_v42 }
0x1124   : > { %16052 = vmatprep.mubr.msk.bf16.mxu1 %vm369_vm0, %v20248_v41 }
0x112b   : > { %16053 = vmatmul.mubr.msk.bf16.gmra.mrb[60].mxu1 %vm369_vm0, %v20254_v29 }
0x112c   : > { %16056 = vmatprep.mubr.msk.bf16.mxu1 %vm369_vm0, %v20256_v14 }
0x1133   : > { %16057 = vmatmul.mubr.msk.bf16.gmra.mrb[64].mxu1 %vm369_vm0, %v20262_v48 }
0x1134   : > { %16060 = vmatprep.mubr.msk.bf16.mxu1 %vm369_vm0, %v20264_v23 }
0x113b   : > { %16061 = vmatmul.mubr.msk.bf16.gmra.mrb[68].mxu1 %vm369_vm0, %v20270_v55 }
0x113c   : > { %16064 = vmatprep.mubr.msk.bf16.mxu1 %vm369_vm0, %v20378_v44 }
0x1143   : > { %16065 = vmatmul.mubr.msk.bf16.gmra.mrb[72].mxu1 %vm369_vm0, %v12269_v10 }
0x1144   : > { %16072 = vmatprep.mubr.msk.bf16.mxu1 %vm369_vm0, %v20138_v61  ;;  %v12558_v61 = vld [vmem:[#allocation2 + $0x228] sm:$0xff] }
0x114b   : > { %16073 = vmatmul.mubr.msk.bf16.vlgmr.msra.gmra.mrb[44].mxu1 %vm369_vm0, %v20150_v9  ;;  %v12559_v9 = vld [vmem:[#allocation2 + $0x230] sm:$0xff] }
0x114c   : > { %16076 = vmatprep.mubr.msk.bf16.mxu1 %vm369_vm0, %v20153_v16  ;;  %16105 = vmatpush3.bf16.msra.mxu1 %v17345_v38  ;;  %v12575_v16 = vpack.c.bf16 %v12559_v9, %v12558_v61 }
0x114d   : > { %16106 = vmatprep.subr.bf16.mxu1 %v17346_v1 }
0x1150   : > { %16107 = vmatpush3.bf16.msra.mxu1 %v17346_v1 }
0x1153   : > { %16077 = vmatmul.mubr.msk.bf16.gmra.mrb[48].mxu1 %vm369_vm0, %v20159_v21  ;;  %v12864_v21 = vld [vmem:[#allocation2 + $0x229] sm:$0xff] }
0x1154   : > { %16080 = vmatprep.mubr.msk.bf16.mxu1 %vm369_vm0, %v20161_v49  ;;  %v12865_v49 = vld [vmem:[#allocation2 + $0x231] sm:$0xff] }
0x115b   : > { %16081 = vmatmul.mubr.msk.bf16.gmra.mrb[52].mxu1 %vm369_vm0, %v20167_v7  ;;  %v12881_v7 = vpack.c.bf16 %v12865_v49, %v12864_v21 }
0x115c   : > { %16084 = vmatprep.mubr.msk.bf16.mxu1 %vm369_vm0, %v20169_v39  ;;  %v20569_v39 = vld [vmem:[%s20728_s6] ss:$0 sm:$0xff] }
0x1163   : > { %16085 = vmatmul.mubr.msk.bf16.gmra.mrb[56].mxu1 %vm369_vm0, %v20175_v53 }
0x1164   : > { %16088 = vmatprep.mubr.msk.bf16.mxu1 %vm369_vm0, %v20177_v4  ;;  %v20574_v4 = vld [vmem:[%s20728_s6 + $0x1] ss:$0 sm:$0xff] }
0x116b   : > { %16089 = vmatmul.mubr.msk.bf16.gmra.mrb[60].mxu1 %vm369_vm0, %v20183_v3 }
0x116c   : > { %16092 = vmatprep.mubr.msk.bf16.mxu1 %vm369_vm0, %v20185_v54 }
0x1173   : > { %16093 = vmatmul.mubr.msk.bf16.gmra.mrb[64].mxu1 %vm369_vm0, %v20191_v12 }
0x1174   : > { %16096 = vmatprep.mubr.msk.bf16.mxu1 %vm369_vm0, %v20193_v6 }
0x117b   : > { %16097 = vmatmul.mubr.msk.bf16.gmra.mrb[68].mxu1 %vm369_vm0, %v20199_v43 }
0x117c   : > { %16100 = vmatprep.mubr.msk.bf16.mxu1 %vm369_vm0, %v20418_v34 }
0x1183   : > { %16101 = vmatmul.mubr.msk.bf16.gmra.mrb[72].mxu1 %vm369_vm0, %v12575_v16 }
0x1184   : > { %16108 = vmatprep.mubr.msk.bf16.mxu1 %vm369_vm0, %v20280_v18 }
0x118b   : > { %16109 = vmatmul.mubr.msk.bf16.vlgmr.msra.gmra.mrb[44].mxu1 %vm369_vm0, %v20290_v24 }
0x118c   : > { %16112 = vmatprep.mubr.msk.bf16.mxu1 %vm369_vm0, %v20292_v8 }
0x1193   : > { %16113 = vmatmul.mubr.msk.bf16.gmra.mrb[48].mxu1 %vm369_vm0, %v20298_v36 }
0x1194   : > { %16116 = vmatprep.mubr.msk.bf16.mxu1 %vm369_vm0, %v20300_v58 }
0x119b   : > { %16117 = vmatmul.mubr.msk.bf16.gmra.mrb[52].mxu1 %vm369_vm0, %v20306_v30 }
0x119c   : > { %16120 = vmatprep.mubr.msk.bf16.mxu1 %vm369_vm0, %v20308_v56 }
0x11a3   : > { %16121 = vmatmul.mubr.msk.bf16.gmra.mrb[56].mxu1 %vm369_vm0, %v20314_v17 }
0x11a4   : > { %16124 = vmatprep.mubr.msk.bf16.mxu1 %vm369_vm0, %v20316_v35 }
0x11ab   : > { %16125 = vmatmul.mubr.msk.bf16.gmra.mrb[60].mxu1 %vm369_vm0, %v20322_v46 }
0x11ac   : > { %16128 = vmatprep.mubr.msk.bf16.mxu1 %vm369_vm0, %v20324_v60 }
0x11b3   : > { %16129 = vmatmul.mubr.msk.bf16.gmra.mrb[64].mxu1 %vm369_vm0, %v20330_v57 }
0x11b4   : > { %16132 = vmatprep.mubr.msk.bf16.mxu1 %vm369_vm0, %v20332_v27 }
0x11bb   : > { %16133 = vmatmul.mubr.msk.bf16.gmra.mrb[68].mxu1 %vm369_vm0, %v20338_v26 }
0x11bc   : > { %16136 = vmatprep.mubr.msk.bf16.mxu1 %vm369_vm0, %v20458_v20 }
0x11c3   : > { %16137 = vmatmul.mubr.msk.bf16.gmra.mrb[72].mxu1 %vm369_vm0, %v12881_v7 }
0x125e   : > { %v16110_v53 = vpop.f32.mrb[44].mxu1 }
0x125f   : > { %v13147_v3 = vadd.f32 %v16110_v53, %v20569_v39  ;;  %v12981_v54 = vpop.f32.mrb[45].mxu1 }
0x1260   : > { %v13145_v12 = vadd.f32 %v20569_v39, %v12981_v54  ;;  %v16111_v6 = vpop.f32.mrb[46].mxu1 }
0x1261   : > { %v13184_v43 = vmax.f32 %v13147_v3, %v20574_v4  ;;  %v13148_v31 = vadd.f32 %v16111_v6, %v20569_v39  ;;  %v12984_v51 = vpop.f32.mrb[47].mxu1 }
0x1262   : > { %v13182_v28 = vmax.f32 %v13145_v12, %v20574_v4  ;;  %v13146_v42 = vadd.f32 %v20569_v39, %v12984_v51 }
0x1263   : > { %13217 = vst.msk [vmem:[%s20580_s12 + $0x10] sm:$0xff] %vm13214_vm4, %v13184_v43  ;;  %v13185_v41 = vmax.f32 %v13148_v31, %v20574_v4 }
0x1264   : > { %13215 = vst.msk [vmem:[%s20580_s12] sm:$0xff] %vm13214_vm4, %v13182_v28  ;;  %v13183_v29 = vmax.f32 %v13146_v42, %v20574_v4 }
0x1265   : > { %13218 = vst.msk [vmem:[%s20580_s12 + $0x18] sm:$0xff] %vm13214_vm4, %v13185_v41 }
0x1266   : > { %13216 = vst.msk [vmem:[%s20580_s12 + $0x8] sm:$0xff] %vm13214_vm4, %v13183_v29  ;;  %v16114_v14 = vpop.f32.mrb[48].mxu1 }
0x1267   : > { %v13151_v48 = vadd.f32 %v16114_v14, %v20569_v39  ;;  %v12997_v23 = vpop.f32.mrb[49].mxu1 }
0x1268   : > { %v13149_v55 = vadd.f32 %v20569_v39, %v12997_v23  ;;  %v16115_v18 = vpop.f32.mrb[50].mxu1 }
0x1269   : > { %v13188_v24 = vmax.f32 %v13151_v48, %v20574_v4  ;;  %v13152_v8 = vadd.f32 %v16115_v18, %v20569_v39  ;;  %v13000_v36 = vpop.f32.mrb[51].mxu1 }
0x126a   : > { %v13186_v58 = vmax.f32 %v13149_v55, %v20574_v4  ;;  %v13150_v30 = vadd.f32 %v20569_v39, %v13000_v36 }
0x126b   : > { %13221 = vst.msk [vmem:[%s20580_s12 + $0x30] sm:$0xff] %vm13214_vm4, %v13188_v24  ;;  %v13189_v56 = vmax.f32 %v13152_v8, %v20574_v4 }
0x126c   : > { %13219 = vst.msk [vmem:[%s20580_s12 + $0x20] sm:$0xff] %vm13214_vm4, %v13186_v58  ;;  %v13187_v17 = vmax.f32 %v13150_v30, %v20574_v4 }
0x126d   : > { %13222 = vst.msk [vmem:[%s20580_s12 + $0x38] sm:$0xff] %vm13214_vm4, %v13189_v56 }
0x126e   : > { %13220 = vst.msk [vmem:[%s20580_s12 + $0x28] sm:$0xff] %vm13214_vm4, %v13187_v17  ;;  %v16118_v35 = vpop.f32.mrb[52].mxu1 }
0x126f   : > { %v13155_v46 = vadd.f32 %v16118_v35, %v20569_v39  ;;  %v13013_v60 = vpop.f32.mrb[53].mxu1 }
0x1270   : > { %v13153_v2 = vadd.f32 %v20569_v39, %v13013_v60  ;;  %v16119_v37 = vpop.f32.mrb[54].mxu1 }
0x1271   : > { %v13192_v13 = vmax.f32 %v13155_v46, %v20574_v4  ;;  %v13156_v57 = vadd.f32 %v16119_v37, %v20569_v39  ;;  %v13016_v27 = vpop.f32.mrb[55].mxu1 }
0x1272   : > { %v13190_v40 = vmax.f32 %v13153_v2, %v20574_v4  ;;  %v13154_v0 = vadd.f32 %v20569_v39, %v13016_v27 }
0x1273   : > { %13225 = vst.msk [vmem:[%s20580_s12 + $0x50] sm:$0xff] %vm13214_vm4, %v13192_v13  ;;  %v13193_v26 = vmax.f32 %v13156_v57, %v20574_v4 }
0x1274   : > { %13223 = vst.msk [vmem:[%s20580_s12 + $0x40] sm:$0xff] %vm13214_vm4, %v13190_v40  ;;  %v13191_v45 = vmax.f32 %v13154_v0, %v20574_v4 }
0x1275   : > { %13226 = vst.msk [vmem:[%s20580_s12 + $0x58] sm:$0xff] %vm13214_vm4, %v13193_v26 }
0x1276   : > { %13224 = vst.msk [vmem:[%s20580_s12 + $0x48] sm:$0xff] %vm13214_vm4, %v13191_v45  ;;  %v16122_v22 = vpop.f32.mrb[56].mxu1 }
0x1277   : > { %v13159_v15 = vadd.f32 %v16122_v22, %v20569_v39  ;;  %v13029_v11 = vpop.f32.mrb[57].mxu1 }
0x1278   : > { %v13157_v44 = vadd.f32 %v20569_v39, %v13029_v11  ;;  %v16123_v50 = vpop.f32.mrb[58].mxu1 }
0x1279   : > { %v13196_v19 = vmax.f32 %v13159_v15, %v20574_v4  ;;  %v13160_v47 = vadd.f32 %v16123_v50, %v20569_v39  ;;  %v13032_v33 = vpop.f32.mrb[59].mxu1 }
0x127a   : > { %v13194_v34 = vmax.f32 %v13157_v44, %v20574_v4  ;;  %v13158_v5 = vadd.f32 %v20569_v39, %v13032_v33 }
0x127b   : > { %13229 = vst.msk [vmem:[%s20580_s12 + $0x70] sm:$0xff] %vm13214_vm4, %v13196_v19  ;;  %v13197_v62 = vmax.f32 %v13160_v47, %v20574_v4 }
0x127c   : > { %13227 = vst.msk [vmem:[%s20580_s12 + $0x60] sm:$0xff] %vm13214_vm4, %v13194_v34  ;;  %v13195_v63 = vmax.f32 %v13158_v5, %v20574_v4 }
0x127d   : > { %13230 = vst.msk [vmem:[%s20580_s12 + $0x78] sm:$0xff] %vm13214_vm4, %v13197_v62 }
0x127e   : > { %13228 = vst.msk [vmem:[%s20580_s12 + $0x68] sm:$0xff] %vm13214_vm4, %v13195_v63  ;;  %v16126_v59 = vpop.f32.mrb[60].mxu1 }
0x127f   : > { %v13163_v20 = vadd.f32 %v16126_v59, %v20569_v39  ;;  %v13045_v32 = vpop.f32.mrb[61].mxu1 }
0x1280   : > { %v13161_v38 = vadd.f32 %v20569_v39, %v13045_v32  ;;  %v16127_v25 = vpop.f32.mrb[62].mxu1 }
0x1281   : > { %v13200_v52 = vmax.f32 %v13163_v20, %v20574_v4  ;;  %v13164_v10 = vadd.f32 %v16127_v25, %v20569_v39  ;;  %v13048_v1 = vpop.f32.mrb[63].mxu1 }
0x1282   : > { %v13198_v61 = vmax.f32 %v13161_v38, %v20574_v4  ;;  %v13162_v9 = vadd.f32 %v20569_v39, %v13048_v1 }
0x1283   : > { %13233 = vst.msk [vmem:[%s20580_s12 + $0x90] sm:$0xff] %vm13214_vm4, %v13200_v52  ;;  %v13201_v16 = vmax.f32 %v13164_v10, %v20574_v4 }
0x1284   : > { %13231 = vst.msk [vmem:[%s20580_s12 + $0x80] sm:$0xff] %vm13214_vm4, %v13198_v61  ;;  %v13199_v21 = vmax.f32 %v13162_v9, %v20574_v4 }
0x1285   : > { %13234 = vst.msk [vmem:[%s20580_s12 + $0x98] sm:$0xff] %vm13214_vm4, %v13201_v16 }
0x1286   : > { %13232 = vst.msk [vmem:[%s20580_s12 + $0x88] sm:$0xff] %vm13214_vm4, %v13199_v21  ;;  %v16130_v49 = vpop.f32.mrb[64].mxu1 }
0x1287   : > { %v13167_v7 = vadd.f32 %v16130_v49, %v20569_v39  ;;  %v13061_v53 = vpop.f32.mrb[65].mxu1 }
0x1288   : > { %v13165_v3 = vadd.f32 %v20569_v39, %v13061_v53  ;;  %v16131_v54 = vpop.f32.mrb[66].mxu1 }
0x1289   : > { %v13204_v12 = vmax.f32 %v13167_v7, %v20574_v4  ;;  %v13168_v6 = vadd.f32 %v16131_v54, %v20569_v39  ;;  %v13064_v43 = vpop.f32.mrb[67].mxu1 }
0x128a   : > { %v13202_v31 = vmax.f32 %v13165_v3, %v20574_v4  ;;  %v13166_v51 = vadd.f32 %v20569_v39, %v13064_v43 }
0x128b   : > { %13237 = vst.msk [vmem:[%s20580_s12 + $0xb0] sm:$0xff] %vm13214_vm4, %v13204_v12  ;;  %v13205_v28 = vmax.f32 %v13168_v6, %v20574_v4 }
0x128c   : > { %13235 = vst.msk [vmem:[%s20580_s12 + $0xa0] sm:$0xff] %vm13214_vm4, %v13202_v31  ;;  %v13203_v42 = vmax.f32 %v13166_v51, %v20574_v4 }
0x128d   : > { %13238 = vst.msk [vmem:[%s20580_s12 + $0xb8] sm:$0xff] %vm13214_vm4, %v13205_v28 }
0x128e   : > { %13236 = vst.msk [vmem:[%s20580_s12 + $0xa8] sm:$0xff] %vm13214_vm4, %v13203_v42  ;;  %v16134_v41 = vpop.f32.mrb[68].mxu1 }
0x128f   : > { %v13171_v29 = vadd.f32 %v16134_v41, %v20569_v39  ;;  %v13077_v14 = vpop.f32.mrb[69].mxu1 }
0x1290   : > { %v13169_v48 = vadd.f32 %v20569_v39, %v13077_v14  ;;  %v16135_v23 = vpop.f32.mrb[70].mxu1 }
0x1291   : > { %v13208_v55 = vmax.f32 %v13171_v29, %v20574_v4  ;;  %v13172_v18 = vadd.f32 %v16135_v23, %v20569_v39  ;;  %v13080_v24 = vpop.f32.mrb[71].mxu1 }
0x1292   : > { %v13206_v8 = vmax.f32 %v13169_v48, %v20574_v4  ;;  %v13170_v36 = vadd.f32 %v20569_v39, %v13080_v24 }
0x1293   : > { %13241 = vst.msk [vmem:[%s20580_s12 + $0xd0] sm:$0xff] %vm13214_vm4, %v13208_v55  ;;  %v13209_v58 = vmax.f32 %v13172_v18, %v20574_v4 }
0x1294   : > { %13239 = vst.msk [vmem:[%s20580_s12 + $0xc0] sm:$0xff] %vm13214_vm4, %v13206_v8  ;;  %v13207_v30 = vmax.f32 %v13170_v36, %v20574_v4 }
0x1295   : > { %13242 = vst.msk [vmem:[%s20580_s12 + $0xd8] sm:$0xff] %vm13214_vm4, %v13209_v58 }
0x1296   : > { %13240 = vst.msk [vmem:[%s20580_s12 + $0xc8] sm:$0xff] %vm13214_vm4, %v13207_v30  ;;  %v16138_v56 = vpop.f32.mrb[72].mxu1 }
0x1297   : > { %v13175_v17 = vadd.f32 %v16138_v56, %v20569_v39  ;;  %v13093_v35 = vpop.f32.mrb[73].mxu1 }
0x1298   : > { %v13173_v46 = vadd.f32 %v20569_v39, %v13093_v35  ;;  %v16139_v60 = vpop.f32.mrb[74].mxu1 }
0x1299   : > { %v13212_v2 = vmax.f32 %v13175_v17, %v20574_v4  ;;  %v13176_v37 = vadd.f32 %v16139_v60, %v20569_v39  ;;  %v13096_v13 = vpop.f32.mrb[75].mxu1 }
0x129a   : > { %v13210_v57 = vmax.f32 %v13173_v46, %v20574_v4  ;;  %v13174_v27 = vadd.f32 %v20569_v39, %v13096_v13 }
0x129b   : > { %13245 = vst.msk [vmem:[%s20580_s12 + $0xf0] sm:$0xff] %vm13214_vm4, %v13212_v2  ;;  %v13213_v40 = vmax.f32 %v13176_v37, %v20574_v4 }
0x129c   : > { %13243 = vst.msk [vmem:[%s20580_s12 + $0xe0] sm:$0xff] %vm13214_vm4, %v13210_v57  ;;  %v13211_v0 = vmax.f32 %v13174_v27, %v20574_v4 }
0x129d   : > { %13246 = vst.msk [vmem:[%s20580_s12 + $0xf8] sm:$0xff] %vm13214_vm4, %v13213_v40 }
0x129e   : > { %13244 = vst.msk [vmem:[%s20580_s12 + $0xe8] sm:$0xff] %vm13214_vm4, %v13211_v0 }
0x129f PF: > { %s20746_s12 = sld [smem:[#allocation9_spill]]  ;;  %s20747_s30 = smov %s17441_s10 }
0x12a0   : > { %s20748_s10 = smov %s17445_s11  ;;  %s20749_s11 = smov %s17580_s24 }
0x12a5   : > { %p20_p8 = scmp.ge.s32.totalorder %s20746_s12, 4  }
0x12a7   :  { %22 = sbr.rel (!%p20_p8) target bundleno = 4 (0x4), region = 142 }
0x12ae   :  { %13268 = vsyncpa [#allocation4], 1 }
0x12af   :  { %13270 = vsyncpa [#allocation4 + $0x1], 1 }
0x12b0   :  { %13271 = vsyncpa [#allocation6], 1 }

</bundles_post_ra>
